<compile_context>
chip_gen: v7x
topology: tpu7x:2x2x1
jax: 0.10.0
libtpu: 0.0.40
codegen_flags: <defaults>
</compile_context>

<pallas_src>
import math
import functools

import jax
import jax.numpy as jnp
from jax import lax
from jax.experimental import pallas as pl
from jax.experimental.pallas import tpu as pltpu

# Keep the pure-JAX reference matmuls (and the traced in-kernel dots) in full
# f32 so the 1e-4 check is meaningful.
jax.config.update("jax_default_matmul_precision", "highest")


def _layernorm(x, gamma, beta, eps=1e-5):
    mu = jnp.mean(x, axis=-1, keepdims=True)
    var = jnp.mean((x - mu) ** 2, axis=-1, keepdims=True)
    return (x - mu) * lax.rsqrt(var + eps) * gamma + beta


def _round_up(x, m):
    return ((x + m - 1) // m) * m


# ----------------------------- fused kernel ----------------------------------

# bias-slab row layout (per layer): 0 bq, 1 bkv, 2 bo, 3 g1, 4 be1, 5 b1,
#                                   6 b2, 7 g2, 8 be2
_NB = 9


def enc_dec_combine_kernel(enc_ref, dec_ref, wq_ref, wkv_ref, wo_ref, w1_ref,
                           w2_ref, b_ref, vw_ref, vb_ref, out_ref, dec_sc,
                           *, B, T_enc, T_dec, num_heads, head_dim, HP, E, Dd):
    """One grid step == one combine layer. dec stream is carried in dec_sc."""
    EP = num_heads * HP
    l = pl.program_id(0)

    @pl.when(l == 0)
    def _():
        dec_sc[...] = dec_ref[...]

    enc = enc_ref[...]                      # [B*T_enc, De]   (resident, layer-invariant)
    dec = dec_sc[...]                       # [B*T_dec, Dd]   (carried across layers)

    wq = wq_ref[0]                          # [Dd, EP]   (scale folded in, head-padded)
    wkv = wkv_ref[0]                        # [De, 2*EP] (fused K|V, head-padded)
    wo = wo_ref[0]                          # [EP, Dd]   (head-padded rows)
    w1 = w1_ref[0]                          # [Dd, E]
    w2 = w2_ref[0]                          # [E, Dd]
    b = b_ref[0]                            # [_NB, BC]  packed bias/gamma/beta rows
    bq, bkv = b[0:1, :EP], b[1:2, :2 * EP]
    bo, g1, be1 = b[2:3, :Dd], b[3:4, :Dd], b[4:5, :Dd]
    b1 = b[5:6, :E]
    b2, g2, be2 = b[6:7, :Dd], b[7:8, :Dd], b[8:9, :Dd]

    # Projections on the full flattened slabs (one wide MXU pass each).
    q = jnp.dot(dec, wq, preferred_element_type=jnp.float32) + bq      # [B*Td, EP]
    kv = jnp.dot(enc, wkv, preferred_element_type=jnp.float32) + bkv   # [B*Te, 2*EP]

    # Per-(batch, head) attention: lane-tile-aligned head slices, and the head
    # output is folded straight through wo into a [T_dec, Dd] accumulator
    # (no attention scratch, no masked partial stores).
    attn_blocks = []
    for bi in range(B):
        qr = slice(bi * T_dec, (bi + 1) * T_dec)
        kr = slice(bi * T_enc, (bi + 1) * T_enc)
        acc = jnp.zeros((T_dec, Dd), jnp.float32)
        for h in range(num_heads):
            c0 = h * HP
            qh = q[qr, c0:c0 + HP]                      # [Td, HP] (padded lanes are 0)
            kh = kv[kr, c0:c0 + HP]                     # [Te, HP]
            vh = kv[kr, EP + c0:EP + c0 + HP]           # [Te, HP]
            # scores = qh @ kh.T (contract last dims; padded lanes contribute 0)
            s = lax.dot_general(qh, kh, (((1,), (1,)), ((), ())),
                                preferred_element_type=jnp.float32)     # [Td, Te]
            s = s - jnp.max(s, axis=-1, keepdims=True)
            p = jnp.exp(s)
            denom = jnp.sum(p, axis=-1, keepdims=True)
            r = pl.reciprocal(denom, approx=True)       # EUP vrcp ...
            r = r * (2.0 - denom * r)                   # ... + one Newton step
            p = p * r
            pv = jnp.dot(p, vh, preferred_element_type=jnp.float32)     # [Td, HP]
            acc = acc + jnp.dot(pv, wo[c0:c0 + HP, :],
                                preferred_element_type=jnp.float32)     # [Td, Dd]
        attn_blocks.append(acc)
    attn = jnp.concatenate(attn_blocks, axis=0) + bo    # [B*Td, Dd]

    # Residual + LayerNorm (attention), feed-forward, residual + LayerNorm.
    d1 = _layernorm(dec + attn, g1, be1)
    f = jnp.dot(d1, w1, preferred_element_type=jnp.float32) + b1
    f = jnp.maximum(f, 0.0)
    f = jnp.dot(f, w2, preferred_element_type=jnp.float32) + b2
    d2 = _layernorm(d1 + f, g2, be2)
    dec_sc[...] = d2

    # Final vocab head (lane-dense padded output) only on the last layer.
    @pl.when(l == pl.num_programs(0) - 1)
    def _():
        out_ref[...] = (jnp.dot(d2, vw_ref[...], preferred_element_type=jnp.float32)
                        + vb_ref[...])


# ----------------------------- wrapper ----------------------------------------


def enc_dec_combine_forward(out_enc, out_dec, params, num_heads):
    B, T_enc, De = out_enc.shape
    B2, T_dec, Dd = out_dec.shape
    assert B == B2
    layers = params["layers"]
    L = len(layers)
    E = layers[0]["wq"].shape[1]
    head_dim = E // num_heads
    HP = _round_up(head_dim, 128)            # lane-tile-aligned per-head width
    EP = num_heads * HP
    V = params["vocab_w"].shape[1]
    VP = _round_up(V, 128)                   # lane-dense vocab-head store
    BC = _round_up(max(2 * EP, Dd, E), 128)  # bias-slab lane width
    scale = 1.0 / math.sqrt(head_dim)

    def pad_cols(w):   # [in, E] -> [in, EP]; head h -> lanes [h*HP, h*HP+head_dim)
        w3 = w.reshape(w.shape[0], num_heads, head_dim)
        return jnp.pad(w3, ((0, 0), (0, 0), (0, HP - head_dim))).reshape(w.shape[0], EP)

    def pad_rows(w):   # [E, out] -> [EP, out]; head h -> rows [h*HP, h*HP+head_dim)
        w3 = w.reshape(num_heads, head_dim, w.shape[1])
        return jnp.pad(w3, ((0, 0), (0, HP - head_dim), (0, 0))).reshape(EP, w.shape[1])

    def brow(v):       # [1, w] -> [1, BC]
        return jnp.pad(v, ((0, 0), (0, BC - v.shape[1])))

    wq_s, wkv_s, wo_s, w1_s, w2_s, b_s = [], [], [], [], [], []
    for lp in layers:
        wq_s.append(pad_cols(lp["wq"] * scale))          # fold 1/sqrt(hd) into Q
        wkv_s.append(jnp.concatenate([pad_cols(lp["wk"]), pad_cols(lp["wv"])], axis=1))
        wo_s.append(pad_rows(lp["wo"]))
        w1_s.append(lp["w1"])
        w2_s.append(lp["w2"])
        b_s.append(jnp.concatenate([
            brow(pad_cols(lp["bq"] * scale)),
            brow(jnp.concatenate([pad_cols(lp["bk"]), pad_cols(lp["bv"])], axis=1)),
            brow(lp["bo"]), brow(lp["g1"]), brow(lp["be1"]),
            brow(lp["b1"]), brow(lp["b2"]), brow(lp["g2"]), brow(lp["be2"])],
            axis=0))
    wq_s = jnp.stack(wq_s)       # [L, Dd, EP]
    wkv_s = jnp.stack(wkv_s)     # [L, De, 2*EP]
    wo_s = jnp.stack(wo_s)       # [L, EP, Dd]
    w1_s = jnp.stack(w1_s)       # [L, Dd, E]
    w2_s = jnp.stack(w2_s)       # [L, E, Dd]
    b_s = jnp.stack(b_s)         # [L, _NB, BC]

    vw_p = jnp.pad(params["vocab_w"], ((0, 0), (0, VP - V)))
    vb_p = jnp.pad(params["vocab_b"], ((0, 0), (0, VP - V)))

    enc2d = out_enc.astype(jnp.float32).reshape(B * T_enc, De)
    dec2d = out_dec.astype(jnp.float32).reshape(B * T_dec, Dd)

    kernel = functools.partial(
        enc_dec_combine_kernel, B=B, T_enc=T_enc, T_dec=T_dec,
        num_heads=num_heads, head_dim=head_dim, HP=HP, E=E, Dd=Dd)

    in_specs = [
        pl.BlockSpec((B * T_enc, De), lambda l: (0, 0)),       # enc (layer-invariant)
        pl.BlockSpec((B * T_dec, Dd), lambda l: (0, 0)),       # dec (read only at l==0)
        pl.BlockSpec((1, Dd, EP), lambda l: (l, 0, 0)),        # wq
        pl.BlockSpec((1, De, 2 * EP), lambda l: (l, 0, 0)),    # wkv
        pl.BlockSpec((1, EP, Dd), lambda l: (l, 0, 0)),        # wo
        pl.BlockSpec((1, Dd, E), lambda l: (l, 0, 0)),         # w1
        pl.BlockSpec((1, E, Dd), lambda l: (l, 0, 0)),         # w2
        pl.BlockSpec((1, _NB, BC), lambda l: (l, 0, 0)),       # packed biases
        pl.BlockSpec((Dd, VP), lambda l: (0, 0)),              # vocab_w
        pl.BlockSpec((1, VP), lambda l: (0, 0)),               # vocab_b
    ]
    args = [enc2d, dec2d, wq_s, wkv_s, wo_s, w1_s, w2_s, b_s, vw_p, vb_p]

    # Advisory cost estimate for the XLA scheduler (the call is launch bound).
    mm_flops = L * (2 * B * T_dec * Dd * EP                 # Q projection
                    + 2 * B * T_enc * De * 2 * EP           # fused K/V projection
                    + 4 * B * num_heads * T_dec * T_enc * HP  # QK^T + P.V
                    + 2 * B * T_dec * EP * Dd               # (p@v) @ wo
                    + 2 * B * T_dec * Dd * E                # FF1
                    + 2 * B * T_dec * E * Dd)               # FF2
    mm_flops += 2 * B * T_dec * Dd * VP                     # vocab head
    transcendentals = L * (B * num_heads * T_dec * T_enc    # softmax exp
                           + 2 * B * T_dec)                 # rsqrt per LayerNorm row
    bytes_accessed = sum(int(a.size) * 4 for a in args) + B * T_dec * VP * 4

    out2d = pl.pallas_call(
        kernel,
        out_shape=jax.ShapeDtypeStruct((B * T_dec, VP), jnp.float32),
        grid=(L,),
        in_specs=in_specs,
        out_specs=pl.BlockSpec((B * T_dec, VP), lambda l: (0, 0)),
        scratch_shapes=[pltpu.VMEM((B * T_dec, Dd), jnp.float32)],   # carried dec
        compiler_params=pltpu.CompilerParams(dimension_semantics=("arbitrary",)),
        cost_estimate=pl.CostEstimate(flops=mm_flops,
                                      transcendentals=transcendentals,
                                      bytes_accessed=bytes_accessed),
    )(*args)
    return out2d[:, :V].reshape(B, T_dec, V)


# ----------------------------- reference (pure JAX) ----------------------------


def enc_dec_combine_ref(out_enc, out_dec, params, num_heads):
    B, T_enc, _ = out_enc.shape
    _, T_dec, _ = out_dec.shape
    e = out_enc.astype(jnp.float32)
    d = out_dec.astype(jnp.float32)
    for lp in params["layers"]:
        E = lp["wq"].shape[1]
        hd = E // num_heads
        q = d @ lp["wq"] + lp["bq"]
        k = e @ lp["wk"] + lp["bk"]
        v = e @ lp["wv"] + lp["bv"]
        q = q.reshape(B, T_dec, num_heads, hd).transpose(0, 2, 1, 3)
        k = k.reshape(B, T_enc, num_heads, hd).transpose(0, 2, 1, 3)
        v = v.reshape(B, T_enc, num_heads, hd).transpose(0, 2, 1, 3)
        s = jnp.einsum("bhqd,bhkd->bhqk", q, k) / math.sqrt(hd)
        p = jax.nn.softmax(s, axis=-1)
        a = jnp.einsum("bhqk,bhkd->bhqd", p, v).transpose(0, 2, 1, 3).reshape(B, T_dec, E)
        a = a @ lp["wo"] + lp["bo"]
        d = _layernorm(d + a, lp["g1"], lp["be1"])
        f = jnp.maximum(d @ lp["w1"] + lp["b1"], 0.0)
        f = f @ lp["w2"] + lp["b2"]
        d = _layernorm(d + f, lp["g2"], lp["be2"])
    return d @ params["vocab_w"] + params["vocab_b"]


# ----------------------------- params ------------------------------------------


def init_params(key, enc_emb_dim, dec_emb_dim, transformer_emb_dim, vocab_size, n_layers):
    def lin(k, fan_in, fan_out):
        kw, kb = jax.random.split(k)
        w = jax.random.normal(kw, (fan_in, fan_out), jnp.float32) * 0.05
        b = jax.random.normal(kb, (1, fan_out), jnp.float32) * 0.05
        return w, b

    keys = jax.random.split(key, n_layers + 1)
    layers = []
    for i in range(n_layers):
        lk = jax.random.split(keys[i], 6)
        wq, bq = lin(lk[0], dec_emb_dim, transformer_emb_dim)
        wk, bk = lin(lk[1], enc_emb_dim, transformer_emb_dim)
        wv, bv = lin(lk[2], enc_emb_dim, transformer_emb_dim)
        wo, bo = lin(lk[3], transformer_emb_dim, dec_emb_dim)
        w1, b1 = lin(lk[4], dec_emb_dim, transformer_emb_dim)
        w2, b2 = lin(lk[5], transformer_emb_dim, dec_emb_dim)
        layers.append(dict(
            wq=wq, bq=bq, wk=wk, bk=bk, wv=wv, bv=bv, wo=wo, bo=bo,
            g1=jnp.ones((1, dec_emb_dim), jnp.float32),
            be1=jnp.zeros((1, dec_emb_dim), jnp.float32),
            w1=w1, b1=b1, w2=w2, b2=b2,
            g2=jnp.ones((1, dec_emb_dim), jnp.float32),
            be2=jnp.zeros((1, dec_emb_dim), jnp.float32),
        ))
    vw, vb = lin(keys[n_layers], dec_emb_dim, vocab_size)
    return dict(layers=layers, vocab_w=vw, vocab_b=vb)


# ----------------------------- main ---------------------------------------------

if __name__ == "__main__":
    # Enc_Dec_Combine(vocab_size=64, enc_emb_dim=32, dec_emb_dim=32,
    #                 transformer_emb_dim=64, transformer_heads=4,
    #                 transfrmer_final_att_layers=2)
    B, T_enc, T_dec = 2, 16, 8
    enc_emb_dim, dec_emb_dim, transformer_emb_dim = 32, 32, 64
    heads, n_layers, vocab_size = 4, 2, 64

    key = jax.random.PRNGKey(0)
    k_enc, k_dec, k_p = jax.random.split(key, 3)
    out_enc = jax.random.normal(k_enc, (B, T_enc, enc_emb_dim), jnp.float32)
    out_dec = jax.random.normal(k_dec, (B, T_dec, dec_emb_dim), jnp.float32)
    params = init_params(k_p, enc_emb_dim, dec_emb_dim, transformer_emb_dim,
                         vocab_size, n_layers)

    fwd = jax.jit(functools.partial(enc_dec_combine_forward, num_heads=heads))
    logits = fwd(out_enc, out_dec, params)
    logits = jax.block_until_ready(logits)

    ref = enc_dec_combine_ref(out_enc, out_dec, params, heads)
    assert logits.shape == (B, T_dec, vocab_size)
    assert jnp.allclose(logits, ref, atol=1e-4, rtol=1e-4), "mismatch vs JAX reference"

    print("KERNEL_OK")
</pallas_src>

<mosaic_0001>
module attributes {stable_mosaic.version = 11 : i64} {
  func.func @enc_dec_combine_kernel(%arg0: i32, %arg1: memref<32x32xf32, #tpu.memory_space<vmem>>, %arg2: memref<16x32xf32, #tpu.memory_space<vmem>>, %arg3: memref<1x32x512xf32, #tpu.memory_space<vmem>>, %arg4: memref<1x32x1024xf32, #tpu.memory_space<vmem>>, %arg5: memref<1x512x32xf32, #tpu.memory_space<vmem>>, %arg6: memref<1x32x64xf32, #tpu.memory_space<vmem>>, %arg7: memref<1x64x32xf32, #tpu.memory_space<vmem>>, %arg8: memref<1x9x1024xf32, #tpu.memory_space<vmem>>, %arg9: memref<32x128xf32, #tpu.memory_space<vmem>>, %arg10: memref<1x128xf32, #tpu.memory_space<vmem>>, %arg11: memref<16x128xf32, #tpu.memory_space<vmem>>, %arg12: memref<16x32xf32, #tpu.memory_space<vmem>>) attributes {dimension_semantics = [#tpu.dimension_semantics<arbitrary>], iteration_bounds = array<i64: 2>, scalar_prefetch = 0 : i64, scratch_operands = 1 : i64, tpu.core_type = #tpu.core_type<tc>, window_params = [{pipeline_mode = #tpu.pipeline_mode<synchronous>, transform_indices = @transform_0, window_bounds = array<i64: 32, 32>}, {pipeline_mode = #tpu.pipeline_mode<synchronous>, transform_indices = @transform_1, window_bounds = array<i64: 16, 32>}, {transform_indices = @transform_2, window_bounds = array<i64: 1, 32, 512>}, {transform_indices = @transform_3, window_bounds = array<i64: 1, 32, 1024>}, {transform_indices = @transform_4, window_bounds = array<i64: 1, 512, 32>}, {transform_indices = @transform_5, window_bounds = array<i64: 1, 32, 64>}, {transform_indices = @transform_6, window_bounds = array<i64: 1, 64, 32>}, {transform_indices = @transform_7, window_bounds = array<i64: 1, 9, 1024>}, {pipeline_mode = #tpu.pipeline_mode<synchronous>, transform_indices = @transform_8, window_bounds = array<i64: 32, 128>}, {pipeline_mode = #tpu.pipeline_mode<synchronous>, transform_indices = @transform_9, window_bounds = array<i64: 1, 128>}, {pipeline_mode = #tpu.pipeline_mode<synchronous>, transform_indices = @transform_10, window_bounds = array<i64: 16, 128>}]} {
    %c0_i32 = arith.constant 0 : i32
    %0 = arith.cmpi eq, %arg0, %c0_i32 : i32
    %1 = arith.extui %0 : i1 to i32
    %c0_i32_0 = arith.constant 0 : i32
    %2 = arith.cmpi ne, %1, %c0_i32_0 : i32
    scf.if %2 {
      %c0_89 = arith.constant 0 : index
      %c0_90 = arith.constant 0 : index
      %271 = vector.load %arg2[%c0_89, %c0_90] : memref<16x32xf32, #tpu.memory_space<vmem>>, vector<16x32xf32>
      %c0_91 = arith.constant 0 : index
      %c0_92 = arith.constant 0 : index
      %272 = vector.load %arg12[%c0_91, %c0_92] : memref<16x32xf32, #tpu.memory_space<vmem>>, vector<16x32xf32>
      tpu.vector_store %arg12[%c0_91, %c0_92], %271 {strides = array<i32>} : memref<16x32xf32, #tpu.memory_space<vmem>>, vector<16x32xf32>,
    } else {
    }
    %c0 = arith.constant 0 : index
    %c0_1 = arith.constant 0 : index
    %3 = vector.load %arg1[%c0, %c0_1] : memref<32x32xf32, #tpu.memory_space<vmem>>, vector<32x32xf32>
    %c0_2 = arith.constant 0 : index
    %c0_3 = arith.constant 0 : index
    %4 = vector.load %arg12[%c0_2, %c0_3] : memref<16x32xf32, #tpu.memory_space<vmem>>, vector<16x32xf32>
    %c0_4 = arith.constant 0 : index
    %c0_5 = arith.constant 0 : index
    %c0_6 = arith.constant 0 : index
    %5 = vector.load %arg3[%c0_4, %c0_5, %c0_6] : memref<1x32x512xf32, #tpu.memory_space<vmem>>, vector<1x32x512xf32>
    %6 = vector.shape_cast %5 : vector<1x32x512xf32> to vector<32x512xf32>
    %c0_7 = arith.constant 0 : index
    %c0_8 = arith.constant 0 : index
    %c0_9 = arith.constant 0 : index
    %7 = vector.load %arg4[%c0_7, %c0_8, %c0_9] : memref<1x32x1024xf32, #tpu.memory_space<vmem>>, vector<1x32x1024xf32>
    %8 = vector.shape_cast %7 : vector<1x32x1024xf32> to vector<32x1024xf32>
    %c0_10 = arith.constant 0 : index
    %c0_11 = arith.constant 0 : index
    %c0_12 = arith.constant 0 : index
    %9 = vector.load %arg5[%c0_10, %c0_11, %c0_12] : memref<1x512x32xf32, #tpu.memory_space<vmem>>, vector<1x512x32xf32>
    %10 = vector.shape_cast %9 : vector<1x512x32xf32> to vector<512x32xf32>
    %c0_13 = arith.constant 0 : index
    %c0_14 = arith.constant 0 : index
    %c0_15 = arith.constant 0 : index
    %11 = vector.load %arg6[%c0_13, %c0_14, %c0_15] : memref<1x32x64xf32, #tpu.memory_space<vmem>>, vector<1x32x64xf32>
    %12 = vector.shape_cast %11 : vector<1x32x64xf32> to vector<32x64xf32>
    %c0_16 = arith.constant 0 : index
    %c0_17 = arith.constant 0 : index
    %c0_18 = arith.constant 0 : index
    %13 = vector.load %arg7[%c0_16, %c0_17, %c0_18] : memref<1x64x32xf32, #tpu.memory_space<vmem>>, vector<1x64x32xf32>
    %14 = vector.shape_cast %13 : vector<1x64x32xf32> to vector<64x32xf32>
    %c0_19 = arith.constant 0 : index
    %c0_20 = arith.constant 0 : index
    %c0_21 = arith.constant 0 : index
    %15 = vector.load %arg8[%c0_19, %c0_20, %c0_21] : memref<1x9x1024xf32, #tpu.memory_space<vmem>>, vector<1x9x1024xf32>
    %16 = vector.shape_cast %15 : vector<1x9x1024xf32> to vector<9x1024xf32>
    %17 = vector.extract_strided_slice %16 {offsets = [0, 0], sizes = [1, 512], strides = [1, 1]} : vector<9x1024xf32> to vector<1x512xf32>
    %18 = vector.extract_strided_slice %16 {offsets = [1, 0], sizes = [1, 1024], strides = [1, 1]} : vector<9x1024xf32> to vector<1x1024xf32>
    %19 = vector.extract_strided_slice %16 {offsets = [2, 0], sizes = [1, 32], strides = [1, 1]} : vector<9x1024xf32> to vector<1x32xf32>
    %20 = vector.extract_strided_slice %16 {offsets = [3, 0], sizes = [1, 32], strides = [1, 1]} : vector<9x1024xf32> to vector<1x32xf32>
    %21 = vector.extract_strided_slice %16 {offsets = [4, 0], sizes = [1, 32], strides = [1, 1]} : vector<9x1024xf32> to vector<1x32xf32>
    %22 = vector.extract_strided_slice %16 {offsets = [5, 0], sizes = [1, 64], strides = [1, 1]} : vector<9x1024xf32> to vector<1x64xf32>
    %23 = vector.extract_strided_slice %16 {offsets = [6, 0], sizes = [1, 32], strides = [1, 1]} : vector<9x1024xf32> to vector<1x32xf32>
    %24 = vector.extract_strided_slice %16 {offsets = [7, 0], sizes = [1, 32], strides = [1, 1]} : vector<9x1024xf32> to vector<1x32xf32>
    %25 = vector.extract_strided_slice %16 {offsets = [8, 0], sizes = [1, 32], strides = [1, 1]} : vector<9x1024xf32> to vector<1x32xf32>
    %cst = arith.constant dense<0.000000e+00> : vector<16x512xf32>
    %26 = tpu.matmul %4, %6, %cst {dimension_numbers = #tpu.dot_dimension_numbers<[1], [0], [0], [1], [0, 0, 1, 1], [], []>, precision = #tpu.contract_precision<fp32>} : vector<16x32xf32>, vector<32x512xf32>, vector<16x512xf32> -> vector<16x512xf32>
    %27 = vector.broadcast %17 : vector<1x512xf32> to vector<16x512xf32>
    %28 = arith.addf %26, %27 : vector<16x512xf32>
    %cst_22 = arith.constant dense<0.000000e+00> : vector<32x1024xf32>
    %29 = tpu.matmul %3, %8, %cst_22 {dimension_numbers = #tpu.dot_dimension_numbers<[1], [0], [0], [1], [0, 0, 1, 1], [], []>, precision = #tpu.contract_precision<fp32>} : vector<32x32xf32>, vector<32x1024xf32>, vector<32x1024xf32> -> vector<32x1024xf32>
    %30 = vector.broadcast %18 : vector<1x1024xf32> to vector<32x1024xf32>
    %31 = arith.addf %29, %30 : vector<32x1024xf32>
    %cst_23 = arith.constant 0.000000e+00 : f32
    %32 = vector.broadcast %cst_23 : f32 to vector<8x32xf32>
    %33 = vector.extract_strided_slice %28 {offsets = [0, 0], sizes = [8, 128], strides = [1, 1]} : vector<16x512xf32> to vector<8x128xf32>
    %34 = vector.extract_strided_slice %31 {offsets = [0, 0], sizes = [16, 128], strides = [1, 1]} : vector<32x1024xf32> to vector<16x128xf32>
    %35 = vector.extract_strided_slice %31 {offsets = [0, 512], sizes = [16, 128], strides = [1, 1]} : vector<32x1024xf32> to vector<16x128xf32>
    %cst_24 = arith.constant dense<0.000000e+00> : vector<8x16xf32>
    %36 = tpu.matmul %33, %34, %cst_24 {dimension_numbers = #tpu.dot_dimension_numbers<[1], [1], [0], [0], [0, 0, 1, 0], [], []>, precision = #tpu.contract_precision<fp32>} : vector<8x128xf32>, vector<16x128xf32>, vector<8x16xf32> -> vector<8x16xf32>
    %cst_25 = arith.constant dense<0xFF800000> : vector<8xf32>
    %37 = vector.multi_reduction <maximumf>, %36, %cst_25 [1] : vector<8x16xf32> to vector<8xf32>
    %38 = vector.shape_cast %37 : vector<8xf32> to vector<8x1xf32>
    %39 = vector.broadcast %38 : vector<8x1xf32> to vector<8x16xf32>
    %40 = arith.subf %36, %39 : vector<8x16xf32>
    %41 = math.exp %40 : vector<8x16xf32>
    %cst_26 = arith.constant dense<0.000000e+00> : vector<8xf32>
    %42 = vector.multi_reduction <add>, %41, %cst_26 [1] : vector<8x16xf32> to vector<8xf32>
    %43 = vector.shape_cast %42 : vector<8xf32> to vector<8x1xf32>
    %44 = tpu.reciprocal %43 {approx = true} : vector<8x1xf32> -> vector<8x1xf32>
    %45 = arith.mulf %43, %44 : vector<8x1xf32>
    %cst_27 = arith.constant 2.000000e+00 : f32
    %46 = vector.broadcast %cst_27 : f32 to vector<8x1xf32>
    %47 = arith.subf %46, %45 : vector<8x1xf32>
    %48 = arith.mulf %44, %47 : vector<8x1xf32>
    %49 = vector.broadcast %48 : vector<8x1xf32> to vector<8x16xf32>
    %50 = arith.mulf %41, %49 : vector<8x16xf32>
    %cst_28 = arith.constant dense<0.000000e+00> : vector<8x128xf32>
    %51 = tpu.matmul %50, %35, %cst_28 {dimension_numbers = #tpu.dot_dimension_numbers<[1], [0], [0], [1], [0, 0, 1, 1], [], []>, precision = #tpu.contract_precision<fp32>} : vector<8x16xf32>, vector<16x128xf32>, vector<8x128xf32> -> vector<8x128xf32>
    %52 = vector.extract_strided_slice %10 {offsets = [0, 0], sizes = [128, 32], strides = [1, 1]} : vector<512x32xf32> to vector<128x32xf32>
    %cst_29 = arith.constant dense<0.000000e+00> : vector<8x32xf32>
    %53 = tpu.matmul %51, %52, %cst_29 {dimension_numbers = #tpu.dot_dimension_numbers<[1], [0], [0], [1], [0, 0, 1, 1], [], []>, precision = #tpu.contract_precision<fp32>} : vector<8x128xf32>, vector<128x32xf32>, vector<8x32xf32> -> vector<8x32xf32>
    %54 = arith.addf %32, %53 : vector<8x32xf32>
    %55 = vector.extract_strided_slice %28 {offsets = [0, 128], sizes = [8, 128], strides = [1, 1]} : vector<16x512xf32> to vector<8x128xf32>
    %56 = vector.extract_strided_slice %31 {offsets = [0, 128], sizes = [16, 128], strides = [1, 1]} : vector<32x1024xf32> to vector<16x128xf32>
    %57 = vector.extract_strided_slice %31 {offsets = [0, 640], sizes = [16, 128], strides = [1, 1]} : vector<32x1024xf32> to vector<16x128xf32>
    %cst_30 = arith.constant dense<0.000000e+00> : vector<8x16xf32>
    %58 = tpu.matmul %55, %56, %cst_30 {dimension_numbers = #tpu.dot_dimension_numbers<[1], [1], [0], [0], [0, 0, 1, 0], [], []>, precision = #tpu.contract_precision<fp32>} : vector<8x128xf32>, vector<16x128xf32>, vector<8x16xf32> -> vector<8x16xf32>
    %cst_31 = arith.constant dense<0xFF800000> : vector<8xf32>
    %59 = vector.multi_reduction <maximumf>, %58, %cst_31 [1] : vector<8x16xf32> to vector<8xf32>
    %60 = vector.shape_cast %59 : vector<8xf32> to vector<8x1xf32>
    %61 = vector.broadcast %60 : vector<8x1xf32> to vector<8x16xf32>
    %62 = arith.subf %58, %61 : vector<8x16xf32>
    %63 = math.exp %62 : vector<8x16xf32>
    %cst_32 = arith.constant dense<0.000000e+00> : vector<8xf32>
    %64 = vector.multi_reduction <add>, %63, %cst_32 [1] : vector<8x16xf32> to vector<8xf32>
    %65 = vector.shape_cast %64 : vector<8xf32> to vector<8x1xf32>
    %66 = tpu.reciprocal %65 {approx = true} : vector<8x1xf32> -> vector<8x1xf32>
    %67 = arith.mulf %65, %66 : vector<8x1xf32>
    %cst_33 = arith.constant 2.000000e+00 : f32
    %68 = vector.broadcast %cst_33 : f32 to vector<8x1xf32>
    %69 = arith.subf %68, %67 : vector<8x1xf32>
    %70 = arith.mulf %66, %69 : vector<8x1xf32>
    %71 = vector.broadcast %70 : vector<8x1xf32> to vector<8x16xf32>
    %72 = arith.mulf %63, %71 : vector<8x16xf32>
    %cst_34 = arith.constant dense<0.000000e+00> : vector<8x128xf32>
    %73 = tpu.matmul %72, %57, %cst_34 {dimension_numbers = #tpu.dot_dimension_numbers<[1], [0], [0], [1], [0, 0, 1, 1], [], []>, precision = #tpu.contract_precision<fp32>} : vector<8x16xf32>, vector<16x128xf32>, vector<8x128xf32> -> vector<8x128xf32>
    %74 = vector.extract_strided_slice %10 {offsets = [128, 0], sizes = [128, 32], strides = [1, 1]} : vector<512x32xf32> to vector<128x32xf32>
    %cst_35 = arith.constant dense<0.000000e+00> : vector<8x32xf32>
    %75 = tpu.matmul %73, %74, %cst_35 {dimension_numbers = #tpu.dot_dimension_numbers<[1], [0], [0], [1], [0, 0, 1, 1], [], []>, precision = #tpu.contract_precision<fp32>} : vector<8x128xf32>, vector<128x32xf32>, vector<8x32xf32> -> vector<8x32xf32>
    %76 = arith.addf %54, %75 : vector<8x32xf32>
    %77 = vector.extract_strided_slice %28 {offsets = [0, 256], sizes = [8, 128], strides = [1, 1]} : vector<16x512xf32> to vector<8x128xf32>
    %78 = vector.extract_strided_slice %31 {offsets = [0, 256], sizes = [16, 128], strides = [1, 1]} : vector<32x1024xf32> to vector<16x128xf32>
    %79 = vector.extract_strided_slice %31 {offsets = [0, 768], sizes = [16, 128], strides = [1, 1]} : vector<32x1024xf32> to vector<16x128xf32>
    %cst_36 = arith.constant dense<0.000000e+00> : vector<8x16xf32>
    %80 = tpu.matmul %77, %78, %cst_36 {dimension_numbers = #tpu.dot_dimension_numbers<[1], [1], [0], [0], [0, 0, 1, 0], [], []>, precision = #tpu.contract_precision<fp32>} : vector<8x128xf32>, vector<16x128xf32>, vector<8x16xf32> -> vector<8x16xf32>
    %cst_37 = arith.constant dense<0xFF800000> : vector<8xf32>
    %81 = vector.multi_reduction <maximumf>, %80, %cst_37 [1] : vector<8x16xf32> to vector<8xf32>
    %82 = vector.shape_cast %81 : vector<8xf32> to vector<8x1xf32>
    %83 = vector.broadcast %82 : vector<8x1xf32> to vector<8x16xf32>
    %84 = arith.subf %80, %83 : vector<8x16xf32>
    %85 = math.exp %84 : vector<8x16xf32>
    %cst_38 = arith.constant dense<0.000000e+00> : vector<8xf32>
    %86 = vector.multi_reduction <add>, %85, %cst_38 [1] : vector<8x16xf32> to vector<8xf32>
    %87 = vector.shape_cast %86 : vector<8xf32> to vector<8x1xf32>
    %88 = tpu.reciprocal %87 {approx = true} : vector<8x1xf32> -> vector<8x1xf32>
    %89 = arith.mulf %87, %88 : vector<8x1xf32>
    %cst_39 = arith.constant 2.000000e+00 : f32
    %90 = vector.broadcast %cst_39 : f32 to vector<8x1xf32>
    %91 = arith.subf %90, %89 : vector<8x1xf32>
    %92 = arith.mulf %88, %91 : vector<8x1xf32>
    %93 = vector.broadcast %92 : vector<8x1xf32> to vector<8x16xf32>
    %94 = arith.mulf %85, %93 : vector<8x16xf32>
    %cst_40 = arith.constant dense<0.000000e+00> : vector<8x128xf32>
    %95 = tpu.matmul %94, %79, %cst_40 {dimension_numbers = #tpu.dot_dimension_numbers<[1], [0], [0], [1], [0, 0, 1, 1], [], []>, precision = #tpu.contract_precision<fp32>} : vector<8x16xf32>, vector<16x128xf32>, vector<8x128xf32> -> vector<8x128xf32>
    %96 = vector.extract_strided_slice %10 {offsets = [256, 0], sizes = [128, 32], strides = [1, 1]} : vector<512x32xf32> to vector<128x32xf32>
    %cst_41 = arith.constant dense<0.000000e+00> : vector<8x32xf32>
    %97 = tpu.matmul %95, %96, %cst_41 {dimension_numbers = #tpu.dot_dimension_numbers<[1], [0], [0], [1], [0, 0, 1, 1], [], []>, precision = #tpu.contract_precision<fp32>} : vector<8x128xf32>, vector<128x32xf32>, vector<8x32xf32> -> vector<8x32xf32>
    %98 = arith.addf %76, %97 : vector<8x32xf32>
    %99 = vector.extract_strided_slice %28 {offsets = [0, 384], sizes = [8, 128], strides = [1, 1]} : vector<16x512xf32> to vector<8x128xf32>
    %100 = vector.extract_strided_slice %31 {offsets = [0, 384], sizes = [16, 128], strides = [1, 1]} : vector<32x1024xf32> to vector<16x128xf32>
    %101 = vector.extract_strided_slice %31 {offsets = [0, 896], sizes = [16, 128], strides = [1, 1]} : vector<32x1024xf32> to vector<16x128xf32>
    %cst_42 = arith.constant dense<0.000000e+00> : vector<8x16xf32>
    %102 = tpu.matmul %99, %100, %cst_42 {dimension_numbers = #tpu.dot_dimension_numbers<[1], [1], [0], [0], [0, 0, 1, 0], [], []>, precision = #tpu.contract_precision<fp32>} : vector<8x128xf32>, vector<16x128xf32>, vector<8x16xf32> -> vector<8x16xf32>
    %cst_43 = arith.constant dense<0xFF800000> : vector<8xf32>
    %103 = vector.multi_reduction <maximumf>, %102, %cst_43 [1] : vector<8x16xf32> to vector<8xf32>
    %104 = vector.shape_cast %103 : vector<8xf32> to vector<8x1xf32>
    %105 = vector.broadcast %104 : vector<8x1xf32> to vector<8x16xf32>
    %106 = arith.subf %102, %105 : vector<8x16xf32>
    %107 = math.exp %106 : vector<8x16xf32>
    %cst_44 = arith.constant dense<0.000000e+00> : vector<8xf32>
    %108 = vector.multi_reduction <add>, %107, %cst_44 [1] : vector<8x16xf32> to vector<8xf32>
    %109 = vector.shape_cast %108 : vector<8xf32> to vector<8x1xf32>
    %110 = tpu.reciprocal %109 {approx = true} : vector<8x1xf32> -> vector<8x1xf32>
    %111 = arith.mulf %109, %110 : vector<8x1xf32>
    %cst_45 = arith.constant 2.000000e+00 : f32
    %112 = vector.broadcast %cst_45 : f32 to vector<8x1xf32>
    %113 = arith.subf %112, %111 : vector<8x1xf32>
    %114 = arith.mulf %110, %113 : vector<8x1xf32>
    %115 = vector.broadcast %114 : vector<8x1xf32> to vector<8x16xf32>
    %116 = arith.mulf %107, %115 : vector<8x16xf32>
    %cst_46 = arith.constant dense<0.000000e+00> : vector<8x128xf32>
    %117 = tpu.matmul %116, %101, %cst_46 {dimension_numbers = #tpu.dot_dimension_numbers<[1], [0], [0], [1], [0, 0, 1, 1], [], []>, precision = #tpu.contract_precision<fp32>} : vector<8x16xf32>, vector<16x128xf32>, vector<8x128xf32> -> vector<8x128xf32>
    %118 = vector.extract_strided_slice %10 {offsets = [384, 0], sizes = [128, 32], strides = [1, 1]} : vector<512x32xf32> to vector<128x32xf32>
    %cst_47 = arith.constant dense<0.000000e+00> : vector<8x32xf32>
    %119 = tpu.matmul %117, %118, %cst_47 {dimension_numbers = #tpu.dot_dimension_numbers<[1], [0], [0], [1], [0, 0, 1, 1], [], []>, precision = #tpu.contract_precision<fp32>} : vector<8x128xf32>, vector<128x32xf32>, vector<8x32xf32> -> vector<8x32xf32>
    %120 = arith.addf %98, %119 : vector<8x32xf32>
    %cst_48 = arith.constant 0.000000e+00 : f32
    %121 = vector.broadcast %cst_48 : f32 to vector<8x32xf32>
    %122 = vector.extract_strided_slice %28 {offsets = [8, 0], sizes = [8, 128], strides = [1, 1]} : vector<16x512xf32> to vector<8x128xf32>
    %123 = vector.extract_strided_slice %31 {offsets = [16, 0], sizes = [16, 128], strides = [1, 1]} : vector<32x1024xf32> to vector<16x128xf32>
    %124 = vector.extract_strided_slice %31 {offsets = [16, 512], sizes = [16, 128], strides = [1, 1]} : vector<32x1024xf32> to vector<16x128xf32>
    %cst_49 = arith.constant dense<0.000000e+00> : vector<8x16xf32>
    %125 = tpu.matmul %122, %123, %cst_49 {dimension_numbers = #tpu.dot_dimension_numbers<[1], [1], [0], [0], [0, 0, 1, 0], [], []>, precision = #tpu.contract_precision<fp32>} : vector<8x128xf32>, vector<16x128xf32>, vector<8x16xf32> -> vector<8x16xf32>
    %cst_50 = arith.constant dense<0xFF800000> : vector<8xf32>
    %126 = vector.multi_reduction <maximumf>, %125, %cst_50 [1] : vector<8x16xf32> to vector<8xf32>
    %127 = vector.shape_cast %126 : vector<8xf32> to vector<8x1xf32>
    %128 = vector.broadcast %127 : vector<8x1xf32> to vector<8x16xf32>
    %129 = arith.subf %125, %128 : vector<8x16xf32>
    %130 = math.exp %129 : vector<8x16xf32>
    %cst_51 = arith.constant dense<0.000000e+00> : vector<8xf32>
    %131 = vector.multi_reduction <add>, %130, %cst_51 [1] : vector<8x16xf32> to vector<8xf32>
    %132 = vector.shape_cast %131 : vector<8xf32> to vector<8x1xf32>
    %133 = tpu.reciprocal %132 {approx = true} : vector<8x1xf32> -> vector<8x1xf32>
    %134 = arith.mulf %132, %133 : vector<8x1xf32>
    %cst_52 = arith.constant 2.000000e+00 : f32
    %135 = vector.broadcast %cst_52 : f32 to vector<8x1xf32>
    %136 = arith.subf %135, %134 : vector<8x1xf32>
    %137 = arith.mulf %133, %136 : vector<8x1xf32>
    %138 = vector.broadcast %137 : vector<8x1xf32> to vector<8x16xf32>
    %139 = arith.mulf %130, %138 : vector<8x16xf32>
    %cst_53 = arith.constant dense<0.000000e+00> : vector<8x128xf32>
    %140 = tpu.matmul %139, %124, %cst_53 {dimension_numbers = #tpu.dot_dimension_numbers<[1], [0], [0], [1], [0, 0, 1, 1], [], []>, precision = #tpu.contract_precision<fp32>} : vector<8x16xf32>, vector<16x128xf32>, vector<8x128xf32> -> vector<8x128xf32>
    %141 = vector.extract_strided_slice %10 {offsets = [0, 0], sizes = [128, 32], strides = [1, 1]} : vector<512x32xf32> to vector<128x32xf32>
    %cst_54 = arith.constant dense<0.000000e+00> : vector<8x32xf32>
    %142 = tpu.matmul %140, %141, %cst_54 {dimension_numbers = #tpu.dot_dimension_numbers<[1], [0], [0], [1], [0, 0, 1, 1], [], []>, precision = #tpu.contract_precision<fp32>} : vector<8x128xf32>, vector<128x32xf32>, vector<8x32xf32> -> vector<8x32xf32>
    %143 = arith.addf %121, %142 : vector<8x32xf32>
    %144 = vector.extract_strided_slice %28 {offsets = [8, 128], sizes = [8, 128], strides = [1, 1]} : vector<16x512xf32> to vector<8x128xf32>
    %145 = vector.extract_strided_slice %31 {offsets = [16, 128], sizes = [16, 128], strides = [1, 1]} : vector<32x1024xf32> to vector<16x128xf32>
    %146 = vector.extract_strided_slice %31 {offsets = [16, 640], sizes = [16, 128], strides = [1, 1]} : vector<32x1024xf32> to vector<16x128xf32>
    %cst_55 = arith.constant dense<0.000000e+00> : vector<8x16xf32>
    %147 = tpu.matmul %144, %145, %cst_55 {dimension_numbers = #tpu.dot_dimension_numbers<[1], [1], [0], [0], [0, 0, 1, 0], [], []>, precision = #tpu.contract_precision<fp32>} : vector<8x128xf32>, vector<16x128xf32>, vector<8x16xf32> -> vector<8x16xf32>
    %cst_56 = arith.constant dense<0xFF800000> : vector<8xf32>
    %148 = vector.multi_reduction <maximumf>, %147, %cst_56 [1] : vector<8x16xf32> to vector<8xf32>
    %149 = vector.shape_cast %148 : vector<8xf32> to vector<8x1xf32>
    %150 = vector.broadcast %149 : vector<8x1xf32> to vector<8x16xf32>
    %151 = arith.subf %147, %150 : vector<8x16xf32>
    %152 = math.exp %151 : vector<8x16xf32>
    %cst_57 = arith.constant dense<0.000000e+00> : vector<8xf32>
    %153 = vector.multi_reduction <add>, %152, %cst_57 [1] : vector<8x16xf32> to vector<8xf32>
    %154 = vector.shape_cast %153 : vector<8xf32> to vector<8x1xf32>
    %155 = tpu.reciprocal %154 {approx = true} : vector<8x1xf32> -> vector<8x1xf32>
    %156 = arith.mulf %154, %155 : vector<8x1xf32>
    %cst_58 = arith.constant 2.000000e+00 : f32
    %157 = vector.broadcast %cst_58 : f32 to vector<8x1xf32>
    %158 = arith.subf %157, %156 : vector<8x1xf32>
    %159 = arith.mulf %155, %158 : vector<8x1xf32>
    %160 = vector.broadcast %159 : vector<8x1xf32> to vector<8x16xf32>
    %161 = arith.mulf %152, %160 : vector<8x16xf32>
    %cst_59 = arith.constant dense<0.000000e+00> : vector<8x128xf32>
    %162 = tpu.matmul %161, %146, %cst_59 {dimension_numbers = #tpu.dot_dimension_numbers<[1], [0], [0], [1], [0, 0, 1, 1], [], []>, precision = #tpu.contract_precision<fp32>} : vector<8x16xf32>, vector<16x128xf32>, vector<8x128xf32> -> vector<8x128xf32>
    %163 = vector.extract_strided_slice %10 {offsets = [128, 0], sizes = [128, 32], strides = [1, 1]} : vector<512x32xf32> to vector<128x32xf32>
    %cst_60 = arith.constant dense<0.000000e+00> : vector<8x32xf32>
    %164 = tpu.matmul %162, %163, %cst_60 {dimension_numbers = #tpu.dot_dimension_numbers<[1], [0], [0], [1], [0, 0, 1, 1], [], []>, precision = #tpu.contract_precision<fp32>} : vector<8x128xf32>, vector<128x32xf32>, vector<8x32xf32> -> vector<8x32xf32>
    %165 = arith.addf %143, %164 : vector<8x32xf32>
    %166 = vector.extract_strided_slice %28 {offsets = [8, 256], sizes = [8, 128], strides = [1, 1]} : vector<16x512xf32> to vector<8x128xf32>
    %167 = vector.extract_strided_slice %31 {offsets = [16, 256], sizes = [16, 128], strides = [1, 1]} : vector<32x1024xf32> to vector<16x128xf32>
    %168 = vector.extract_strided_slice %31 {offsets = [16, 768], sizes = [16, 128], strides = [1, 1]} : vector<32x1024xf32> to vector<16x128xf32>
    %cst_61 = arith.constant dense<0.000000e+00> : vector<8x16xf32>
    %169 = tpu.matmul %166, %167, %cst_61 {dimension_numbers = #tpu.dot_dimension_numbers<[1], [1], [0], [0], [0, 0, 1, 0], [], []>, precision = #tpu.contract_precision<fp32>} : vector<8x128xf32>, vector<16x128xf32>, vector<8x16xf32> -> vector<8x16xf32>
    %cst_62 = arith.constant dense<0xFF800000> : vector<8xf32>
    %170 = vector.multi_reduction <maximumf>, %169, %cst_62 [1] : vector<8x16xf32> to vector<8xf32>
    %171 = vector.shape_cast %170 : vector<8xf32> to vector<8x1xf32>
    %172 = vector.broadcast %171 : vector<8x1xf32> to vector<8x16xf32>
    %173 = arith.subf %169, %172 : vector<8x16xf32>
    %174 = math.exp %173 : vector<8x16xf32>
    %cst_63 = arith.constant dense<0.000000e+00> : vector<8xf32>
    %175 = vector.multi_reduction <add>, %174, %cst_63 [1] : vector<8x16xf32> to vector<8xf32>
    %176 = vector.shape_cast %175 : vector<8xf32> to vector<8x1xf32>
    %177 = tpu.reciprocal %176 {approx = true} : vector<8x1xf32> -> vector<8x1xf32>
    %178 = arith.mulf %176, %177 : vector<8x1xf32>
    %cst_64 = arith.constant 2.000000e+00 : f32
    %179 = vector.broadcast %cst_64 : f32 to vector<8x1xf32>
    %180 = arith.subf %179, %178 : vector<8x1xf32>
    %181 = arith.mulf %177, %180 : vector<8x1xf32>
    %182 = vector.broadcast %181 : vector<8x1xf32> to vector<8x16xf32>
    %183 = arith.mulf %174, %182 : vector<8x16xf32>
    %cst_65 = arith.constant dense<0.000000e+00> : vector<8x128xf32>
    %184 = tpu.matmul %183, %168, %cst_65 {dimension_numbers = #tpu.dot_dimension_numbers<[1], [0], [0], [1], [0, 0, 1, 1], [], []>, precision = #tpu.contract_precision<fp32>} : vector<8x16xf32>, vector<16x128xf32>, vector<8x128xf32> -> vector<8x128xf32>
    %185 = vector.extract_strided_slice %10 {offsets = [256, 0], sizes = [128, 32], strides = [1, 1]} : vector<512x32xf32> to vector<128x32xf32>
    %cst_66 = arith.constant dense<0.000000e+00> : vector<8x32xf32>
    %186 = tpu.matmul %184, %185, %cst_66 {dimension_numbers = #tpu.dot_dimension_numbers<[1], [0], [0], [1], [0, 0, 1, 1], [], []>, precision = #tpu.contract_precision<fp32>} : vector<8x128xf32>, vector<128x32xf32>, vector<8x32xf32> -> vector<8x32xf32>
    %187 = arith.addf %165, %186 : vector<8x32xf32>
    %188 = vector.extract_strided_slice %28 {offsets = [8, 384], sizes = [8, 128], strides = [1, 1]} : vector<16x512xf32> to vector<8x128xf32>
    %189 = vector.extract_strided_slice %31 {offsets = [16, 384], sizes = [16, 128], strides = [1, 1]} : vector<32x1024xf32> to vector<16x128xf32>
    %190 = vector.extract_strided_slice %31 {offsets = [16, 896], sizes = [16, 128], strides = [1, 1]} : vector<32x1024xf32> to vector<16x128xf32>
    %cst_67 = arith.constant dense<0.000000e+00> : vector<8x16xf32>
    %191 = tpu.matmul %188, %189, %cst_67 {dimension_numbers = #tpu.dot_dimension_numbers<[1], [1], [0], [0], [0, 0, 1, 0], [], []>, precision = #tpu.contract_precision<fp32>} : vector<8x128xf32>, vector<16x128xf32>, vector<8x16xf32> -> vector<8x16xf32>
    %cst_68 = arith.constant dense<0xFF800000> : vector<8xf32>
    %192 = vector.multi_reduction <maximumf>, %191, %cst_68 [1] : vector<8x16xf32> to vector<8xf32>
    %193 = vector.shape_cast %192 : vector<8xf32> to vector<8x1xf32>
    %194 = vector.broadcast %193 : vector<8x1xf32> to vector<8x16xf32>
    %195 = arith.subf %191, %194 : vector<8x16xf32>
    %196 = math.exp %195 : vector<8x16xf32>
    %cst_69 = arith.constant dense<0.000000e+00> : vector<8xf32>
    %197 = vector.multi_reduction <add>, %196, %cst_69 [1] : vector<8x16xf32> to vector<8xf32>
    %198 = vector.shape_cast %197 : vector<8xf32> to vector<8x1xf32>
    %199 = tpu.reciprocal %198 {approx = true} : vector<8x1xf32> -> vector<8x1xf32>
    %200 = arith.mulf %198, %199 : vector<8x1xf32>
    %cst_70 = arith.constant 2.000000e+00 : f32
    %201 = vector.broadcast %cst_70 : f32 to vector<8x1xf32>
    %202 = arith.subf %201, %200 : vector<8x1xf32>
    %203 = arith.mulf %199, %202 : vector<8x1xf32>
    %204 = vector.broadcast %203 : vector<8x1xf32> to vector<8x16xf32>
    %205 = arith.mulf %196, %204 : vector<8x16xf32>
    %cst_71 = arith.constant dense<0.000000e+00> : vector<8x128xf32>
    %206 = tpu.matmul %205, %190, %cst_71 {dimension_numbers = #tpu.dot_dimension_numbers<[1], [0], [0], [1], [0, 0, 1, 1], [], []>, precision = #tpu.contract_precision<fp32>} : vector<8x16xf32>, vector<16x128xf32>, vector<8x128xf32> -> vector<8x128xf32>
    %207 = vector.extract_strided_slice %10 {offsets = [384, 0], sizes = [128, 32], strides = [1, 1]} : vector<512x32xf32> to vector<128x32xf32>
    %cst_72 = arith.constant dense<0.000000e+00> : vector<8x32xf32>
    %208 = tpu.matmul %206, %207, %cst_72 {dimension_numbers = #tpu.dot_dimension_numbers<[1], [0], [0], [1], [0, 0, 1, 1], [], []>, precision = #tpu.contract_precision<fp32>} : vector<8x128xf32>, vector<128x32xf32>, vector<8x32xf32> -> vector<8x32xf32>
    %209 = arith.addf %187, %208 : vector<8x32xf32>
    %210 = tpu.concatenate %120, %209 in 0 : vector<8x32xf32>, vector<8x32xf32> -> vector<16x32xf32>
    %211 = vector.broadcast %19 : vector<1x32xf32> to vector<16x32xf32>
    %212 = arith.addf %210, %211 : vector<16x32xf32>
    %213 = arith.addf %4, %212 : vector<16x32xf32>
    %cst_73 = arith.constant dense<0.000000e+00> : vector<16xf32>
    %214 = vector.multi_reduction <add>, %213, %cst_73 [1] : vector<16x32xf32> to vector<16xf32>
    %215 = vector.shape_cast %214 : vector<16xf32> to vector<16x1xf32>
    %cst_74 = arith.constant 3.200000e+01 : f32
    %216 = vector.broadcast %cst_74 : f32 to vector<16x1xf32>
    %217 = arith.divf %215, %216 : vector<16x1xf32>
    %218 = vector.broadcast %217 : vector<16x1xf32> to vector<16x32xf32>
    %219 = arith.subf %213, %218 : vector<16x32xf32>
    %220 = arith.mulf %219, %219 : vector<16x32xf32>
    %cst_75 = arith.constant dense<0.000000e+00> : vector<16xf32>
    %221 = vector.multi_reduction <add>, %220, %cst_75 [1] : vector<16x32xf32> to vector<16xf32>
    %222 = vector.shape_cast %221 : vector<16xf32> to vector<16x1xf32>
    %cst_76 = arith.constant 3.200000e+01 : f32
    %223 = vector.broadcast %cst_76 : f32 to vector<16x1xf32>
    %224 = arith.divf %222, %223 : vector<16x1xf32>
    %225 = vector.broadcast %217 : vector<16x1xf32> to vector<16x32xf32>
    %226 = arith.subf %213, %225 : vector<16x32xf32>
    %cst_77 = arith.constant 9.99999974E-6 : f32
    %227 = vector.broadcast %cst_77 : f32 to vector<16x1xf32>
    %228 = arith.addf %224, %227 : vector<16x1xf32>
    %229 = math.rsqrt %228 : vector<16x1xf32>
    %230 = vector.broadcast %229 : vector<16x1xf32> to vector<16x32xf32>
    %231 = arith.mulf %226, %230 : vector<16x32xf32>
    %232 = vector.broadcast %20 : vector<1x32xf32> to vector<16x32xf32>
    %233 = arith.mulf %231, %232 : vector<16x32xf32>
    %234 = vector.broadcast %21 : vector<1x32xf32> to vector<16x32xf32>
    %235 = arith.addf %233, %234 : vector<16x32xf32>
    %cst_78 = arith.constant dense<0.000000e+00> : vector<16x64xf32>
    %236 = tpu.matmul %235, %12, %cst_78 {dimension_numbers = #tpu.dot_dimension_numbers<[1], [0], [0], [1], [0, 0, 1, 1], [], []>, precision = #tpu.contract_precision<fp32>} : vector<16x32xf32>, vector<32x64xf32>, vector<16x64xf32> -> vector<16x64xf32>
    %237 = vector.broadcast %22 : vector<1x64xf32> to vector<16x64xf32>
    %238 = arith.addf %236, %237 : vector<16x64xf32>
    %cst_79 = arith.constant 0.000000e+00 : f32
    %239 = vector.broadcast %cst_79 : f32 to vector<16x64xf32>
    %240 = arith.maximumf %238, %239 : vector<16x64xf32>
    %cst_80 = arith.constant dense<0.000000e+00> : vector<16x32xf32>
    %241 = tpu.matmul %240, %14, %cst_80 {dimension_numbers = #tpu.dot_dimension_numbers<[1], [0], [0], [1], [0, 0, 1, 1], [], []>, precision = #tpu.contract_precision<fp32>} : vector<16x64xf32>, vector<64x32xf32>, vector<16x32xf32> -> vector<16x32xf32>
    %242 = vector.broadcast %23 : vector<1x32xf32> to vector<16x32xf32>
    %243 = arith.addf %241, %242 : vector<16x32xf32>
    %244 = arith.addf %235, %243 : vector<16x32xf32>
    %cst_81 = arith.constant dense<0.000000e+00> : vector<16xf32>
    %245 = vector.multi_reduction <add>, %244, %cst_81 [1] : vector<16x32xf32> to vector<16xf32>
    %246 = vector.shape_cast %245 : vector<16xf32> to vector<16x1xf32>
    %cst_82 = arith.constant 3.200000e+01 : f32
    %247 = vector.broadcast %cst_82 : f32 to vector<16x1xf32>
    %248 = arith.divf %246, %247 : vector<16x1xf32>
    %249 = vector.broadcast %248 : vector<16x1xf32> to vector<16x32xf32>
    %250 = arith.subf %244, %249 : vector<16x32xf32>
    %251 = arith.mulf %250, %250 : vector<16x32xf32>
    %cst_83 = arith.constant dense<0.000000e+00> : vector<16xf32>
    %252 = vector.multi_reduction <add>, %251, %cst_83 [1] : vector<16x32xf32> to vector<16xf32>
    %253 = vector.shape_cast %252 : vector<16xf32> to vector<16x1xf32>
    %cst_84 = arith.constant 3.200000e+01 : f32
    %254 = vector.broadcast %cst_84 : f32 to vector<16x1xf32>
    %255 = arith.divf %253, %254 : vector<16x1xf32>
    %256 = vector.broadcast %248 : vector<16x1xf32> to vector<16x32xf32>
    %257 = arith.subf %244, %256 : vector<16x32xf32>
    %cst_85 = arith.constant 9.99999974E-6 : f32
    %258 = vector.broadcast %cst_85 : f32 to vector<16x1xf32>
    %259 = arith.addf %255, %258 : vector<16x1xf32>
    %260 = math.rsqrt %259 : vector<16x1xf32>
    %261 = vector.broadcast %260 : vector<16x1xf32> to vector<16x32xf32>
    %262 = arith.mulf %257, %261 : vector<16x32xf32>
    %263 = vector.broadcast %24 : vector<1x32xf32> to vector<16x32xf32>
    %264 = arith.mulf %262, %263 : vector<16x32xf32>
    %265 = vector.broadcast %25 : vector<1x32xf32> to vector<16x32xf32>
    %266 = arith.addf %264, %265 : vector<16x32xf32>
    %c0_86 = arith.constant 0 : index
    %c0_87 = arith.constant 0 : index
    %267 = vector.load %arg12[%c0_86, %c0_87] : memref<16x32xf32, #tpu.memory_space<vmem>>, vector<16x32xf32>
    tpu.vector_store %arg12[%c0_86, %c0_87], %266 {strides = array<i32>} : memref<16x32xf32, #tpu.memory_space<vmem>>, vector<16x32xf32>,
    %c1_i32 = arith.constant 1 : i32
    %268 = arith.cmpi eq, %arg0, %c1_i32 : i32
    %269 = arith.extui %268 : i1 to i32
    %c0_i32_88 = arith.constant 0 : i32
    %270 = arith.cmpi ne, %269, %c0_i32_88 : i32
    scf.if %270 {
      %c0_89 = arith.constant 0 : index
      %c0_90 = arith.constant 0 : index
      %271 = vector.load %arg9[%c0_89, %c0_90] : memref<32x128xf32, #tpu.memory_space<vmem>>, vector<32x128xf32>
      %cst_91 = arith.constant dense<0.000000e+00> : vector<16x128xf32>
      %272 = tpu.matmul %266, %271, %cst_91 {dimension_numbers = #tpu.dot_dimension_numbers<[1], [0], [0], [1], [0, 0, 1, 1], [], []>, precision = #tpu.contract_precision<fp32>} : vector<16x32xf32>, vector<32x128xf32>, vector<16x128xf32> -> vector<16x128xf32>
      %c0_92 = arith.constant 0 : index
      %c0_93 = arith.constant 0 : index
      %273 = vector.load %arg10[%c0_92, %c0_93] : memref<1x128xf32, #tpu.memory_space<vmem>>, vector<1x128xf32>
      %274 = vector.broadcast %273 : vector<1x128xf32> to vector<16x128xf32>
      %275 = arith.addf %272, %274 : vector<16x128xf32>
      %c0_94 = arith.constant 0 : index
      %c0_95 = arith.constant 0 : index
      %276 = vector.load %arg11[%c0_94, %c0_95] : memref<16x128xf32, #tpu.memory_space<vmem>>, vector<16x128xf32>
      tpu.vector_store %arg11[%c0_94, %c0_95], %275 {strides = array<i32>} : memref<16x128xf32, #tpu.memory_space<vmem>>, vector<16x128xf32>,
    } else {
    }
    return
  }
  func.func @transform_0(%arg0: i32) -> (i32, i32) {
    %c0_i32 = arith.constant 0 : i32
    %c0_i32_0 = arith.constant 0 : i32
    %c0_i32_1 = arith.constant 0 : i32
    return %c0_i32, %c0_i32_0 : i32, i32
  }
  func.func @transform_1(%arg0: i32) -> (i32, i32) {
    %c0_i32 = arith.constant 0 : i32
    %c0_i32_0 = arith.constant 0 : i32
    %c0_i32_1 = arith.constant 0 : i32
    return %c0_i32, %c0_i32_0 : i32, i32
  }
  func.func @transform_2(%arg0: i32) -> (i32, i32, i32) {
    %c0_i32 = arith.constant 0 : i32
    %c0_i32_0 = arith.constant 0 : i32
    %c0_i32_1 = arith.constant 0 : i32
    return %arg0, %c0_i32, %c0_i32_0 : i32, i32, i32
  }
  func.func @transform_3(%arg0: i32) -> (i32, i32, i32) {
    %c0_i32 = arith.constant 0 : i32
    %c0_i32_0 = arith.constant 0 : i32
    %c0_i32_1 = arith.constant 0 : i32
    return %arg0, %c0_i32, %c0_i32_0 : i32, i32, i32
  }
  func.func @transform_4(%arg0: i32) -> (i32, i32, i32) {
    %c0_i32 = arith.constant 0 : i32
    %c0_i32_0 = arith.constant 0 : i32
    %c0_i32_1 = arith.constant 0 : i32
    return %arg0, %c0_i32, %c0_i32_0 : i32, i32, i32
  }
  func.func @transform_5(%arg0: i32) -> (i32, i32, i32) {
    %c0_i32 = arith.constant 0 : i32
    %c0_i32_0 = arith.constant 0 : i32
    %c0_i32_1 = arith.constant 0 : i32
    return %arg0, %c0_i32, %c0_i32_0 : i32, i32, i32
  }
  func.func @transform_6(%arg0: i32) -> (i32, i32, i32) {
    %c0_i32 = arith.constant 0 : i32
    %c0_i32_0 = arith.constant 0 : i32
    %c0_i32_1 = arith.constant 0 : i32
    return %arg0, %c0_i32, %c0_i32_0 : i32, i32, i32
  }
  func.func @transform_7(%arg0: i32) -> (i32, i32, i32) {
    %c0_i32 = arith.constant 0 : i32
    %c0_i32_0 = arith.constant 0 : i32
    %c0_i32_1 = arith.constant 0 : i32
    return %arg0, %c0_i32, %c0_i32_0 : i32, i32, i32
  }
  func.func @transform_8(%arg0: i32) -> (i32, i32) {
    %c0_i32 = arith.constant 0 : i32
    %c0_i32_0 = arith.constant 0 : i32
    %c0_i32_1 = arith.constant 0 : i32
    return %c0_i32, %c0_i32_0 : i32, i32
  }
  func.func @transform_9(%arg0: i32) -> (i32, i32) {
    %c0_i32 = arith.constant 0 : i32
    %c0_i32_0 = arith.constant 0 : i32
    %c0_i32_1 = arith.constant 0 : i32
    return %c0_i32, %c0_i32_0 : i32, i32
  }
  func.func @transform_10(%arg0: i32) -> (i32, i32) {
    %c0_i32 = arith.constant 0 : i32
    %c0_i32_0 = arith.constant 0 : i32
    %c0_i32_1 = arith.constant 0 : i32
    return %c0_i32, %c0_i32_0 : i32, i32
  }
}

</mosaic_0001>

<bundles_post_ra>
// kernel: enc_dec_combine_forward.1
= control target key start
LH: loop header
LB: loop body
LE: loop exit
PB: predicated region body
PF: predicated region fallthrough
CT: control target
= control target key end

     0   :  { %s25413_s13 = smov 0   ;;  %s29533_s0 = inlined_call_operand.vmem [shape: f32[32,32], index: 0, kind: input, shape index: {}]   ;;  %s29534_s1 = inlined_call_operand.vmem [shape: f32[16,32], index: 1, kind: input, shape index: {}]   ;;  %s29535_s2 = inlined_call_operand.vmem [shape: f32[2,32,512], index: 2, kind: input, shape index: {}]   ;;  %s29536_s3 = inlined_call_operand.vmem [shape: f32[2,32,1024], index: 3, kind: input, shape index: {}]   ;;  %s29537_s4 = inlined_call_operand.vmem [shape: f32[2,512,32], index: 4, kind: input, shape index: {}]   ;;  %s29538_s5 = inlined_call_operand.vmem [shape: f32[2,32,64], index: 5, kind: input, shape index: {}]   ;;  %s29539_s6 = inlined_call_operand.vmem [shape: f32[2,64,32], index: 6, kind: input, shape index: {}]   ;;  %s29540_s7 = inlined_call_operand.vmem [shape: f32[2,9,1024], index: 7, kind: input, shape index: {}]   ;;  %s29541_s8 = inlined_call_operand.vmem [shape: f32[32,128], index: 8, kind: input, shape index: {}]   ;;  %s29542_s9 = inlined_call_operand.vmem [shape: f32[1,128], index: 9, kind: input, shape index: {}]   ;;  %s29543_s10 = inlined_call_operand.vmem [shape: f32[16,128], index: 10, kind: output, shape index: {}]  }
   0x1   :  { %29795 = sst [smem:[#allocation136_spill]] %s29535_s2 }
   0x2 LB: > { %s25419_s14 = sadd.s32 4294967295, %s25353_s13   ;;  %p19079_p0 = scmp.ge.s32.totalorder %s25353_s13, 1  ;;  %s25353_s13 = sphi %s25413_s13, %s20_s13  }
   0x3   : > { %p357_p1 = scmp.lt.s32.totalorder %s25353_s13, 3 }
   0x5   : > { %p358_p2 = pnand %p19079_p0, %p357_p1 }
   0x7   : > { %361 = sbr.rel (%p358_p2) target bundleno = 9078 (0x2376), region = 60 }
   0xe   : > { %p415_p3 = scmp.lt.s32.totalorder %s25419_s14, 1  ;;  %s29796_s2 = sld [smem:[#allocation136_spill]] }
   0xf   : > { %p19092_p4 = scmp.ne.s32.totalorder %s25419_s14, 0 }
  0x10   : > { %s416_s15 = scalar_select %p415_p3, %s25419_s14, 1 }
  0x11   : > { %448 = sbr.rel (%p19092_p4) target bundleno = 24 (0x18), region = 64  ;;  %v449_v0 = vld [vmem:[%s29534_s1] sm:$0xff] (!%p19092_p4)  ;;  %vm451_vm0 = vcmask (!%p19092_p4), 261120   ;;  %v450_v1 = vld [vmem:[%s29534_s1 + $0x8] sm:$0xff] (!%p19092_p4) }
  0x12   : > { %s19098_s16 = sshll.u32 %s416_s15, 7  ;;  %s19099_s17 = sshll.u32 %s416_s15, 8  ;;  %452 = vst.msk [vmem:[#allocation2] sm:$0xff] (!%p19092_p4), %vm451_vm0, %v449_v0  ;;  %453 = vst.msk [vmem:[#allocation2 + $0x8] sm:$0xff] (!%p19092_p4), %vm451_vm0, %v450_v1 }
  0x13   : > { %s25433_s23 = scalar_lea.vmem %s29536_s3, %s19099_s17  ;;  %s19100_s24 = sshll.u32 %s416_s15, 9 }
  0x14   : > { %s25428_s20 = scalar_lea.vmem %s29796_s2, %s19098_s16  ;;  %s19101_s25 = sshll.u32 %s416_s15, 5 }
  0x15   : > { %s25438_s28 = scalar_lea.vmem %s29537_s4, %s19100_s24  ;;  %s25443_s11 = scalar_lea.vmem %s29538_s5, %s19101_s25 }
  0x16   : > { %s19102_s12 = sshll.u32 %s416_s15, 6  ;;  %s25448_s2 = scalar_lea.vmem %s29540_s7, %s19098_s16 }
  0x17   : > { %s25453_s22 = scalar_lea.vmem %s29539_s6, %s19102_s12 }
  0x18 PF: > { %v461_v2 = vld [vmem:[%s25428_s20 + $0x8] sm:$0xff]  ;;  %v460_v4 = vld [vmem:[%s25428_s20] sm:$0xff]  ;;  %vm609_vm1 = vcmask 261120   ;;  %v29569_v11 = vmov 0.0   ;;  %vm25357_vm2 = vmmov 0   ;;  %vm5063_vm3 = vcmask 130048  }
  0x19   : > { %v465_v3 = vld [vmem:[%s25428_s20 + $0x28] sm:$0xff]  ;;  %v616_v5 = vand.u32 4294901760, %v461_v2  ;;  %v464_v7 = vld [vmem:[%s25428_s20 + $0x20] sm:$0xff]  ;;  %v618_v8 = vand.u32 4294901760, %v460_v4  ;;  %688 = vmatprep.mubr.f32.mxu0 %v29569_v11  ;;  %1280 = vmatprep.mubr.f32.mxu1 %v29569_v11  ;;  %vm17808_vm4 = vcmask 523264   ;;  %p19094_p5 = scmp.ne.s32.totalorder %s25419_s14, 1 }
  0x1a   : > { %v620_v6 = vand.u32 4294901760, %v465_v3  ;;  %v469_v9 = vld [vmem:[%s25428_s20 + $0x48] sm:$0xff]  ;;  %v622_v12 = vand.u32 4294901760, %v464_v7  ;;  %v468_v15 = vld [vmem:[%s25428_s20 + $0x40] sm:$0xff] }
  0x1b   : > { %v473_v10 = vld [vmem:[%s25428_s20 + $0x68] sm:$0xff]  ;;  %v624_v13 = vand.u32 4294901760, %v469_v9  ;;  %v472_v16 = vld [vmem:[%s25428_s20 + $0x60] sm:$0xff]  ;;  %v25474_v19 = vsub.f32 %v461_v2, %v616_v5  ;;  %v25478_v21 = vsub.f32 %v460_v4, %v618_v8  ;;  %v626_v27 = vand.u32 4294901760, %v468_v15 }
  0x1c   : > { %v628_v14 = vand.u32 4294901760, %v473_v10  ;;  %v458_v17 = vld [vmem:[#allocation2] sm:$0xff]  ;;  %v25472_v18 = vpack.c.bf16 %v620_v6, %v616_v5  ;;  %v25476_v20 = vsub.f32 %v465_v3, %v620_v6  ;;  %v25480_v22 = vpack.c.bf16 %v622_v12, %v618_v8  ;;  %v459_v34 = vld [vmem:[#allocation2 + $0x8] sm:$0xff] }
  0x1d   : > { %v25482_v23 = vsub.f32 %v464_v7, %v622_v12  ;;  %v25486_v25 = vsub.f32 %v469_v9, %v624_v13  ;;  %v630_v28 = vand.u32 4294901760, %v472_v16  ;;  %v611_v29 = vsel %vm609_vm1, %v458_v17, 0 }
  0x1e   : > { %v25484_v24 = vpack.c.bf16 %v628_v14, %v624_v13  ;;  %22939 = vmatprep.subr.bf16.mxu0 %v25472_v18  ;;  %v25489_v26 = vsub.f32 %v473_v10, %v628_v14  ;;  %v25493_v30 = vand.u32 4294901760, %v611_v29  ;;  %v713_v31 = vand.u32 4294901760, %v25474_v19  ;;  %v477_v14 = vld [vmem:[%s25433_s23 + $0x8] sm:$0xff] }
  0x1f   : > { %22941 = vmatpush1.bf16.msra.mxu0 %v25480_v22  ;;  %v725_v32 = vand.u32 4294901760, %v25476_v20  ;;  %v719_v33 = vand.u32 4294901760, %v25478_v21  ;;  %v25499_v35 = vpack.c.bf16 %v630_v28, %v626_v27  ;;  %v25501_v36 = vsub.f32 %v468_v15, %v626_v27  ;;  %v485_v15 = vld [vmem:[%s25433_s23 + $0x48] sm:$0xff]  ;;  %v25574_v27 = vld [vmem:[%s25433_s23 + $0x40] sm:$0xff] }
  0x20   : > { %22943 = vmatprep.subr.bf16.mxu0 %v25484_v24  ;;  %v25503_v37 = vsub.f32 %v472_v16, %v630_v28  ;;  %v731_v38 = vand.u32 4294901760, %v25482_v23  ;;  %v25507_v39 = vsub.f32 %v611_v29, %v25493_v30  ;;  %v714_v40 = vsub.f32 %v25474_v19, %v713_v31  ;;  %v25577_v28 = vld [vmem:[%s25433_s23 + $0x88] sm:$0xff] }
  0x21   : > { %v726_v41 = vsub.f32 %v25476_v20, %v725_v32  ;;  %v720_v42 = vsub.f32 %v25478_v21, %v719_v33  ;;  %v614_v44 = vsel %vm609_vm1, %v459_v34, 0  ;;  %v737_v45 = vand.u32 4294901760, %v25486_v25  ;;  %v25580_v29 = vld [vmem:[%s25433_s23 + $0xc8] sm:$0xff] }
  0x22   : > { %v732_v43 = vsub.f32 %v25482_v23, %v731_v38  ;;  %v749_v46 = vand.u32 4294901760, %v25489_v26  ;;  %v25526_v47 = vand.u32 4294901760, %v25507_v39  ;;  %v715_v48 = vand.u32 4294901760, %v714_v40  ;;  %v462_v40 = vld [vmem:[%s25428_s20 + $0x10] sm:$0xff] }
  0x23   : > { %22945 = vmatpush1.bf16.msra.mxu0 %v25499_v35  ;;  %v727_v49 = vand.u32 4294901760, %v726_v41  ;;  %v721_v50 = vand.u32 4294901760, %v720_v42  ;;  %v25528_v52 = vand.u32 4294901760, %v614_v44  ;;  %v738_v53 = vsub.f32 %v25486_v25, %v737_v45 }
  0x24   : > { %v733_v51 = vand.u32 4294901760, %v732_v43  ;;  %v750_v54 = vsub.f32 %v25489_v26, %v749_v46  ;;  %v692_v55 = vsub.f32 %v25507_v39, %v25526_v47  ;;  %v743_v57 = vand.u32 4294901760, %v25501_v36 }
  0x25   : > { %v22946_v56 = vpack.c.bf16 %v727_v49, %v715_v48  ;;  %v755_v58 = vand.u32 4294901760, %v25503_v37  ;;  %v25539_v60 = vsub.f32 %v614_v44, %v25528_v52  ;;  %v739_v61 = vand.u32 4294901760, %v738_v53 }
  0x26   : > { %v22948_v59 = vpack.c.bf16 %v733_v51, %v721_v50  ;;  %v751_v62 = vand.u32 4294901760, %v750_v54  ;;  %v25541_v63 = vand.u32 4294901760, %v692_v55  ;;  %v744_v0 = vsub.f32 %v25501_v36, %v743_v57  ;;  %v471_v54 = vld [vmem:[%s25428_s20 + $0x58] sm:$0xff] }
  0x27   : > { %22947 = vmatprep.subr.bf16.mxu0 %v22946_v56  ;;  %v756_v1 = vsub.f32 %v25503_v37, %v755_v58  ;;  %v25546_v2 = vand.u32 4294901760, %v25539_v60  ;;  %v22954_v9 = vpack.c.bf16 %v25476_v20, %v25474_v19  ;;  %v22956_v10 = vpack.c.bf16 %v25482_v23, %v25478_v21  ;;  %v475_v55 = vld [vmem:[%s25428_s20 + $0x78] sm:$0xff] }
  0x28   : > { %v22950_v3 = vpack.c.bf16 %v751_v62, %v739_v61  ;;  %694 = vmatmul.mubr.f32.vlgmr.msra.gmra.mrb[0].mxu0 %v25541_v63  ;;  %v745_v4 = vand.u32 4294901760, %v744_v0  ;;  %v22958_v12 = vpack.c.bf16 %v25489_v26, %v25486_v25  ;;  %v22960_v13 = vpack.c.bf16 %v25503_v37, %v25501_v36  ;;  %v25570_v26 = vld [vmem:[%s25433_s23] sm:$0xff]  ;;  %v463_v36 = vld [vmem:[%s25428_s20 + $0x18] sm:$0xff]  ;;  %v470_v61 = vld [vmem:[%s25428_s20 + $0x50] sm:$0xff] }
  0x29   : > { %v757_v5 = vand.u32 4294901760, %v756_v1  ;;  %22949 = vmatpush1.bf16.msra.mxu0 %v22948_v59  ;;  %699 = vmatprep.mubr.f32.mxu0 %v29569_v11  ;;  %v703_v6 = vsub.f32 %v25539_v60, %v25546_v2  ;;  %v1844_v16 = vand.u32 4294901760, %v477_v14  ;;  %v1848_v17 = vand.u32 4294901760, %v485_v15  ;;  %v467_v37 = vld [vmem:[%s25428_s20 + $0x38] sm:$0xff]  ;;  %v454_v25 = vld [vmem:[%s29533_s0] sm:$0xff] }
  0x2a   : > { %22951 = vmatprep.subr.bf16.mxu0 %v22950_v3  ;;  %v22970_v34 = vpack.c.bf16 %v725_v32, %v713_v31  ;;  %v22972_v41 = vpack.c.bf16 %v731_v38, %v719_v33  ;;  %v25596_v42 = vpack.c.bf16 %v749_v46, %v737_v45  ;;  %v25598_v43 = vpack.c.bf16 %v755_v58, %v743_v57  ;;  %v25609_v32 = vld [vmem:[%s25433_s23 + $0x80] sm:$0xff]  ;;  %v466_v46 = vld [vmem:[%s25428_s20 + $0x30] sm:$0xff] }
  0x2b   : > { %v22952_v7 = vpack.c.bf16 %v757_v5, %v745_v4  ;;  %v25552_v8 = vand.u32 4294901760, %v703_v6  ;;  %v1846_v19 = vand.u32 4294901760, %v25570_v26  ;;  %v25602_v20 = vpack.c.bf16 %v1848_v17, %v1844_v16  ;;  %v25618_v38 = vld [vmem:[%s25433_s23 + $0xc0] sm:$0xff]  ;;  %v474_v4 = vld [vmem:[%s25428_s20 + $0x70] sm:$0xff]  ;;  %v455_v6 = vld [vmem:[%s29533_s0 + $0x8] sm:$0xff] }
  0x2c   : > { %v25604_v31 = vsub.f32 %v477_v14, %v1844_v16  ;;  %v1850_v21 = vand.u32 4294901760, %v25574_v27  ;;  %v1852_v23 = vand.u32 4294901760, %v25577_v28  ;;  %v29551_v33 = vand.u32 4294901760, %v25580_v29 }
  0x2d   : > { %705 = vmatmul.mubr.f32.gmra.mrb[2].mxu0 %v25552_v8  ;;  %v1208_v44 = vand.u32 4294901760, %v463_v36  ;;  %v1212_v45 = vand.u32 4294901760, %v467_v37  ;;  %v1210_v48 = vand.u32 4294901760, %v462_v40  ;;  %v25622_v49 = vsub.f32 %v485_v15, %v1848_v17 }
  0x2e   : > { %22953 = vmatpush1.bf16.msra.mxu0 %v22952_v7  ;;  %815 = vmatprep.mubr.f32.mxu0 %v29569_v11  ;;  %v25627_v50 = vsub.f32 %v25570_v26, %v1846_v19  ;;  %v25632_v51 = vsub.f32 %v25574_v27, %v1850_v21  ;;  %v25637_v53 = vsub.f32 %v25577_v28, %v1852_v23  ;;  %v29548_v57 = vand.u32 4294901760, %v25609_v32 }
  0x2f   : > { %22955 = vmatprep.subr.bf16.mxu0 %v22954_v9  ;;  %v25644_v56 = vsub.f32 %v25580_v29, %v29551_v33  ;;  %v25648_v58 = vsel %vm609_vm1, %v454_v25, 0  ;;  %v25650_v59 = vpack.c.bf16 %v1212_v45, %v1208_v44  ;;  %v1858_v62 = vand.u32 4294901760, %v25618_v38 }
  0x30   : > { %v25655_v0 = vsub.f32 %v463_v36, %v1208_v44  ;;  %v25657_v1 = vsub.f32 %v467_v37, %v1212_v45  ;;  %v1214_v3 = vand.u32 4294901760, %v466_v46  ;;  %v25665_v5 = vsub.f32 %v25609_v32, %v29548_v57 }
  0x31   : > { %817 = vmatmul.mubr.f32.vlgmr.msra.gmra.mrb[0].mxu0 %v25493_v30  ;;  %v25670_v7 = vsub.f32 %v462_v40, %v1210_v48  ;;  %v1216_v9 = vand.u32 4294901760, %v471_v54  ;;  %22987 = vmatprep.subr.bf16.mxu1 %v25650_v59  ;;  %v1218_v16 = vand.u32 4294901760, %v470_v61  ;;  %v25691_v40 = vsel %vm609_vm1, %v455_v6, 0 }
  0x32   : > { %22957 = vmatpush1.bf16.msra.mxu0 %v22956_v10  ;;  %822 = vmatprep.mubr.f32.mxu0 %v29569_v11  ;;  %v1220_v10 = vand.u32 4294901760, %v475_v55  ;;  %v25679_v14 = vpack.c.bf16 %v1214_v3, %v1210_v48  ;;  %v25681_v15 = vsub.f32 %v466_v46, %v1214_v3  ;;  %v29546_v44 = vand.u32 4294901760, %v25655_v0 }
  0x33   : > { %22959 = vmatprep.subr.bf16.mxu0 %v22958_v12  ;;  %v25673_v12 = vand.u32 4294901760, %v25648_v58  ;;  %v25685_v36 = vsub.f32 %v471_v54, %v1216_v9  ;;  %v25694_v25 = vsub.f32 %v470_v61, %v1218_v16  ;;  %v29544_v45 = vand.u32 4294901760, %v25657_v1 }
  0x34   : > { %v25683_v17 = vpack.c.bf16 %v1220_v10, %v1216_v9  ;;  %v25687_v37 = vsub.f32 %v475_v55, %v1220_v10  ;;  %22989 = vmatpush1.bf16.msra.mxu1 %v25679_v14  ;;  %v29545_v55 = vand.u32 4294901760, %v25670_v7  ;;  %v1963_v61 = vand.u32 4294901760, %v25604_v31 }
  0x35   : > { %824 = vmatmul.mubr.f32.gmra.mrb[2].mxu0 %v25528_v52  ;;  %v1318_v3 = vsub.f32 %v25657_v1, %v29544_v45  ;;  %v29547_v6 = vand.u32 4294901760, %v25681_v15  ;;  %v29552_v10 = vand.u32 4294901760, %v25694_v25 }
  0x36   : > { %22961 = vmatpush1.bf16.msra.mxu0 %v22960_v13  ;;  %910 = vmatprep.mubr.f32.mxu0 %v29569_v11  ;;  %v456_v13 = vld [vmem:[%s29533_s0 + $0x10] sm:$0xff]  ;;  %v29550_v9 = vand.u32 4294901760, %v25687_v37 }
  0x37   : > { %22963 = vmatprep.subr.bf16.mxu0 %v25472_v18  ;;  %v25700_v46 = vsel %vm609_vm1, %v456_v13, 0  ;;  %22991 = vmatprep.subr.bf16.mxu1 %v25683_v17 }
  0x39   : > { %913 = vmatmul.mubr.f32.vlgmr.msra.gmra.mrb[0].mxu0 %v25507_v39 }
  0x3a   : > { %22965 = vmatpush1.bf16.msra.mxu0 %v25480_v22  ;;  %918 = vmatprep.mubr.f32.mxu0 %v29569_v11 }
  0x3b   : > { %22967 = vmatprep.subr.bf16.mxu0 %v25484_v24 }
  0x3d   : > { %921 = vmatmul.mubr.f32.gmra.mrb[2].mxu0 %v25539_v60 }
  0x3e   : > { %22969 = vmatpush1.bf16.msra.mxu0 %v25499_v35  ;;  %999 = vmatprep.mubr.f32.mxu0 %v29569_v11 }
  0x3f   : > { %22971 = vmatprep.subr.bf16.mxu0 %v22970_v34  ;;  %v1222_v34 = vand.u32 4294901760, %v474_v4 }
  0x41   : > { %1003 = vmatmul.mubr.f32.vlgmr.msra.gmra.mrb[0].mxu0 %v25526_v47  ;;  %v25702_v48 = vpack.c.bf16 %v1222_v34, %v1218_v16  ;;  %v25704_v54 = vsub.f32 %v474_v4, %v1222_v34  ;;  %v1312_v4 = vsub.f32 %v25670_v7, %v29545_v55  ;;  %v1319_v16 = vand.u32 4294901760, %v1318_v3 }
  0x42   : > { %22973 = vmatpush1.bf16.msra.mxu0 %v22972_v41  ;;  %1008 = vmatprep.mubr.f32.mxu0 %v29569_v11  ;;  %v1306_v41 = vsub.f32 %v25655_v0, %v29546_v44  ;;  %v1324_v34 = vsub.f32 %v25681_v15, %v29547_v6  ;;  %v1336_v3 = vsub.f32 %v25694_v25, %v29552_v10  ;;  %v1975_v6 = vand.u32 4294901760, %v25622_v49 }
  0x43   : > { %22975 = vmatprep.subr.bf16.mxu0 %v25596_v42  ;;  %v29549_v42 = vand.u32 4294901760, %v25685_v36  ;;  %22993 = vmatpush1.bf16.msra.mxu1 %v25702_v48  ;;  %v1347_v45 = vand.u32 4294901760, %v25704_v54  ;;  %v1313_v55 = vand.u32 4294901760, %v1312_v4 }
  0x44   : > { %v1307_v13 = vand.u32 4294901760, %v1306_v41  ;;  %v1342_v41 = vsub.f32 %v25687_v37, %v29550_v9  ;;  %v1325_v57 = vand.u32 4294901760, %v1324_v34  ;;  %v1337_v10 = vand.u32 4294901760, %v1336_v3 }
  0x45   : > { %1012 = vmatmul.mubr.f32.gmra.mrb[2].mxu0 %v25546_v2  ;;  %v1330_v44 = vsub.f32 %v25685_v36, %v29549_v42  ;;  %v1348_v4 = vsub.f32 %v25704_v54, %v1347_v45  ;;  %v25748_v42 = vsub.f32 %v25618_v38, %v1858_v62 }
  0x46   : > { %22977 = vmatpush1.bf16.msra.mxu0 %v25598_v43  ;;  %1106 = vmatprep.mubr.f32.mxu0 %v29569_v11  ;;  %v22994_v43 = vpack.c.bf16 %v1319_v16, %v1307_v13  ;;  %v1343_v33 = vand.u32 4294901760, %v1342_v41  ;;  %v25757_v13 = vand.u32 4294901760, %v25691_v40  ;;  %v22996_v16 = vpack.c.bf16 %v1325_v57, %v1313_v55 }
  0x47   : > { %22979 = vmatprep.subr.bf16.mxu0 %v25472_v18  ;;  %1286 = vmatmul.mubr.f32.vlgmr.msra.gmra.mrb[0].mxu1 %v25541_v63  ;;  %v1331_v9 = vand.u32 4294901760, %v1330_v44  ;;  %v25754_v18 = vsub.f32 %v25648_v58, %v25673_v12  ;;  %v1349_v34 = vand.u32 4294901760, %v1348_v4  ;;  %v1964_v63 = vsub.f32 %v25604_v31, %v1963_v61  ;;  %v457_v58 = vld [vmem:[%s29533_s0 + $0x18] sm:$0xff] }
  0x48   : > { %22995 = vmatprep.subr.bf16.mxu1 %v22994_v43  ;;  %v1969_v44 = vand.u32 4294901760, %v25627_v50  ;;  %v1981_v41 = vand.u32 4294901760, %v25632_v51  ;;  %v29554_v57 = vand.u32 4294901760, %v25637_v53  ;;  %v29553_v55 = vand.u32 4294901760, %v25644_v56  ;;  %1291 = vmatprep.mubr.f32.mxu1 %v29569_v11 }
  0x49   : > { %1108 = vmatmul.mubr.f32.vlgmr.msra.gmra.mrb[0].mxu0 %v25493_v30  ;;  %v22998_v3 = vpack.c.bf16 %v1343_v33, %v1331_v9  ;;  %22997 = vmatpush1.bf16.msra.mxu1 %v22996_v16  ;;  %v23000_v43 = vpack.c.bf16 %v1349_v34, %v1337_v10  ;;  %v25779_v4 = vpack.c.bf16 %v1850_v21, %v1846_v19  ;;  %v25782_v33 = vand.u32 4294901760, %v25700_v46 }
  0x4a   : > { %22981 = vmatpush1.bf16.msra.mxu0 %v25480_v22  ;;  %1113 = vmatprep.mubr.f32.mxu0 %v29569_v11  ;;  %v1976_v22 = vsub.f32 %v25622_v49, %v1975_v6  ;;  %v29797_v9 = vand.u32 4294901760, %v25580_v29  ;;  %v25795_v27 = vand.u32 4294901760, %v25754_v18  ;;  %v25799_v19 = vsub.f32 %v25691_v40, %v25757_v13 }
  0x4b   : > { %22983 = vmatprep.subr.bf16.mxu0 %v25484_v24  ;;  %22999 = vmatprep.subr.bf16.mxu1 %v22998_v3  ;;  %v23002_v24 = vpack.c.bf16 %v25657_v1, %v25655_v0  ;;  %v1842_v21 = vsel %vm609_vm1, %v457_v58, 0  ;;  %v1970_v28 = vsub.f32 %v25627_v50, %v1969_v44  ;;  %v1982_v29 = vsub.f32 %v25632_v51, %v1981_v41 }
  0x4c   : > { %v25792_v26 = vpack.c.bf16 %v29797_v9, %v1852_v23  ;;  %1297 = vmatmul.mubr.f32.gmra.mrb[2].mxu1 %v25552_v8  ;;  %v29556_v23 = vand.u32 4294901760, %v25665_v5  ;;  %v29555_v40 = vand.u32 4294901760, %v25748_v42  ;;  %v1965_v10 = vand.u32 4294901760, %v1964_v63 }
  0x4d   : > { %1115 = vmatmul.mubr.f32.gmra.mrb[2].mxu0 %v25528_v52  ;;  %v1977_v8 = vand.u32 4294901760, %v1976_v22  ;;  %v2000_v16 = vsub.f32 %v25644_v56, %v29553_v55  ;;  %23001 = vmatpush1.bf16.msra.mxu1 %v23000_v43  ;;  %v29798_v34 = vand.u32 4294901760, %v25609_v32  ;;  %v25828_v3 = vsub.f32 %v25700_v46, %v25782_v33 }
  0x4e   : > { %22985 = vmatpush1.bf16.msra.mxu0 %v25499_v35  ;;  %1193 = vmatprep.mubr.f32.mxu0 %v29569_v11  ;;  %v1988_v35 = vsub.f32 %v25637_v53, %v29554_v57  ;;  %v23004_v63 = vpack.c.bf16 %v25681_v15, %v25670_v7  ;;  %v1920_v22 = vsub.f32 %v25754_v18, %v25795_v27  ;;  %v25837_v32 = vand.u32 4294901760, %v25799_v19 }
  0x4f   : > { %23035 = vmatprep.subr.bf16.mxu0 %v25602_v20  ;;  %v25824_v58 = vpack.c.bf16 %v1858_v62, %v29798_v34  ;;  %1407 = vmatprep.mubr.f32.mxu1 %v29569_v11  ;;  %v25839_v38 = vand.u32 4294901760, %v1842_v21  ;;  %v23006_v62 = vpack.c.bf16 %v25687_v37, %v25685_v36  ;;  %v1971_v46 = vand.u32 4294901760, %v1970_v28 }
  0x50   : > { %23003 = vmatprep.subr.bf16.mxu1 %v23002_v24  ;;  %v1983_v43 = vand.u32 4294901760, %v1982_v29  ;;  %v1994_v24 = vsub.f32 %v25665_v5, %v29556_v23  ;;  %v2006_v9 = vsub.f32 %v25748_v42, %v29555_v40  ;;  %v23042_v34 = vpack.c.bf16 %v1977_v8, %v1965_v10  ;;  %1409 = vmatmul.mubr.f32.vlgmr.msra.gmra.mrb[0].mxu1 %v25493_v30 }
  0x51   : > { %1195 = vmatmul.mubr.f32.vlgmr.msra.gmra.mrb[0].mxu0 %v25493_v30  ;;  %v1989_v55 = vand.u32 4294901760, %v1988_v35  ;;  %v2001_v57 = vand.u32 4294901760, %v2000_v16  ;;  %23005 = vmatpush1.bf16.msra.mxu1 %v23004_v63  ;;  %v23008_v28 = vpack.c.bf16 %v25704_v54, %v25694_v25  ;;  %v25857_v29 = vand.u32 4294901760, %v1920_v22 }
  0x52   : > { %23037 = vmatpush1.bf16.msra.mxu0 %v25779_v4  ;;  %1200 = vmatprep.mubr.f32.mxu0 %v29569_v11  ;;  %v1931_v40 = vsub.f32 %v25799_v19, %v25837_v32  ;;  %v25862_v23 = vand.u32 4294901760, %v25828_v3  ;;  %v25865_v10 = vsub.f32 %v1842_v21, %v25839_v38  ;;  %v23044_v8 = vpack.c.bf16 %v1983_v43, %v1971_v46 }
  0x53   : > { %23039 = vmatprep.subr.bf16.mxu0 %v25792_v26  ;;  %1414 = vmatprep.mubr.f32.mxu1 %v29569_v11  ;;  %v1995_v35 = vand.u32 4294901760, %v1994_v24  ;;  %v2007_v16 = vand.u32 4294901760, %v2006_v9  ;;  %v23046_v63 = vpack.c.bf16 %v2001_v57, %v1989_v55  ;;  %v23050_v55 = vpack.c.bf16 %v25622_v49, %v25604_v31 }
  0x54   : > { %23007 = vmatprep.subr.bf16.mxu1 %v23006_v62  ;;  %1416 = vmatmul.mubr.f32.gmra.mrb[2].mxu1 %v25528_v52  ;;  %v25872_v22 = vand.u32 4294901760, %v1931_v40  ;;  %v1942_v21 = vsub.f32 %v25828_v3, %v25862_v23  ;;  %v25877_v62 = vand.u32 4294901760, %v25865_v10  ;;  %v29799_v43 = vand.u32 4294901760, %v25655_v0 }
  0x55   : > { %1202 = vmatmul.mubr.f32.gmra.mrb[2].mxu0 %v25528_v52  ;;  %23009 = vmatpush1.bf16.msra.mxu1 %v23008_v28  ;;  %v23048_v57 = vpack.c.bf16 %v2007_v16, %v1995_v35  ;;  %v29800_v24 = vand.u32 4294901760, %v25657_v1  ;;  %v479_v1 = vld [vmem:[%s25433_s23 + $0x18] sm:$0xff]  ;;  %v29804_v35 = vand.u32 4294901760, %v25687_v37  ;;  %v23068_v31 = vpack.c.bf16 %v1981_v41, %v1969_v44 }
  0x56   : > { %23041 = vmatpush1.bf16.msra.mxu0 %v25824_v58  ;;  %1916 = vmatprep.mubr.f32.mxu0 %v29569_v11  ;;  %v25887_v40 = vand.u32 4294901760, %v1942_v21  ;;  %v1953_v46 = vsub.f32 %v25865_v10, %v25877_v62  ;;  %v487_v28 = vld [vmem:[%s25433_s23 + $0x58] sm:$0xff]  ;;  %v486_v21 = vld [vmem:[%s25433_s23 + $0x50] sm:$0xff]  ;;  %v29806_v49 = vand.u32 4294901760, %v25637_v53 }
  0x57   : > { %23043 = vmatprep.subr.bf16.mxu0 %v23042_v34  ;;  %1502 = vmatprep.mubr.f32.mxu1 %v29569_v11  ;;  %v23018_v9 = vpack.c.bf16 %v29800_v24, %v29799_v43  ;;  %v29802_v34 = vand.u32 4294901760, %v25681_v15  ;;  %v2538_v15 = vand.u32 4294901760, %v487_v28  ;;  %v495_v37 = vld [vmem:[%s25433_s23 + $0x98] sm:$0xff]  ;;  %v23052_v43 = vpack.c.bf16 %v25632_v51, %v25627_v50 }
  0x58   : > { %23011 = vmatprep.subr.bf16.mxu1 %v25650_v59  ;;  %1505 = vmatmul.mubr.f32.vlgmr.msra.gmra.mrb[0].mxu1 %v25507_v39  ;;  %v29801_v39 = vand.u32 4294901760, %v25670_v7  ;;  %v2534_v7 = vand.u32 4294901760, %v479_v1  ;;  %v2540_v24 = vand.u32 4294901760, %v486_v21  ;;  %v2542_v54 = vand.u32 4294901760, %v495_v37 }
  0x59   : > { %1922 = vmatmul.mubr.f32.vlgmr.msra.gmra.mrb[4].mxu0 %v25857_v29  ;;  %23013 = vmatpush1.bf16.msra.mxu1 %v25679_v14  ;;  %v29808_v51 = vand.u32 4294901760, %v25665_v5 }
  0x5a   : > { %1927 = vmatprep.mubr.f32.mxu0 %v29569_v11  ;;  %23045 = vmatpush1.bf16.msra.mxu0 %v23044_v8  ;;  %v23020_v0 = vpack.c.bf16 %v29802_v34, %v29801_v39  ;;  %v25907_v8 = vand.u32 4294901760, %v1953_v46  ;;  %v25927_v46 = vsub.f32 %v487_v28, %v2538_v15  ;;  %v494_v39 = vld [vmem:[%s25433_s23 + $0x90] sm:$0xff]  ;;  %v25944_v28 = vsub.f32 %v495_v37, %v2542_v54 }
  0x5b   : > { %23047 = vmatprep.subr.bf16.mxu0 %v23046_v63  ;;  %1510 = vmatprep.mubr.f32.mxu1 %v29569_v11  ;;  %v478_v63 = vld [vmem:[%s25433_s23 + $0x10] sm:$0xff] }
  0x5c   : > { %23015 = vmatprep.subr.bf16.mxu1 %v25683_v17  ;;  %1513 = vmatmul.mubr.f32.gmra.mrb[2].mxu1 %v25539_v60  ;;  %v29803_v60 = vand.u32 4294901760, %v25685_v36  ;;  %v502_v34 = vld [vmem:[%s25433_s23 + $0xd0] sm:$0xff] }
  0x5d   : > { %1933 = vmatmul.mubr.f32.gmra.mrb[6].mxu0 %v25872_v22  ;;  %23017 = vmatpush1.bf16.msra.mxu1 %v25702_v48 }
  0x5e   : > { %1938 = vmatprep.mubr.f32.mxu0 %v29569_v11  ;;  %23049 = vmatpush1.bf16.msra.mxu0 %v23048_v57  ;;  %v23022_v16 = vpack.c.bf16 %v29804_v35, %v29803_v60  ;;  %v29805_v57 = vand.u32 4294901760, %v25694_v25  ;;  %v2536_v25 = vand.u32 4294901760, %v478_v63  ;;  %v29557_v35 = vand.u32 4294901760, %v25927_v46 }
  0x5f   : > { %23051 = vmatprep.subr.bf16.mxu0 %v23050_v55  ;;  %1591 = vmatprep.mubr.f32.mxu1 %v29569_v11  ;;  %v503_v55 = vld [vmem:[%s25433_s23 + $0xd8] sm:$0xff] }
  0x60   : > { %23019 = vmatprep.subr.bf16.mxu1 %v23018_v9  ;;  %1595 = vmatmul.mubr.f32.vlgmr.msra.gmra.mrb[0].mxu1 %v25526_v47  ;;  %v23024_v36 = vpack.c.bf16 %v1347_v45, %v29805_v57  ;;  %v25925_v47 = vsub.f32 %v479_v1, %v2534_v7  ;;  %v23054_v45 = vpack.c.bf16 %v25644_v56, %v25637_v53  ;;  %v2546_v9 = vand.u32 4294901760, %v503_v55 }
  0x61   : > { %1944 = vmatmul.mubr.f32.gmra.mrb[8].mxu0 %v25887_v40  ;;  %23021 = vmatpush1.bf16.msra.mxu1 %v23020_v0  ;;  %v25938_v0 = vsub.f32 %v478_v63, %v2536_v25  ;;  %v25940_v1 = vsub.f32 %v486_v21, %v2540_v24  ;;  %v2544_v63 = vand.u32 4294901760, %v494_v39  ;;  %v2548_v21 = vand.u32 4294901760, %v502_v34 }
  0x62   : > { %1949 = vmatprep.mubr.f32.mxu0 %v29569_v11  ;;  %1600 = vmatprep.mubr.f32.mxu1 %v29569_v11  ;;  %v25946_v60 = vsub.f32 %v503_v55, %v2546_v9  ;;  %v29809_v53 = vand.u32 4294901760, %v25748_v42 }
  0x63   : > { %23023 = vmatprep.subr.bf16.mxu1 %v23022_v16  ;;  %v23056_v16 = vpack.c.bf16 %v25748_v42, %v25665_v5  ;;  %v25958_v57 = vsub.f32 %v494_v39, %v2544_v63  ;;  %v2659_v37 = vand.u32 4294901760, %v25938_v0  ;;  %v2671_v55 = vand.u32 4294901760, %v25940_v1  ;;  %v481_v5 = vld [vmem:[%s25433_s23 + $0x28] sm:$0xff] }
  0x64   : > { %1604 = vmatmul.mubr.f32.gmra.mrb[2].mxu1 %v25546_v2  ;;  %v2653_v2 = vand.u32 4294901760, %v25925_v47  ;;  %v23102_v50 = vpack.c.bf16 %v25946_v60, %v25944_v28  ;;  %v489_v42 = vld [vmem:[%s25433_s23 + $0x68] sm:$0xff] }
  0x65   : > { %1955 = vmatmul.mubr.f32.gmra.mrb[10].mxu0 %v25907_v8  ;;  %23025 = vmatpush1.bf16.msra.mxu1 %v23024_v36  ;;  %v25960_v36 = vsub.f32 %v502_v34, %v2548_v21  ;;  %v2660_v39 = vsub.f32 %v25938_v0, %v2659_v37  ;;  %v2672_v34 = vsub.f32 %v25940_v1, %v2671_v55  ;;  %v3228_v41 = vand.u32 4294901760, %v489_v42 }
  0x66   : > { %2065 = vmatprep.mubr.f32.mxu0 %v29569_v11  ;;  %1698 = vmatprep.mubr.f32.mxu1 %v29569_v11 }
  0x67   : > { %23027 = vmatprep.subr.bf16.mxu1 %v25650_v59  ;;  %v25954_v59 = vpack.c.bf16 %v2538_v15, %v2534_v7  ;;  %v2654_v7 = vsub.f32 %v25925_v47, %v2653_v2  ;;  %v29558_v15 = vand.u32 4294901760, %v25944_v28  ;;  %v23104_v44 = vpack.c.bf16 %v25960_v36, %v25958_v57 }
  0x68   : > { %1700 = vmatmul.mubr.f32.vlgmr.msra.gmra.mrb[0].mxu1 %v25493_v30 }
  0x69   : > { %2067 = vmatmul.mubr.f32.vlgmr.msra.gmra.mrb[4].mxu0 %v25673_v12  ;;  %23029 = vmatpush1.bf16.msra.mxu1 %v25679_v14  ;;  %v2666_v14 = vsub.f32 %v25927_v46, %v29557_v35  ;;  %v29561_v35 = vand.u32 4294901760, %v25960_v36 }
  0x6a   : > { %2072 = vmatprep.mubr.f32.mxu0 %v29569_v11  ;;  %23053 = vmatpush1.bf16.msra.mxu0 %v23052_v43  ;;  %v29559_v43 = vand.u32 4294901760, %v25946_v60 }
  0x6b   : > { %23055 = vmatprep.subr.bf16.mxu0 %v23054_v45  ;;  %1705 = vmatprep.mubr.f32.mxu1 %v29569_v11  ;;  %v25979_v45 = vpack.c.bf16 %v2546_v9, %v2542_v54  ;;  %v26001_v9 = vpack.c.bf16 %v2548_v21, %v2544_v63 }
  0x6c   : > { %23031 = vmatprep.subr.bf16.mxu1 %v25683_v17  ;;  %1707 = vmatmul.mubr.f32.gmra.mrb[2].mxu1 %v25528_v52  ;;  %v25977_v17 = vpack.c.bf16 %v2540_v24, %v2536_v25  ;;  %v2655_v25 = vand.u32 4294901760, %v2654_v7  ;;  %v2678_v24 = vsub.f32 %v25944_v28, %v29558_v15  ;;  %v2690_v54 = vsub.f32 %v25946_v60, %v29559_v43 }
  0x6d   : > { %2074 = vmatmul.mubr.f32.gmra.mrb[6].mxu0 %v25757_v13  ;;  %23033 = vmatpush1.bf16.msra.mxu1 %v25702_v48  ;;  %v2667_v48 = vand.u32 4294901760, %v2666_v14  ;;  %v2661_v7 = vand.u32 4294901760, %v2660_v39  ;;  %v2673_v14 = vand.u32 4294901760, %v2672_v34  ;;  %v2696_v43 = vsub.f32 %v25960_v36, %v29561_v35 }
  0x6e   : > { %2079 = vmatprep.mubr.f32.mxu0 %v29569_v11  ;;  %23057 = vmatpush1.bf16.msra.mxu0 %v23056_v16  ;;  %v29560_v16 = vand.u32 4294901760, %v25958_v57  ;;  %v2679_v63 = vand.u32 4294901760, %v2678_v24  ;;  %v2691_v21 = vand.u32 4294901760, %v2690_v54  ;;  %v480_v24 = vld [vmem:[%s25433_s23 + $0x20] sm:$0xff] }
  0x6f   : > { %23059 = vmatprep.subr.bf16.mxu0 %v25602_v20  ;;  %1785 = vmatprep.mubr.f32.mxu1 %v29569_v11  ;;  %v23092_v39 = vpack.c.bf16 %v2673_v14, %v2661_v7  ;;  %v488_v54 = vld [vmem:[%s25433_s23 + $0x60] sm:$0xff]  ;;  %v497_v7 = vld [vmem:[%s25433_s23 + $0xa8] sm:$0xff] }
  0x70   : > { %23083 = vmatprep.subr.bf16.mxu1 %v25954_v59  ;;  %1787 = vmatmul.mubr.f32.vlgmr.msra.gmra.mrb[0].mxu1 %v25493_v30  ;;  %v2684_v15 = vsub.f32 %v25958_v57, %v29560_v16  ;;  %v23090_v30 = vpack.c.bf16 %v2667_v48, %v2655_v25  ;;  %v2697_v16 = vand.u32 4294901760, %v2696_v43  ;;  %v23094_v35 = vpack.c.bf16 %v2691_v21, %v2679_v63  ;;  %v505_v14 = vld [vmem:[%s25433_s23 + $0xe8] sm:$0xff]  ;;  %v496_v21 = vld [vmem:[%s25433_s23 + $0xa0] sm:$0xff] }
  0x71   : > { %2081 = vmatmul.mubr.f32.gmra.mrb[8].mxu0 %v25782_v33  ;;  %23085 = vmatpush1.bf16.msra.mxu1 %v25977_v17  ;;  %v23098_v43 = vpack.c.bf16 %v25927_v46, %v25925_v47  ;;  %v26089_v48 = vsub.f32 %v489_v42, %v3228_v41  ;;  %v3236_v63 = vand.u32 4294901760, %v505_v14 }
  0x72   : > { %2086 = vmatprep.mubr.f32.mxu0 %v29569_v11  ;;  %1792 = vmatprep.mubr.f32.mxu1 %v29569_v11  ;;  %v2685_v34 = vand.u32 4294901760, %v2684_v15 }
  0x73   : > { %23087 = vmatprep.subr.bf16.mxu1 %v25979_v45  ;;  %v3355_v47 = vand.u32 4294901760, %v26089_v48 }
  0x74   : > { %1794 = vmatmul.mubr.f32.gmra.mrb[2].mxu1 %v25528_v52  ;;  %v23066_v52 = vpack.c.bf16 %v1975_v6, %v1963_v61  ;;  %v23096_v15 = vpack.c.bf16 %v2697_v16, %v2685_v34  ;;  %v29807_v61 = vand.u32 4294901760, %v25644_v56  ;;  %v23072_v56 = vpack.c.bf16 %v29809_v53, %v29808_v51 }
  0x75   : > { %2088 = vmatmul.mubr.f32.gmra.mrb[10].mxu0 %v25839_v38  ;;  %23089 = vmatpush1.bf16.msra.mxu1 %v26001_v9 }
  0x76   : > { %2174 = vmatprep.mubr.f32.mxu0 %v29569_v11  ;;  %2606 = vmatprep.mubr.f32.mxu1 %v29569_v11  ;;  %v23070_v6 = vpack.c.bf16 %v29807_v61, %v29806_v49 }
  0x77   : > { %23091 = vmatprep.subr.bf16.mxu1 %v23090_v30 }
  0x78   : > { %2612 = vmatmul.mubr.f32.vlgmr.msra.gmra.mrb[4].mxu1 %v25857_v29 }
  0x79   : > { %2177 = vmatmul.mubr.f32.vlgmr.msra.gmra.mrb[4].mxu0 %v25754_v18  ;;  %2617 = vmatprep.mubr.f32.mxu1 %v29569_v11 }
  0x7a   : > { %2182 = vmatprep.mubr.f32.mxu0 %v29569_v11  ;;  %23061 = vmatpush1.bf16.msra.mxu0 %v25779_v4 }
  0x7b   : > { %23063 = vmatprep.subr.bf16.mxu0 %v25792_v26  ;;  %23093 = vmatpush1.bf16.msra.mxu1 %v23092_v39  ;;  %v504_v39 = vld [vmem:[%s25433_s23 + $0xe0] sm:$0xff] }
  0x7c   : > { %23095 = vmatprep.subr.bf16.mxu1 %v23094_v35  ;;  %2623 = vmatmul.mubr.f32.gmra.mrb[6].mxu1 %v25872_v22  ;;  %v23100_v35 = vpack.c.bf16 %v25940_v1, %v25938_v0 }
  0x7d   : > { %2185 = vmatmul.mubr.f32.gmra.mrb[6].mxu0 %v25799_v19  ;;  %2628 = vmatprep.mubr.f32.mxu1 %v29569_v11 }
  0x7e   : > { %2190 = vmatprep.mubr.f32.mxu0 %v29569_v11  ;;  %23065 = vmatpush1.bf16.msra.mxu0 %v25824_v58 }
  0x7f   : > { %23067 = vmatprep.subr.bf16.mxu0 %v23066_v52  ;;  %23097 = vmatpush1.bf16.msra.mxu1 %v23096_v15  ;;  %v3356_v52 = vsub.f32 %v26089_v48, %v3355_v47  ;;  %v3234_v15 = vand.u32 4294901760, %v496_v21 }
  0x80   : > { %23099 = vmatprep.subr.bf16.mxu1 %v23098_v43  ;;  %2634 = vmatmul.mubr.f32.gmra.mrb[8].mxu1 %v25887_v40  ;;  %v3238_v43 = vand.u32 4294901760, %v504_v39 }
  0x81   : > { %2193 = vmatmul.mubr.f32.gmra.mrb[8].mxu0 %v25828_v3  ;;  %2639 = vmatprep.mubr.f32.mxu1 %v29569_v11  ;;  %v3357_v53 = vand.u32 4294901760, %v3356_v52 }
  0x82   : > { %2198 = vmatprep.mubr.f32.mxu0 %v29569_v11 }
  0x84   : > { %2645 = vmatmul.mubr.f32.gmra.mrb[10].mxu1 %v25907_v8 }
  0x85   : > { %2201 = vmatmul.mubr.f32.gmra.mrb[10].mxu0 %v25865_v10  ;;  %2755 = vmatprep.mubr.f32.mxu1 %v29569_v11 }
  0x86   : > { %2279 = vmatprep.mubr.f32.mxu0 %v29569_v11 }
  0x88   : > { %2757 = vmatmul.mubr.f32.vlgmr.msra.gmra.mrb[4].mxu1 %v25673_v12 }
  0x89   : > { %2283 = vmatmul.mubr.f32.vlgmr.msra.gmra.mrb[4].mxu0 %v25795_v27  ;;  %2762 = vmatprep.mubr.f32.mxu1 %v29569_v11 }
  0x8a   : > { %2288 = vmatprep.mubr.f32.mxu0 %v29569_v11  ;;  %23069 = vmatpush1.bf16.msra.mxu0 %v23068_v31 }
  0x8b   : > { %23071 = vmatprep.subr.bf16.mxu0 %v23070_v6  ;;  %23101 = vmatpush1.bf16.msra.mxu1 %v23100_v35 }
  0x8c   : > { %23103 = vmatprep.subr.bf16.mxu1 %v23102_v50  ;;  %2764 = vmatmul.mubr.f32.gmra.mrb[6].mxu1 %v25757_v13  ;;  %v26136_v50 = vsub.f32 %v505_v14, %v3236_v63 }
  0x8d   : > { %2292 = vmatmul.mubr.f32.gmra.mrb[6].mxu0 %v25837_v32  ;;  %2769 = vmatprep.mubr.f32.mxu1 %v29569_v11 }
  0x8e   : > { %2297 = vmatprep.mubr.f32.mxu0 %v29569_v11  ;;  %23073 = vmatpush1.bf16.msra.mxu0 %v23072_v56  ;;  %v23116_v56 = vpack.c.bf16 %v2671_v55, %v2659_v37  ;;  %v3379_v37 = vand.u32 4294901760, %v26136_v50  ;;  %v29813_v55 = vand.u32 4294901760, %v25958_v57 }
  0x8f   : > { %23075 = vmatprep.subr.bf16.mxu0 %v25602_v20  ;;  %23105 = vmatpush1.bf16.msra.mxu1 %v23104_v44  ;;  %v3224_v20 = vand.u32 4294901760, %v481_v5  ;;  %v29811_v44 = vand.u32 4294901760, %v25944_v28 }
  0x90   : > { %23107 = vmatprep.subr.bf16.mxu1 %v25954_v59  ;;  %2771 = vmatmul.mubr.f32.gmra.mrb[8].mxu1 %v25782_v33 }
  0x91   : > { %2301 = vmatmul.mubr.f32.gmra.mrb[8].mxu0 %v25862_v23  ;;  %2776 = vmatprep.mubr.f32.mxu1 %v29569_v11  ;;  %v26085_v16 = vpack.c.bf16 %v3228_v41, %v3224_v20  ;;  %v26087_v25 = vsub.f32 %v481_v5, %v3224_v20  ;;  %v29812_v5 = vand.u32 4294901760, %v25946_v60  ;;  %v26148_v20 = vpack.c.bf16 %v3238_v43, %v3234_v15 }
  0x92   : > { %2306 = vmatprep.mubr.f32.mxu0 %v29569_v11  ;;  %v26152_v41 = vsub.f32 %v496_v21, %v3234_v15 }
  0x93   : > { %v3343_v30 = vand.u32 4294901760, %v26087_v25  ;;  %v23118_v42 = vpack.c.bf16 %v29812_v5, %v29811_v44 }
  0x94   : > { %2778 = vmatmul.mubr.f32.gmra.mrb[10].mxu1 %v25839_v38  ;;  %v3373_v57 = vand.u32 4294901760, %v26152_v41 }
  0x95   : > { %2310 = vmatmul.mubr.f32.gmra.mrb[10].mxu0 %v25877_v62  ;;  %2864 = vmatprep.mubr.f32.mxu1 %v29569_v11  ;;  %v3344_v34 = vsub.f32 %v26087_v25, %v3343_v30 }
  0x96   : > { %2404 = vmatprep.mubr.f32.mxu0 %v29569_v11 }
  0x97   : > { %v3345_v51 = vand.u32 4294901760, %v3344_v34 }
  0x98   : > { %2867 = vmatmul.mubr.f32.vlgmr.msra.gmra.mrb[4].mxu1 %v25754_v18 }
  0x99   : > { %2406 = vmatmul.mubr.f32.vlgmr.msra.gmra.mrb[4].mxu0 %v25673_v12  ;;  %2872 = vmatprep.mubr.f32.mxu1 %v29569_v11  ;;  %v23138_v28 = vpack.c.bf16 %v3357_v53, %v3345_v51  ;;  %v491_v51 = vld [vmem:[%s25433_s23 + $0x78] sm:$0xff] }
  0x9a   : > { %2411 = vmatprep.mubr.f32.mxu0 %v29569_v11  ;;  %23077 = vmatpush1.bf16.msra.mxu0 %v25779_v4  ;;  %v29810_v4 = vand.u32 4294901760, %v25927_v46  ;;  %v3230_v46 = vand.u32 4294901760, %v488_v54  ;;  %v3918_v44 = vand.u32 4294901760, %v491_v51 }
  0x9b   : > { %23079 = vmatprep.subr.bf16.mxu0 %v25792_v26  ;;  %23109 = vmatpush1.bf16.msra.mxu1 %v25977_v17 }
  0x9c   : > { %23111 = vmatprep.subr.bf16.mxu1 %v25979_v45  ;;  %v23114_v26 = vpack.c.bf16 %v29810_v4, %v2653_v2  ;;  %2875 = vmatmul.mubr.f32.gmra.mrb[6].mxu1 %v25799_v19  ;;  %v3232_v2 = vand.u32 4294901760, %v497_v7  ;;  %v26129_v61 = vsub.f32 %v488_v54, %v3230_v46  ;;  %v26154_v4 = vsub.f32 %v504_v39, %v3238_v43  ;;  %v483_v43 = vld [vmem:[%s25433_s23 + $0x38] sm:$0xff] }
  0x9d   : > { %2413 = vmatmul.mubr.f32.gmra.mrb[6].mxu0 %v25757_v13  ;;  %2880 = vmatprep.mubr.f32.mxu1 %v29569_v11 }
  0x9e   : > { %2418 = vmatprep.mubr.f32.mxu0 %v29569_v11  ;;  %23081 = vmatpush1.bf16.msra.mxu0 %v25824_v58  ;;  %v3226_v58 = vand.u32 4294901760, %v480_v24  ;;  %v26131_v6 = vpack.c.bf16 %v3236_v63, %v3232_v2  ;;  %v26134_v35 = vsub.f32 %v497_v7, %v3232_v2  ;;  %v3361_v1 = vand.u32 4294901760, %v26129_v61 }
  0x9f   : > { %23131 = vmatprep.subr.bf16.mxu0 %v26085_v16  ;;  %23113 = vmatpush1.bf16.msra.mxu1 %v26001_v9  ;;  %v3374_v63 = vsub.f32 %v26152_v41, %v3373_v57 }
  0xa0   : > { %23115 = vmatprep.subr.bf16.mxu1 %v23114_v26  ;;  %2883 = vmatmul.mubr.f32.gmra.mrb[8].mxu1 %v25828_v3  ;;  %v26125_v31 = vpack.c.bf16 %v3230_v46, %v3226_v58  ;;  %v26127_v49 = vsub.f32 %v480_v24, %v3226_v58  ;;  %v3367_v60 = vand.u32 4294901760, %v26134_v35  ;;  %v29814_v26 = vand.u32 4294901760, %v25960_v36 }
  0xa1   : > { %2420 = vmatmul.mubr.f32.gmra.mrb[8].mxu0 %v25782_v33  ;;  %2888 = vmatprep.mubr.f32.mxu1 %v29569_v11  ;;  %v3362_v7 = vsub.f32 %v26129_v61, %v3361_v1  ;;  %v3385_v36 = vand.u32 4294901760, %v26154_v4  ;;  %v3380_v58 = vsub.f32 %v26136_v50, %v3379_v37  ;;  %v3375_v52 = vand.u32 4294901760, %v3374_v63  ;;  %v498_v63 = vld [vmem:[%s25433_s23 + $0xb0] sm:$0xff] }
  0xa2   : > { %2425 = vmatprep.mubr.f32.mxu0 %v29569_v11  ;;  %v3349_v0 = vand.u32 4294901760, %v26127_v49  ;;  %v23120_v24 = vpack.c.bf16 %v29814_v26, %v29813_v55  ;;  %v3368_v14 = vsub.f32 %v26134_v35, %v3367_v60  ;;  %v26216_v26 = vsub.f32 %v491_v51, %v3918_v44 }
  0xa3   : > { %v3363_v2 = vand.u32 4294901760, %v3362_v7  ;;  %v3386_v21 = vsub.f32 %v26154_v4, %v3385_v36  ;;  %v3381_v34 = vand.u32 4294901760, %v3380_v58  ;;  %v499_v7 = vld [vmem:[%s25433_s23 + $0xb8] sm:$0xff] }
  0xa4   : > { %2891 = vmatmul.mubr.f32.gmra.mrb[10].mxu1 %v25865_v10  ;;  %v3350_v54 = vsub.f32 %v26127_v49, %v3349_v0  ;;  %v3369_v39 = vand.u32 4294901760, %v3368_v14  ;;  %v507_v14 = vld [vmem:[%s25433_s23 + $0xf8] sm:$0xff] }
  0xa5   : > { %2427 = vmatmul.mubr.f32.gmra.mrb[10].mxu0 %v25839_v38  ;;  %2969 = vmatprep.mubr.f32.mxu1 %v29569_v11  ;;  %v3387_v15 = vand.u32 4294901760, %v3386_v21  ;;  %v506_v21 = vld [vmem:[%s25433_s23 + $0xf0] sm:$0xff] }
  0xa6   : > { %2505 = vmatprep.mubr.f32.mxu0 %v29569_v11  ;;  %v3351_v46 = vand.u32 4294901760, %v3350_v54  ;;  %v23142_v53 = vpack.c.bf16 %v3381_v34, %v3369_v39  ;;  %v29562_v54 = vand.u32 4294901760, %v26216_v26 }
  0xa7   : > { %v23144_v5 = vpack.c.bf16 %v3387_v15, %v3375_v52 }
  0xa8   : > { %2973 = vmatmul.mubr.f32.vlgmr.msra.gmra.mrb[4].mxu1 %v25795_v27  ;;  %v4046_v34 = vsub.f32 %v26216_v26, %v29562_v54 }
  0xa9   : > { %2507 = vmatmul.mubr.f32.vlgmr.msra.gmra.mrb[4].mxu0 %v25673_v12  ;;  %2978 = vmatprep.mubr.f32.mxu1 %v29569_v11 }
  0xaa   : > { %2512 = vmatprep.mubr.f32.mxu0 %v29569_v11  ;;  %23133 = vmatpush1.bf16.msra.mxu0 %v26125_v31 }
  0xab   : > { %23135 = vmatprep.subr.bf16.mxu0 %v26131_v6  ;;  %23117 = vmatpush1.bf16.msra.mxu1 %v23116_v56  ;;  %v3914_v56 = vand.u32 4294901760, %v483_v43 }
  0xac   : > { %23119 = vmatprep.subr.bf16.mxu1 %v23118_v42  ;;  %2982 = vmatmul.mubr.f32.gmra.mrb[6].mxu1 %v25837_v32  ;;  %v23146_v42 = vpack.c.bf16 %v26089_v48, %v26087_v25 }
  0xad   : > { %2514 = vmatmul.mubr.f32.gmra.mrb[6].mxu0 %v25757_v13  ;;  %2987 = vmatprep.mubr.f32.mxu1 %v29569_v11  ;;  %v26214_v55 = vsub.f32 %v483_v43, %v3914_v56  ;;  %v23150_v43 = vpack.c.bf16 %v26136_v50, %v26134_v35  ;;  %v585_v35 = vld [vmem:[%s25448_s2 + $0x8] sm:$0xff] }
  0xae   : > { %2519 = vmatprep.mubr.f32.mxu0 %v29569_v11  ;;  %23137 = vmatpush1.bf16.msra.mxu0 %v26148_v20 }
  0xaf   : > { %23139 = vmatprep.subr.bf16.mxu0 %v23138_v28  ;;  %23121 = vmatpush1.bf16.msra.mxu1 %v23120_v24  ;;  %v26212_v28 = vpack.c.bf16 %v3918_v44, %v3914_v56  ;;  %v4033_v24 = vand.u32 4294901760, %v26214_v55  ;;  %v3924_v56 = vand.u32 4294901760, %v498_v63  ;;  %v3928_v44 = vand.u32 4294901760, %v506_v21 }
  0xb0   : > { %23123 = vmatprep.subr.bf16.mxu1 %v25954_v59  ;;  %2991 = vmatmul.mubr.f32.gmra.mrb[8].mxu1 %v25862_v23  ;;  %v23140_v59 = vpack.c.bf16 %v3363_v2, %v3351_v46  ;;  %v3922_v46 = vand.u32 4294901760, %v499_v7  ;;  %v3926_v2 = vand.u32 4294901760, %v507_v14 }
  0xb1   : > { %2521 = vmatmul.mubr.f32.gmra.mrb[8].mxu0 %v25782_v33  ;;  %2996 = vmatprep.mubr.f32.mxu1 %v29569_v11  ;;  %v4034_v39 = vsub.f32 %v26214_v55, %v4033_v24 }
  0xb2   : > { %2526 = vmatprep.mubr.f32.mxu0 %v29569_v11 }
  0xb3   : > { %v4035_v54 = vand.u32 4294901760, %v4034_v39 }
  0xb4   : > { %3000 = vmatmul.mubr.f32.gmra.mrb[10].mxu1 %v25877_v62 }
  0xb5   : > { %2528 = vmatmul.mubr.f32.gmra.mrb[10].mxu0 %v25839_v38  ;;  %3094 = vmatprep.mubr.f32.mxu1 %v29569_v11 }
  0xb6   : > { %3296 = vmatprep.mubr.f32.mxu0 %v29569_v11 }
  0xb8   : > { %3096 = vmatmul.mubr.f32.vlgmr.msra.gmra.mrb[4].mxu1 %v25673_v12 }
  0xb9   : > { %3302 = vmatmul.mubr.f32.vlgmr.msra.gmra.mrb[12].mxu0 %v25857_v29  ;;  %3101 = vmatprep.mubr.f32.mxu1 %v29569_v11 }
  0xba   : > { %3307 = vmatprep.mubr.f32.mxu0 %v29569_v11  ;;  %23141 = vmatpush1.bf16.msra.mxu0 %v23140_v59  ;;  %v23148_v59 = vpack.c.bf16 %v26129_v61, %v26127_v49 }
  0xbb   : > { %23143 = vmatprep.subr.bf16.mxu0 %v23142_v53  ;;  %23125 = vmatpush1.bf16.msra.mxu1 %v25977_v17  ;;  %v482_v17 = vld [vmem:[%s25433_s23 + $0x30] sm:$0xff]  ;;  %v26255_v53 = vsub.f32 %v499_v7, %v3922_v46  ;;  %v26270_v7 = vpack.c.bf16 %v3928_v44, %v3924_v56 }
  0xbc   : > { %23127 = vmatprep.subr.bf16.mxu1 %v25979_v45  ;;  %3103 = vmatmul.mubr.f32.gmra.mrb[6].mxu1 %v25757_v13  ;;  %v490_v45 = vld [vmem:[%s25433_s23 + $0x70] sm:$0xff]  ;;  %v3916_v58 = vand.u32 4294901760, %v482_v17 }
  0xbd   : > { %3313 = vmatmul.mubr.f32.gmra.mrb[14].mxu0 %v25872_v22  ;;  %3108 = vmatprep.mubr.f32.mxu1 %v29569_v11 }
  0xbe   : > { %3318 = vmatprep.mubr.f32.mxu0 %v29569_v11  ;;  %23145 = vmatpush1.bf16.msra.mxu0 %v23144_v5  ;;  %v26248_v15 = vsub.f32 %v482_v17, %v3916_v58  ;;  %v26258_v5 = vpack.c.bf16 %v3926_v2, %v3922_v46  ;;  %v4047_v17 = vand.u32 4294901760, %v4046_v34 }
  0xbf   : > { %23147 = vmatprep.subr.bf16.mxu0 %v23146_v42  ;;  %23129 = vmatpush1.bf16.msra.mxu1 %v26001_v9  ;;  %v3920_v9 = vand.u32 4294901760, %v490_v45  ;;  %v26260_v42 = vsub.f32 %v507_v14, %v3926_v2  ;;  %v26272_v14 = vsub.f32 %v506_v21, %v3928_v44 }
  0xc0   : > { %23179 = vmatprep.subr.bf16.mxu1 %v26212_v28  ;;  %3110 = vmatmul.mubr.f32.gmra.mrb[8].mxu1 %v25782_v33  ;;  %v23186_v2 = vpack.c.bf16 %v4047_v17, %v4035_v54 }
  0xc1   : > { %3324 = vmatmul.mubr.f32.gmra.mrb[16].mxu0 %v25887_v40  ;;  %3115 = vmatprep.mubr.f32.mxu1 %v29569_v11  ;;  %v26246_v52 = vpack.c.bf16 %v3920_v9, %v3916_v58  ;;  %v26253_v51 = vsub.f32 %v490_v45, %v3920_v9  ;;  %v23152_v58 = vpack.c.bf16 %v26154_v4, %v26152_v41  ;;  %v4039_v9 = vand.u32 4294901760, %v26248_v15 }
  0xc2   : > { %3329 = vmatprep.mubr.f32.mxu0 %v29569_v11  ;;  %v26266_v45 = vsub.f32 %v498_v63, %v3924_v56  ;;  %v29563_v63 = vand.u32 4294901760, %v26255_v53  ;;  %v29564_v39 = vand.u32 4294901760, %v26260_v42  ;;  %v23198_v25 = vpack.c.bf16 %v26260_v42, %v26255_v53 }
  0xc3   : > { %v29565_v46 = vand.u32 4294901760, %v26253_v51  ;;  %v4040_v21 = vsub.f32 %v26248_v15, %v4039_v9 }
  0xc4   : > { %3117 = vmatmul.mubr.f32.gmra.mrb[10].mxu1 %v25839_v38  ;;  %v29566_v34 = vand.u32 4294901760, %v26266_v45  ;;  %v4070_v56 = vsub.f32 %v26260_v42, %v29564_v39  ;;  %v23200_v48 = vpack.c.bf16 %v26272_v14, %v26266_v45 }
  0xc5   : > { %3335 = vmatmul.mubr.f32.gmra.mrb[18].mxu0 %v25907_v8  ;;  %3195 = vmatprep.mubr.f32.mxu1 %v29569_v11  ;;  %v4052_v54 = vsub.f32 %v26253_v51, %v29565_v46  ;;  %v4041_v44 = vand.u32 4294901760, %v4040_v21 }
  0xc6   : > { %3445 = vmatprep.mubr.f32.mxu0 %v29569_v11  ;;  %v4071_v39 = vand.u32 4294901760, %v4070_v56 }
  0xc7   : > { %v4053_v17 = vand.u32 4294901760, %v4052_v54 }
  0xc8   : > { %3197 = vmatmul.mubr.f32.vlgmr.msra.gmra.mrb[4].mxu1 %v25673_v12 }
  0xc9   : > { %3447 = vmatmul.mubr.f32.vlgmr.msra.gmra.mrb[12].mxu0 %v25673_v12  ;;  %3202 = vmatprep.mubr.f32.mxu1 %v29569_v11  ;;  %v23188_v21 = vpack.c.bf16 %v4053_v17, %v4041_v44 }
  0xca   : > { %3452 = vmatprep.mubr.f32.mxu0 %v29569_v11  ;;  %23149 = vmatpush1.bf16.msra.mxu0 %v23148_v59  ;;  %v4075_v59 = vand.u32 4294901760, %v26272_v14 }
  0xcb   : > { %23151 = vmatprep.subr.bf16.mxu0 %v23150_v43  ;;  %23181 = vmatpush1.bf16.msra.mxu1 %v26246_v52  ;;  %v4058_v43 = vsub.f32 %v26255_v53, %v29563_v63 }
  0xcc   : > { %23183 = vmatprep.subr.bf16.mxu1 %v26258_v5  ;;  %3204 = vmatmul.mubr.f32.gmra.mrb[6].mxu1 %v25757_v13 }
  0xcd   : > { %3454 = vmatmul.mubr.f32.gmra.mrb[14].mxu0 %v25757_v13  ;;  %3209 = vmatprep.mubr.f32.mxu1 %v29569_v11  ;;  %v4059_v63 = vand.u32 4294901760, %v4058_v43  ;;  %v23162_v43 = vpack.c.bf16 %v3355_v47, %v3343_v30 }
  0xce   : > { %3459 = vmatprep.mubr.f32.mxu0 %v29569_v11  ;;  %23153 = vmatpush1.bf16.msra.mxu0 %v23152_v58  ;;  %v4064_v58 = vsub.f32 %v26266_v45, %v29566_v34 }
  0xcf   : > { %23155 = vmatprep.subr.bf16.mxu0 %v26085_v16  ;;  %23185 = vmatpush1.bf16.msra.mxu1 %v26270_v7  ;;  %v23190_v34 = vpack.c.bf16 %v4071_v39, %v4059_v63  ;;  %v23194_v63 = vpack.c.bf16 %v26216_v26, %v26214_v55 }
  0xd0   : > { %23187 = vmatprep.subr.bf16.mxu1 %v23186_v2  ;;  %3211 = vmatmul.mubr.f32.gmra.mrb[8].mxu1 %v25782_v33  ;;  %v4076_v2 = vsub.f32 %v26272_v14, %v4075_v59  ;;  %v4065_v54 = vand.u32 4294901760, %v4064_v58 }
  0xd1   : > { %3461 = vmatmul.mubr.f32.gmra.mrb[16].mxu0 %v25782_v33  ;;  %3216 = vmatprep.mubr.f32.mxu1 %v29569_v11 }
  0xd2   : > { %3466 = vmatprep.mubr.f32.mxu0 %v29569_v11  ;;  %v4077_v46 = vand.u32 4294901760, %v4076_v2 }
  0xd4   : > { %3218 = vmatmul.mubr.f32.gmra.mrb[10].mxu1 %v25839_v38  ;;  %v23192_v56 = vpack.c.bf16 %v4077_v46, %v4065_v54 }
  0xd5   : > { %3468 = vmatmul.mubr.f32.gmra.mrb[18].mxu0 %v25839_v38  ;;  %3986 = vmatprep.mubr.f32.mxu1 %v29569_v11 }
  0xd6   : > { %3554 = vmatprep.mubr.f32.mxu0 %v29569_v11 }
  0xd8   : > { %3992 = vmatmul.mubr.f32.vlgmr.msra.gmra.mrb[12].mxu1 %v25857_v29  ;;  %v23164_v29 = vpack.c.bf16 %v3361_v1, %v3349_v0 }
  0xd9   : > { %3557 = vmatmul.mubr.f32.vlgmr.msra.gmra.mrb[12].mxu0 %v25754_v18  ;;  %3997 = vmatprep.mubr.f32.mxu1 %v29569_v11 }
  0xda   : > { %3562 = vmatprep.mubr.f32.mxu0 %v29569_v11  ;;  %23157 = vmatpush1.bf16.msra.mxu0 %v26125_v31 }
  0xdb   : > { %23159 = vmatprep.subr.bf16.mxu0 %v26131_v6  ;;  %23189 = vmatpush1.bf16.msra.mxu1 %v23188_v21 }
  0xdc   : > { %23191 = vmatprep.subr.bf16.mxu1 %v23190_v34  ;;  %4003 = vmatmul.mubr.f32.gmra.mrb[14].mxu1 %v25872_v22  ;;  %v23166_v22 = vpack.c.bf16 %v3379_v37, %v3367_v60  ;;  %v26467_v37 = vld [vmem:[%s25448_s2 + $0x10] sm:$0xff] }
  0xdd   : > { %3565 = vmatmul.mubr.f32.gmra.mrb[14].mxu0 %v25799_v19  ;;  %4008 = vmatprep.mubr.f32.mxu1 %v29569_v11 }
  0xde   : > { %3570 = vmatprep.mubr.f32.mxu0 %v29569_v11  ;;  %23161 = vmatpush1.bf16.msra.mxu0 %v26148_v20 }
  0xdf   : > { %23163 = vmatprep.subr.bf16.mxu0 %v23162_v43  ;;  %23193 = vmatpush1.bf16.msra.mxu1 %v23192_v56 }
  0xe0   : > { %23195 = vmatprep.subr.bf16.mxu1 %v23194_v63  ;;  %4014 = vmatmul.mubr.f32.gmra.mrb[16].mxu1 %v25887_v40  ;;  %v23196_v40 = vpack.c.bf16 %v26253_v51, %v26248_v15 }
  0xe1   : > { %3573 = vmatmul.mubr.f32.gmra.mrb[16].mxu0 %v25828_v3  ;;  %4019 = vmatprep.mubr.f32.mxu1 %v29569_v11 }
  0xe2   : > { %3578 = vmatprep.mubr.f32.mxu0 %v29569_v11 }
  0xe4   : > { %4025 = vmatmul.mubr.f32.gmra.mrb[18].mxu1 %v25907_v8  ;;  %v23168_v8 = vpack.c.bf16 %v3385_v36, %v3373_v57 }
  0xe5   : > { %3581 = vmatmul.mubr.f32.gmra.mrb[18].mxu0 %v25865_v10  ;;  %4135 = vmatprep.mubr.f32.mxu1 %v29569_v11 }
  0xe6   : > { %3659 = vmatprep.mubr.f32.mxu0 %v29569_v11 }
  0xe8   : > { %4137 = vmatmul.mubr.f32.vlgmr.msra.gmra.mrb[12].mxu1 %v25673_v12 }
  0xe9   : > { %3663 = vmatmul.mubr.f32.vlgmr.msra.gmra.mrb[12].mxu0 %v25795_v27  ;;  %4142 = vmatprep.mubr.f32.mxu1 %v29569_v11 }
  0xea   : > { %3668 = vmatprep.mubr.f32.mxu0 %v29569_v11  ;;  %23165 = vmatpush1.bf16.msra.mxu0 %v23164_v29 }
  0xeb   : > { %23167 = vmatprep.subr.bf16.mxu0 %v23166_v22  ;;  %23197 = vmatpush1.bf16.msra.mxu1 %v23196_v40 }
  0xec   : > { %23199 = vmatprep.subr.bf16.mxu1 %v23198_v25  ;;  %4144 = vmatmul.mubr.f32.gmra.mrb[14].mxu1 %v25757_v13 }
  0xed   : > { %3672 = vmatmul.mubr.f32.gmra.mrb[14].mxu0 %v25837_v32  ;;  %4149 = vmatprep.mubr.f32.mxu1 %v29569_v11 }
  0xee   : > { %3677 = vmatprep.mubr.f32.mxu0 %v29569_v11  ;;  %23169 = vmatpush1.bf16.msra.mxu0 %v23168_v8 }
  0xef   : > { %23171 = vmatprep.subr.bf16.mxu0 %v26085_v16  ;;  %23201 = vmatpush1.bf16.msra.mxu1 %v23200_v48  ;;  %v29815_v16 = vand.u32 4294901760, %v26216_v26 }
  0xf0   : > { %23203 = vmatprep.subr.bf16.mxu1 %v26212_v28  ;;  %4151 = vmatmul.mubr.f32.gmra.mrb[16].mxu1 %v25782_v33 }
  0xf1   : > { %3681 = vmatmul.mubr.f32.gmra.mrb[16].mxu0 %v25862_v23  ;;  %4156 = vmatprep.mubr.f32.mxu1 %v29569_v11  ;;  %v23210_v30 = vpack.c.bf16 %v29815_v16, %v4033_v24 }
  0xf2   : > { %3686 = vmatprep.mubr.f32.mxu0 %v29569_v11 }
  0xf4   : > { %4158 = vmatmul.mubr.f32.gmra.mrb[18].mxu1 %v25839_v38 }
  0xf5   : > { %3690 = vmatmul.mubr.f32.gmra.mrb[18].mxu0 %v25877_v62  ;;  %4244 = vmatprep.mubr.f32.mxu1 %v29569_v11 }
  0xf6   : > { %3784 = vmatprep.mubr.f32.mxu0 %v29569_v11 }
  0xf8   : > { %4247 = vmatmul.mubr.f32.vlgmr.msra.gmra.mrb[12].mxu1 %v25754_v18  ;;  %v29567_v18 = vmov 0.0|0.0  }
  0xf9   : > { %3786 = vmatmul.mubr.f32.vlgmr.msra.gmra.mrb[12].mxu0 %v25673_v12  ;;  %4252 = vmatprep.mubr.f32.mxu1 %v29569_v11 }
  0xfa   : > { %3791 = vmatprep.mubr.f32.mxu0 %v29569_v11  ;;  %23173 = vmatpush1.bf16.msra.mxu0 %v26125_v31  ;;  %v29818_v31 = vand.u32 4294901760, %v26260_v42 }
  0xfb   : > { %23175 = vmatprep.subr.bf16.mxu0 %v26131_v6  ;;  %23205 = vmatpush1.bf16.msra.mxu1 %v26246_v52 }
  0xfc   : > { %23207 = vmatprep.subr.bf16.mxu1 %v26258_v5  ;;  %4255 = vmatmul.mubr.f32.gmra.mrb[14].mxu1 %v25799_v19  ;;  %v29816_v19 = vand.u32 4294901760, %v26253_v51 }
  0xfd   : > { %3793 = vmatmul.mubr.f32.gmra.mrb[14].mxu0 %v25757_v13  ;;  %4260 = vmatprep.mubr.f32.mxu1 %v29569_v11 }
  0xfe   : > { %3798 = vmatprep.mubr.f32.mxu0 %v29569_v11  ;;  %23177 = vmatpush1.bf16.msra.mxu0 %v26148_v20  ;;  %v23212_v47 = vpack.c.bf16 %v29816_v19, %v4039_v9 }
  0xff   : > { %23209 = vmatpush1.bf16.msra.mxu1 %v26270_v7  ;;  %23229 = vmatprep.subr.bf16.mxu0 %v29567_v18 }
 0x100   : > { %23211 = vmatprep.subr.bf16.mxu1 %v23210_v30  ;;  %4263 = vmatmul.mubr.f32.gmra.mrb[16].mxu1 %v25828_v3  ;;  %v29817_v3 = vand.u32 4294901760, %v26255_v53 }
 0x101   : > { %3800 = vmatmul.mubr.f32.gmra.mrb[16].mxu0 %v25782_v33  ;;  %4268 = vmatprep.mubr.f32.mxu1 %v29569_v11 }
 0x102   : > { %3805 = vmatprep.mubr.f32.mxu0 %v29569_v11  ;;  %v23214_v49 = vpack.c.bf16 %v29818_v31, %v29817_v3 }
 0x104   : > { %4271 = vmatmul.mubr.f32.gmra.mrb[18].mxu1 %v25865_v10  ;;  %v29819_v10 = vand.u32 4294901760, %v26266_v45 }
 0x105   : > { %3807 = vmatmul.mubr.f32.gmra.mrb[18].mxu0 %v25839_v38  ;;  %4349 = vmatprep.mubr.f32.mxu1 %v29569_v11 }
 0x106   : > { %3885 = vmatprep.mubr.f32.mxu0 %v29569_v11  ;;  %v23216_v61 = vpack.c.bf16 %v4075_v59, %v29819_v10 }
 0x108   : > { %4353 = vmatmul.mubr.f32.vlgmr.msra.gmra.mrb[12].mxu1 %v25795_v27  ;;  %v593_v27 = vlaneseq }
 0x109   : > { %3887 = vmatmul.mubr.f32.vlgmr.msra.gmra.mrb[12].mxu0 %v25673_v12  ;;  %4358 = vmatprep.mubr.f32.mxu1 %v29569_v11 }
 0x10a   : > { %3892 = vmatprep.mubr.f32.mxu0 %v29569_v11  ;;  %23213 = vmatpush1.bf16.msra.mxu1 %v23212_v47 }
 0x10b   : > { %23215 = vmatprep.subr.bf16.mxu1 %v23214_v49 }
 0x10c   : > { %4362 = vmatmul.mubr.f32.gmra.mrb[14].mxu1 %v25837_v32 }
 0x10d   : > { %3894 = vmatmul.mubr.f32.gmra.mrb[14].mxu0 %v25757_v13  ;;  %4367 = vmatprep.mubr.f32.mxu1 %v29569_v11 }
 0x10e   : > { %3899 = vmatprep.mubr.f32.mxu0 %v29569_v11  ;;  %23217 = vmatpush1.bf16.msra.mxu1 %v23216_v61 }
 0x10f   : > { %23219 = vmatprep.subr.bf16.mxu1 %v26212_v28 }
 0x110   : > { %4371 = vmatmul.mubr.f32.gmra.mrb[16].mxu1 %v25862_v23  ;;  %v26435_v23 = vshrl.u32 %v593_v27, 7 }
 0x111   : > { %3901 = vmatmul.mubr.f32.gmra.mrb[16].mxu0 %v25782_v33  ;;  %4376 = vmatprep.mubr.f32.mxu1 %v29569_v11 }
 0x112   : > { %3906 = vmatprep.mubr.f32.mxu0 %v29569_v11  ;;  %29820 = vst [vmem:[#allocation3_spill] sm:$0xff] %v26435_v23  ;;  %v595_v32 = vsub.s32 0, %v26435_v23 }
 0x114   : > { %4380 = vmatmul.mubr.f32.gmra.mrb[18].mxu1 %v25877_v62  ;;  %v584_v62 = vld [vmem:[%s25448_s2] sm:$0xff]  ;;  %v26449_v41 = vrot.slane %v585_v35, %v595_v32 }
 0x115   : > { %3908 = vmatmul.mubr.f32.gmra.mrb[18].mxu0 %v25839_v38  ;;  %4474 = vmatprep.mubr.f32.mxu1 %v29569_v11  ;;  %v596_v20 = vrot.slane %v584_v62, %v595_v32 }
 0x116   : > { %20351 = vmatprep.mubr.msk.f32.mxu0 %vm25357_vm2, %v29569_v11 }
 0x118   : > { %4476 = vmatmul.mubr.f32.vlgmr.msra.gmra.mrb[12].mxu1 %v25673_v12 }
 0x119   : > { %4481 = vmatprep.mubr.f32.mxu1 %v29569_v11  ;;  %23221 = vmatpush1.bf16.msra.mxu1 %v26246_v52  ;;  %v26489_v52 = vsub.s32 1, %v26435_v23 }
 0x11a   : > { %23223 = vmatprep.subr.bf16.mxu1 %v26258_v5 }
 0x11b   : > { %v1803_v51 = vrot.slane %v584_v62, %v26489_v52  ;;  %v1807_v53 = vrot.slane %v585_v35, %v26489_v52 }
 0x11c   : > { %4483 = vmatmul.mubr.f32.gmra.mrb[14].mxu1 %v25757_v13 }
 0x11d   : > { %4488 = vmatprep.mubr.f32.mxu1 %v29569_v11  ;;  %23225 = vmatpush1.bf16.msra.mxu1 %v26270_v7 }
 0x11e   : > { %23226 = vmatprep.subr.bf16.mxu1 %v29567_v18 }
 0x120   : > { %4490 = vmatmul.mubr.f32.gmra.mrb[16].mxu1 %v25782_v33 }
 0x121   : > { %4495 = vmatprep.mubr.f32.mxu1 %v29569_v11 }
 0x124   : > { %v1196_v6 = vpop.f32.mrb[0].mxu0  ;;  %4497 = vmatmul.mubr.f32.gmra.mrb[18].mxu1 %v25839_v38 }
 0x125   : > { %v26446_v50 = vpop.f32.mrb[1].mxu0  ;;  %4575 = vmatprep.mubr.f32.mxu1 %v29569_v11  ;;  %v24858_v24 = vadd.f32 %v1196_v6, %v596_v20 }
 0x127   : > { %v26491_v15 = vand.u32 4294901760, %v24858_v24 }
 0x128   : > { %v1203_v4 = vpop.f32.mrb[2].mxu0  ;;  %4577 = vmatmul.mubr.f32.vlgmr.msra.gmra.mrb[12].mxu1 %v25673_v12  ;;  %v26472_v12 = vld [vmem:[%s25448_s2 + $0x18] sm:$0xff] }
 0x129   : > { %v26452_v0 = vadd.f32 %v1203_v4, %v596_v20  ;;  %v1205_v1 = vpop.f32.mrb[3].mxu0  ;;  %4582 = vmatprep.mubr.f32.mxu1 %v29569_v11  ;;  %v26496_v5 = vsub.f32 %v24858_v24, %v26491_v15 }
 0x12a   : > { %v26455_v60 = vadd.f32 %v1205_v1, %v26449_v41 }
 0x12b   : > { %29821 = vst [vmem:[#allocation4_spill] sm:$0xff] %v26452_v0  ;;  %v4673_v9 = vand.u32 4294901760, %v26496_v5 }
 0x12c   : > { %29822 = vst [vmem:[#allocation5_spill] sm:$0xff] %v26455_v60  ;;  %4584 = vmatmul.mubr.f32.gmra.mrb[14].mxu1 %v25757_v13  ;;  %v26477_v13 = vrot.slane %v26467_v37, %v595_v32  ;;  %v591_v60 = vld [vmem:[%s25448_s2 + $0x38] sm:$0xff] }
 0x12d   : > { %4589 = vmatprep.mubr.f32.mxu1 %v29569_v11  ;;  %v4674_v21 = vsub.f32 %v26496_v5, %v4673_v9 }
 0x12e   : > { %29825 = vst [vmem:[#allocation8_spill] sm:$0xff] %v26477_v13 }
 0x12f   : > { %v4675_v47 = vand.u32 4294901760, %v4674_v21 }
 0x130   : > { %4591 = vmatmul.mubr.f32.gmra.mrb[16].mxu1 %v25782_v33  ;;  %v26480_v33 = vrot.slane %v26472_v12, %v595_v32 }
 0x131   : > { %4596 = vmatprep.mubr.f32.mxu1 %v29569_v11 }
 0x132   : > { %29826 = vst [vmem:[#allocation9_spill] sm:$0xff] %v26480_v33 }
 0x134   : > { %4598 = vmatmul.mubr.f32.gmra.mrb[18].mxu1 %v25839_v38 }
 0x135   : > { %20344 = vmatprep.mubr.msk.f32.mxu1 %vm25357_vm2, %v29569_v11 }
 0x143   : > { %v26469_v57 = vpop.f32.mrb[0].mxu1 }
 0x144   : > { %29823 = vst [vmem:[#allocation6_spill] sm:$0xff] %v26469_v57  ;;  %v26474_v36 = vpop.f32.mrb[1].mxu1  ;;  %v27379_v57 = vld [vmem:[%s25438_s28 + $0x78] sm:$0xff] }
 0x145   : > { %29824 = vst [vmem:[#allocation7_spill] sm:$0xff] %v26474_v36  ;;  %v27230_v36 = vld [vmem:[%s25438_s28 + $0x38] sm:$0xff] }
 0x147   : > { %v1795_v28 = vpop.f32.mrb[2].mxu1 }
 0x148   : > { %v26483_v38 = vadd.f32 %v1795_v28, %v26477_v13  ;;  %v1797_v55 = vpop.f32.mrb[3].mxu1 }
 0x149   : > { %v26486_v26 = vadd.f32 %v1797_v55, %v26480_v33 }
 0x14a   : > { %29827 = vst [vmem:[#allocation10_spill] sm:$0xff] %v26483_v38 }
 0x14b   : > { %29828 = vst [vmem:[#allocation11_spill] sm:$0xff] %v26486_v26 }
 0x17c   : > { %v2508_v42 = vpop.f32.mrb[4].mxu0 }
 0x17d   : > { %v24866_v45 = vadd.f32 %v2508_v42, %v1803_v51  ;;  %v2510_v7 = vpop.f32.mrb[5].mxu0 }
 0x17e   : > { %v24867_v14 = vadd.f32 %v2510_v7, %v1807_v53 }
 0x17f   : > { %v4605_v46 = vand.u32 4294901760, %v24866_v45 }
 0x180   : > { %v5541_v39 = vand.u32 4294901760, %v24867_v14  ;;  %v2515_v34 = vpop.f32.mrb[6].mxu0 }
 0x181   : > { %v26499_v59 = vsub.f32 %v24866_v45, %v4605_v46  ;;  %v24868_v44 = vadd.f32 %v2515_v34, %v1803_v51  ;;  %v2517_v17 = vpop.f32.mrb[7].mxu0 }
 0x182   : > { %v26501_v58 = vsub.f32 %v24867_v14, %v5541_v39  ;;  %v24869_v2 = vadd.f32 %v2517_v17, %v1807_v53 }
 0x183   : > { %v4684_v54 = vand.u32 4294901760, %v26499_v59  ;;  %v4608_v43 = vand.u32 4294901760, %v24868_v44 }
 0x184   : > { %v5620_v56 = vand.u32 4294901760, %v26501_v58  ;;  %v5544_v63 = vand.u32 4294901760, %v24869_v2  ;;  %v2522_v29 = vpop.f32.mrb[8].mxu0 }
 0x185   : > { %v26508_v22 = vpack.c.bf16 %v4608_v43, %v4605_v46  ;;  %v4690_v40 = vsub.f32 %v24868_v44, %v4608_v43  ;;  %v24870_v25 = vadd.f32 %v2522_v29, %v1803_v51  ;;  %v2524_v8 = vpop.f32.mrb[9].mxu0  ;;  %v4685_v48 = vsub.f32 %v26499_v59, %v4684_v54 }
 0x186   : > { %v26511_v16 = vpack.c.bf16 %v5544_v63, %v5541_v39  ;;  %v26513_v30 = vsub.f32 %v24869_v2, %v5544_v63  ;;  %v24871_v19 = vadd.f32 %v2524_v8, %v1807_v53  ;;  %v5621_v10 = vsub.f32 %v26501_v58, %v5620_v56 }
 0x187   : > { %v4691_v3 = vand.u32 4294901760, %v4690_v40  ;;  %v23233_v31 = vpack.c.bf16 %v4690_v40, %v26499_v59  ;;  %v10912_v49 = vand.u32 4294901760, %v24870_v25  ;;  %23228 = vmatpush3.bf16.xpose.msra.mxu1 %v26508_v22  ;;  %v4686_v28 = vand.u32 4294901760, %v4685_v48 }
 0x188   : > { %v5627_v61 = vand.u32 4294901760, %v26513_v30  ;;  %v11847_v32 = vand.u32 4294901760, %v24871_v19  ;;  %v2529_v62 = vpop.f32.mrb[10].mxu0  ;;  %23244 = vmatprep.subr.bf16.mxu1 %v29567_v18  ;;  %v5622_v39 = vand.u32 4294901760, %v5621_v10 }
 0x189   : > { %v4692_v6 = vsub.f32 %v4690_v40, %v4691_v3  ;;  %v26522_v35 = vsub.f32 %v24870_v25, %v10912_v49  ;;  %v24872_v20 = vadd.f32 %v2529_v62, %v1803_v51  ;;  %v2531_v4 = vpop.f32.mrb[11].mxu0  ;;  %v26524_v1 = vpack.c.bf16 %v4691_v3, %v4684_v54 }
 0x18a   : > { %v5628_v55 = vsub.f32 %v26513_v30, %v5627_v61  ;;  %v26527_v24 = vsub.f32 %v24871_v19, %v11847_v32  ;;  %v24873_v42 = vadd.f32 %v2531_v4, %v1807_v53  ;;  %v26530_v46 = vpack.c.bf16 %v5627_v61, %v5620_v56 }
 0x18b   : > { %29829 = vst [vmem:[#allocation12_spill] sm:$0xff] %v26522_v35  ;;  %v4693_v45 = vand.u32 4294901760, %v4692_v6  ;;  %v10991_v7 = vand.u32 4294901760, %v26522_v35  ;;  %v10915_v14 = vand.u32 4294901760, %v24872_v20  ;;  %v1811_v6 = vrot.slane %v26467_v37, %v26489_v52 }
 0x18c   : > { %29830 = vst [vmem:[#allocation13_spill] sm:$0xff] %v26527_v24  ;;  %v5629_v34 = vand.u32 4294901760, %v5628_v55  ;;  %v11926_v59 = vand.u32 4294901760, %v26527_v24  ;;  %v11850_v51 = vand.u32 4294901760, %v24873_v42 }
 0x18d   : > { %v26533_v44 = vpack.c.bf16 %v10915_v14, %v10912_v49  ;;  %v26535_v17 = vsub.f32 %v24872_v20, %v10915_v14  ;;  %v23230_v2 = vpack.c.bf16 %v4693_v45, %v4686_v28  ;;  %v10992_v43 = vsub.f32 %v26522_v35, %v10991_v7 }
 0x18e   : > { %v26537_v21 = vpack.c.bf16 %v11850_v51, %v11847_v32  ;;  %v26539_v54 = vsub.f32 %v24873_v42, %v11850_v51  ;;  %20345 = vmatmul.mubr.f32.vlgmr.msra.gmra.mrb[20].mxu1 %v4675_v47  ;;  %v26541_v53 = vpack.c.bf16 %v5629_v34, %v5622_v39  ;;  %v11927_v29 = vsub.f32 %v26527_v24, %v11926_v59 }
 0x18f   : > { %29831 = vst [vmem:[#allocation14_spill] sm:$0xff] %v26533_v44  ;;  %29832 = vst [vmem:[#allocation15_spill] sm:$0xff] %v26535_v17  ;;  %v10998_v56 = vand.u32 4294901760, %v26535_v17  ;;  %23231 = vmatpush3.bf16.xpose.msra.mxu0 %v23230_v2  ;;  %20386 = vmatprep.mubr.msk.f32.mxu1 %vm25357_vm2, %v29569_v11  ;;  %v10993_v3 = vand.u32 4294901760, %v10992_v43  ;;  %v1815_v20 = vrot.slane %v26472_v12, %v26489_v52 }
 0x190   : > { %29833 = vst [vmem:[#allocation16_spill] sm:$0xff] %v26537_v21  ;;  %29834 = vst [vmem:[#allocation17_spill] sm:$0xff] %v26539_v54  ;;  %v11933_v40 = vand.u32 4294901760, %v26539_v54  ;;  %23232 = vmatprep.subr.bf16.mxu0 %v29567_v18  ;;  %v11928_v10 = vand.u32 4294901760, %v11927_v29  ;;  %v590_v21 = vld [vmem:[%s25448_s2 + $0x30] sm:$0xff] }
 0x191   : > { %v10999_v8 = vsub.f32 %v26535_v17, %v10998_v56  ;;  %v26555_v48 = vpack.c.bf16 %v10998_v56, %v10991_v7 }
 0x192   : > { %v11934_v19 = vsub.f32 %v26539_v54, %v11933_v40  ;;  %v26558_v47 = vpack.c.bf16 %v11933_v40, %v11926_v59 }
 0x193   : > { %29835 = vst [vmem:[#allocation18_spill] sm:$0xff] %v26555_v48  ;;  %v11000_v49 = vand.u32 4294901760, %v10999_v8 }
 0x194   : > { %29836 = vst [vmem:[#allocation19_spill] sm:$0xff] %v26558_v47  ;;  %v11935_v61 = vand.u32 4294901760, %v11934_v19 }
 0x195   : > { %v26560_v32 = vpack.c.bf16 %v11000_v49, %v10993_v3 }
 0x196   : > { %20352 = vmatmul.mubr.f32.vlgmr.msra.gmra.mrb[20].mxu0 %v26491_v15  ;;  %v26563_v62 = vpack.c.bf16 %v11935_v61, %v11928_v10 }
 0x197   : > { %29837 = vst [vmem:[#allocation20_spill] sm:$0xff] %v26560_v32  ;;  %23234 = vmatpush3.bf16.xpose.msra.mxu0 %v23233_v31  ;;  %20358 = vmatprep.mubr.msk.f32.mxu0 %vm25357_vm2, %v29569_v11 }
 0x198   : > { %29838 = vst [vmem:[#allocation21_spill] sm:$0xff] %v26563_v62  ;;  %23235 = vmatprep.subr.bf16.mxu0 %v29567_v18 }
 0x19b   : > { %v3198_v4 = vpop.f32.mrb[4].mxu1 }
 0x19c   : > { %v24874_v31 = vadd.f32 %v3198_v4, %v1811_v6  ;;  %v3200_v28 = vpop.f32.mrb[5].mxu1 }
 0x19d   : > { %v24875_v55 = vadd.f32 %v3200_v28, %v1815_v20 }
 0x19e   : > { %20359 = vmatmul.mubr.f32.vlgmr.msra.gmra.mrb[20].mxu0 %v26496_v5  ;;  %v7758_v42 = vand.u32 4294901760, %v24874_v31 }
 0x19f   : > { %23237 = vmatpush3.bf16.xpose.msra.mxu0 %v26508_v22  ;;  %20365 = vmatprep.mubr.msk.f32.mxu0 %vm25357_vm2, %v29569_v11  ;;  %v9335_v45 = vand.u32 4294901760, %v24875_v55  ;;  %v3205_v7 = vpop.f32.mrb[6].mxu1 }
 0x1a0   : > { %23238 = vmatprep.subr.bf16.mxu0 %v29567_v18  ;;  %v26577_v37 = vsub.f32 %v24874_v31, %v7758_v42  ;;  %v24876_v14 = vadd.f32 %v3205_v7, %v1811_v6  ;;  %v3207_v12 = vpop.f32.mrb[7].mxu1 }
 0x1a1   : > { %v26579_v39 = vsub.f32 %v24875_v55, %v9335_v45  ;;  %v24877_v34 = vadd.f32 %v3207_v12, %v1815_v20 }
 0x1a2   : > { %29839 = vst [vmem:[#allocation22_spill] sm:$0xff] %v26577_v37  ;;  %v7837_v59 = vand.u32 4294901760, %v26577_v37  ;;  %v7761_v51 = vand.u32 4294901760, %v24876_v14 }
 0x1a3   : > { %29840 = vst [vmem:[#allocation23_spill] sm:$0xff] %v26579_v39  ;;  %v9414_v2 = vand.u32 4294901760, %v26579_v39  ;;  %v9338_v43 = vand.u32 4294901760, %v24877_v34  ;;  %v3212_v56 = vpop.f32.mrb[8].mxu1 }
 0x1a4   : > { %v7838_v29 = vsub.f32 %v26577_v37, %v7837_v59  ;;  %v26589_v40 = vpack.c.bf16 %v7761_v51, %v7758_v42  ;;  %v26591_v8 = vsub.f32 %v24876_v14, %v7761_v51  ;;  %v3214_v19 = vpop.f32.mrb[9].mxu1  ;;  %v24878_v49 = vadd.f32 %v3212_v56, %v1811_v6 }
 0x1a5   : > { %v9415_v5 = vsub.f32 %v26579_v39, %v9414_v2  ;;  %v26597_v3 = vsub.f32 %v24877_v34, %v9338_v43  ;;  %v24879_v4 = vadd.f32 %v3214_v19, %v1815_v20 }
 0x1a6   : > { %20366 = vmatmul.mubr.f32.vlgmr.msra.gmra.mrb[20].mxu0 %v4673_v9  ;;  %29841 = vst [vmem:[#allocation24_spill] sm:$0xff] %v26589_v40  ;;  %29842 = vst [vmem:[#allocation25_spill] sm:$0xff] %v26591_v8  ;;  %v26595_v9 = vpack.c.bf16 %v9338_v43, %v9335_v45  ;;  %v7844_v10 = vand.u32 4294901760, %v26591_v8  ;;  %v14064_v42 = vand.u32 4294901760, %v24878_v49 }
 0x1a7   : > { %23240 = vmatpush3.bf16.xpose.msra.mxu0 %v26524_v1  ;;  %20372 = vmatprep.mubr.msk.f32.mxu0 %vm25357_vm2, %v29569_v11  ;;  %29844 = vst [vmem:[#allocation27_spill] sm:$0xff] %v26597_v3  ;;  %v7839_v1 = vand.u32 4294901760, %v7838_v29  ;;  %v9416_v31 = vand.u32 4294901760, %v9415_v5  ;;  %v9421_v28 = vand.u32 4294901760, %v26597_v3  ;;  %v3219_v7 = vpop.f32.mrb[10].mxu1  ;;  %v15641_v14 = vand.u32 4294901760, %v24879_v4 }
 0x1a8   : > { %23241 = vmatprep.subr.bf16.mxu0 %v29567_v18  ;;  %29843 = vst [vmem:[#allocation26_spill] sm:$0xff] %v26595_v9  ;;  %v7845_v45 = vsub.f32 %v26591_v8, %v7844_v10  ;;  %v24880_v12 = vadd.f32 %v3219_v7, %v1811_v6  ;;  %v3221_v34 = vpop.f32.mrb[11].mxu1  ;;  %v26606_v51 = vpack.c.bf16 %v7844_v10, %v7837_v59 }
 0x1a9   : > { %v9422_v43 = vsub.f32 %v26597_v3, %v9421_v28  ;;  %v26609_v56 = vsub.f32 %v24878_v49, %v14064_v42  ;;  %v24881_v29 = vadd.f32 %v3221_v34, %v1815_v20  ;;  %v26611_v19 = vpack.c.bf16 %v9421_v28, %v9414_v2  ;;  %v27195_v3 = vld [vmem:[%s25438_s28 + $0x20] sm:$0xff] }
 0x1aa   : > { %29845 = vst [vmem:[#allocation28_spill] sm:$0xff] %v26606_v51  ;;  %v7846_v5 = vand.u32 4294901760, %v7845_v45  ;;  %v26613_v25 = vsub.f32 %v24879_v4, %v15641_v14  ;;  %v14067_v63 = vand.u32 4294901760, %v24880_v12 }
 0x1ab   : > { %29846 = vst [vmem:[#allocation29_spill] sm:$0xff] %v26609_v56  ;;  %29847 = vst [vmem:[#allocation30_spill] sm:$0xff] %v26611_v19  ;;  %v9423_v55 = vand.u32 4294901760, %v9422_v43  ;;  %v14143_v61 = vand.u32 4294901760, %v26609_v56  ;;  %v15644_v6 = vand.u32 4294901760, %v24881_v29 }
 0x1ac   : > { %29848 = vst [vmem:[#allocation31_spill] sm:$0xff] %v26613_v25  ;;  %v15720_v59 = vand.u32 4294901760, %v26613_v25  ;;  %v26621_v20 = vpack.c.bf16 %v14067_v63, %v14064_v42  ;;  %v26623_v2 = vsub.f32 %v24880_v12, %v14067_v63  ;;  %v26625_v49 = vpack.c.bf16 %v7846_v5, %v7839_v1  ;;  %v589_v63 = vld [vmem:[%s25448_s2 + $0x28] sm:$0xff] }
 0x1ad   : > { %v14144_v10 = vsub.f32 %v26609_v56, %v14143_v61  ;;  %v26628_v4 = vpack.c.bf16 %v15644_v6, %v15641_v14  ;;  %v26630_v28 = vsub.f32 %v24881_v29, %v15644_v6 }
 0x1ae   : > { %20373 = vmatmul.mubr.f32.vlgmr.msra.gmra.mrb[20].mxu0 %v26491_v15  ;;  %29849 = vst [vmem:[#allocation32_spill] sm:$0xff] %v26621_v20  ;;  %29850 = vst [vmem:[#allocation33_spill] sm:$0xff] %v26623_v2  ;;  %v15721_v7 = vsub.f32 %v26613_v25, %v15720_v59  ;;  %v14150_v45 = vand.u32 4294901760, %v26623_v2 }
 0x1af   : > { %23243 = vmatpush3.bf16.xpose.msra.mxu0 %v26508_v22  ;;  %20379 = vmatprep.mubr.msk.f32.mxu0 %vm25357_vm2, %v29569_v11  ;;  %29851 = vst [vmem:[#allocation34_spill] sm:$0xff] %v26625_v49  ;;  %29852 = vst [vmem:[#allocation35_spill] sm:$0xff] %v26628_v4  ;;  %v26633_v22 = vpack.c.bf16 %v9423_v55, %v9416_v31  ;;  %v15727_v1 = vand.u32 4294901760, %v26630_v28  ;;  %v14145_v14 = vand.u32 4294901760, %v14144_v10  ;;  %v588_v10 = vld [vmem:[%s25448_s2 + $0x20] sm:$0xff] }
 0x1b0   : > { %29853 = vst [vmem:[#allocation36_spill] sm:$0xff] %v26630_v28  ;;  %23280 = vmatprep.subr.bf16.mxu0 %v29567_v18  ;;  %v14151_v12 = vsub.f32 %v26623_v2, %v14150_v45  ;;  %v26643_v34 = vpack.c.bf16 %v14150_v45, %v14143_v61  ;;  %v15722_v31 = vand.u32 4294901760, %v15721_v7  ;;  %v1819_v61 = vrot.slane %v588_v10, %v26489_v52 }
 0x1b1   : > { %29854 = vst [vmem:[#allocation37_spill] sm:$0xff] %v26633_v22  ;;  %v15728_v55 = vsub.f32 %v26630_v28, %v15727_v1  ;;  %v26646_v43 = vpack.c.bf16 %v15727_v1, %v15720_v59  ;;  %v1823_v7 = vrot.slane %v589_v63, %v26489_v52  ;;  %v27198_v22 = vld [vmem:[%s25438_s28 + $0x28] sm:$0xff] }
 0x1b2   : > { %29855 = vst [vmem:[#allocation38_spill] sm:$0xff] %v26643_v34  ;;  %v14152_v29 = vand.u32 4294901760, %v14151_v12 }
 0x1b3   : > { %29856 = vst [vmem:[#allocation39_spill] sm:$0xff] %v26646_v43  ;;  %v15729_v5 = vand.u32 4294901760, %v15728_v55 }
 0x1b4   : > { %v26651_v6 = vpack.c.bf16 %v14152_v29, %v14145_v14 }
 0x1b5   : > { %v26653_v42 = vpack.c.bf16 %v15729_v5, %v15722_v31 }
 0x1b6   : > { %20380 = vmatmul.mubr.f32.vlgmr.msra.gmra.mrb[20].mxu0 %v26491_v15  ;;  %29857 = vst [vmem:[#allocation40_spill] sm:$0xff] %v26651_v6 }
 0x1b7   : > { %20470 = vmatprep.mubr.msk.f32.mxu0 %vm25357_vm2, %v29569_v11  ;;  %29858 = vst [vmem:[#allocation41_spill] sm:$0xff] %v26653_v42 }
 0x1dc   : > { %v3888_v45 = vpop.f32.mrb[12].mxu0 }
 0x1dd   : > { %v24882_v59 = vadd.f32 %v3888_v45, %v1819_v61  ;;  %v3890_v1 = vpop.f32.mrb[13].mxu0 }
 0x1de   : > { %v24883_v12 = vadd.f32 %v3890_v1, %v1823_v7 }
 0x1df   : > { %v5082_v27 = vand.u32 4294901760, %v24882_v59 }
 0x1e0   : > { %v6017_v15 = vand.u32 4294901760, %v24883_v12  ;;  %v3895_v55 = vpop.f32.mrb[14].mxu0 }
 0x1e1   : > { %v26659_v18 = vsub.f32 %v24882_v59, %v5082_v27  ;;  %v24884_v11 = vadd.f32 %v3895_v55, %v1819_v61  ;;  %v3897_v14 = vpop.f32.mrb[15].mxu0 }
 0x1e2   : > { %v26661_v29 = vsub.f32 %v24883_v12, %v6017_v15  ;;  %v24885_v31 = vadd.f32 %v3897_v14, %v1823_v7 }
 0x1e3   : > { %v5161_v5 = vand.u32 4294901760, %v26659_v18  ;;  %v5085_v23 = vand.u32 4294901760, %v24884_v11 }
 0x1e4   : > { %v6096_v10 = vand.u32 4294901760, %v26661_v29  ;;  %v6020_v63 = vand.u32 4294901760, %v24885_v31  ;;  %v3902_v43 = vpop.f32.mrb[16].mxu0 }
 0x1e5   : > { %v5162_v45 = vsub.f32 %v26659_v18, %v5161_v5  ;;  %v26666_v1 = vpack.c.bf16 %v5085_v23, %v5082_v27  ;;  %v26668_v25 = vsub.f32 %v24884_v11, %v5085_v23  ;;  %v24886_v59 = vadd.f32 %v3902_v43, %v1819_v61  ;;  %v3904_v28 = vpop.f32.mrb[17].mxu0 }
 0x1e6   : > { %v6097_v55 = vsub.f32 %v26661_v29, %v6096_v10  ;;  %v26671_v12 = vpack.c.bf16 %v6020_v63, %v6017_v15  ;;  %v26673_v14 = vsub.f32 %v24885_v31, %v6020_v63  ;;  %v24887_v42 = vadd.f32 %v3904_v28, %v1823_v7 }
 0x1e7   : > { %v5163_v4 = vand.u32 4294901760, %v5162_v45  ;;  %v5168_v26 = vand.u32 4294901760, %v26668_v25  ;;  %v11388_v56 = vand.u32 4294901760, %v24886_v59  ;;  %23246 = vmatpush3.bf16.msra.mxu1 %v26666_v1  ;;  %v29859_v28 = vmov 0.0|0.0  }
 0x1e8   : > { %v6098_v11 = vand.u32 4294901760, %v6097_v55  ;;  %v6103_v23 = vand.u32 4294901760, %v26673_v14  ;;  %v12323_v43 = vand.u32 4294901760, %v24887_v42  ;;  %v3909_v15 = vpop.f32.mrb[18].mxu0  ;;  %23282 = vmatpush3.bf16.msra.mxu0 %v26671_v12  ;;  %23247 = vmatprep.subr.bf16.mxu1 %v29859_v28 }
 0x1e9   : > { %v5169_v31 = vsub.f32 %v26668_v25, %v5168_v26  ;;  %v26685_v63 = vsub.f32 %v24886_v59, %v11388_v56  ;;  %v24888_v45 = vadd.f32 %v3909_v15, %v1819_v61  ;;  %v3911_v34 = vpop.f32.mrb[19].mxu0  ;;  %v26687_v2 = vpack.c.bf16 %v5168_v26, %v5161_v5  ;;  %23283 = vmatprep.subr.bf16.mxu0 %v29859_v28 }
 0x1ea   : > { %v6104_v55 = vsub.f32 %v26673_v14, %v6103_v23  ;;  %v26691_v6 = vsub.f32 %v24887_v42, %v12323_v43  ;;  %v24889_v27 = vadd.f32 %v3911_v34, %v1823_v7  ;;  %v26693_v20 = vpack.c.bf16 %v6103_v23, %v6096_v10 }
 0x1eb   : > { %29860 = vst [vmem:[#allocation42_spill] sm:$0xff] %v26685_v63  ;;  %v5170_v38 = vand.u32 4294901760, %v5169_v31  ;;  %v11467_v47 = vand.u32 4294901760, %v26685_v63  ;;  %v11391_v24 = vand.u32 4294901760, %v24888_v45 }
 0x1ec   : > { %29861 = vst [vmem:[#allocation43_spill] sm:$0xff] %v26691_v6  ;;  %v6105_v54 = vand.u32 4294901760, %v6104_v55  ;;  %v12402_v59 = vand.u32 4294901760, %v26691_v6  ;;  %v12326_v61 = vand.u32 4294901760, %v24889_v27 }
 0x1ed   : > { %v11468_v26 = vsub.f32 %v26685_v63, %v11467_v47  ;;  %v26698_v5 = vpack.c.bf16 %v11391_v24, %v11388_v56  ;;  %v26700_v15 = vsub.f32 %v24888_v45, %v11391_v24  ;;  %v26702_v62 = vpack.c.bf16 %v5170_v38, %v5163_v4 }
 0x1ee   : > { %v12403_v42 = vsub.f32 %v26691_v6, %v12402_v59  ;;  %v26705_v34 = vpack.c.bf16 %v12326_v61, %v12323_v43  ;;  %v26707_v7 = vsub.f32 %v24889_v27, %v12326_v61  ;;  %v26709_v10 = vpack.c.bf16 %v6105_v54, %v6098_v11 }
 0x1ef   : > { %29862 = vst [vmem:[#allocation44_spill] sm:$0xff] %v26698_v5  ;;  %29863 = vst [vmem:[#allocation45_spill] sm:$0xff] %v26700_v15  ;;  %v11474_v23 = vand.u32 4294901760, %v26700_v15  ;;  %v11469_v4 = vand.u32 4294901760, %v11468_v26  ;;  %v1827_v38 = vrot.slane %v590_v21, %v26489_v52  ;;  %v1831_v26 = vrot.slane %v591_v60, %v26489_v52 }
 0x1f0   : > { %29864 = vst [vmem:[#allocation46_spill] sm:$0xff] %v26705_v34  ;;  %29865 = vst [vmem:[#allocation47_spill] sm:$0xff] %v26707_v7  ;;  %v12409_v24 = vand.u32 4294901760, %v26707_v7  ;;  %v12404_v27 = vand.u32 4294901760, %v12403_v42 }
 0x1f1   : > { %v11475_v43 = vsub.f32 %v26700_v15, %v11474_v23  ;;  %v26718_v31 = vpack.c.bf16 %v11474_v23, %v11467_v47 }
 0x1f2   : > { %v12410_v54 = vsub.f32 %v26707_v7, %v12409_v24  ;;  %v26721_v11 = vpack.c.bf16 %v12409_v24, %v12402_v59 }
 0x1f3   : > { %29866 = vst [vmem:[#allocation48_spill] sm:$0xff] %v26718_v31  ;;  %v11476_v45 = vand.u32 4294901760, %v11475_v43 }
 0x1f4   : > { %29867 = vst [vmem:[#allocation49_spill] sm:$0xff] %v26721_v11  ;;  %v12411_v55 = vand.u32 4294901760, %v12410_v54 }
 0x1f5   : > { %v26723_v61 = vpack.c.bf16 %v11476_v45, %v11469_v4 }
 0x1f6   : > { %v26725_v56 = vpack.c.bf16 %v12411_v55, %v12404_v27 }
 0x1f7   : > { %29868 = vst [vmem:[#allocation50_spill] sm:$0xff] %v26723_v61 }
 0x1f8   : > { %29869 = vst [vmem:[#allocation51_spill] sm:$0xff] %v26725_v56 }
 0x1fb   : > { %v4578_v6 = vpop.f32.mrb[12].mxu1 }
 0x1fc   : > { %v24890_v47 = vadd.f32 %v4578_v6, %v1827_v38  ;;  %v4580_v23 = vpop.f32.mrb[13].mxu1 }
 0x1fd   : > { %v24891_v42 = vadd.f32 %v4580_v23, %v1831_v26 }
 0x1fe   : > { %v8234_v31 = vand.u32 4294901760, %v24890_v47 }
 0x1ff   : > { %v9811_v7 = vand.u32 4294901760, %v24891_v42  ;;  %v4585_v59 = vpop.f32.mrb[14].mxu1 }
 0x200   : > { %v26731_v24 = vsub.f32 %v24890_v47, %v8234_v31  ;;  %v24892_v43 = vadd.f32 %v4585_v59, %v1827_v38  ;;  %v4587_v4 = vpop.f32.mrb[15].mxu1 }
 0x201   : > { %v26733_v54 = vsub.f32 %v24891_v42, %v9811_v7  ;;  %v24893_v27 = vadd.f32 %v4587_v4, %v1831_v26 }
 0x202   : > { %29870 = vst [vmem:[#allocation52_spill] sm:$0xff] %v26731_v24  ;;  %v8313_v45 = vand.u32 4294901760, %v26731_v24  ;;  %v8237_v55 = vand.u32 4294901760, %v24892_v43 }
 0x203   : > { %29871 = vst [vmem:[#allocation53_spill] sm:$0xff] %v26733_v54  ;;  %v9890_v21 = vand.u32 4294901760, %v26733_v54  ;;  %v9814_v60 = vand.u32 4294901760, %v24893_v27  ;;  %v4592_v52 = vpop.f32.mrb[16].mxu1 }
 0x204   : > { %v8314_v6 = vsub.f32 %v26731_v24, %v8313_v45  ;;  %v26738_v23 = vpack.c.bf16 %v8237_v55, %v8234_v31  ;;  %v26740_v11 = vsub.f32 %v24892_v43, %v8237_v55  ;;  %v24894_v47 = vadd.f32 %v4592_v52, %v1827_v38  ;;  %v4594_v56 = vpop.f32.mrb[17].mxu1 }
 0x205   : > { %v9891_v59 = vsub.f32 %v26733_v54, %v9890_v21  ;;  %v26743_v42 = vpack.c.bf16 %v9814_v60, %v9811_v7  ;;  %v26745_v4 = vsub.f32 %v24893_v27, %v9814_v60  ;;  %v24895_v63 = vadd.f32 %v4594_v56, %v1831_v26 }
 0x206   : > { %29872 = vst [vmem:[#allocation54_spill] sm:$0xff] %v26740_v11  ;;  %v8320_v15 = vand.u32 4294901760, %v26740_v11  ;;  %v14540_v34 = vand.u32 4294901760, %v24894_v47  ;;  %v8315_v48 = vand.u32 4294901760, %v8314_v6 }
 0x207   : > { %29873 = vst [vmem:[#allocation55_spill] sm:$0xff] %v26743_v42  ;;  %29874 = vst [vmem:[#allocation56_spill] sm:$0xff] %v26745_v4  ;;  %v9897_v31 = vand.u32 4294901760, %v26745_v4  ;;  %v16117_v55 = vand.u32 4294901760, %v24895_v63  ;;  %v4599_v52 = vpop.f32.mrb[18].mxu1  ;;  %v9892_v35 = vand.u32 4294901760, %v9891_v59 }
 0x208   : > { %v8321_v7 = vsub.f32 %v26740_v11, %v8320_v15  ;;  %v26754_v27 = vsub.f32 %v24894_v47, %v14540_v34  ;;  %v24896_v56 = vadd.f32 %v4599_v52, %v1827_v38  ;;  %v4601_v60 = vpop.f32.mrb[19].mxu1  ;;  %v26759_v6 = vpack.c.bf16 %v8320_v15, %v8313_v45  ;;  %v27227_v42 = vld [vmem:[%s25438_s28 + $0x30] sm:$0xff] }
 0x209   : > { %v9898_v17 = vsub.f32 %v26745_v4, %v9897_v31  ;;  %v26757_v32 = vsub.f32 %v24895_v63, %v16117_v55  ;;  %v24897_v61 = vadd.f32 %v4601_v60, %v1831_v26  ;;  %v26762_v5 = vpack.c.bf16 %v9897_v31, %v9890_v21 }
 0x20a   : > { %29875 = vst [vmem:[#allocation57_spill] sm:$0xff] %v26754_v27  ;;  %29877 = vst [vmem:[#allocation59_spill] sm:$0xff] %v26759_v6  ;;  %v8322_v44 = vand.u32 4294901760, %v8321_v7  ;;  %v14619_v0 = vand.u32 4294901760, %v26754_v27  ;;  %v14543_v43 = vand.u32 4294901760, %v24896_v56 }
 0x20b   : > { %29876 = vst [vmem:[#allocation58_spill] sm:$0xff] %v26757_v32  ;;  %29878 = vst [vmem:[#allocation60_spill] sm:$0xff] %v26762_v5  ;;  %v9899_v59 = vand.u32 4294901760, %v9898_v17  ;;  %v16196_v54 = vand.u32 4294901760, %v26757_v32  ;;  %v16120_v47 = vand.u32 4294901760, %v24897_v61 }
 0x20c   : > { %v14620_v38 = vsub.f32 %v26754_v27, %v14619_v0  ;;  %v26766_v52 = vpack.c.bf16 %v14543_v43, %v14540_v34  ;;  %v26768_v4 = vsub.f32 %v24896_v56, %v14543_v43  ;;  %v26770_v63 = vpack.c.bf16 %v8322_v44, %v8315_v48 }
 0x20d   : > { %v16197_v15 = vsub.f32 %v26757_v32, %v16196_v54  ;;  %v26773_v26 = vpack.c.bf16 %v16120_v47, %v16117_v55  ;;  %v26775_v45 = vsub.f32 %v24897_v61, %v16120_v47  ;;  %v26777_v21 = vpack.c.bf16 %v9899_v59, %v9892_v35 }
 0x20e   : > { %29879 = vst [vmem:[#allocation61_spill] sm:$0xff] %v26766_v52  ;;  %29880 = vst [vmem:[#allocation62_spill] sm:$0xff] %v26768_v4  ;;  %v14626_v17 = vand.u32 4294901760, %v26768_v4  ;;  %v14621_v44 = vand.u32 4294901760, %v14620_v38 }
 0x20f   : > { %29881 = vst [vmem:[#allocation63_spill] sm:$0xff] %v26770_v63  ;;  %29882 = vst [vmem:[#allocation64_spill] sm:$0xff] %v26773_v26  ;;  %v16203_v34 = vand.u32 4294901760, %v26775_v45  ;;  %v16198_v55 = vand.u32 4294901760, %v16197_v15 }
 0x210   : > { %29883 = vst [vmem:[#allocation65_spill] sm:$0xff] %v26775_v45  ;;  %29884 = vst [vmem:[#allocation66_spill] sm:$0xff] %v26777_v21  ;;  %v14627_v48 = vsub.f32 %v26768_v4, %v14626_v17  ;;  %v26786_v7 = vpack.c.bf16 %v14626_v17, %v14619_v0 }
 0x211   : > { %v16204_v61 = vsub.f32 %v26775_v45, %v16203_v34  ;;  %v26789_v35 = vpack.c.bf16 %v16203_v34, %v16196_v54 }
 0x212   : > { %29885 = vst [vmem:[#allocation67_spill] sm:$0xff] %v26786_v7  ;;  %v14628_v56 = vand.u32 4294901760, %v14627_v48 }
 0x213   : > { %29886 = vst [vmem:[#allocation68_spill] sm:$0xff] %v26789_v35  ;;  %v16205_v60 = vand.u32 4294901760, %v16204_v61 }
 0x214   : > { %v26791_v59 = vpack.c.bf16 %v14628_v56, %v14621_v44 }
 0x215   : > { %v26793_v47 = vpack.c.bf16 %v16205_v60, %v16198_v55 }
 0x216   : > { %29887 = vst [vmem:[#allocation69_spill] sm:$0xff] %v26791_v59 }
 0x217   : > { %29888 = vst [vmem:[#allocation70_spill] sm:$0xff] %v26793_v47 }
 0x261   : > { %v4677_v31 = vpop.f32.mrb[20].mxu1 }
 0x262   : > { %v20346_v26 = vpop.f32.mrb[21].mxu1 }
 0x289   : > { %v5059_v27 = vpop.f32.mrb[20].mxu0 }
 0x28a   : > { %v24898_v38 = vadd.f32 %v5059_v27, %v4677_v31  ;;  %v20381_v43 = vpop.f32.mrb[21].mxu0 }
 0x28c   : > { %v5064_v0 = vsel %vm5063_vm3, %v24898_v38, -inf }
 0x28d   : > { %5065 = vmax.xlane.f32.xlu0 %v5064_v0 }
 0x31a   : > { %v5066_v15 = vpop.xlane.xlu0 %5065 }
 0x31b   : > { %v5067_v17 = vsub.f32 %v24898_v38, %v5066_v15  ;;  %v29890_v15 = vpack.c.bf16 %v26668_v25, %v26659_v18  ;;  %v24859_v18 = vadd.f32 %v26446_v50, %v26449_v41  ;;  %v29891_v41 = vpack.c.bf16 %v26513_v30, %v26501_v58 }
 0x31d   : > { %v5068_v32 = vmul.f32 1.442695, %v5067_v17  ;;  %v5607_v25 = vand.u32 4294901760, %v24859_v18 }
 0x31f   : > { %25304 = vpow2.f32 %v5068_v32  ;;  %v29889_v32 = vmov 0.0  }
 0x329   : > { %v25305_v54 = vpop.eup %25304 }
 0x32a   : > { %v5070_v34 = vsel %vm5063_vm3, %v25305_v54, 0.0 }
 0x32b   : > { %5071 = vadd.xlane.f32.xlu0 %v5070_v34 }
 0x3b8   : > { %v5072_v44 = vpop.xlane.xlu0 %5071 }
 0x3b9   : > { %25306 = vrcp.f32 %v5072_v44 }
 0x3c3   : > { %v25307_v48 = vpop.eup %25306 }
 0x3c4   : > { %v5074_v55 = vmul.f32 %v25307_v48, %v5072_v44 }
 0x3c6   : > { %v5075_v26 = vsub.f32 2.0, %v5074_v55  ;;  %v26855_v55 = vld [vmem:[%s25438_s28 + $0x80] sm:$0xff] }
 0x3c8   : > { %v5076_v61 = vmul.f32 %v25307_v48, %v5075_v26  ;;  %v26858_v26 = vld [vmem:[%s25438_s28 + $0x88] sm:$0xff] }
 0x3ca   : > { %v5077_v56 = vmul.f32 %v25305_v54, %v5076_v61  ;;  %v29611_v61 = vand.u32 4294901760, %v26855_v55 }
 0x3cc   : > { %v5079_v27 = vsel %vm5063_vm3, %v5077_v56, 0  ;;  %v29608_v56 = vand.u32 4294901760, %v26858_v26 }
 0x3cd   : > { %v5148_v31 = vand.u32 4294901760, %v5079_v27 }
 0x3cf   : > { %v5149_v43 = vsub.f32 %v5079_v27, %v5148_v31  ;;  %v26863_v27 = vld [vmem:[%s25438_s28 + $0x90] sm:$0xff] }
 0x3d1   : > { %v5150_v60 = vand.u32 4294901760, %v5149_v43 }
 0x3d3   : > { %v5151_v0 = vsub.f32 %v5149_v43, %v5150_v60 }
 0x3d5   : > { %v5152_v38 = vand.u32 4294901760, %v5151_v0  ;;  %v26874_v0 = vpack.c.bf16 %v29608_v56, %v29611_v61 }
 0x3d7   : > { %20387 = vmatmul.mubr.f32.vlgmr.msra.gmra.mrb[22].mxu1 %v5152_v38  ;;  %29892 = vst [vmem:[#allocation71_spill] sm:$0xff] %v26874_v0 }
 0x3d8   : > { %23249 = vmatpush3.bf16.msra.mxu1 %v26702_v62  ;;  %20393 = vmatprep.mubr.msk.f32.mxu1 %vm25357_vm2, %v29889_v32  ;;  %v5608_v62 = vsub.f32 %v24859_v18, %v5607_v25  ;;  %v26887_v18 = vld [vmem:[%s25438_s28 + $0xa8] sm:$0xff] }
 0x3d9   : > { %23250 = vmatprep.subr.bf16.mxu1 %v29859_v28 }
 0x3da   : > { %v5609_v17 = vand.u32 4294901760, %v5608_v62 }
 0x3df   : > { %20394 = vmatmul.mubr.f32.vlgmr.msra.gmra.mrb[22].mxu1 %v5148_v31 }
 0x3e0   : > { %23252 = vmatpush3.bf16.msra.mxu1 %v29890_v15  ;;  %20400 = vmatprep.mubr.msk.f32.mxu1 %vm25357_vm2, %v29889_v32  ;;  %v26884_v15 = vld [vmem:[%s25438_s28 + $0xa0] sm:$0xff] }
 0x3e1   : > { %23253 = vmatprep.subr.bf16.mxu1 %v29859_v28 }
 0x3e7   : > { %20401 = vmatmul.mubr.f32.vlgmr.msra.gmra.mrb[22].mxu1 %v5149_v43  ;;  %v29607_v43 = vand.u32 4294901760, %v26863_v27 }
 0x3e8   : > { %23255 = vmatpush3.bf16.msra.mxu1 %v26666_v1  ;;  %20407 = vmatprep.mubr.msk.f32.mxu1 %vm25357_vm2, %v29889_v32 }
 0x3e9   : > { %23256 = vmatprep.subr.bf16.mxu1 %v29859_v28 }
 0x3ef   : > { %20408 = vmatmul.mubr.f32.vlgmr.msra.gmra.mrb[22].mxu1 %v5150_v60 }
 0x3f0   : > { %23258 = vmatpush3.bf16.msra.mxu1 %v26687_v2  ;;  %20414 = vmatprep.mubr.msk.f32.mxu1 %vm25357_vm2, %v29889_v32  ;;  %v5610_v2 = vsub.f32 %v5608_v62, %v5609_v17 }
 0x3f1   : > { %23259 = vmatprep.subr.bf16.mxu1 %v29859_v28 }
 0x3f2   : > { %v5611_v50 = vand.u32 4294901760, %v5610_v2  ;;  %v26900_v2 = vld [vmem:[%s25438_s28 + $0xb0] sm:$0xff] }
 0x3f7   : > { %20415 = vmatmul.mubr.f32.vlgmr.msra.gmra.mrb[22].mxu1 %v5148_v31 }
 0x3f8   : > { %23261 = vmatpush3.bf16.msra.mxu1 %v26666_v1  ;;  %20421 = vmatprep.mubr.msk.f32.mxu1 %vm25357_vm2, %v29889_v32 }
 0x3f9   : > { %23262 = vmatprep.subr.bf16.mxu1 %v29859_v28 }
 0x3ff   : > { %20422 = vmatmul.mubr.f32.vlgmr.msra.gmra.mrb[22].mxu1 %v5148_v31  ;;  %v26866_v31 = vld [vmem:[%s25438_s28 + $0x98] sm:$0xff] }
 0x400   : > { %20428 = vmatprep.mubr.msk.f32.mxu1 %vm25357_vm2, %v29889_v32  ;;  %v29606_v60 = vand.u32 4294901760, %v26866_v31 }
 0x401   : > { %23264 = vmatpush3.bf16.xpose.msra.mxu1 %v26511_v16 }
 0x402   : > { %23265 = vmatprep.subr.bf16.mxu1 %v29859_v28  ;;  %v26881_v38 = vpack.c.bf16 %v29606_v60, %v29607_v43 }
 0x404   : > { %29893 = vst [vmem:[#allocation72_spill] sm:$0xff] %v26881_v38 }
 0x408   : > { %20429 = vmatmul.mubr.f32.vlgmr.msra.gmra.mrb[24].mxu1 %v5611_v50  ;;  %v26903_v50 = vld [vmem:[%s25438_s28 + $0xb8] sm:$0xff] }
 0x409   : > { %23267 = vmatpush3.bf16.xpose.msra.mxu1 %v26541_v53  ;;  %20435 = vmatprep.mubr.msk.f32.mxu1 %vm25357_vm2, %v29889_v32 }
 0x40a   : > { %23268 = vmatprep.subr.bf16.mxu1 %v29859_v28 }
 0x410   : > { %20436 = vmatmul.mubr.f32.vlgmr.msra.gmra.mrb[24].mxu1 %v5607_v25 }
 0x411   : > { %23270 = vmatpush3.bf16.xpose.msra.mxu1 %v29891_v41  ;;  %20442 = vmatprep.mubr.msk.f32.mxu1 %vm25357_vm2, %v29889_v32  ;;  %v29601_v41 = vand.u32 4294901760, %v26900_v2 }
 0x412   : > { %23271 = vmatprep.subr.bf16.mxu1 %v29859_v28 }
 0x418   : > { %20443 = vmatmul.mubr.f32.vlgmr.msra.gmra.mrb[24].mxu1 %v5608_v62  ;;  %v29602_v62 = vand.u32 4294901760, %v26887_v18 }
 0x419   : > { %23273 = vmatpush3.bf16.xpose.msra.mxu1 %v26511_v16  ;;  %20449 = vmatprep.mubr.msk.f32.mxu1 %vm25357_vm2, %v29889_v32 }
 0x41a   : > { %23274 = vmatprep.subr.bf16.mxu1 %v29859_v28 }
 0x420   : > { %20450 = vmatmul.mubr.f32.vlgmr.msra.gmra.mrb[24].mxu1 %v5609_v17 }
 0x421   : > { %23276 = vmatpush3.bf16.xpose.msra.mxu1 %v26530_v46  ;;  %20456 = vmatprep.mubr.msk.f32.mxu1 %vm25357_vm2, %v29889_v32 }
 0x422   : > { %23277 = vmatprep.subr.bf16.mxu1 %v29859_v28 }
 0x428   : > { %20457 = vmatmul.mubr.f32.vlgmr.msra.gmra.mrb[24].mxu1 %v5607_v25 }
 0x429   : > { %23279 = vmatpush3.bf16.xpose.msra.mxu1 %v26511_v16  ;;  %20463 = vmatprep.mubr.msk.f32.mxu1 %vm25357_vm2, %v29889_v32 }
 0x42a   : > { %23370 = vmatprep.subr.bf16.mxu1 %v29859_v28 }
 0x430   : > { %20464 = vmatmul.mubr.f32.vlgmr.msra.gmra.mrb[24].mxu1 %v5607_v25  ;;  %v29603_v25 = vand.u32 4294901760, %v26884_v15 }
 0x431   : > { %20645 = vmatprep.mubr.msk.f32.mxu1 %vm25357_vm2, %v29889_v32  ;;  %23372 = vmatpush3.bf16.msra.mxu1 %v26874_v0 }
 0x432   : > { %23373 = vmatprep.subr.bf16.mxu1 %v29859_v28  ;;  %v26897_v17 = vpack.c.bf16 %v29602_v62, %v29603_v25 }
 0x434   : > { %29894 = vst [vmem:[#allocation73_spill] sm:$0xff] %v26897_v17 }
 0x435   : > { %23375 = vmatpush3.bf16.msra.mxu1 %v26881_v38 }
 0x436   : > { %23376 = vmatprep.subr.bf16.mxu1 %v29859_v28 }
 0x439   : > { %23378 = vmatpush3.bf16.msra.mxu1 %v26897_v17 }
 0x43a   : > { %23379 = vmatprep.subr.bf16.mxu1 %v29859_v28 }
 0x4d2   : > { %v26850_v58 = vpop.f32.mrb[22].mxu1 }
 0x4d3   : > { %v20423_v30 = vpop.f32.mrb[23].mxu1 }
 0x4d4   : > { %v29600_v30 = vand.u32 4294901760, %v26903_v50 }
 0x503   : > { %v5995_v46 = vpop.f32.mrb[24].mxu1 }
 0x504   : > { %v20465_v53 = vpop.f32.mrb[25].mxu1  ;;  %v5999_v16 = vsel %vm5063_vm3, %v5995_v46, -inf }
 0x505   : > { %6000 = vmax.xlane.f32.xlu1 %v5999_v16  ;;  %v26916_v53 = vld [vmem:[%s25438_s28 + $0xc0] sm:$0xff]  ;;  %v26919_v16 = vld [vmem:[%s25438_s28 + $0xc8] sm:$0xff] }
 0x592   : > { %v6001_v1 = vpop.xlane.xlu1 %6000 }
 0x593   : > { %v6002_v54 = vsub.f32 %v5995_v46, %v6001_v1  ;;  %v26913_v46 = vpack.c.bf16 %v29600_v30, %v29601_v41  ;;  %v29605_v1 = vand.u32 4294901760, %v26916_v53  ;;  %v26935_v30 = vld [vmem:[%s25438_s28 + $0xd8] sm:$0xff] }
 0x594   : > { %v29609_v62 = vand.u32 4294901760, %v26935_v30 }
 0x595   : > { %v6003_v34 = vmul.f32 1.442695, %v6002_v54  ;;  %29895 = vst [vmem:[#allocation74_spill] sm:$0xff] %v26913_v46  ;;  %v29604_v54 = vand.u32 4294901760, %v26919_v16  ;;  %23381 = vmatpush3.bf16.msra.mxu1 %v26913_v46 }
 0x596   : > { %23382 = vmatprep.subr.bf16.mxu1 %v29859_v28 }
 0x597   : > { %25308 = vpow2.f32 %v6003_v34  ;;  %v26929_v34 = vpack.c.bf16 %v29604_v54, %v29605_v1  ;;  %v26948_v54 = vld [vmem:[%s25438_s28 + $0xe0] sm:$0xff]  ;;  %v26951_v1 = vld [vmem:[%s25438_s28 + $0xe8] sm:$0xff] }
 0x598   : > { %v29616_v60 = vand.u32 4294901760, %v26948_v54  ;;  %v29615_v43 = vand.u32 4294901760, %v26951_v1 }
 0x599   : > { %29896 = vst [vmem:[#allocation75_spill] sm:$0xff] %v26929_v34  ;;  %23384 = vmatpush3.bf16.msra.mxu1 %v26929_v34 }
 0x59a   : > { %23385 = vmatprep.subr.bf16.mxu1 %v29859_v28  ;;  %v26961_v56 = vpack.c.bf16 %v29615_v43, %v29616_v60 }
 0x59c   : > { %29898 = vst [vmem:[#allocation77_spill] sm:$0xff] %v26961_v56 }
 0x5a1   : > { %v25309_v44 = vpop.eup %25308 }
 0x5a2   : > { %v6005_v48 = vsel %vm5063_vm3, %v25309_v44, 0.0 }
 0x5a3   : > { %6006 = vadd.xlane.f32.xlu1 %v6005_v48  ;;  %v26932_v48 = vld [vmem:[%s25438_s28 + $0xd0] sm:$0xff] }
 0x5a4   : > { %v29610_v41 = vand.u32 4294901760, %v26932_v48 }
 0x5a6   : > { %v26945_v25 = vpack.c.bf16 %v29609_v62, %v29610_v41 }
 0x5a8   : > { %29897 = vst [vmem:[#allocation76_spill] sm:$0xff] %v26945_v25  ;;  %23387 = vmatpush3.bf16.msra.mxu1 %v26945_v25 }
 0x5a9   : > { %23388 = vmatprep.subr.bf16.mxu1 %v29859_v28 }
 0x5ac   : > { %23390 = vmatpush3.bf16.msra.mxu1 %v26961_v56 }
 0x5ad   : > { %23391 = vmatprep.subr.bf16.mxu1 %v29859_v28 }
 0x630   : > { %v6007_v62 = vpop.xlane.xlu1 %6006 }
 0x631   : > { %25310 = vrcp.f32 %v6007_v62 }
 0x63b   : > { %v25311_v41 = vpop.eup %25310 }
 0x63c   : > { %v6009_v61 = vmul.f32 %v25311_v41, %v6007_v62  ;;  %v29902_v62 = vand.u32 4294901760, %v26855_v55 }
 0x63e   : > { %v6010_v35 = vsub.f32 2.0, %v6009_v61 }
 0x640   : > { %v6011_v45 = vmul.f32 %v25311_v41, %v6010_v35  ;;  %v29899_v35 = vpack.c.bf16 %v26673_v14, %v26661_v29  ;;  %v539_v29 = vld [vmem:[%s25438_s28 + $0xf8] sm:$0xff]  ;;  %v27034_v41 = vsub.f32 %v26855_v55, %v29902_v62 }
 0x641   : > { %v6521_v14 = vand.u32 4294901760, %v539_v29 }
 0x642   : > { %v6012_v47 = vmul.f32 %v25309_v44, %v6011_v45 }
 0x644   : > { %v6014_v7 = vsel %vm5063_vm3, %v6012_v47, 0 }
 0x645   : > { %v6083_v4 = vand.u32 4294901760, %v6014_v7 }
 0x647   : > { %v6084_v59 = vsub.f32 %v6014_v7, %v6083_v4 }
 0x649   : > { %v6085_v52 = vand.u32 4294901760, %v6084_v59 }
 0x64b   : > { %v6086_v43 = vsub.f32 %v6084_v59, %v6085_v52 }
 0x64d   : > { %v6087_v60 = vand.u32 4294901760, %v6086_v43 }
 0x64f   : > { %20471 = vmatmul.mubr.f32.vlgmr.msra.gmra.mrb[22].mxu0 %v6087_v60 }
 0x650   : > { %23285 = vmatpush3.bf16.msra.mxu0 %v26709_v10  ;;  %20477 = vmatprep.mubr.msk.f32.mxu0 %vm25357_vm2, %v29889_v32 }
 0x651   : > { %23286 = vmatprep.subr.bf16.mxu0 %v29859_v28 }
 0x657   : > { %20478 = vmatmul.mubr.f32.vlgmr.msra.gmra.mrb[22].mxu0 %v6083_v4 }
 0x658   : > { %23288 = vmatpush3.bf16.msra.mxu0 %v29899_v35  ;;  %20484 = vmatprep.mubr.msk.f32.mxu0 %vm25357_vm2, %v29889_v32  ;;  %v29903_v35 = vand.u32 4294901760, %v26858_v26 }
 0x659   : > { %23289 = vmatprep.subr.bf16.mxu0 %v29859_v28 }
 0x65f   : > { %20485 = vmatmul.mubr.f32.vlgmr.msra.gmra.mrb[22].mxu0 %v6084_v59 }
 0x660   : > { %23291 = vmatpush3.bf16.msra.mxu0 %v26671_v12  ;;  %20491 = vmatprep.mubr.msk.f32.mxu0 %vm25357_vm2, %v29889_v32 }
 0x661   : > { %23292 = vmatprep.subr.bf16.mxu0 %v29859_v28 }
 0x667   : > { %20492 = vmatmul.mubr.f32.vlgmr.msra.gmra.mrb[22].mxu0 %v6085_v52  ;;  %v27015_v52 = vsub.f32 %v539_v29, %v6521_v14  ;;  %v29620_v29 = vand.u32 4294901760, %v27034_v41 }
 0x668   : > { %23294 = vmatpush3.bf16.msra.mxu0 %v26693_v20  ;;  %20498 = vmatprep.mubr.msk.f32.mxu0 %vm25357_vm2, %v29889_v32  ;;  %v538_v20 = vld [vmem:[%s25438_s28 + $0xf0] sm:$0xff] }
 0x669   : > { %23295 = vmatprep.subr.bf16.mxu0 %v29859_v28  ;;  %v29617_v7 = vand.u32 4294901760, %v27015_v52  ;;  %v6570_v55 = vsub.f32 %v27034_v41, %v29620_v29 }
 0x66b   : > { %v6675_v47 = vsub.f32 %v27015_v52, %v29617_v7 }
 0x66d   : > { %v6676_v61 = vand.u32 4294901760, %v6675_v47  ;;  %v29905_v47 = vand.u32 4294901760, %v26866_v31 }
 0x66f   : > { %20499 = vmatmul.mubr.f32.vlgmr.msra.gmra.mrb[22].mxu0 %v6083_v4 }
 0x670   : > { %23297 = vmatpush3.bf16.msra.mxu0 %v26671_v12  ;;  %20505 = vmatprep.mubr.msk.f32.mxu0 %vm25357_vm2, %v29889_v32  ;;  %v6518_v12 = vand.u32 4294901760, %v538_v20 }
 0x671   : > { %23298 = vmatprep.subr.bf16.mxu0 %v29859_v28 }
 0x672   : > { %v27007_v10 = vpack.c.bf16 %v6521_v14, %v6518_v12  ;;  %v29904_v14 = vand.u32 4294901760, %v26863_v27 }
 0x674   : > { %29900 = vst [vmem:[#allocation78_spill] sm:$0xff] %v27007_v10  ;;  %23393 = vmatpush3.bf16.msra.mxu1 %v27007_v10 }
 0x675   : > { %23418 = vmatprep.subr.bf16.mxu1 %v29859_v28 }
 0x677   : > { %20506 = vmatmul.mubr.f32.vlgmr.msra.gmra.mrb[22].mxu0 %v6083_v4  ;;  %v27013_v4 = vsub.f32 %v538_v20, %v6518_v12  ;;  %v27039_v20 = vsub.f32 %v26858_v26, %v29903_v35  ;;  %v29909_v35 = vand.u32 4294901760, %v26903_v50 }
 0x678   : > { %23300 = vmatpush3.bf16.msra.mxu0 %v26874_v0  ;;  %20540 = vmatprep.mubr.msk.f32.mxu0 %vm25357_vm2, %v29889_v32 }
 0x679   : > { %23301 = vmatprep.subr.bf16.mxu0 %v29859_v28  ;;  %v29618_v45 = vand.u32 4294901760, %v27013_v4  ;;  %v27029_v60 = vpack.c.bf16 %v27015_v52, %v27013_v4  ;;  %v29619_v12 = vand.u32 4294901760, %v27039_v20  ;;  %v27081_v62 = vsub.f32 %v26903_v50, %v29909_v35 }
 0x67b   : > { %v6668_v59 = vsub.f32 %v27013_v4, %v29618_v45  ;;  %v6577_v26 = vsub.f32 %v27039_v20, %v29619_v12  ;;  %v29908_v12 = vand.u32 4294901760, %v26900_v2 }
 0x67c   : > { %23303 = vmatpush3.bf16.msra.mxu0 %v26881_v38 }
 0x67d   : > { %23304 = vmatprep.subr.bf16.mxu0 %v29859_v28  ;;  %v6669_v44 = vand.u32 4294901760, %v6668_v59  ;;  %v27046_v59 = vsub.f32 %v26863_v27, %v29904_v14  ;;  %v29906_v27 = vand.u32 4294901760, %v26884_v15  ;;  %v27076_v29 = vsub.f32 %v26900_v2, %v29908_v12 }
 0x67e   : > { %v6578_v5 = vand.u32 4294901760, %v6577_v26 }
 0x67f   : > { %v27025_v43 = vpack.c.bf16 %v6676_v61, %v6669_v44  ;;  %v27051_v44 = vsub.f32 %v26866_v31, %v29905_v47  ;;  %v27064_v14 = vsub.f32 %v26884_v15, %v29906_v27  ;;  %v29907_v31 = vand.u32 4294901760, %v26887_v18 }
 0x680   : > { %23306 = vmatpush3.bf16.msra.mxu0 %v26897_v17  ;;  %v6571_v27 = vand.u32 4294901760, %v6570_v55  ;;  %v29912_v55 = vand.u32 4294901760, %v26916_v53 }
 0x681   : > { %23307 = vmatprep.subr.bf16.mxu0 %v29859_v28  ;;  %29901 = vst [vmem:[#allocation79_spill] sm:$0xff] %v27025_v43  ;;  %v27069_v47 = vsub.f32 %v26887_v18, %v29907_v31  ;;  %v29910_v18 = vand.u32 4294901760, %v27046_v59 }
 0x682   : > { %v27100_v26 = vsub.f32 %v26916_v53, %v29912_v55  ;;  %v27108_v12 = vpack.c.bf16 %v6578_v5, %v6571_v27  ;;  %v29917_v5 = vand.u32 4294901760, %v27076_v29  ;;  %v29918_v27 = vand.u32 4294901760, %v27081_v62 }
 0x683   : > { %v6584_v31 = vsub.f32 %v27046_v59, %v29910_v18  ;;  %v29913_v18 = vand.u32 4294901760, %v26919_v16  ;;  %v29916_v53 = vand.u32 4294901760, %v27069_v47 }
 0x684   : > { %23309 = vmatpush3.bf16.msra.mxu0 %v26913_v46  ;;  %29914 = vst [vmem:[#allocation80_spill] sm:$0xff] %v27108_v12 }
 0x685   : > { %23310 = vmatprep.subr.bf16.mxu0 %v29859_v28  ;;  %v27105_v19 = vsub.f32 %v26919_v16, %v29913_v18  ;;  %v6585_v35 = vand.u32 4294901760, %v6584_v31  ;;  %v6605_v55 = vsub.f32 %v27069_v47, %v29916_v53  ;;  %v6619_v31 = vsub.f32 %v27081_v62, %v29918_v27 }
 0x686   : > { %v29919_v18 = vand.u32 4294901760, %v26932_v48  ;;  %v29920_v53 = vand.u32 4294901760, %v26935_v30 }
 0x688   : > { %23312 = vmatpush3.bf16.msra.mxu0 %v26929_v34 }
 0x689   : > { %23313 = vmatprep.subr.bf16.mxu0 %v29859_v28 }
 0x68c   : > { %23315 = vmatpush3.bf16.msra.mxu0 %v26945_v25 }
 0x68d   : > { %23316 = vmatprep.subr.bf16.mxu0 %v29859_v28 }
 0x690   : > { %23318 = vmatpush3.bf16.msra.mxu0 %v26961_v56 }
 0x691   : > { %23319 = vmatprep.subr.bf16.mxu0 %v29859_v28 }
 0x694   : > { %23321 = vmatpush3.bf16.msra.mxu0 %v27007_v10 }
 0x695   : > { %23322 = vmatprep.subr.bf16.mxu0 %v29859_v28 }
 0x74a   : > { %v6471_v61 = vpop.f32.mrb[22].mxu0 }
 0x74b   : > { %v27071_v7 = vand.u32 4294901760, %v6471_v61  ;;  %v20507_v45 = vpop.f32.mrb[23].mxu0 }
 0x74c   : > { %v29911_v45 = vand.u32 4294901760, %v27051_v44 }
 0x74d   : > { %v27084_v15 = vsub.f32 %v6471_v61, %v27071_v7  ;;  %v29915_v61 = vand.u32 4294901760, %v27064_v14 }
 0x74e   : > { %v6591_v21 = vsub.f32 %v27051_v44, %v29911_v45 }
 0x74f   : > { %v6558_v50 = vand.u32 4294901760, %v27084_v15  ;;  %v6598_v39 = vsub.f32 %v27064_v14, %v29915_v61 }
 0x750   : > { %v6592_v2 = vand.u32 4294901760, %v6591_v21  ;;  %v6612_v21 = vsub.f32 %v27076_v29, %v29917_v5 }
 0x751   : > { %v6559_v45 = vsub.f32 %v27084_v15, %v6558_v50  ;;  %20646 = vmatmul.mubr.f32.vlgmr.msra.gmra.mrb[26].mxu1 %v6558_v50  ;;  %v6599_v27 = vand.u32 4294901760, %v6598_v39  ;;  %v6606_v50 = vand.u32 4294901760, %v6605_v55  ;;  %v29640_v55 = vand.u32 4294901760, %v27195_v3 }
 0x752   : > { %23420 = vmatpush3.bf16.msra.mxu1 %v26874_v0  ;;  %20715 = vmatprep.mubr.msk.f32.mxu1 %vm25357_vm2, %v29889_v32  ;;  %v27136_v0 = vsub.f32 %v26935_v30, %v29920_v53  ;;  %v27140_v5 = vpack.c.bf16 %v6592_v2, %v6585_v35  ;;  %v6620_v30 = vand.u32 4294901760, %v6619_v31  ;;  %v29922_v53 = vand.u32 4294901760, %v27100_v26 }
 0x753   : > { %v6560_v16 = vand.u32 4294901760, %v6559_v45  ;;  %23421 = vmatprep.subr.bf16.mxu1 %v29859_v28  ;;  %v27131_v45 = vsub.f32 %v26932_v48, %v29919_v18  ;;  %v27148_v48 = vld [vmem:[%s25438_s28 + $0x8] sm:$0xff]  ;;  %v6613_v18 = vand.u32 4294901760, %v6612_v21  ;;  %v29923_v2 = vand.u32 4294901760, %v27105_v19 }
 0x754   : > { %29921 = vst [vmem:[#allocation81_spill] sm:$0xff] %v27140_v5  ;;  %v6626_v61 = vsub.f32 %v27100_v26, %v29922_v53  ;;  %v29924_v21 = vand.u32 4294901760, %v26948_v54 }
 0x755   : > { %20541 = vmatmul.mubr.f32.vlgmr.msra.gmra.mrb[24].mxu0 %v6560_v16  ;;  %v27145_v16 = vld [vmem:[%s25438_s28] sm:$0xff]  ;;  %v6633_v39 = vsub.f32 %v27105_v19, %v29923_v2  ;;  %v27172_v2 = vpack.c.bf16 %v6606_v50, %v6599_v27  ;;  %v29929_v27 = vand.u32 4294901760, %v27136_v0 }
 0x756   : > { %23324 = vmatpush3.bf16.msra.mxu0 %v27108_v12  ;;  %23423 = vmatpush3.bf16.msra.mxu1 %v26881_v38  ;;  %v27163_v31 = vsub.f32 %v26948_v54, %v29924_v21  ;;  %v29925_v38 = vand.u32 4294901760, %v26951_v1  ;;  %v27179_v54 = vld [vmem:[%s25438_s28 + $0x10] sm:$0xff]  ;;  %v6627_v21 = vand.u32 4294901760, %v6626_v61 }
 0x757   : > { %23325 = vmatprep.subr.bf16.mxu0 %v29859_v28  ;;  %23424 = vmatprep.subr.bf16.mxu1 %v29859_v28  ;;  %29926 = vst [vmem:[#allocation82_spill] sm:$0xff] %v27172_v2  ;;  %v6647_v35 = vsub.f32 %v27136_v0, %v29929_v27 }
 0x758   : > { %20575 = vmatprep.mubr.msk.f32.mxu0 %vm25357_vm2, %v29889_v32  ;;  %v27168_v53 = vsub.f32 %v26951_v1, %v29925_v38  ;;  %v27182_v38 = vld [vmem:[%s25438_s28 + $0x18] sm:$0xff]  ;;  %v27184_v1 = vpack.c.bf16 %v6620_v30, %v6613_v18  ;;  %v29931_v18 = vand.u32 4294901760, %v27148_v48  ;;  %v29933_v9 = vand.u32 4294901760, %v27163_v31 }
 0x75a   : > { %23327 = vmatpush3.bf16.msra.mxu0 %v27140_v5  ;;  %23426 = vmatpush3.bf16.msra.mxu1 %v26897_v17  ;;  %29927 = vst [vmem:[#allocation83_spill] sm:$0xff] %v27184_v1  ;;  %v6634_v5 = vand.u32 4294901760, %v6633_v39  ;;  %v29928_v17 = vand.u32 4294901760, %v27131_v45  ;;  %v27210_v30 = vsub.f32 %v27148_v48, %v29931_v18  ;;  %v6654_v18 = vsub.f32 %v27163_v31, %v29933_v9 }
 0x75b   : > { %23328 = vmatprep.subr.bf16.mxu0 %v29859_v28  ;;  %23427 = vmatprep.subr.bf16.mxu1 %v29859_v28  ;;  %v29934_v39 = vand.u32 4294901760, %v27168_v53 }
 0x75c   : > { %v6640_v50 = vsub.f32 %v27131_v45, %v29928_v17  ;;  %v29930_v17 = vand.u32 4294901760, %v27145_v16  ;;  %v27216_v12 = vpack.c.bf16 %v6634_v5, %v6627_v21  ;;  %v29935_v21 = vand.u32 4294901760, %v27179_v54 }
 0x75d   : > { %v6661_v27 = vsub.f32 %v27168_v53, %v29934_v39  ;;  %v29940_v24 = vand.u32 4294901760, %v27210_v30 }
 0x75e   : > { %23330 = vmatpush3.bf16.msra.mxu0 %v27172_v2  ;;  %23429 = vmatpush3.bf16.msra.mxu1 %v26913_v46  ;;  %v27205_v61 = vsub.f32 %v27145_v16, %v29930_v17  ;;  %29932 = vst [vmem:[#allocation84_spill] sm:$0xff] %v27216_v12  ;;  %v29642_v17 = vand.u32 4294901760, %v27198_v22  ;;  %v6641_v46 = vand.u32 4294901760, %v6640_v50  ;;  %v6648_v2 = vand.u32 4294901760, %v6647_v35 }
 0x75f   : > { %23331 = vmatprep.subr.bf16.mxu0 %v29859_v28  ;;  %23430 = vmatprep.subr.bf16.mxu1 %v29859_v28  ;;  %v27239_v9 = vsub.f32 %v27179_v54, %v29935_v21  ;;  %v29936_v50 = vand.u32 4294901760, %v27182_v38  ;;  %v27251_v35 = vsub.f32 %v27195_v3, %v29640_v55  ;;  %v6662_v33 = vand.u32 4294901760, %v6661_v27 }
 0x760   : > { %v27256_v21 = vsub.f32 %v27198_v22, %v29642_v17  ;;  %v29939_v55 = vand.u32 4294901760, %v27205_v61  ;;  %v7218_v17 = vsub.f32 %v27210_v30, %v29940_v24  ;;  %v29941_v24 = vand.u32 4294901760, %v27227_v42 }
 0x761   : > { %v27244_v39 = vsub.f32 %v27182_v38, %v29936_v50  ;;  %v29943_v50 = vand.u32 4294901760, %v27230_v36  ;;  %v29948_v11 = vand.u32 4294901760, %v27251_v35 }
 0x762   : > { %23333 = vmatpush3.bf16.msra.mxu0 %v27184_v1  ;;  %23432 = vmatpush3.bf16.msra.mxu1 %v26929_v34  ;;  %29937 = vst [vmem:[#allocation85_spill] sm:$0xff] %v27256_v21  ;;  %v27260_v34 = vpack.c.bf16 %v6648_v2, %v6641_v46  ;;  %v6655_v1 = vand.u32 4294901760, %v6654_v18  ;;  %v7211_v6 = vsub.f32 %v27205_v61, %v29939_v55  ;;  %v27273_v46 = vld [vmem:[%s25438_s28 + $0x40] sm:$0xff]  ;;  %v27276_v2 = vld [vmem:[%s25438_s28 + $0x48] sm:$0xff]  ;;  %v7219_v55 = vand.u32 4294901760, %v7218_v17 }
 0x763   : > { %23334 = vmatprep.subr.bf16.mxu0 %v29859_v28  ;;  %23433 = vmatprep.subr.bf16.mxu1 %v29859_v28  ;;  %v27285_v18 = vsub.f32 %v27227_v42, %v29941_v24  ;;  %v27290_v5 = vsub.f32 %v27230_v36, %v29943_v50  ;;  %v29946_v24 = vand.u32 4294901760, %v27239_v9  ;;  %v29947_v51 = vand.u32 4294901760, %v27244_v39 }
 0x764   : > { %29938 = vst [vmem:[#allocation86_spill] sm:$0xff] %v27260_v34  ;;  %v7212_v27 = vand.u32 4294901760, %v7211_v6  ;;  %v7239_v6 = vsub.f32 %v27251_v35, %v29948_v11  ;;  %v29949_v17 = vand.u32 4294901760, %v27256_v21  ;;  %v29952_v37 = vand.u32 4294901760, %v27276_v2 }
 0x765   : > { %29942 = vst [vmem:[#allocation87_spill] sm:$0xff] %v27285_v18  ;;  %29944 = vst [vmem:[#allocation88_spill] sm:$0xff] %v27290_v5  ;;  %v7225_v63 = vsub.f32 %v27239_v9, %v29946_v24  ;;  %v7232_v50 = vsub.f32 %v27244_v39, %v29947_v51  ;;  %v29955_v49 = vand.u32 4294901760, %v27285_v18 }
 0x766   : > { %23336 = vmatpush3.bf16.msra.mxu0 %v27216_v12  ;;  %23435 = vmatpush3.bf16.msra.mxu1 %v26945_v25  ;;  %v27292_v25 = vpack.c.bf16 %v6662_v33, %v6655_v1  ;;  %v27305_v33 = vld [vmem:[%s25438_s28 + $0x50] sm:$0xff]  ;;  %v27308_v1 = vld [vmem:[%s25438_s28 + $0x58] sm:$0xff]  ;;  %v7246_v24 = vsub.f32 %v27256_v21, %v29949_v17  ;;  %v27328_v8 = vsub.f32 %v27276_v2, %v29952_v37  ;;  %v27342_v37 = vld [vmem:[%s25438_s28 + $0x68] sm:$0xff]  ;;  %v7240_v40 = vand.u32 4294901760, %v7239_v6 }
 0x767   : > { %23337 = vmatprep.subr.bf16.mxu0 %v29859_v28  ;;  %23436 = vmatprep.subr.bf16.mxu1 %v29859_v28  ;;  %v27334_v17 = vpack.c.bf16 %v7219_v55, %v7212_v27  ;;  %v7226_v12 = vand.u32 4294901760, %v7225_v63  ;;  %v7233_v51 = vand.u32 4294901760, %v7232_v50  ;;  %v29956_v55 = vand.u32 4294901760, %v27290_v5 }
 0x768   : > { %29945 = vst [vmem:[#allocation89_spill] sm:$0xff] %v27292_v25  ;;  %29953 = vst [vmem:[#allocation91_spill] sm:$0xff] %v27328_v8  ;;  %v7247_v11 = vand.u32 4294901760, %v7246_v24  ;;  %v29959_v24 = vand.u32 4294901760, %v27308_v1  ;;  %v29966_v13 = vand.u32 4294901760, %v27328_v8 }
 0x769   : > { %29954 = vst [vmem:[#allocation92_spill] sm:$0xff] %v27334_v17  ;;  %v7260_v63 = vsub.f32 %v27290_v5, %v29956_v55  ;;  %v27367_v55 = vpack.c.bf16 %v27039_v20, %v27034_v41  ;;  %v27369_v27 = vpack.c.bf16 %v7233_v51, %v7226_v12 }
 0x76a   : > { %23339 = vmatpush3.bf16.msra.mxu0 %v27260_v34  ;;  %23438 = vmatpush3.bf16.msra.mxu1 %v26961_v56  ;;  %v29950_v56 = vand.u32 4294901760, %v27273_v46  ;;  %v7274_v5 = vsub.f32 %v27328_v8, %v29966_v13 }
 0x76b   : > { %23340 = vmatprep.subr.bf16.mxu0 %v29859_v28  ;;  %23439 = vmatprep.subr.bf16.mxu1 %v29859_v28  ;;  %29961 = vst [vmem:[#allocation95_spill] sm:$0xff] %v27367_v55  ;;  %29962 = vst [vmem:[#allocation96_spill] sm:$0xff] %v27369_v27  ;;  %v7261_v51 = vand.u32 4294901760, %v7260_v63  ;;  %v29968_v63 = vand.u32 4294901760, %v27342_v37 }
 0x76c   : > { %v27323_v34 = vsub.f32 %v27273_v46, %v29950_v56  ;;  %v27339_v56 = vld [vmem:[%s25438_s28 + $0x60] sm:$0xff] }
 0x76e   : > { %29951 = vst [vmem:[#allocation90_spill] sm:$0xff] %v27323_v34  ;;  %23342 = vmatpush3.bf16.msra.mxu0 %v27292_v25  ;;  %23441 = vmatpush3.bf16.msra.mxu1 %v27007_v10  ;;  %v7253_v25 = vsub.f32 %v27285_v18, %v29955_v49  ;;  %v29957_v10 = vand.u32 4294901760, %v27305_v33  ;;  %v27361_v49 = vsub.f32 %v27308_v1, %v29959_v24  ;;  %v27376_v24 = vld [vmem:[%s25438_s28 + $0x70] sm:$0xff] }
 0x76f   : > { %23343 = vmatprep.subr.bf16.mxu0 %v29859_v28  ;;  %23466 = vmatprep.subr.bf16.mxu1 %v29859_v28 }
 0x770   : > { %v27356_v6 = vsub.f32 %v27305_v33, %v29957_v10  ;;  %29960 = vst [vmem:[#allocation94_spill] sm:$0xff] %v27361_v49  ;;  %v7254_v12 = vand.u32 4294901760, %v7253_v25  ;;  %v29965_v10 = vand.u32 4294901760, %v27323_v34  ;;  %v29967_v25 = vand.u32 4294901760, %v27339_v56 }
 0x771   : > { %20716 = vmatmul.mubr.f32.vlgmr.msra.gmra.mrb[28].mxu1 %v27071_v7  ;;  %v29970_v18 = vand.u32 4294901760, %v27361_v49 }
 0x772   : > { %29958 = vst [vmem:[#allocation93_spill] sm:$0xff] %v27356_v6  ;;  %23345 = vmatpush3.bf16.msra.mxu0 %v27025_v43  ;;  %23468 = vmatpush3.bf16.msra.mxu1 %v27334_v17  ;;  %v27383_v17 = vpack.c.bf16 %v27051_v44, %v27046_v59  ;;  %v27385_v43 = vpack.c.bf16 %v7247_v11, %v7240_v40 }
 0x773   : > { %23346 = vmatprep.subr.bf16.mxu0 %v29859_v28  ;;  %23469 = vmatprep.subr.bf16.mxu1 %v29859_v28  ;;  %v7267_v50 = vsub.f32 %v27323_v34, %v29965_v10  ;;  %v27403_v11 = vsub.f32 %v27339_v56, %v29967_v25  ;;  %v27408_v10 = vsub.f32 %v27342_v37, %v29968_v63  ;;  %v7275_v63 = vand.u32 4294901760, %v7274_v5 }
 0x774   : > { %29963 = vst [vmem:[#allocation97_spill] sm:$0xff] %v27383_v17  ;;  %29964 = vst [vmem:[#allocation98_spill] sm:$0xff] %v27385_v43  ;;  %20785 = vmatprep.mubr.msk.f32.mxu1 %vm25357_vm2, %v29889_v32  ;;  %v27416_v40 = vpack.c.bf16 %v27069_v47, %v27064_v14  ;;  %v7288_v8 = vsub.f32 %v27361_v49, %v29970_v18  ;;  %v29971_v34 = vand.u32 4294901760, %v27376_v24 }
 0x775   : > { %20576 = vmatmul.mubr.f32.vlgmr.msra.gmra.mrb[26].mxu0 %v27071_v7  ;;  %v7268_v25 = vand.u32 4294901760, %v7267_v50  ;;  %v29972_v50 = vand.u32 4294901760, %v27379_v57  ;;  %v27446_v18 = vpack.c.bf16 %v27081_v62, %v27076_v29 }
 0x776   : > { %23348 = vmatpush3.bf16.msra.mxu0 %v27367_v55  ;;  %23471 = vmatpush3.bf16.msra.mxu1 %v27369_v27  ;;  %v27418_v27 = vpack.c.bf16 %v7261_v51, %v7254_v12  ;;  %v29969_v55 = vand.u32 4294901760, %v27356_v6  ;;  %v27435_v5 = vsub.f32 %v27376_v24, %v29971_v34  ;;  %v29973_v34 = vand.u32 4294901760, %v27403_v11 }
 0x777   : > { %23349 = vmatprep.subr.bf16.mxu0 %v29859_v28  ;;  %23472 = vmatprep.subr.bf16.mxu1 %v29859_v28  ;;  %v27448_v12 = vpack.c.bf16 %v7275_v63, %v7268_v25 }
 0x778   : > { %20610 = vmatprep.mubr.msk.f32.mxu0 %vm25357_vm2, %v29889_v32  ;;  %v7281_v13 = vsub.f32 %v27356_v6, %v29969_v55  ;;  %v27440_v55 = vsub.f32 %v27379_v57, %v29972_v50  ;;  %v7295_v50 = vsub.f32 %v27403_v11, %v29973_v34  ;;  %v29678_v6 = vand.u32 4294901760, %v27435_v5 }
 0x77a   : > { %23351 = vmatpush3.bf16.msra.mxu0 %v27383_v17  ;;  %23474 = vmatpush3.bf16.msra.mxu1 %v27385_v43  ;;  %v7282_v51 = vand.u32 4294901760, %v7281_v13  ;;  %v7289_v43 = vand.u32 4294901760, %v7288_v8  ;;  %v29974_v17 = vand.u32 4294901760, %v27408_v10  ;;  %v29677_v21 = vand.u32 4294901760, %v27440_v55 }
 0x77b   : > { %23352 = vmatprep.subr.bf16.mxu0 %v29859_v28  ;;  %23475 = vmatprep.subr.bf16.mxu1 %v29859_v28  ;;  %v27464_v8 = vpack.c.bf16 %v27105_v19, %v27100_v26  ;;  %v7296_v25 = vand.u32 4294901760, %v7295_v50  ;;  %v7309_v63 = vsub.f32 %v27435_v5, %v29678_v6 }
 0x77c   : > { %v7302_v49 = vsub.f32 %v27408_v10, %v29974_v17  ;;  %v27466_v13 = vpack.c.bf16 %v7289_v43, %v7282_v51  ;;  %v7316_v34 = vsub.f32 %v27440_v55, %v29677_v21  ;;  %v27482_v43 = vpack.c.bf16 %v27136_v0, %v27131_v45 }
 0x77d   : > { %v7310_v51 = vand.u32 4294901760, %v7309_v63  ;;  %v27492_v21 = vpack.c.bf16 %v27168_v53, %v27163_v31 }
 0x77e   : > { %23354 = vmatpush3.bf16.msra.mxu0 %v27416_v40  ;;  %23477 = vmatpush3.bf16.msra.mxu1 %v27418_v27  ;;  %29975 = vst [vmem:[#allocation99_spill] sm:$0xff] %v27466_v13  ;;  %v7303_v17 = vand.u32 4294901760, %v7302_v49  ;;  %v7317_v50 = vand.u32 4294901760, %v7316_v34  ;;  %v27507_v34 = vand.u32 4294901760, %v26850_v58 }
 0x77f   : > { %23355 = vmatprep.subr.bf16.mxu0 %v29859_v28  ;;  %23478 = vmatprep.subr.bf16.mxu1 %v29859_v28 }
 0x780   : > { %v27484_v49 = vpack.c.bf16 %v7303_v17, %v7296_v25  ;;  %v27494_v6 = vpack.c.bf16 %v7317_v50, %v7310_v51  ;;  %v29978_v25 = vand.u32 4294901760, %v27145_v16  ;;  %v29979_v17 = vand.u32 4294901760, %v27148_v48 }
 0x781   : > { %v29980_v51 = vand.u32 4294901760, %v27034_v41  ;;  %v29981_v16 = vand.u32 4294901760, %v27039_v20  ;;  %v29982_v50 = vand.u32 4294901760, %v27179_v54  ;;  %v29984_v41 = vand.u32 4294901760, %v27046_v59 }
 0x782   : > { %23357 = vmatpush3.bf16.msra.mxu0 %v27446_v18  ;;  %23480 = vmatpush3.bf16.msra.mxu1 %v27448_v12  ;;  %29976 = vst [vmem:[#allocation100_spill] sm:$0xff] %v27484_v49  ;;  %29977 = vst [vmem:[#allocation101_spill] sm:$0xff] %v27494_v6  ;;  %v27504_v63 = vpack.c.bf16 %v29979_v17, %v29978_v25  ;;  %v29983_v25 = vand.u32 4294901760, %v27182_v38  ;;  %v29985_v20 = vand.u32 4294901760, %v27051_v44  ;;  %v29986_v38 = vand.u32 4294901760, %v27195_v3 }
 0x783   : > { %23358 = vmatprep.subr.bf16.mxu0 %v29859_v28  ;;  %23481 = vmatprep.subr.bf16.mxu1 %v29859_v28  ;;  %v27518_v48 = vpack.c.bf16 %v29981_v16, %v29980_v51  ;;  %v29987_v51 = vand.u32 4294901760, %v27198_v22  ;;  %v29988_v59 = vand.u32 4294901760, %v27064_v14  ;;  %v29989_v44 = vand.u32 4294901760, %v27069_v47 }
 0x784   : > { %v27524_v17 = vpack.c.bf16 %v29983_v25, %v29982_v50  ;;  %v27537_v54 = vpack.c.bf16 %v29985_v20, %v29984_v41  ;;  %v29990_v22 = vand.u32 4294901760, %v27227_v42  ;;  %v29993_v14 = vand.u32 4294901760, %v27076_v29 }
 0x785   : > { %v27543_v16 = vpack.c.bf16 %v29987_v51, %v29986_v38  ;;  %v27555_v3 = vpack.c.bf16 %v29989_v44, %v29988_v59  ;;  %v29994_v47 = vand.u32 4294901760, %v27081_v62  ;;  %v29995_v42 = vand.u32 4294901760, %v27273_v46 }
 0x786   : > { %23360 = vmatpush3.bf16.msra.mxu0 %v27464_v8  ;;  %23483 = vmatpush3.bf16.msra.mxu1 %v27466_v13  ;;  %v29998_v29 = vand.u32 4294901760, %v27100_v26  ;;  %v29999_v62 = vand.u32 4294901760, %v27105_v19  ;;  %v30000_v46 = vand.u32 4294901760, %v27305_v33  ;;  %v30003_v26 = vand.u32 4294901760, %v27131_v45 }
 0x787   : > { %23361 = vmatprep.subr.bf16.mxu0 %v29859_v28  ;;  %23484 = vmatprep.subr.bf16.mxu1 %v29859_v28  ;;  %v27571_v25 = vpack.c.bf16 %v29994_v47, %v29993_v14  ;;  %v30004_v19 = vand.u32 4294901760, %v27136_v0  ;;  %v30005_v33 = vand.u32 4294901760, %v27339_v56  ;;  %v30008_v45 = vand.u32 4294901760, %v27163_v31  ;;  %v30017_v14 = vld [vmem:[#allocation85_spill] sm:$0xff] }
 0x788   : > { %v27587_v20 = vpack.c.bf16 %v29999_v62, %v29998_v29  ;;  %v30009_v0 = vand.u32 4294901760, %v27168_v53  ;;  %v30010_v56 = vand.u32 4294901760, %v27376_v24  ;;  %v30013_v31 = vand.u32 4294901760, %v27013_v4  ;;  %v30022_v62 = vld [vmem:[#allocation90_spill] sm:$0xff] }
 0x789   : > { %v27603_v51 = vpack.c.bf16 %v30004_v19, %v30003_v26  ;;  %v30014_v53 = vand.u32 4294901760, %v27015_v52  ;;  %v27687_v4 = vpack.c.bf16 %v27210_v30, %v27205_v61  ;;  %v27704_v47 = vpack.c.bf16 %v30017_v14, %v27251_v35  ;;  %v30025_v26 = vld [vmem:[#allocation93_spill] sm:$0xff]  ;;  %v30026_v19 = vld [vmem:[#allocation94_spill] sm:$0xff] }
 0x78a   : > { %23363 = vmatpush3.bf16.msra.mxu0 %v27482_v43  ;;  %23486 = vmatpush3.bf16.msra.mxu1 %v27484_v49  ;;  %v27619_v44 = vpack.c.bf16 %v30009_v0, %v30008_v45  ;;  %v27734_v45 = vpack.c.bf16 %v27440_v55, %v27435_v5  ;;  %v30030_v0 = vand.u32 4294901760, %v27205_v61  ;;  %v30036_v61 = vand.u32 4294901760, %v27251_v35 }
 0x78b   : > { %23364 = vmatprep.subr.bf16.mxu0 %v29859_v28  ;;  %23487 = vmatprep.subr.bf16.mxu1 %v29859_v28  ;;  %v27639_v24 = vpack.c.bf16 %v30014_v53, %v30013_v31  ;;  %30015 = vst [vmem:[#allocation107_spill] sm:$0xff] %v27687_v4  ;;  %30018 = vst [vmem:[#allocation85_spill] sm:$0xff] %v27704_v47  ;;  %v30033_v31 = vand.u32 4294901760, %v27239_v9  ;;  %v30034_v53 = vand.u32 4294901760, %v27244_v39  ;;  %v30042_v35 = vand.u32 4294901760, %v30022_v62 }
 0x78c   : > { %30029 = vst [vmem:[#allocation93_spill] sm:$0xff] %v27734_v45 }
 0x78e   : > { %23366 = vmatpush3.bf16.msra.mxu0 %v27492_v21  ;;  %23489 = vmatpush3.bf16.msra.mxu1 %v27494_v6  ;;  %v27937_v6 = vld [vmem:[%s25438_s28 + $0x160] sm:$0xff] }
 0x78f   : > { %23367 = vmatprep.subr.bf16.mxu0 %v29859_v28  ;;  %23514 = vmatprep.subr.bf16.mxu1 %v29859_v28 }
 0x791   : > { %20786 = vmatmul.mubr.f32.vlgmr.msra.gmra.mrb[30].mxu1 %v27507_v34 }
 0x792   : > { %23369 = vmatpush3.bf16.msra.mxu0 %v27029_v60  ;;  %23516 = vmatpush3.bf16.msra.mxu1 %v27504_v63 }
 0x793   : > { %23394 = vmatprep.subr.bf16.mxu0 %v29859_v28  ;;  %23517 = vmatprep.subr.bf16.mxu1 %v29859_v28 }
 0x794   : > { %20855 = vmatprep.mubr.msk.f32.mxu1 %vm25357_vm2, %v29889_v32 }
 0x795   : > { %20611 = vmatmul.mubr.f32.vlgmr.msra.gmra.mrb[28].mxu0 %v27084_v15  ;;  %v29991_v15 = vand.u32 4294901760, %v27230_v36  ;;  %v29996_v36 = vand.u32 4294901760, %v27276_v2  ;;  %v30001_v2 = vand.u32 4294901760, %v27308_v1  ;;  %v30006_v1 = vand.u32 4294901760, %v27342_v37 }
 0x796   : > { %23396 = vmatpush3.bf16.msra.mxu0 %v27518_v48  ;;  %23519 = vmatpush3.bf16.msra.mxu1 %v27524_v17  ;;  %v30011_v37 = vand.u32 4294901760, %v27379_v57 }
 0x797   : > { %23397 = vmatprep.subr.bf16.mxu0 %v29859_v28  ;;  %23520 = vmatprep.subr.bf16.mxu1 %v29859_v28  ;;  %v27561_v50 = vpack.c.bf16 %v29991_v15, %v29990_v22  ;;  %v27577_v41 = vpack.c.bf16 %v29996_v36, %v29995_v42  ;;  %v27593_v38 = vpack.c.bf16 %v30001_v2, %v30000_v46  ;;  %v30019_v42 = vld [vmem:[#allocation87_spill] sm:$0xff]  ;;  %v30020_v36 = vld [vmem:[#allocation88_spill] sm:$0xff] }
 0x798   : > { %20680 = vmatprep.mubr.msk.f32.mxu0 %vm25357_vm2, %v29889_v32  ;;  %v27609_v59 = vpack.c.bf16 %v30006_v1, %v30005_v33  ;;  %v27625_v22 = vpack.c.bf16 %v30011_v37, %v30010_v56  ;;  %v27629_v15 = vsub.f32 %v26850_v58, %v27507_v34  ;;  %v27710_v29 = vpack.c.bf16 %v30020_v36, %v30019_v42  ;;  %v30023_v46 = vld [vmem:[#allocation91_spill] sm:$0xff] }
 0x799   : > { %29992 = vst [vmem:[#allocation102_spill] sm:$0xff] %v27561_v50  ;;  %29997 = vst [vmem:[#allocation103_spill] sm:$0xff] %v27577_v41  ;;  %v27716_v2 = vpack.c.bf16 %v30023_v46, %v30022_v62  ;;  %v27722_v33 = vpack.c.bf16 %v30026_v19, %v30025_v26  ;;  %v27728_v1 = vpack.c.bf16 %v27408_v10, %v27403_v11  ;;  %v30031_v56 = vand.u32 4294901760, %v27210_v30 }
 0x79a   : > { %23399 = vmatpush3.bf16.msra.mxu0 %v27537_v54  ;;  %23522 = vmatpush3.bf16.msra.mxu1 %v27543_v16  ;;  %30002 = vst [vmem:[#allocation104_spill] sm:$0xff] %v27593_v38  ;;  %30007 = vst [vmem:[#allocation105_spill] sm:$0xff] %v27609_v59  ;;  %v7199_v57 = vand.u32 4294901760, %v27629_v15  ;;  %v30037_v30 = vand.u32 4294901760, %v30017_v14  ;;  %v30048_v62 = vand.u32 4294901760, %v27403_v11 }
 0x79b   : > { %23400 = vmatprep.subr.bf16.mxu0 %v29859_v28  ;;  %23523 = vmatprep.subr.bf16.mxu1 %v29859_v28  ;;  %30012 = vst [vmem:[#allocation106_spill] sm:$0xff] %v27625_v22  ;;  %30021 = vst [vmem:[#allocation87_spill] sm:$0xff] %v27710_v29  ;;  %v27742_v37 = vpack.c.bf16 %v30031_v56, %v30030_v0 }
 0x79c   : > { %v7200_v58 = vsub.f32 %v27629_v15, %v7199_v57  ;;  %30024 = vst [vmem:[#allocation88_spill] sm:$0xff] %v27716_v2  ;;  %30027 = vst [vmem:[#allocation90_spill] sm:$0xff] %v27722_v33 }
 0x79d   : > { %30028 = vst [vmem:[#allocation91_spill] sm:$0xff] %v27728_v1  ;;  %30032 = vst [vmem:[#allocation94_spill] sm:$0xff] %v27742_v37 }
 0x79e   : > { %23402 = vmatpush3.bf16.msra.mxu0 %v27555_v3  ;;  %23525 = vmatpush3.bf16.msra.mxu1 %v27561_v50  ;;  %v7201_v52 = vand.u32 4294901760, %v7200_v58 }
 0x79f   : > { %23403 = vmatprep.subr.bf16.mxu0 %v29859_v28  ;;  %23526 = vmatprep.subr.bf16.mxu1 %v29859_v28 }
 0x7a2   : > { %23405 = vmatpush3.bf16.msra.mxu0 %v27571_v25  ;;  %23528 = vmatpush3.bf16.msra.mxu1 %v27577_v41 }
 0x7a3   : > { %23406 = vmatprep.subr.bf16.mxu0 %v29859_v28  ;;  %23529 = vmatprep.subr.bf16.mxu1 %v29859_v28 }
 0x7a6   : > { %23408 = vmatpush3.bf16.msra.mxu0 %v27587_v20  ;;  %23531 = vmatpush3.bf16.msra.mxu1 %v27593_v38 }
 0x7a7   : > { %23409 = vmatprep.subr.bf16.mxu0 %v29859_v28  ;;  %23532 = vmatprep.subr.bf16.mxu1 %v29859_v28 }
 0x7aa   : > { %23411 = vmatpush3.bf16.msra.mxu0 %v27603_v51  ;;  %23534 = vmatpush3.bf16.msra.mxu1 %v27609_v59 }
 0x7ab   : > { %23412 = vmatprep.subr.bf16.mxu0 %v29859_v28  ;;  %23535 = vmatprep.subr.bf16.mxu1 %v29859_v28 }
 0x7ae   : > { %23414 = vmatpush3.bf16.msra.mxu0 %v27619_v44  ;;  %23537 = vmatpush3.bf16.msra.mxu1 %v27625_v22 }
 0x7af   : > { %23415 = vmatprep.subr.bf16.mxu0 %v29859_v28  ;;  %23562 = vmatprep.subr.bf16.mxu1 %v29859_v28 }
 0x7b1   : > { %20856 = vmatmul.mubr.f32.vlgmr.msra.gmra.mrb[32].mxu1 %v7199_v57  ;;  %v27751_v57 = vpack.c.bf16 %v30034_v53, %v30033_v31  ;;  %v30051_v31 = vld [vmem:[#allocation8_spill] sm:$0xff]  ;;  %v30052_v53 = vld [vmem:[#allocation6_spill] sm:$0xff] }
 0x7b2   : > { %23417 = vmatpush3.bf16.msra.mxu0 %v27639_v24  ;;  %23564 = vmatpush3.bf16.msra.mxu1 %v27504_v63 }
 0x7b3   : > { %23442 = vmatprep.subr.bf16.mxu0 %v29859_v28  ;;  %23565 = vmatprep.subr.bf16.mxu1 %v29859_v28  ;;  %30035 = vst [vmem:[#allocation109_spill] sm:$0xff] %v27751_v57 }
 0x7b4   : > { %20925 = vmatprep.mubr.msk.f32.mxu1 %vm25357_vm2, %v29889_v32 }
 0x7b5   : > { %20681 = vmatmul.mubr.f32.vlgmr.msra.gmra.mrb[30].mxu0 %v27071_v7  ;;  %v27696_v7 = vpack.c.bf16 %v27244_v39, %v27239_v9  ;;  %v30039_v9 = vand.u32 4294901760, %v30019_v42  ;;  %v30040_v39 = vand.u32 4294901760, %v30020_v36  ;;  %v30045_v42 = vand.u32 4294901760, %v30025_v26 }
 0x7b6   : > { %23444 = vmatpush3.bf16.msra.mxu0 %v27504_v63  ;;  %23567 = vmatpush3.bf16.msra.mxu1 %v27524_v17  ;;  %v30046_v36 = vand.u32 4294901760, %v30026_v19  ;;  %v30053_v26 = vand.u32 4294901760, %v27435_v5  ;;  %v30054_v19 = vand.u32 4294901760, %v27440_v55 }
 0x7b7   : > { %23445 = vmatprep.subr.bf16.mxu0 %v29859_v28  ;;  %23568 = vmatprep.subr.bf16.mxu1 %v29859_v28  ;;  %30016 = vst [vmem:[#allocation108_spill] sm:$0xff] %v27696_v7  ;;  %v27769_v58 = vpack.c.bf16 %v30040_v39, %v30039_v9  ;;  %v30056_v39 = vld [vmem:[#allocation24_spill] sm:$0xff] }
 0x7b8   : > { %20750 = vmatprep.mubr.msk.f32.mxu0 %vm25357_vm2, %v29889_v32  ;;  %v27785_v0 = vpack.c.bf16 %v30046_v36, %v30045_v42 }
 0x7b9   : > { %30041 = vst [vmem:[#allocation111_spill] sm:$0xff] %v27769_v58 }
 0x7ba   : > { %23447 = vmatpush3.bf16.msra.mxu0 %v27524_v17  ;;  %23570 = vmatpush3.bf16.msra.mxu1 %v27543_v16  ;;  %30047 = vst [vmem:[#allocation113_spill] sm:$0xff] %v27785_v0 }
 0x7bb   : > { %23448 = vmatprep.subr.bf16.mxu0 %v29859_v28  ;;  %23571 = vmatprep.subr.bf16.mxu1 %v29859_v28 }
 0x7be   : > { %23450 = vmatpush3.bf16.msra.mxu0 %v27543_v16  ;;  %23573 = vmatpush3.bf16.msra.mxu1 %v27561_v50 }
 0x7bf   : > { %23451 = vmatprep.subr.bf16.mxu0 %v29859_v28  ;;  %23574 = vmatprep.subr.bf16.mxu1 %v29859_v28 }
 0x7c2   : > { %23453 = vmatpush3.bf16.msra.mxu0 %v27561_v50  ;;  %23576 = vmatpush3.bf16.msra.mxu1 %v27577_v41  ;;  %v30078_v50 = vld [vmem:[#allocation63_spill] sm:$0xff] }
 0x7c3   : > { %23454 = vmatprep.subr.bf16.mxu0 %v29859_v28  ;;  %23577 = vmatprep.subr.bf16.mxu1 %v29859_v28 }
 0x7c6   : > { %23456 = vmatpush3.bf16.msra.mxu0 %v27577_v41  ;;  %23579 = vmatpush3.bf16.msra.mxu1 %v27593_v38 }
 0x7c7   : > { %23457 = vmatprep.subr.bf16.mxu0 %v29859_v28  ;;  %23580 = vmatprep.subr.bf16.mxu1 %v29859_v28 }
 0x7ca   : > { %23459 = vmatpush3.bf16.msra.mxu0 %v27593_v38  ;;  %23582 = vmatpush3.bf16.msra.mxu1 %v27609_v59 }
 0x7cb   : > { %23460 = vmatprep.subr.bf16.mxu0 %v29859_v28  ;;  %23583 = vmatprep.subr.bf16.mxu1 %v29859_v28 }
 0x7ce   : > { %23462 = vmatpush3.bf16.msra.mxu0 %v27609_v59  ;;  %23585 = vmatpush3.bf16.msra.mxu1 %v27625_v22 }
 0x7cf   : > { %23463 = vmatprep.subr.bf16.mxu0 %v29859_v28  ;;  %23604 = vmatprep.subr.bf16.mxu1 %v29859_v28 }
 0x7d1   : > { %20926 = vmatmul.mubr.f32.vlgmr.msra.gmra.mrb[34].mxu1 %v27507_v34 }
 0x7d2   : > { %23465 = vmatpush3.bf16.msra.mxu0 %v27625_v22  ;;  %23606 = vmatpush3.bf16.msra.mxu1 %v26738_v23 }
 0x7d3   : > { %23490 = vmatprep.subr.bf16.mxu0 %v29859_v28  ;;  %20974 = vmatprep.mubr.msk.f32.mxu1 %vm25357_vm2, %v29889_v32 }
 0x7d4   : > { %23607 = vmatprep.subr.bf16.mxu1 %v29859_v28 }
 0x7d5   : > { %20751 = vmatmul.mubr.f32.vlgmr.msra.gmra.mrb[32].mxu0 %v7201_v52  ;;  %v30043_v52 = vand.u32 4294901760, %v30023_v46  ;;  %v30049_v46 = vand.u32 4294901760, %v27408_v10 }
 0x7d6   : > { %23492 = vmatpush3.bf16.msra.mxu0 %v27687_v4  ;;  %20820 = vmatprep.mubr.msk.f32.mxu0 %vm25357_vm2, %v29889_v32 }
 0x7d7   : > { %23493 = vmatprep.subr.bf16.mxu0 %v29859_v28  ;;  %v27777_v14 = vpack.c.bf16 %v30043_v52, %v30042_v35  ;;  %v27793_v56 = vpack.c.bf16 %v30049_v46, %v30048_v62  ;;  %v30057_v35 = vld [vmem:[#allocation34_spill] sm:$0xff]  ;;  %v30058_v62 = vld [vmem:[#allocation25_spill] sm:$0xff] }
 0x7d8   : > { %v30059_v46 = vld [vmem:[#allocation22_spill] sm:$0xff] }
 0x7d9   : > { %30044 = vst [vmem:[#allocation112_spill] sm:$0xff] %v27777_v14  ;;  %30050 = vst [vmem:[#allocation114_spill] sm:$0xff] %v27793_v56 }
 0x7da   : > { %23495 = vmatpush3.bf16.msra.mxu0 %v27696_v7 }
 0x7db   : > { %23496 = vmatprep.subr.bf16.mxu0 %v29859_v28 }
 0x7de   : > { %23498 = vmatpush3.bf16.msra.mxu0 %v27704_v47  ;;  %v549_v47 = vld [vmem:[%s25438_s28 + $0x148] sm:$0xff] }
 0x7df   : > { %23499 = vmatprep.subr.bf16.mxu0 %v29859_v28 }
 0x7e2   : > { %23501 = vmatpush3.bf16.msra.mxu0 %v27710_v29 }
 0x7e3   : > { %23502 = vmatprep.subr.bf16.mxu0 %v29859_v28 }
 0x7e6   : > { %23504 = vmatpush3.bf16.msra.mxu0 %v27716_v2 }
 0x7e7   : > { %23505 = vmatprep.subr.bf16.mxu0 %v29859_v28 }
 0x7ea   : > { %23507 = vmatpush3.bf16.msra.mxu0 %v27722_v33 }
 0x7eb   : > { %23508 = vmatprep.subr.bf16.mxu0 %v29859_v28 }
 0x7ee   : > { %23510 = vmatpush3.bf16.msra.mxu0 %v27728_v1 }
 0x7ef   : > { %23511 = vmatprep.subr.bf16.mxu0 %v29859_v28 }
 0x7f2   : > { %23513 = vmatpush3.bf16.msra.mxu0 %v27734_v45 }
 0x7f3   : > { %23538 = vmatprep.subr.bf16.mxu0 %v29859_v28 }
 0x7f5   : > { %20821 = vmatmul.mubr.f32.vlgmr.msra.gmra.mrb[34].mxu0 %v27629_v15  ;;  %v27761_v15 = vpack.c.bf16 %v30037_v30, %v30036_v61  ;;  %v24862_v61 = vadd.f32 %v30052_v53, %v30051_v31  ;;  %v27803_v30 = vpack.c.bf16 %v30054_v19, %v30053_v26  ;;  %v30060_v31 = vpack.c.bf16 %v30058_v62, %v30059_v46  ;;  %v30061_v53 = vld [vmem:[#allocation28_spill] sm:$0xff] }
 0x7f6   : > { %23540 = vmatpush3.bf16.msra.mxu0 %v27742_v37  ;;  %20890 = vmatprep.mubr.msk.f32.mxu0 %vm25357_vm2, %v29889_v32 }
 0x7f7   : > { %23541 = vmatprep.subr.bf16.mxu0 %v29859_v28  ;;  %30038 = vst [vmem:[#allocation110_spill] sm:$0xff] %v27761_v15  ;;  %30055 = vst [vmem:[#allocation8_spill] sm:$0xff] %v27803_v30  ;;  %v7824_v11 = vand.u32 4294901760, %v24862_v61 }
 0x7f9   : > { %v7825_v10 = vsub.f32 %v24862_v61, %v7824_v11 }
 0x7fa   : > { %23543 = vmatpush3.bf16.msra.mxu0 %v27751_v57  ;;  %v547_v57 = vld [vmem:[%s25438_s28 + $0x138] sm:$0xff] }
 0x7fb   : > { %23544 = vmatprep.subr.bf16.mxu0 %v29859_v28  ;;  %v7826_v9 = vand.u32 4294901760, %v7825_v10 }
 0x7fd   : > { %v7827_v5 = vsub.f32 %v7825_v10, %v7826_v9 }
 0x7fe   : > { %23546 = vmatpush3.bf16.msra.mxu0 %v27761_v15 }
 0x7ff   : > { %23547 = vmatprep.subr.bf16.mxu0 %v29859_v28  ;;  %v7828_v55 = vand.u32 4294901760, %v7827_v5 }
 0x802   : > { %23549 = vmatpush3.bf16.msra.mxu0 %v27769_v58 }
 0x803   : > { %23550 = vmatprep.subr.bf16.mxu0 %v29859_v28 }
 0x806   : > { %23552 = vmatpush3.bf16.msra.mxu0 %v27777_v14 }
 0x807   : > { %23553 = vmatprep.subr.bf16.mxu0 %v29859_v28 }
 0x80a   : > { %23555 = vmatpush3.bf16.msra.mxu0 %v27785_v0 }
 0x80b   : > { %23556 = vmatprep.subr.bf16.mxu0 %v29859_v28 }
 0x80e   : > { %23558 = vmatpush3.bf16.msra.mxu0 %v27793_v56 }
 0x80f   : > { %23559 = vmatprep.subr.bf16.mxu0 %v29859_v28 }
 0x812   : > { %23561 = vmatpush3.bf16.msra.mxu0 %v27803_v30 }
 0x813   : > { %23586 = vmatprep.subr.bf16.mxu0 %v29859_v28 }
 0x815   : > { %20891 = vmatmul.mubr.f32.vlgmr.msra.gmra.mrb[36].mxu0 %v27507_v34 }
 0x816   : > { %20932 = vmatprep.mubr.msk.f32.mxu0 %vm25357_vm2, %v29889_v32 }
 0x81b   : > { %23588 = vmatpush3.bf16.xpose.msra.mxu0 %v30056_v39 }
 0x81c   : > { %23589 = vmatprep.subr.bf16.mxu0 %v29859_v28 }
 0x822   : > { %20933 = vmatmul.mubr.f32.vlgmr.msra.gmra.mrb[38].mxu0 %v7828_v55 }
 0x823   : > { %23591 = vmatpush3.bf16.xpose.msra.mxu0 %v30057_v35  ;;  %20939 = vmatprep.mubr.msk.f32.mxu0 %vm25357_vm2, %v29889_v32 }
 0x824   : > { %v6906_v52 = vpop.f32.mrb[26].mxu1  ;;  %23592 = vmatprep.subr.bf16.mxu0 %v29859_v28 }
 0x825   : > { %v20647_v34 = vpop.f32.mrb[27].mxu1 }
 0x828   : > { %v6562_v42 = vpop.f32.mrb[24].mxu0 }
 0x829   : > { %v20542_v36 = vpop.f32.mrb[25].mxu0 }
 0x82a   : > { %20940 = vmatmul.mubr.f32.vlgmr.msra.gmra.mrb[38].mxu0 %v7824_v11 }
 0x82b   : > { %23594 = vmatpush3.bf16.xpose.msra.mxu0 %v30060_v31  ;;  %20946 = vmatprep.mubr.msk.f32.mxu0 %vm25357_vm2, %v29889_v32 }
 0x82c   : > { %23595 = vmatprep.subr.bf16.mxu0 %v29859_v28 }
 0x832   : > { %20947 = vmatmul.mubr.f32.vlgmr.msra.gmra.mrb[38].mxu0 %v7825_v10 }
 0x833   : > { %23597 = vmatpush3.bf16.xpose.msra.mxu0 %v30056_v39  ;;  %20953 = vmatprep.mubr.msk.f32.mxu0 %vm25357_vm2, %v29889_v32 }
 0x834   : > { %23598 = vmatprep.subr.bf16.mxu0 %v29859_v28 }
 0x83a   : > { %20954 = vmatmul.mubr.f32.vlgmr.msra.gmra.mrb[38].mxu0 %v7826_v9 }
 0x83b   : > { %23600 = vmatpush3.bf16.xpose.msra.mxu0 %v30061_v53  ;;  %20960 = vmatprep.mubr.msk.f32.mxu0 %vm25357_vm2, %v29889_v32 }
 0x83c   : > { %23601 = vmatprep.subr.bf16.mxu0 %v29859_v28 }
 0x842   : > { %20961 = vmatmul.mubr.f32.vlgmr.msra.gmra.mrb[38].mxu0 %v7824_v11 }
 0x843   : > { %23603 = vmatpush3.bf16.xpose.msra.mxu0 %v30056_v39  ;;  %20967 = vmatprep.mubr.msk.f32.mxu0 %vm25357_vm2, %v29889_v32 }
 0x844   : > { %v7112_v61 = vpop.f32.mrb[28].mxu1  ;;  %23646 = vmatprep.subr.bf16.mxu0 %v29859_v28 }
 0x845   : > { %v20717_v26 = vpop.f32.mrb[29].mxu1 }
 0x848   : > { %v6713_v19 = vpop.f32.mrb[26].mxu0 }
 0x849   : > { %v6714_v10 = vadd.f32 %v6713_v19, %v6562_v42  ;;  %v20577_v9 = vpop.f32.mrb[27].mxu0 }
 0x84a   : > { %20968 = vmatmul.mubr.f32.vlgmr.msra.gmra.mrb[38].mxu0 %v7824_v11 }
 0x84b   : > { %21079 = vmatprep.mubr.msk.f32.mxu0 %vm25357_vm2, %v29889_v32 }
 0x864   : > { %v7354_v5 = vpop.f32.mrb[30].mxu1 }
 0x865   : > { %v20787_v55 = vpop.f32.mrb[31].mxu1 }
 0x868   : > { %v6817_v35 = vpop.f32.mrb[28].mxu0 }
 0x869   : > { %v6818_v34 = vadd.f32 %v6817_v35, %v6714_v10  ;;  %v20612_v36 = vpop.f32.mrb[29].mxu0 }
 0x86a   : > { %v540_v36 = vld [vmem:[%s25438_s28 + $0x100] sm:$0xff] }
 0x86b   : > { %v6907_v39 = vadd.f32 %v6906_v52, %v6818_v34 }
 0x884   : > { %v7547_v62 = vpop.f32.mrb[32].mxu1 }
 0x885   : > { %v20857_v46 = vpop.f32.mrb[33].mxu1 }
 0x886   : > { %v8693_v46 = vand.u32 4294901760, %v540_v36 }
 0x888   : > { %v7025_v31 = vpop.f32.mrb[30].mxu0 }
 0x889   : > { %v7026_v53 = vadd.f32 %v7025_v31, %v6907_v39  ;;  %v20682_v30 = vpop.f32.mrb[31].mxu0  ;;  %v541_v39 = vld [vmem:[%s25438_s28 + $0x108] sm:$0xff] }
 0x88a   : > { %v8696_v31 = vand.u32 4294901760, %v541_v39 }
 0x88b   : > { %v7113_v56 = vadd.f32 %v7112_v61, %v7026_v53  ;;  %v543_v53 = vld [vmem:[%s25438_s28 + $0x118] sm:$0xff] }
 0x8a4   : > { %v7753_v26 = vpop.f32.mrb[34].mxu1 }
 0x8a5   : > { %v20927_v0 = vpop.f32.mrb[35].mxu1 }
 0x8a8   : > { %v7203_v42 = vpop.f32.mrb[32].mxu0 }
 0x8a9   : > { %v7204_v19 = vadd.f32 %v7203_v42, %v7113_v56  ;;  %v20752_v11 = vpop.f32.mrb[33].mxu0  ;;  %v544_v42 = vld [vmem:[%s25438_s28 + $0x120] sm:$0xff] }
 0x8aa   : > { %v8702_v11 = vand.u32 4294901760, %v543_v53 }
 0x8ab   : > { %v7355_v9 = vadd.f32 %v7354_v5, %v7204_v19  ;;  %v545_v19 = vld [vmem:[%s25438_s28 + $0x128] sm:$0xff] }
 0x8c8   : > { %v7458_v14 = vpop.f32.mrb[34].mxu0 }
 0x8c9   : > { %v7459_v58 = vadd.f32 %v7458_v14, %v7355_v9  ;;  %v20822_v15 = vpop.f32.mrb[35].mxu0  ;;  %v8705_v9 = vand.u32 4294901760, %v544_v42 }
 0x8cb   : > { %v7548_v55 = vadd.f32 %v7547_v62, %v7459_v58  ;;  %v542_v62 = vld [vmem:[%s25438_s28 + $0x110] sm:$0xff] }
 0x8e8   : > { %v7666_v10 = vpop.f32.mrb[36].mxu0 }
 0x8e9   : > { %v7667_v52 = vadd.f32 %v7666_v10, %v7548_v55  ;;  %v20892_v35 = vpop.f32.mrb[37].mxu0  ;;  %v8708_v55 = vand.u32 4294901760, %v545_v19  ;;  %v27850_v10 = vsub.f32 %v540_v36, %v8693_v46 }
 0x8eb   : > { %v27837_v34 = vadd.f32 %v7753_v26, %v7667_v52  ;;  %v8699_v26 = vand.u32 4294901760, %v542_v62  ;;  %v27852_v52 = vsub.f32 %v541_v39, %v8696_v31  ;;  %v546_v39 = vld [vmem:[%s25438_s28 + $0x130] sm:$0xff]  ;;  %v27902_v22 = vpack.c.bf16 %v8708_v55, %v8705_v9 }
 0x8ed   : > { %v27854_v35 = vsub.f32 %v542_v62, %v8699_v26  ;;  %30067 = vst [vmem:[#allocation25_spill] sm:$0xff] %v27902_v22 }
 0x8ef   : > { %v29694_v36 = vand.u32 4294901760, %v27854_v35 }
 0x91d   : > { %v8212_v30 = vpop.f32.mrb[38].mxu0 }
 0x91e   : > { %v20969_v61 = vpop.f32.mrb[39].mxu0  ;;  %v8216_v0 = vsel %vm5063_vm3, %v8212_v30, -inf }
 0x91f   : > { %8217 = vmax.xlane.f32.xlu0 %v8216_v0  ;;  %v27858_v61 = vsub.f32 %v543_v53, %v8702_v11  ;;  %v27860_v0 = vsub.f32 %v544_v42, %v8705_v9  ;;  %v8711_v53 = vand.u32 4294901760, %v546_v39 }
 0x921   : > { %v29697_v62 = vand.u32 4294901760, %v27858_v61  ;;  %v27892_v1 = vsub.f32 %v546_v39, %v8711_v53 }
 0x9ac   : > { %v8218_v56 = vpop.xlane.xlu0 %8217 }
 0x9ad   : > { %v8219_v14 = vsub.f32 %v8212_v30, %v8218_v56  ;;  %v27856_v30 = vpack.c.bf16 %v8696_v31, %v8693_v46  ;;  %v27862_v56 = vsub.f32 %v545_v19, %v8708_v55  ;;  %v8801_v19 = vsub.f32 %v27854_v35, %v29694_v36  ;;  %v548_v36 = vld [vmem:[%s25438_s28 + $0x140] sm:$0xff]  ;;  %v550_v55 = vld [vmem:[%s25438_s28 + $0x150] sm:$0xff] }
 0x9ae   : > { %v8808_v46 = vsub.f32 %v27858_v61, %v29697_v62  ;;  %v30064_v31 = vand.u32 4294901760, %v27860_v0  ;;  %v29701_v62 = vand.u32 4294901760, %v27892_v1 }
 0x9af   : > { %v8220_v15 = vmul.f32 1.442695, %v8219_v14  ;;  %30062 = vst [vmem:[#allocation6_spill] sm:$0xff] %v27856_v30  ;;  %v27864_v14 = vpack.c.bf16 %v8702_v11, %v8699_v26  ;;  %v8714_v11 = vand.u32 4294901760, %v547_v57  ;;  %v30065_v45 = vand.u32 4294901760, %v27862_v56 }
 0x9b0   : > { %v8815_v37 = vsub.f32 %v27860_v0, %v30064_v31  ;;  %v8802_v2 = vand.u32 4294901760, %v8801_v19  ;;  %v8809_v7 = vand.u32 4294901760, %v8808_v46  ;;  %v8829_v46 = vsub.f32 %v27892_v1, %v29701_v62 }
 0x9b1   : > { %25312 = vpow2.f32 %v8220_v15  ;;  %30063 = vst [vmem:[#allocation24_spill] sm:$0xff] %v27864_v14  ;;  %v29688_v15 = vand.u32 4294901760, %v27850_v10  ;;  %v27894_v29 = vsub.f32 %v547_v57, %v8714_v11  ;;  %v8720_v57 = vand.u32 4294901760, %v549_v47 }
 0x9b2   : > { %v27904_v39 = vpack.c.bf16 %v8809_v7, %v8802_v2  ;;  %v27915_v9 = vpack.c.bf16 %v8714_v11, %v8711_v53  ;;  %v551_v7 = vld [vmem:[%s25438_s28 + $0x158] sm:$0xff] }
 0x9b3   : > { %v8787_v26 = vsub.f32 %v27850_v10, %v29688_v15  ;;  %v8822_v15 = vsub.f32 %v27862_v56, %v30065_v45  ;;  %v29702_v31 = vand.u32 4294901760, %v27894_v29  ;;  %v8717_v45 = vand.u32 4294901760, %v548_v36 }
 0x9b4   : > { %30068 = vst [vmem:[#allocation22_spill] sm:$0xff] %v27904_v39  ;;  %30069 = vst [vmem:[#allocation28_spill] sm:$0xff] %v27915_v9  ;;  %v27920_v2 = vsub.f32 %v549_v47, %v8720_v57 }
 0x9b5   : > { %v27923_v62 = vpack.c.bf16 %v8720_v57, %v8717_v45 }
 0x9b7   : > { %30070 = vst [vmem:[#allocation115_spill] sm:$0xff] %v27923_v62 }
 0x9bb   : > { %v27840_v58 = vpop.eup %25312 }
 0x9bc   : > { %v8222_v5 = vsel %vm5063_vm3, %v27840_v58, 0.0 }
 0x9bd   : > { %8223 = vadd.xlane.f32.xlu1 %v8222_v5  ;;  %v29690_v5 = vand.u32 4294901760, %v27852_v52 }
 0x9bf   : > { %v8794_v42 = vsub.f32 %v27852_v52, %v29690_v5  ;;  %v8788_v5 = vand.u32 4294901760, %v8787_v26  ;;  %v8816_v26 = vand.u32 4294901760, %v8815_v37  ;;  %v8723_v37 = vand.u32 4294901760, %v550_v55 }
 0x9c1   : > { %v8795_v33 = vand.u32 4294901760, %v8794_v42  ;;  %v8823_v42 = vand.u32 4294901760, %v8822_v15  ;;  %v8726_v15 = vand.u32 4294901760, %v551_v7 }
 0x9c3   : > { %v27899_v4 = vpack.c.bf16 %v8795_v33, %v8788_v5  ;;  %v8836_v33 = vsub.f32 %v27894_v29, %v29702_v31  ;;  %v27913_v5 = vsub.f32 %v548_v36, %v8717_v45  ;;  %v29709_v31 = vand.u32 4294901760, %v27920_v2  ;;  %v27940_v45 = vld [vmem:[%s25438_s28 + $0x168] sm:$0xff] }
 0x9c4   : > { %v27926_v36 = vsub.f32 %v550_v55, %v8723_v37  ;;  %v27928_v53 = vsub.f32 %v551_v7, %v8726_v15  ;;  %v27931_v11 = vpack.c.bf16 %v8823_v42, %v8816_v26  ;;  %v29717_v55 = vand.u32 4294901760, %v27940_v45 }
 0x9c5   : > { %30066 = vst [vmem:[#allocation34_spill] sm:$0xff] %v27899_v4  ;;  %23648 = vmatpush3.bf16.msra.mxu0 %v27899_v4  ;;  %v29707_v19 = vand.u32 4294901760, %v27913_v5  ;;  %v8830_v4 = vand.u32 4294901760, %v8829_v46  ;;  %v8837_v59 = vand.u32 4294901760, %v8836_v33  ;;  %v8850_v57 = vsub.f32 %v27920_v2, %v29709_v31 }
 0x9c6   : > { %23649 = vmatprep.subr.bf16.mxu0 %v29859_v28  ;;  %30071 = vst [vmem:[#allocation116_spill] sm:$0xff] %v27931_v11  ;;  %v29713_v26 = vand.u32 4294901760, %v27926_v36  ;;  %v29712_v42 = vand.u32 4294901760, %v27928_v53  ;;  %v29714_v46 = vand.u32 4294901760, %v27937_v6  ;;  %v27950_v7 = vpack.c.bf16 %v8726_v15, %v8723_v37  ;;  %v27972_v15 = vld [vmem:[%s25438_s28 + $0x170] sm:$0xff] }
 0x9c7   : > { %v8843_v47 = vsub.f32 %v27913_v5, %v29707_v19  ;;  %v8851_v19 = vand.u32 4294901760, %v8850_v57  ;;  %v27969_v37 = vsub.f32 %v27940_v45, %v29717_v55  ;;  %v27975_v57 = vld [vmem:[%s25438_s28 + $0x178] sm:$0xff] }
 0x9c8   : > { %30072 = vst [vmem:[#allocation117_spill] sm:$0xff] %v27950_v7  ;;  %v8864_v31 = vsub.f32 %v27928_v53, %v29712_v42  ;;  %v27961_v38 = vsub.f32 %v27937_v6, %v29714_v46  ;;  %v29723_v46 = vand.u32 4294901760, %v27972_v15 }
 0x9c9   : > { %23651 = vmatpush3.bf16.msra.mxu0 %v27904_v39  ;;  %v8844_v33 = vand.u32 4294901760, %v8843_v47  ;;  %v8857_v39 = vsub.f32 %v27926_v36, %v29713_v26  ;;  %v27964_v47 = vpack.c.bf16 %v8837_v59, %v8830_v4  ;;  %v29721_v26 = vand.u32 4294901760, %v27969_v37 }
 0x9ca   : > { %23652 = vmatprep.subr.bf16.mxu0 %v29859_v28  ;;  %v29722_v42 = vand.u32 4294901760, %v27961_v38  ;;  %v29724_v59 = vand.u32 4294901760, %v27975_v57  ;;  %v8865_v49 = vand.u32 4294901760, %v8864_v31  ;;  %v27994_v13 = vsub.f32 %v27972_v15, %v29723_v46 }
 0x9cb   : > { %30073 = vst [vmem:[#allocation118_spill] sm:$0xff] %v27964_v47  ;;  %v27982_v4 = vpack.c.bf16 %v8851_v19, %v8844_v33  ;;  %v8878_v41 = vsub.f32 %v27969_v37, %v29721_v26 }
 0x9cc   : > { %v8871_v55 = vsub.f32 %v27961_v38, %v29722_v42  ;;  %v29727_v31 = vand.u32 4294901760, %v27994_v13 }
 0x9cd   : > { %23654 = vmatpush3.bf16.msra.mxu0 %v27931_v11  ;;  %30074 = vst [vmem:[#allocation119_spill] sm:$0xff] %v27982_v4  ;;  %v8858_v11 = vand.u32 4294901760, %v8857_v39  ;;  %v27999_v39 = vsub.f32 %v27975_v57, %v29724_v59  ;;  %v8879_v42 = vand.u32 4294901760, %v8878_v41 }
 0x9ce   : > { %23655 = vmatprep.subr.bf16.mxu0 %v29859_v28  ;;  %v8872_v26 = vand.u32 4294901760, %v8871_v55  ;;  %v8885_v46 = vsub.f32 %v27994_v13, %v29727_v31 }
 0x9cf   : > { %v29726_v19 = vand.u32 4294901760, %v27999_v39  ;;  %v28004_v33 = vpack.c.bf16 %v8865_v49, %v8858_v11 }
 0x9d0   : > { %v8886_v49 = vand.u32 4294901760, %v8885_v46 }
 0x9d1   : > { %23657 = vmatpush3.bf16.msra.mxu0 %v27964_v47  ;;  %30075 = vst [vmem:[#allocation120_spill] sm:$0xff] %v28004_v33  ;;  %v8892_v59 = vsub.f32 %v27999_v39, %v29726_v19  ;;  %v28015_v47 = vpack.c.bf16 %v8879_v42, %v8872_v26 }
 0x9d2   : > { %23658 = vmatprep.subr.bf16.mxu0 %v29859_v28 }
 0x9d3   : > { %30076 = vst [vmem:[#allocation121_spill] sm:$0xff] %v28015_v47  ;;  %v8893_v11 = vand.u32 4294901760, %v8892_v59 }
 0x9d5   : > { %23660 = vmatpush3.bf16.msra.mxu0 %v27982_v4  ;;  %v28019_v41 = vpack.c.bf16 %v8893_v11, %v8886_v49 }
 0x9d6   : > { %23661 = vmatprep.subr.bf16.mxu0 %v29859_v28 }
 0x9d7   : > { %30077 = vst [vmem:[#allocation122_spill] sm:$0xff] %v28019_v41 }
 0x9d9   : > { %23663 = vmatpush3.bf16.msra.mxu0 %v28004_v33 }
 0x9da   : > { %23664 = vmatprep.subr.bf16.mxu0 %v29859_v28 }
 0x9dd   : > { %23666 = vmatpush3.bf16.msra.mxu0 %v28015_v47 }
 0x9de   : > { %23667 = vmatprep.subr.bf16.mxu0 %v29859_v28 }
 0x9e1   : > { %23669 = vmatpush3.bf16.msra.mxu0 %v28019_v41  ;;  %v30139_v41 = vld [vmem:[#allocation66_spill] sm:$0xff] }
 0x9e2   : > { %23694 = vmatprep.subr.bf16.mxu0 %v29859_v28 }
 0xa4a   : > { %v8224_v55 = vpop.xlane.xlu1 %8223 }
 0xa4b   : > { %25314 = vrcp.f32 %v8224_v55 }
 0xa55   : > { %v25315_v19 = vpop.eup %25314 }
 0xa56   : > { %v8226_v31 = vmul.f32 %v25315_v19, %v8224_v55 }
 0xa58   : > { %v8227_v26 = vsub.f32 2.0, %v8226_v31  ;;  %v30079_v31 = vld [vmem:[#allocation54_spill] sm:$0xff] }
 0xa5a   : > { %v8228_v42 = vmul.f32 %v25315_v19, %v8227_v26  ;;  %v30080_v19 = vld [vmem:[#allocation52_spill] sm:$0xff] }
 0xa5b   : > { %v30081_v55 = vpack.c.bf16 %v30079_v31, %v30080_v19  ;;  %v28106_v31 = vpack.c.bf16 %v27862_v56, %v27860_v0  ;;  %v28114_v19 = vpack.c.bf16 %v27894_v29, %v27892_v1 }
 0xa5c   : > { %v8229_v46 = vmul.f32 %v27840_v58, %v8228_v42  ;;  %v30084_v58 = vand.u32 4294901760, %v27940_v45 }
 0xa5d   : > { %30091 = vst [vmem:[#allocation123_spill] sm:$0xff] %v28106_v31  ;;  %30092 = vst [vmem:[#allocation124_spill] sm:$0xff] %v28114_v19 }
 0xa5e   : > { %v8231_v59 = vsel %vm5063_vm3, %v8229_v46, 0 }
 0xa5f   : > { %v8300_v33 = vand.u32 4294901760, %v8231_v59 }
 0xa61   : > { %v8301_v47 = vsub.f32 %v8231_v59, %v8300_v33  ;;  %v28089_v59 = vpack.c.bf16 %v27852_v52, %v27850_v10 }
 0xa63   : > { %v8302_v49 = vand.u32 4294901760, %v8301_v47  ;;  %30089 = vst [vmem:[#allocation52_spill] sm:$0xff] %v28089_v59 }
 0xa65   : > { %v8303_v11 = vsub.f32 %v8301_v47, %v8302_v49 }
 0xa67   : > { %v8304_v4 = vand.u32 4294901760, %v8303_v11  ;;  %v28096_v11 = vpack.c.bf16 %v27858_v61, %v27854_v35 }
 0xa69   : > { %20975 = vmatmul.mubr.f32.vlgmr.msra.gmra.mrb[36].mxu1 %v8304_v4  ;;  %v30086_v4 = vand.u32 4294901760, %v27972_v15 }
 0xa6a   : > { %23609 = vmatpush3.bf16.msra.mxu1 %v30078_v50  ;;  %20981 = vmatprep.mubr.msk.f32.mxu1 %vm25357_vm2, %v29889_v32  ;;  %v30082_v50 = vld [vmem:[#allocation59_spill] sm:$0xff] }
 0xa6b   : > { %23610 = vmatprep.subr.bf16.mxu1 %v29859_v28  ;;  %30090 = vst [vmem:[#allocation59_spill] sm:$0xff] %v28096_v11 }
 0xa71   : > { %20982 = vmatmul.mubr.f32.vlgmr.msra.gmra.mrb[36].mxu1 %v8300_v33 }
 0xa72   : > { %23612 = vmatpush3.bf16.msra.mxu1 %v30081_v55  ;;  %20988 = vmatprep.mubr.msk.f32.mxu1 %vm25357_vm2, %v29889_v32  ;;  %v28122_v55 = vpack.c.bf16 %v27920_v2, %v27913_v5 }
 0xa73   : > { %23613 = vmatprep.subr.bf16.mxu1 %v29859_v28 }
 0xa74   : > { %30093 = vst [vmem:[#allocation125_spill] sm:$0xff] %v28122_v55 }
 0xa79   : > { %20989 = vmatmul.mubr.f32.vlgmr.msra.gmra.mrb[36].mxu1 %v8301_v47 }
 0xa7a   : > { %23615 = vmatpush3.bf16.msra.mxu1 %v26738_v23  ;;  %20995 = vmatprep.mubr.msk.f32.mxu1 %vm25357_vm2, %v29889_v32 }
 0xa7b   : > { %23616 = vmatprep.subr.bf16.mxu1 %v29859_v28 }
 0xa81   : > { %20996 = vmatmul.mubr.f32.vlgmr.msra.gmra.mrb[36].mxu1 %v8302_v49 }
 0xa82   : > { %23618 = vmatpush3.bf16.msra.mxu1 %v30082_v50  ;;  %21002 = vmatprep.mubr.msk.f32.mxu1 %vm25357_vm2, %v29889_v32  ;;  %v28130_v50 = vpack.c.bf16 %v27928_v53, %v27926_v36 }
 0xa83   : > { %23619 = vmatprep.subr.bf16.mxu1 %v29859_v28 }
 0xa84   : > { %30094 = vst [vmem:[#allocation126_spill] sm:$0xff] %v28130_v50 }
 0xa89   : > { %21003 = vmatmul.mubr.f32.vlgmr.msra.gmra.mrb[36].mxu1 %v8300_v33 }
 0xa8a   : > { %23621 = vmatpush3.bf16.msra.mxu1 %v26738_v23  ;;  %21009 = vmatprep.mubr.msk.f32.mxu1 %vm25357_vm2, %v29889_v32  ;;  %v30083_v23 = vand.u32 4294901760, %v27937_v6 }
 0xa8b   : > { %23622 = vmatprep.subr.bf16.mxu1 %v29859_v28 }
 0xa8c   : > { %v28066_v47 = vpack.c.bf16 %v30084_v58, %v30083_v23  ;;  %v28138_v23 = vpack.c.bf16 %v27969_v37, %v27961_v38  ;;  %v28146_v58 = vpack.c.bf16 %v27999_v39, %v27994_v13 }
 0xa8e   : > { %30085 = vst [vmem:[#allocation63_spill] sm:$0xff] %v28066_v47  ;;  %30095 = vst [vmem:[#allocation127_spill] sm:$0xff] %v28138_v23 }
 0xa8f   : > { %30096 = vst [vmem:[#allocation128_spill] sm:$0xff] %v28146_v58 }
 0xa91   : > { %21010 = vmatmul.mubr.f32.vlgmr.msra.gmra.mrb[36].mxu1 %v8300_v33  ;;  %v30087_v33 = vand.u32 4294901760, %v27975_v57 }
 0xa92   : > { %23624 = vmatpush3.bf16.msra.mxu1 %v27856_v30  ;;  %21044 = vmatprep.mubr.msk.f32.mxu1 %vm25357_vm2, %v29889_v32 }
 0xa93   : > { %23625 = vmatprep.subr.bf16.mxu1 %v29859_v28  ;;  %v28074_v26 = vpack.c.bf16 %v30087_v33, %v30086_v4  ;;  %v30097_v4 = vand.u32 4294901760, %v27850_v10  ;;  %v30098_v33 = vand.u32 4294901760, %v27852_v52  ;;  %v30103_v10 = vand.u32 4294901760, %v27860_v0 }
 0xa94   : > { %v30104_v52 = vand.u32 4294901760, %v27862_v56  ;;  %v30109_v0 = vand.u32 4294901760, %v27913_v5  ;;  %v30110_v56 = vand.u32 4294901760, %v27920_v2  ;;  %v30115_v5 = vand.u32 4294901760, %v27961_v38 }
 0xa95   : > { %30088 = vst [vmem:[#allocation54_spill] sm:$0xff] %v28074_v26  ;;  %v30116_v2 = vand.u32 4294901760, %v27969_v37  ;;  %v30122_v38 = vand.u32 4294901760, %v27999_v39  ;;  %v30124_v39 = vld [vmem:[#allocation26_spill] sm:$0xff] }
 0xa96   : > { %23627 = vmatpush3.bf16.msra.mxu1 %v27864_v14 }
 0xa97   : > { %23628 = vmatprep.subr.bf16.mxu1 %v29859_v28 }
 0xa9a   : > { %23630 = vmatpush3.bf16.msra.mxu1 %v27902_v22 }
 0xa9b   : > { %23631 = vmatprep.subr.bf16.mxu1 %v29859_v28 }
 0xa9e   : > { %23633 = vmatpush3.bf16.msra.mxu1 %v27915_v9 }
 0xa9f   : > { %23634 = vmatprep.subr.bf16.mxu1 %v29859_v28 }
 0xaa2   : > { %23636 = vmatpush3.bf16.msra.mxu1 %v27923_v62 }
 0xaa3   : > { %23637 = vmatprep.subr.bf16.mxu1 %v29859_v28 }
 0xaa6   : > { %23639 = vmatpush3.bf16.msra.mxu1 %v27950_v7 }
 0xaa7   : > { %23640 = vmatprep.subr.bf16.mxu1 %v29859_v28 }
 0xaaa   : > { %23642 = vmatpush3.bf16.msra.mxu1 %v28066_v47 }
 0xaab   : > { %23643 = vmatprep.subr.bf16.mxu1 %v29859_v28 }
 0xaae   : > { %23645 = vmatpush3.bf16.msra.mxu1 %v28074_v26 }
 0xaaf   : > { %23670 = vmatprep.subr.bf16.mxu1 %v29859_v28 }
 0xb64   : > { %v8688_v42 = vpop.f32.mrb[36].mxu1 }
 0xb65   : > { %v28078_v6 = vand.u32 4294901760, %v8688_v42  ;;  %v21011_v45 = vpop.f32.mrb[37].mxu1 }
 0xb66   : > { %v30100_v45 = vand.u32 4294901760, %v27854_v35  ;;  %v28180_v35 = vpack.c.bf16 %v30104_v52, %v30103_v10  ;;  %v30120_v10 = vld [vmem:[#allocation55_spill] sm:$0xff]  ;;  %v30121_v52 = vand.u32 4294901760, %v27994_v13 }
 0xb67   : > { %v8774_v46 = vsub.f32 %v8688_v42, %v28078_v6  ;;  %21080 = vmatmul.mubr.f32.vlgmr.msra.gmra.mrb[40].mxu0 %v28078_v6  ;;  %v28158_v42 = vpack.c.bf16 %v30098_v33, %v30097_v4  ;;  %v28200_v4 = vpack.c.bf16 %v30110_v56, %v30109_v0 }
 0xb68   : > { %23696 = vmatpush3.bf16.msra.mxu0 %v27856_v30  ;;  %21149 = vmatprep.mubr.msk.f32.mxu0 %vm25357_vm2, %v29889_v32  ;;  %30105 = vst [vmem:[#allocation131_spill] sm:$0xff] %v28180_v35  ;;  %v28233_v37 = vpack.c.bf16 %v30122_v38, %v30121_v52 }
 0xb69   : > { %v8775_v15 = vand.u32 4294901760, %v8774_v46  ;;  %23697 = vmatprep.subr.bf16.mxu0 %v29859_v28  ;;  %30099 = vst [vmem:[#allocation129_spill] sm:$0xff] %v28158_v42  ;;  %30111 = vst [vmem:[#allocation133_spill] sm:$0xff] %v28200_v4 }
 0xb6b   : > { %v8776_v57 = vsub.f32 %v8774_v46, %v8775_v15 }
 0xb6c   : > { %23699 = vmatpush3.bf16.msra.mxu0 %v27864_v14 }
 0xb6d   : > { %v8777_v49 = vand.u32 4294901760, %v8776_v57  ;;  %23700 = vmatprep.subr.bf16.mxu0 %v29859_v28 }
 0xb6f   : > { %21045 = vmatmul.mubr.f32.vlgmr.msra.gmra.mrb[38].mxu1 %v8777_v49 }
 0xb70   : > { %23672 = vmatpush3.bf16.msra.mxu1 %v28089_v59  ;;  %23702 = vmatpush3.bf16.msra.mxu0 %v27902_v22 }
 0xb71   : > { %23673 = vmatprep.subr.bf16.mxu1 %v29859_v28  ;;  %23703 = vmatprep.subr.bf16.mxu0 %v29859_v28 }
 0xb72   : > { %21114 = vmatprep.mubr.msk.f32.mxu1 %vm25357_vm2, %v29889_v32 }
 0xb74   : > { %23675 = vmatpush3.bf16.msra.mxu1 %v28096_v11  ;;  %23705 = vmatpush3.bf16.msra.mxu0 %v27915_v9  ;;  %v565_v11 = vld [vmem:[%s25438_s28 + $0x1c8] sm:$0xff] }
 0xb75   : > { %23676 = vmatprep.subr.bf16.mxu1 %v29859_v28  ;;  %23706 = vmatprep.subr.bf16.mxu0 %v29859_v28 }
 0xb78   : > { %23678 = vmatpush3.bf16.msra.mxu1 %v28106_v31  ;;  %23708 = vmatpush3.bf16.msra.mxu0 %v27923_v62 }
 0xb79   : > { %23679 = vmatprep.subr.bf16.mxu1 %v29859_v28  ;;  %23709 = vmatprep.subr.bf16.mxu0 %v29859_v28 }
 0xb7c   : > { %23681 = vmatpush3.bf16.msra.mxu1 %v28114_v19  ;;  %23711 = vmatpush3.bf16.msra.mxu0 %v27950_v7 }
 0xb7d   : > { %23682 = vmatprep.subr.bf16.mxu1 %v29859_v28  ;;  %23712 = vmatprep.subr.bf16.mxu0 %v29859_v28 }
 0xb80   : > { %23684 = vmatpush3.bf16.msra.mxu1 %v28122_v55  ;;  %23714 = vmatpush3.bf16.msra.mxu0 %v28066_v47 }
 0xb81   : > { %23685 = vmatprep.subr.bf16.mxu1 %v29859_v28  ;;  %23715 = vmatprep.subr.bf16.mxu0 %v29859_v28 }
 0xb84   : > { %23687 = vmatpush3.bf16.msra.mxu1 %v28130_v50  ;;  %23717 = vmatpush3.bf16.msra.mxu0 %v28074_v26 }
 0xb85   : > { %23688 = vmatprep.subr.bf16.mxu1 %v29859_v28  ;;  %23742 = vmatprep.subr.bf16.mxu0 %v29859_v28 }
 0xb87   : > { %21150 = vmatmul.mubr.f32.vlgmr.msra.gmra.mrb[42].mxu0 %v8775_v15  ;;  %v30101_v15 = vand.u32 4294901760, %v27858_v61  ;;  %v30106_v61 = vand.u32 4294901760, %v27892_v1  ;;  %v30113_v1 = vand.u32 4294901760, %v27928_v53  ;;  %v30119_v53 = vld [vmem:[#allocation7_spill] sm:$0xff] }
 0xb88   : > { %23690 = vmatpush3.bf16.msra.mxu1 %v28138_v23  ;;  %23744 = vmatpush3.bf16.msra.mxu0 %v27856_v30 }
 0xb89   : > { %23691 = vmatprep.subr.bf16.mxu1 %v29859_v28  ;;  %23745 = vmatprep.subr.bf16.mxu0 %v29859_v28  ;;  %v28168_v57 = vpack.c.bf16 %v30101_v15, %v30100_v45  ;;  %v28220_v45 = vpack.c.bf16 %v30116_v2, %v30115_v5  ;;  %v30129_v2 = vld [vmem:[#allocation30_spill] sm:$0xff] }
 0xb8a   : > { %21219 = vmatprep.mubr.msk.f32.mxu0 %vm25357_vm2, %v29889_v32 }
 0xb8b   : > { %30102 = vst [vmem:[#allocation130_spill] sm:$0xff] %v28168_v57  ;;  %30117 = vst [vmem:[#allocation135_spill] sm:$0xff] %v28220_v45 }
 0xb8c   : > { %23693 = vmatpush3.bf16.msra.mxu1 %v28146_v58  ;;  %23747 = vmatpush3.bf16.msra.mxu0 %v27864_v14 }
 0xb8d   : > { %23718 = vmatprep.subr.bf16.mxu1 %v29859_v28  ;;  %23748 = vmatprep.subr.bf16.mxu0 %v29859_v28 }
 0xb8f   : > { %21115 = vmatmul.mubr.f32.vlgmr.msra.gmra.mrb[40].mxu1 %v8774_v46  ;;  %v30107_v46 = vand.u32 4294901760, %v27894_v29  ;;  %v30112_v29 = vand.u32 4294901760, %v27926_v36  ;;  %v30118_v36 = vld [vmem:[#allocation9_spill] sm:$0xff] }
 0xb90   : > { %23720 = vmatpush3.bf16.msra.mxu1 %v28158_v42  ;;  %23750 = vmatpush3.bf16.msra.mxu0 %v27902_v22  ;;  %v24863_v15 = vadd.f32 %v30119_v53, %v30118_v36  ;;  %30123 = vst [vmem:[#allocation9_spill] sm:$0xff] %v28233_v37  ;;  %v563_v42 = vld [vmem:[%s25438_s28 + $0x1b8] sm:$0xff] }
 0xb91   : > { %23721 = vmatprep.subr.bf16.mxu1 %v29859_v28  ;;  %23751 = vmatprep.subr.bf16.mxu0 %v29859_v28  ;;  %v28190_v49 = vpack.c.bf16 %v30107_v46, %v30106_v61  ;;  %v28210_v33 = vpack.c.bf16 %v30113_v1, %v30112_v29  ;;  %v30125_v29 = vld [vmem:[#allocation37_spill] sm:$0xff]  ;;  %v30127_v1 = vld [vmem:[#allocation23_spill] sm:$0xff] }
 0xb92   : > { %21184 = vmatprep.mubr.msk.f32.mxu1 %vm25357_vm2, %v29889_v32  ;;  %v9401_v61 = vand.u32 4294901760, %v24863_v15 }
 0xb93   : > { %30108 = vst [vmem:[#allocation132_spill] sm:$0xff] %v28190_v49  ;;  %30114 = vst [vmem:[#allocation134_spill] sm:$0xff] %v28210_v33 }
 0xb94   : > { %23723 = vmatpush3.bf16.msra.mxu1 %v28168_v57  ;;  %23753 = vmatpush3.bf16.msra.mxu0 %v27915_v9  ;;  %v9402_v46 = vsub.f32 %v24863_v15, %v9401_v61 }
 0xb95   : > { %23724 = vmatprep.subr.bf16.mxu1 %v29859_v28  ;;  %23754 = vmatprep.subr.bf16.mxu0 %v29859_v28 }
 0xb96   : > { %v9403_v13 = vand.u32 4294901760, %v9402_v46 }
 0xb98   : > { %23726 = vmatpush3.bf16.msra.mxu1 %v28180_v35  ;;  %23756 = vmatpush3.bf16.msra.mxu0 %v27923_v62  ;;  %v9404_v0 = vsub.f32 %v9402_v46, %v9403_v13  ;;  %v28371_v62 = vld [vmem:[%s25438_s28 + $0x1e0] sm:$0xff] }
 0xb99   : > { %23727 = vmatprep.subr.bf16.mxu1 %v29859_v28  ;;  %23757 = vmatprep.subr.bf16.mxu0 %v29859_v28 }
 0xb9a   : > { %v9405_v56 = vand.u32 4294901760, %v9404_v0 }
 0xb9c   : > { %23729 = vmatpush3.bf16.msra.mxu1 %v28190_v49  ;;  %23759 = vmatpush3.bf16.msra.mxu0 %v27950_v7 }
 0xb9d   : > { %23730 = vmatprep.subr.bf16.mxu1 %v29859_v28  ;;  %23760 = vmatprep.subr.bf16.mxu0 %v29859_v28 }
 0xba0   : > { %23732 = vmatpush3.bf16.msra.mxu1 %v28200_v4  ;;  %23762 = vmatpush3.bf16.msra.mxu0 %v28066_v47 }
 0xba1   : > { %23733 = vmatprep.subr.bf16.mxu1 %v29859_v28  ;;  %23763 = vmatprep.subr.bf16.mxu0 %v29859_v28 }
 0xba4   : > { %23735 = vmatpush3.bf16.msra.mxu1 %v28210_v33  ;;  %23765 = vmatpush3.bf16.msra.mxu0 %v28074_v26 }
 0xba5   : > { %23736 = vmatprep.subr.bf16.mxu1 %v29859_v28  ;;  %23784 = vmatprep.subr.bf16.mxu0 %v29859_v28 }
 0xba7   : > { %21220 = vmatmul.mubr.f32.vlgmr.msra.gmra.mrb[44].mxu0 %v28078_v6 }
 0xba8   : > { %23738 = vmatpush3.bf16.msra.mxu1 %v28220_v45  ;;  %23786 = vmatpush3.bf16.msra.mxu0 %v30120_v10 }
 0xba9   : > { %23739 = vmatprep.subr.bf16.mxu1 %v29859_v28  ;;  %21268 = vmatprep.mubr.msk.f32.mxu0 %vm25357_vm2, %v29889_v32 }
 0xbaa   : > { %23787 = vmatprep.subr.bf16.mxu0 %v29859_v28 }
 0xbac   : > { %23741 = vmatpush3.bf16.msra.mxu1 %v28233_v37 }
 0xbad   : > { %23766 = vmatprep.subr.bf16.mxu1 %v29859_v28 }
 0xbaf   : > { %21185 = vmatmul.mubr.f32.vlgmr.msra.gmra.mrb[42].mxu1 %v28078_v6  ;;  %v30126_v6 = vld [vmem:[#allocation27_spill] sm:$0xff] }
 0xbb0   : > { %21226 = vmatprep.mubr.msk.f32.mxu1 %vm25357_vm2, %v29889_v32  ;;  %v30128_v5 = vpack.c.bf16 %v30126_v6, %v30127_v1 }
 0xbb5   : > { %23768 = vmatpush3.bf16.xpose.msra.mxu1 %v30124_v39 }
 0xbb6   : > { %23769 = vmatprep.subr.bf16.mxu1 %v29859_v28 }
 0xbbc   : > { %21227 = vmatmul.mubr.f32.vlgmr.msra.gmra.mrb[44].mxu1 %v9405_v56 }
 0xbbd   : > { %23771 = vmatpush3.bf16.xpose.msra.mxu1 %v30125_v29  ;;  %21233 = vmatprep.mubr.msk.f32.mxu1 %vm25357_vm2, %v29889_v32 }
 0xbbe   : > { %23772 = vmatprep.subr.bf16.mxu1 %v29859_v28 }
 0xbc4   : > { %21234 = vmatmul.mubr.f32.vlgmr.msra.gmra.mrb[44].mxu1 %v9401_v61 }
 0xbc5   : > { %23774 = vmatpush3.bf16.xpose.msra.mxu1 %v30128_v5  ;;  %21240 = vmatprep.mubr.msk.f32.mxu1 %vm25357_vm2, %v29889_v32 }
 0xbc6   : > { %23775 = vmatprep.subr.bf16.mxu1 %v29859_v28 }
 0xbcc   : > { %21241 = vmatmul.mubr.f32.vlgmr.msra.gmra.mrb[44].mxu1 %v9402_v46 }
 0xbcd   : > { %23777 = vmatpush3.bf16.xpose.msra.mxu1 %v30124_v39  ;;  %21247 = vmatprep.mubr.msk.f32.mxu1 %vm25357_vm2, %v29889_v32 }
 0xbce   : > { %23778 = vmatprep.subr.bf16.mxu1 %v29859_v28 }
 0xbd4   : > { %21248 = vmatmul.mubr.f32.vlgmr.msra.gmra.mrb[44].mxu1 %v9403_v13 }
 0xbd5   : > { %23780 = vmatpush3.bf16.xpose.msra.mxu1 %v30129_v2  ;;  %21254 = vmatprep.mubr.msk.f32.mxu1 %vm25357_vm2, %v29889_v32 }
 0xbd6   : > { %23781 = vmatprep.subr.bf16.mxu1 %v29859_v28 }
 0xbdc   : > { %21255 = vmatmul.mubr.f32.vlgmr.msra.gmra.mrb[44].mxu1 %v9401_v61 }
 0xbdd   : > { %23783 = vmatpush3.bf16.xpose.msra.mxu1 %v30124_v39  ;;  %21261 = vmatprep.mubr.msk.f32.mxu1 %vm25357_vm2, %v29889_v32 }
 0xbde   : > { %23826 = vmatprep.subr.bf16.mxu1 %v29859_v28 }
 0xbe4   : > { %21262 = vmatmul.mubr.f32.vlgmr.msra.gmra.mrb[44].mxu1 %v9401_v61 }
 0xbe5   : > { %21373 = vmatprep.mubr.msk.f32.mxu1 %vm25357_vm2, %v29889_v32 }
 0xc3a   : > { %v8930_v36 = vpop.f32.mrb[40].mxu0 }
 0xc3b   : > { %v21081_v53 = vpop.f32.mrb[41].mxu0 }
 0xc42   : > { %v8779_v15 = vpop.f32.mrb[38].mxu1 }
 0xc43   : > { %v8931_v52 = vadd.f32 %v8930_v36, %v8779_v15  ;;  %v21046_v38 = vpop.f32.mrb[39].mxu1 }
 0xc5a   : > { %v9123_v46 = vpop.f32.mrb[42].mxu0 }
 0xc5b   : > { %v21151_v13 = vpop.f32.mrb[43].mxu0 }
 0xc62   : > { %v9034_v0 = vpop.f32.mrb[40].mxu1 }
 0xc63   : > { %v9035_v56 = vadd.f32 %v9034_v0, %v8931_v52  ;;  %v21116_v29 = vpop.f32.mrb[41].mxu1 }
 0xc64   : > { %v558_v29 = vld [vmem:[%s25438_s28 + $0x190] sm:$0xff] }
 0xc65   : > { %v9124_v39 = vadd.f32 %v9123_v46, %v9035_v56 }
 0xc7a   : > { %v9329_v6 = vpop.f32.mrb[44].mxu0 }
 0xc7b   : > { %v21221_v1 = vpop.f32.mrb[45].mxu0 }
 0xc7c   : > { %v559_v1 = vld [vmem:[%s25438_s28 + $0x198] sm:$0xff] }
 0xc82   : > { %v9242_v5 = vpop.f32.mrb[42].mxu1 }
 0xc83   : > { %v9243_v2 = vadd.f32 %v9242_v5, %v9124_v39  ;;  %v21186_v61 = vpop.f32.mrb[43].mxu1  ;;  %v10276_v5 = vand.u32 4294901760, %v558_v29 }
 0xc84   : > { %v561_v61 = vld [vmem:[%s25438_s28 + $0x1a8] sm:$0xff] }
 0xc85   : > { %v9330_v37 = vadd.f32 %v9329_v6, %v9243_v2  ;;  %v560_v2 = vld [vmem:[%s25438_s28 + $0x1a0] sm:$0xff] }
 0xc87   : > { %v28271_v53 = vadd.f32 %v9330_v37, %v27837_v34  ;;  %v556_v34 = vld [vmem:[%s25438_s28 + $0x180] sm:$0xff]  ;;  %v557_v37 = vld [vmem:[%s25438_s28 + $0x188] sm:$0xff] }
 0xc88   : > { %v10270_v39 = vand.u32 4294901760, %v556_v34  ;;  %v10273_v6 = vand.u32 4294901760, %v557_v37 }
 0xcb7   : > { %v9789_v36 = vpop.f32.mrb[44].mxu1 }
 0xcb8   : > { %v21263_v15 = vpop.f32.mrb[45].mxu1  ;;  %v9793_v38 = vsel %vm5063_vm3, %v9789_v36, -inf }
 0xcb9   : > { %9794 = vmax.xlane.f32.xlu0 %v9793_v38  ;;  %v10282_v15 = vand.u32 4294901760, %v560_v2  ;;  %v10285_v38 = vand.u32 4294901760, %v561_v61 }
 0xcbb   : > { %v28294_v33 = vsub.f32 %v560_v2, %v10282_v15  ;;  %v28296_v4 = vsub.f32 %v561_v61, %v10285_v38  ;;  %v28336_v47 = vpack.c.bf16 %v10285_v38, %v10282_v15  ;;  %v566_v38 = vld [vmem:[%s25438_s28 + $0x1d0] sm:$0xff] }
 0xcbd   : > { %v30131_v23 = vand.u32 4294901760, %v28296_v4 }
 0xd46   : > { %v9795_v52 = vpop.xlane.xlu0 %9794 }
 0xd47   : > { %v9796_v46 = vsub.f32 %v9789_v36, %v9795_v52  ;;  %v10279_v36 = vand.u32 4294901760, %v559_v1  ;;  %v28284_v52 = vsub.f32 %v556_v34, %v10270_v39 }
 0xd49   : > { %v9797_v13 = vmul.f32 1.442695, %v9796_v46  ;;  %v28286_v46 = vsub.f32 %v557_v37, %v10273_v6  ;;  %v28292_v45 = vsub.f32 %v559_v1, %v10279_v36  ;;  %v28298_v49 = vpack.c.bf16 %v10279_v36, %v10276_v5  ;;  %v562_v37 = vld [vmem:[%s25438_s28 + $0x1b0] sm:$0xff] }
 0xd4a   : > { %v29743_v35 = vand.u32 4294901760, %v28284_v52  ;;  %v10288_v1 = vand.u32 4294901760, %v562_v37  ;;  %v10291_v36 = vand.u32 4294901760, %v563_v42 }
 0xd4b   : > { %25316 = vpow2.f32 %v9797_v13  ;;  %v28288_v13 = vsub.f32 %v558_v29, %v10276_v5  ;;  %v29745_v57 = vand.u32 4294901760, %v28286_v46  ;;  %v29752_v29 = vand.u32 4294901760, %v28292_v45 }
 0xd4c   : > { %v10364_v5 = vsub.f32 %v28284_v52, %v29743_v35  ;;  %v10399_v35 = vsub.f32 %v28296_v4, %v30131_v23  ;;  %v28326_v50 = vsub.f32 %v562_v37, %v10288_v1  ;;  %v28328_v31 = vsub.f32 %v563_v42, %v10291_v36 }
 0xd4d   : > { %v29749_v34 = vand.u32 4294901760, %v28288_v13  ;;  %v10371_v2 = vsub.f32 %v28286_v46, %v29745_v57  ;;  %v10297_v42 = vand.u32 4294901760, %v565_v11  ;;  %v28349_v15 = vpack.c.bf16 %v10291_v36, %v10288_v1 }
 0xd4e   : > { %v10365_v57 = vand.u32 4294901760, %v10364_v5 }
 0xd4f   : > { %v10378_v61 = vsub.f32 %v28288_v13, %v29749_v34  ;;  %v10372_v55 = vand.u32 4294901760, %v10371_v2  ;;  %v564_v34 = vld [vmem:[%s25438_s28 + $0x1c0] sm:$0xff]  ;;  %v10400_v2 = vand.u32 4294901760, %v10399_v35 }
 0xd50   : > { %v10294_v23 = vand.u32 4294901760, %v564_v34 }
 0xd51   : > { %v10379_v19 = vand.u32 4294901760, %v10378_v61  ;;  %v28333_v26 = vpack.c.bf16 %v10372_v55, %v10365_v57 }
 0xd52   : > { %v28347_v57 = vsub.f32 %v564_v34, %v10294_v23 }
 0xd53   : > { %30132 = vst [vmem:[#allocation7_spill] sm:$0xff] %v28333_v26  ;;  %23828 = vmatpush3.bf16.msra.mxu1 %v28333_v26 }
 0xd54   : > { %23829 = vmatprep.subr.bf16.mxu1 %v29859_v28  ;;  %v29764_v61 = vand.u32 4294901760, %v28347_v57 }
 0xd55   : > { %v28274_v0 = vpop.eup %25316 }
 0xd56   : > { %v9799_v56 = vsel %vm5063_vm3, %v28274_v0, 0.0 }
 0xd57   : > { %9800 = vadd.xlane.f32.xlu1 %v9799_v56  ;;  %v28290_v56 = vpack.c.bf16 %v10273_v6, %v10270_v39  ;;  %v10385_v39 = vsub.f32 %v28292_v45, %v29752_v29  ;;  %v30130_v6 = vand.u32 4294901760, %v28294_v33  ;;  %v29757_v29 = vand.u32 4294901760, %v28326_v50 }
 0xd59   : > { %v10392_v58 = vsub.f32 %v28294_v33, %v30130_v6  ;;  %v10386_v59 = vand.u32 4294901760, %v10385_v39  ;;  %v29758_v6 = vand.u32 4294901760, %v28328_v31  ;;  %v10406_v39 = vsub.f32 %v28326_v50, %v29757_v29 }
 0xd5a   : > { %v28357_v29 = vpack.c.bf16 %v10297_v42, %v10294_v23  ;;  %v28374_v23 = vld [vmem:[%s25438_s28 + $0x1e8] sm:$0xff] }
 0xd5b   : > { %v28338_v37 = vpack.c.bf16 %v10386_v59, %v10379_v19  ;;  %v10393_v5 = vand.u32 4294901760, %v10392_v58  ;;  %v10413_v55 = vsub.f32 %v28328_v31, %v29758_v6  ;;  %v567_v59 = vld [vmem:[%s25438_s28 + $0x1d8] sm:$0xff]  ;;  %v28354_v19 = vsub.f32 %v565_v11, %v10297_v42 }
 0xd5c   : > { %v10300_v58 = vand.u32 4294901760, %v566_v38  ;;  %v10303_v35 = vand.u32 4294901760, %v567_v59  ;;  %v10407_v26 = vand.u32 4294901760, %v10406_v39  ;;  %v10420_v11 = vsub.f32 %v28347_v57, %v29764_v61 }
 0xd5d   : > { %30133 = vst [vmem:[#allocation55_spill] sm:$0xff] %v28338_v37  ;;  %v29766_v6 = vand.u32 4294901760, %v28354_v19  ;;  %23831 = vmatpush3.bf16.msra.mxu1 %v28338_v37  ;;  %v28365_v36 = vpack.c.bf16 %v10400_v2, %v10393_v5  ;;  %v10414_v7 = vand.u32 4294901760, %v10413_v55  ;;  %v29771_v39 = vand.u32 4294901760, %v28371_v62 }
 0xd5e   : > { %v28360_v34 = vsub.f32 %v566_v38, %v10300_v58  ;;  %v28362_v1 = vsub.f32 %v567_v59, %v10303_v35  ;;  %23832 = vmatprep.subr.bf16.mxu1 %v29859_v28  ;;  %v10421_v55 = vand.u32 4294901760, %v10420_v11  ;;  %v29775_v38 = vand.u32 4294901760, %v28374_v23 }
 0xd5f   : > { %30134 = vst [vmem:[#allocation26_spill] sm:$0xff] %v28365_v36  ;;  %v10427_v42 = vsub.f32 %v28354_v19, %v29766_v6  ;;  %v28384_v59 = vpack.c.bf16 %v10303_v35, %v10300_v58  ;;  %v28395_v9 = vsub.f32 %v28371_v62, %v29771_v39  ;;  %v28398_v11 = vpack.c.bf16 %v10414_v7, %v10407_v26  ;;  %v28406_v35 = vld [vmem:[%s25438_s28 + $0x1f0] sm:$0xff] }
 0xd60   : > { %v29770_v5 = vand.u32 4294901760, %v28360_v34  ;;  %v29769_v2 = vand.u32 4294901760, %v28362_v1  ;;  %v28403_v58 = vsub.f32 %v28374_v23, %v29775_v38  ;;  %v29782_v39 = vand.u32 4294901760, %v28406_v35 }
 0xd61   : > { %v10428_v61 = vand.u32 4294901760, %v10427_v42  ;;  %23834 = vmatpush3.bf16.msra.mxu1 %v28365_v36  ;;  %30135 = vst [vmem:[#allocation37_spill] sm:$0xff] %v28398_v11  ;;  %v28409_v42 = vld [vmem:[%s25438_s28 + $0x1f8] sm:$0xff] }
 0xd62   : > { %v10434_v37 = vsub.f32 %v28360_v34, %v29770_v5  ;;  %v10441_v6 = vsub.f32 %v28362_v1, %v29769_v2  ;;  %23835 = vmatprep.subr.bf16.mxu1 %v29859_v28  ;;  %v29781_v2 = vand.u32 4294901760, %v28395_v9  ;;  %v29780_v5 = vand.u32 4294901760, %v28403_v58 }
 0xd63   : > { %v29783_v7 = vand.u32 4294901760, %v28409_v42  ;;  %v28416_v26 = vpack.c.bf16 %v10428_v61, %v10421_v55  ;;  %v28428_v30 = vsub.f32 %v28406_v35, %v29782_v39 }
 0xd64   : > { %v10435_v36 = vand.u32 4294901760, %v10434_v37  ;;  %v10442_v22 = vand.u32 4294901760, %v10441_v6  ;;  %v10448_v38 = vsub.f32 %v28395_v9, %v29781_v2  ;;  %v10455_v14 = vsub.f32 %v28403_v58, %v29780_v5 }
 0xd65   : > { %30136 = vst [vmem:[#allocation27_spill] sm:$0xff] %v28416_v26  ;;  %23837 = vmatpush3.bf16.msra.mxu1 %v28398_v11  ;;  %v28433_v37 = vsub.f32 %v28409_v42, %v29783_v7  ;;  %v29786_v6 = vand.u32 4294901760, %v28428_v30 }
 0xd66   : > { %23838 = vmatprep.subr.bf16.mxu1 %v29859_v28  ;;  %v28438_v55 = vpack.c.bf16 %v10442_v22, %v10435_v36  ;;  %v10449_v5 = vand.u32 4294901760, %v10448_v38  ;;  %v10456_v2 = vand.u32 4294901760, %v10455_v14 }
 0xd67   : > { %v29785_v61 = vand.u32 4294901760, %v28433_v37  ;;  %v10462_v39 = vsub.f32 %v28428_v30, %v29786_v6 }
 0xd68   : > { %30137 = vst [vmem:[#allocation23_spill] sm:$0xff] %v28438_v55  ;;  %v28449_v11 = vpack.c.bf16 %v10456_v2, %v10449_v5 }
 0xd69   : > { %23840 = vmatpush3.bf16.msra.mxu1 %v28416_v26  ;;  %v10469_v7 = vsub.f32 %v28433_v37, %v29785_v61  ;;  %v10463_v22 = vand.u32 4294901760, %v10462_v39 }
 0xd6a   : > { %23841 = vmatprep.subr.bf16.mxu1 %v29859_v28  ;;  %30138 = vst [vmem:[#allocation30_spill] sm:$0xff] %v28449_v11 }
 0xd6b   : > { %v10470_v36 = vand.u32 4294901760, %v10469_v7 }
 0xd6d   : > { %23843 = vmatpush3.bf16.msra.mxu1 %v28438_v55  ;;  %v28453_v14 = vpack.c.bf16 %v10470_v36, %v10463_v22 }
 0xd6e   : > { %23844 = vmatprep.subr.bf16.mxu1 %v29859_v28 }
 0xd71   : > { %23846 = vmatpush3.bf16.msra.mxu1 %v28449_v11 }
 0xd72   : > { %23847 = vmatprep.subr.bf16.mxu1 %v29859_v28 }
 0xd75   : > { %23849 = vmatpush3.bf16.msra.mxu1 %v28453_v14 }
 0xd76   : > { %23874 = vmatprep.subr.bf16.mxu1 %v29859_v28 }
 0xde4   : > { %v9801_v38 = vpop.xlane.xlu1 %9800 }
 0xde5   : > { %25318 = vrcp.f32 %v9801_v38 }
 0xdef   : > { %v25319_v61 = vpop.eup %25318 }
 0xdf0   : > { %v9803_v6 = vmul.f32 %v25319_v61, %v9801_v38 }
 0xdf2   : > { %v9804_v5 = vsub.f32 2.0, %v9803_v6  ;;  %v30140_v6 = vld [vmem:[#allocation56_spill] sm:$0xff] }
 0xdf4   : > { %v9805_v2 = vmul.f32 %v25319_v61, %v9804_v5  ;;  %v30141_v61 = vld [vmem:[#allocation53_spill] sm:$0xff] }
 0xdf5   : > { %v30142_v38 = vpack.c.bf16 %v30140_v6, %v30141_v61  ;;  %v28540_v6 = vpack.c.bf16 %v28296_v4, %v28294_v33  ;;  %v28548_v61 = vpack.c.bf16 %v28328_v31, %v28326_v50 }
 0xdf6   : > { %v9806_v39 = vmul.f32 %v28274_v0, %v9805_v2  ;;  %v30145_v0 = vand.u32 4294901760, %v28374_v23 }
 0xdf8   : > { %v9808_v7 = vsel %vm5063_vm3, %v9806_v39, 0 }
 0xdf9   : > { %v9877_v55 = vand.u32 4294901760, %v9808_v7 }
 0xdfb   : > { %v9878_v11 = vsub.f32 %v9808_v7, %v9877_v55  ;;  %v28523_v7 = vpack.c.bf16 %v28286_v46, %v28284_v52 }
 0xdfd   : > { %v9879_v22 = vand.u32 4294901760, %v9878_v11 }
 0xdff   : > { %v9880_v36 = vsub.f32 %v9878_v11, %v9879_v22 }
 0xe01   : > { %v9881_v26 = vand.u32 4294901760, %v9880_v36  ;;  %v28530_v36 = vpack.c.bf16 %v28292_v45, %v28288_v13 }
 0xe03   : > { %21269 = vmatmul.mubr.f32.vlgmr.msra.gmra.mrb[46].mxu0 %v9881_v26  ;;  %v30146_v26 = vand.u32 4294901760, %v28406_v35 }
 0xe04   : > { %23789 = vmatpush3.bf16.msra.mxu0 %v30139_v41  ;;  %21275 = vmatprep.mubr.msk.f32.mxu0 %vm25357_vm2, %v29889_v32  ;;  %v30143_v41 = vld [vmem:[#allocation60_spill] sm:$0xff] }
 0xe05   : > { %23790 = vmatprep.subr.bf16.mxu0 %v29859_v28 }
 0xe0b   : > { %21276 = vmatmul.mubr.f32.vlgmr.msra.gmra.mrb[46].mxu0 %v9877_v55 }
 0xe0c   : > { %23792 = vmatpush3.bf16.msra.mxu0 %v30142_v38  ;;  %21282 = vmatprep.mubr.msk.f32.mxu0 %vm25357_vm2, %v29889_v32  ;;  %v28556_v38 = vpack.c.bf16 %v28354_v19, %v28347_v57 }
 0xe0d   : > { %23793 = vmatprep.subr.bf16.mxu0 %v29859_v28 }
 0xe13   : > { %21283 = vmatmul.mubr.f32.vlgmr.msra.gmra.mrb[46].mxu0 %v9878_v11 }
 0xe14   : > { %23795 = vmatpush3.bf16.msra.mxu0 %v30120_v10  ;;  %21289 = vmatprep.mubr.msk.f32.mxu0 %vm25357_vm2, %v29889_v32 }
 0xe15   : > { %23796 = vmatprep.subr.bf16.mxu0 %v29859_v28 }
 0xe1b   : > { %21290 = vmatmul.mubr.f32.vlgmr.msra.gmra.mrb[46].mxu0 %v9879_v22 }
 0xe1c   : > { %23798 = vmatpush3.bf16.msra.mxu0 %v30143_v41  ;;  %21296 = vmatprep.mubr.msk.f32.mxu0 %vm25357_vm2, %v29889_v32  ;;  %v28564_v41 = vpack.c.bf16 %v28362_v1, %v28360_v34 }
 0xe1d   : > { %23799 = vmatprep.subr.bf16.mxu0 %v29859_v28 }
 0xe23   : > { %21297 = vmatmul.mubr.f32.vlgmr.msra.gmra.mrb[46].mxu0 %v9877_v55 }
 0xe24   : > { %23801 = vmatpush3.bf16.msra.mxu0 %v30120_v10  ;;  %21303 = vmatprep.mubr.msk.f32.mxu0 %vm25357_vm2, %v29889_v32  ;;  %v30144_v10 = vand.u32 4294901760, %v28371_v62 }
 0xe25   : > { %23802 = vmatprep.subr.bf16.mxu0 %v29859_v28 }
 0xe26   : > { %v28500_v11 = vpack.c.bf16 %v30145_v0, %v30144_v10  ;;  %v28572_v10 = vpack.c.bf16 %v28403_v58, %v28395_v9  ;;  %v28580_v0 = vpack.c.bf16 %v28433_v37, %v28428_v30 }
 0xe2b   : > { %21304 = vmatmul.mubr.f32.vlgmr.msra.gmra.mrb[46].mxu0 %v9877_v55  ;;  %v30147_v55 = vand.u32 4294901760, %v28409_v42 }
 0xe2c   : > { %23804 = vmatpush3.bf16.msra.mxu0 %v28290_v56  ;;  %21338 = vmatprep.mubr.msk.f32.mxu0 %vm25357_vm2, %v29889_v32 }
 0xe2d   : > { %23805 = vmatprep.subr.bf16.mxu0 %v29859_v28  ;;  %v28508_v5 = vpack.c.bf16 %v30147_v55, %v30146_v26  ;;  %v30148_v26 = vand.u32 4294901760, %v28284_v52  ;;  %v30149_v55 = vand.u32 4294901760, %v28286_v46  ;;  %v30152_v52 = vand.u32 4294901760, %v28294_v33 }
 0xe2e   : > { %v30153_v46 = vand.u32 4294901760, %v28296_v4  ;;  %v30156_v4 = vand.u32 4294901760, %v28347_v57  ;;  %v30157_v33 = vand.u32 4294901760, %v28354_v19  ;;  %v30162_v57 = vand.u32 4294901760, %v28395_v9  ;;  %v30169_v9 = vld [vmem:[#allocation4_spill] sm:$0xff] }
 0xe2f   : > { %v30163_v19 = vand.u32 4294901760, %v28403_v58  ;;  %v10978_v58 = vand.u32 4294901760, %v30169_v9 }
 0xe30   : > { %23807 = vmatpush3.bf16.msra.mxu0 %v28298_v49 }
 0xe31   : > { %23808 = vmatprep.subr.bf16.mxu0 %v29859_v28 }
 0xe34   : > { %23810 = vmatpush3.bf16.msra.mxu0 %v28336_v47 }
 0xe35   : > { %23811 = vmatprep.subr.bf16.mxu0 %v29859_v28 }
 0xe38   : > { %23813 = vmatpush3.bf16.msra.mxu0 %v28349_v15 }
 0xe39   : > { %23814 = vmatprep.subr.bf16.mxu0 %v29859_v28 }
 0xe3c   : > { %23816 = vmatpush3.bf16.msra.mxu0 %v28357_v29 }
 0xe3d   : > { %23817 = vmatprep.subr.bf16.mxu0 %v29859_v28 }
 0xe40   : > { %23819 = vmatpush3.bf16.msra.mxu0 %v28384_v59 }
 0xe41   : > { %23820 = vmatprep.subr.bf16.mxu0 %v29859_v28 }
 0xe44   : > { %23822 = vmatpush3.bf16.msra.mxu0 %v28500_v11 }
 0xe45   : > { %23823 = vmatprep.subr.bf16.mxu0 %v29859_v28 }
 0xe48   : > { %23825 = vmatpush3.bf16.msra.mxu0 %v28508_v5 }
 0xe49   : > { %23850 = vmatprep.subr.bf16.mxu0 %v29859_v28 }
 0xefe   : > { %v10265_v2 = vpop.f32.mrb[46].mxu0 }
 0xeff   : > { %v28512_v62 = vand.u32 4294901760, %v10265_v2  ;;  %v21305_v23 = vpop.f32.mrb[47].mxu0 }
 0xf00   : > { %v30150_v23 = vand.u32 4294901760, %v28288_v13  ;;  %v28614_v13 = vpack.c.bf16 %v30153_v46, %v30152_v52  ;;  %v10979_v46 = vsub.f32 %v30169_v9, %v10978_v58 }
 0xf01   : > { %v10351_v39 = vsub.f32 %v10265_v2, %v28512_v62  ;;  %21374 = vmatmul.mubr.f32.vlgmr.msra.gmra.mrb[46].mxu1 %v28512_v62  ;;  %v28592_v2 = vpack.c.bf16 %v30149_v55, %v30148_v26  ;;  %v28634_v26 = vpack.c.bf16 %v30157_v33, %v30156_v4  ;;  %v30171_v4 = vld [vmem:[#allocation20_spill] sm:$0xff] }
 0xf02   : > { %23876 = vmatpush3.bf16.msra.mxu1 %v28290_v56  ;;  %21443 = vmatprep.mubr.msk.f32.mxu1 %vm25357_vm2, %v29889_v32  ;;  %v30173_v33 = vld [vmem:[#allocation12_spill] sm:$0xff] }
 0xf03   : > { %v10352_v35 = vand.u32 4294901760, %v10351_v39  ;;  %23877 = vmatprep.subr.bf16.mxu1 %v29859_v28  ;;  %30158 = vst [vmem:[#allocation66_spill] sm:$0xff] %v28634_v26 }
 0xf05   : > { %v10353_v42 = vsub.f32 %v10351_v39, %v10352_v35 }
 0xf06   : > { %23879 = vmatpush3.bf16.msra.mxu1 %v28298_v49 }
 0xf07   : > { %v10354_v22 = vand.u32 4294901760, %v10353_v42  ;;  %23880 = vmatprep.subr.bf16.mxu1 %v29859_v28 }
 0xf09   : > { %21339 = vmatmul.mubr.f32.vlgmr.msra.gmra.mrb[48].mxu0 %v10354_v22 }
 0xf0a   : > { %23852 = vmatpush3.bf16.msra.mxu0 %v28523_v7  ;;  %23882 = vmatpush3.bf16.msra.mxu1 %v28336_v47 }
 0xf0b   : > { %23853 = vmatprep.subr.bf16.mxu0 %v29859_v28  ;;  %23883 = vmatprep.subr.bf16.mxu1 %v29859_v28 }
 0xf0c   : > { %21408 = vmatprep.mubr.msk.f32.mxu0 %vm25357_vm2, %v29889_v32 }
 0xf0e   : > { %23855 = vmatpush3.bf16.msra.mxu0 %v28530_v36  ;;  %23885 = vmatpush3.bf16.msra.mxu1 %v28349_v15 }
 0xf0f   : > { %23856 = vmatprep.subr.bf16.mxu0 %v29859_v28  ;;  %23886 = vmatprep.subr.bf16.mxu1 %v29859_v28 }
 0xf12   : > { %23858 = vmatpush3.bf16.msra.mxu0 %v28540_v6  ;;  %23888 = vmatpush3.bf16.msra.mxu1 %v28357_v29 }
 0xf13   : > { %23859 = vmatprep.subr.bf16.mxu0 %v29859_v28  ;;  %23889 = vmatprep.subr.bf16.mxu1 %v29859_v28 }
 0xf16   : > { %23861 = vmatpush3.bf16.msra.mxu0 %v28548_v61  ;;  %23891 = vmatpush3.bf16.msra.mxu1 %v28384_v59 }
 0xf17   : > { %23862 = vmatprep.subr.bf16.mxu0 %v29859_v28  ;;  %23892 = vmatprep.subr.bf16.mxu1 %v29859_v28 }
 0xf1a   : > { %23864 = vmatpush3.bf16.msra.mxu0 %v28556_v38  ;;  %23894 = vmatpush3.bf16.msra.mxu1 %v28500_v11 }
 0xf1b   : > { %23865 = vmatprep.subr.bf16.mxu0 %v29859_v28  ;;  %23895 = vmatprep.subr.bf16.mxu1 %v29859_v28 }
 0xf1e   : > { %23867 = vmatpush3.bf16.msra.mxu0 %v28564_v41  ;;  %23897 = vmatpush3.bf16.msra.mxu1 %v28508_v5 }
 0xf1f   : > { %23868 = vmatprep.subr.bf16.mxu0 %v29859_v28  ;;  %23922 = vmatprep.subr.bf16.mxu1 %v29859_v28 }
 0xf21   : > { %21444 = vmatmul.mubr.f32.vlgmr.msra.gmra.mrb[48].mxu1 %v10352_v35  ;;  %v30151_v35 = vand.u32 4294901760, %v28292_v45  ;;  %v30154_v45 = vand.u32 4294901760, %v28326_v50  ;;  %v30160_v50 = vand.u32 4294901760, %v28362_v1  ;;  %v30166_v1 = vand.u32 4294901760, %v28428_v30 }
 0xf22   : > { %23870 = vmatpush3.bf16.msra.mxu0 %v28572_v10  ;;  %23924 = vmatpush3.bf16.msra.mxu1 %v28290_v56  ;;  %v10980_v30 = vand.u32 4294901760, %v10979_v46 }
 0xf23   : > { %23871 = vmatprep.subr.bf16.mxu0 %v29859_v28  ;;  %23925 = vmatprep.subr.bf16.mxu1 %v29859_v28  ;;  %v28602_v42 = vpack.c.bf16 %v30151_v35, %v30150_v23  ;;  %v28654_v23 = vpack.c.bf16 %v30163_v19, %v30162_v57  ;;  %v30167_v35 = vand.u32 4294901760, %v28433_v37  ;;  %v30170_v37 = vld [vmem:[#allocation14_spill] sm:$0xff] }
 0xf24   : > { %21513 = vmatprep.mubr.msk.f32.mxu1 %vm25357_vm2, %v29889_v32  ;;  %v30176_v57 = vld [vmem:[#allocation46_spill] sm:$0xff] }
 0xf25   : > { %30164 = vst [vmem:[#allocation53_spill] sm:$0xff] %v28654_v23  ;;  %v28665_v52 = vpack.c.bf16 %v30167_v35, %v30166_v1 }
 0xf26   : > { %23873 = vmatpush3.bf16.msra.mxu0 %v28580_v0  ;;  %23927 = vmatpush3.bf16.msra.mxu1 %v28298_v49 }
 0xf27   : > { %23898 = vmatprep.subr.bf16.mxu0 %v29859_v28  ;;  %23928 = vmatprep.subr.bf16.mxu1 %v29859_v28  ;;  %30168 = vst [vmem:[#allocation60_spill] sm:$0xff] %v28665_v52 }
 0xf29   : > { %21409 = vmatmul.mubr.f32.vlgmr.msra.gmra.mrb[50].mxu0 %v10351_v39  ;;  %v30155_v39 = vand.u32 4294901760, %v28328_v31  ;;  %v30159_v31 = vand.u32 4294901760, %v28360_v34  ;;  %v30165_v34 = vld [vmem:[#allocation44_spill] sm:$0xff] }
 0xf2a   : > { %23900 = vmatpush3.bf16.msra.mxu0 %v28592_v2  ;;  %23930 = vmatpush3.bf16.msra.mxu1 %v28336_v47 }
 0xf2b   : > { %23901 = vmatprep.subr.bf16.mxu0 %v29859_v28  ;;  %23931 = vmatprep.subr.bf16.mxu1 %v29859_v28  ;;  %v28624_v22 = vpack.c.bf16 %v30155_v39, %v30154_v45  ;;  %v28644_v55 = vpack.c.bf16 %v30160_v50, %v30159_v31  ;;  %v10981_v45 = vsub.f32 %v10979_v46, %v10980_v30  ;;  %v30175_v50 = vld [vmem:[#allocation18_spill] sm:$0xff] }
 0xf2c   : > { %21478 = vmatprep.mubr.msk.f32.mxu0 %vm25357_vm2, %v29889_v32 }
 0xf2d   : > { %30161 = vst [vmem:[#allocation56_spill] sm:$0xff] %v28644_v55  ;;  %v10982_v39 = vand.u32 4294901760, %v10981_v45 }
 0xf2e   : > { %23903 = vmatpush3.bf16.msra.mxu0 %v28602_v42  ;;  %23933 = vmatpush3.bf16.msra.mxu1 %v28349_v15 }
 0xf2f   : > { %23904 = vmatprep.subr.bf16.mxu0 %v29859_v28  ;;  %23934 = vmatprep.subr.bf16.mxu1 %v29859_v28 }
 0xf32   : > { %23906 = vmatpush3.bf16.msra.mxu0 %v28614_v13  ;;  %23936 = vmatpush3.bf16.msra.mxu1 %v28357_v29 }
 0xf33   : > { %23907 = vmatprep.subr.bf16.mxu0 %v29859_v28  ;;  %23937 = vmatprep.subr.bf16.mxu1 %v29859_v28 }
 0xf36   : > { %23909 = vmatpush3.bf16.msra.mxu0 %v28624_v22  ;;  %23939 = vmatpush3.bf16.msra.mxu1 %v28384_v59 }
 0xf37   : > { %23910 = vmatprep.subr.bf16.mxu0 %v29859_v28  ;;  %23940 = vmatprep.subr.bf16.mxu1 %v29859_v28 }
 0xf3a   : > { %23912 = vmatpush3.bf16.msra.mxu0 %v28634_v26  ;;  %23942 = vmatpush3.bf16.msra.mxu1 %v28500_v11 }
 0xf3b   : > { %23913 = vmatprep.subr.bf16.mxu0 %v29859_v28  ;;  %23943 = vmatprep.subr.bf16.mxu1 %v29859_v28 }
 0xf3e   : > { %23915 = vmatpush3.bf16.msra.mxu0 %v28644_v55  ;;  %23945 = vmatpush3.bf16.msra.mxu1 %v28508_v5 }
 0xf3f   : > { %23916 = vmatprep.subr.bf16.mxu0 %v29859_v28  ;;  %23964 = vmatprep.subr.bf16.mxu1 %v29859_v28 }
 0xf41   : > { %21514 = vmatmul.mubr.f32.vlgmr.msra.gmra.mrb[50].mxu1 %v28512_v62 }
 0xf42   : > { %23918 = vmatpush3.bf16.msra.mxu0 %v28654_v23  ;;  %23966 = vmatpush3.bf16.msra.mxu1 %v30165_v34 }
 0xf43   : > { %23919 = vmatprep.subr.bf16.mxu0 %v29859_v28  ;;  %21562 = vmatprep.mubr.msk.f32.mxu1 %vm25357_vm2, %v29889_v32 }
 0xf44   : > { %23967 = vmatprep.subr.bf16.mxu1 %v29859_v28 }
 0xf46   : > { %23921 = vmatpush3.bf16.msra.mxu0 %v28665_v52 }
 0xf47   : > { %23946 = vmatprep.subr.bf16.mxu0 %v29859_v28 }
 0xf49   : > { %21479 = vmatmul.mubr.f32.vlgmr.msra.gmra.mrb[52].mxu0 %v28512_v62  ;;  %v30172_v62 = vld [vmem:[#allocation15_spill] sm:$0xff] }
 0xf4a   : > { %21520 = vmatprep.mubr.msk.f32.mxu0 %vm25357_vm2, %v29889_v32  ;;  %v30174_v31 = vpack.c.bf16 %v30172_v62, %v30173_v33 }
 0xf4f   : > { %23948 = vmatpush3.bf16.xpose.msra.mxu0 %v30170_v37 }
 0xf50   : > { %23949 = vmatprep.subr.bf16.mxu0 %v29859_v28 }
 0xf56   : > { %21521 = vmatmul.mubr.f32.vlgmr.msra.gmra.mrb[54].mxu0 %v10982_v39 }
 0xf57   : > { %23951 = vmatpush3.bf16.xpose.msra.mxu0 %v30171_v4  ;;  %21527 = vmatprep.mubr.msk.f32.mxu0 %vm25357_vm2, %v29889_v32 }
 0xf58   : > { %23952 = vmatprep.subr.bf16.mxu0 %v29859_v28 }
 0xf5e   : > { %21528 = vmatmul.mubr.f32.vlgmr.msra.gmra.mrb[54].mxu0 %v10978_v58 }
 0xf5f   : > { %23954 = vmatpush3.bf16.xpose.msra.mxu0 %v30174_v31  ;;  %21534 = vmatprep.mubr.msk.f32.mxu0 %vm25357_vm2, %v29889_v32 }
 0xf60   : > { %23955 = vmatprep.subr.bf16.mxu0 %v29859_v28 }
 0xf66   : > { %21535 = vmatmul.mubr.f32.vlgmr.msra.gmra.mrb[54].mxu0 %v10979_v46 }
 0xf67   : > { %23957 = vmatpush3.bf16.xpose.msra.mxu0 %v30170_v37  ;;  %21541 = vmatprep.mubr.msk.f32.mxu0 %vm25357_vm2, %v29889_v32 }
 0xf68   : > { %23958 = vmatprep.subr.bf16.mxu0 %v29859_v28 }
 0xf6e   : > { %21542 = vmatmul.mubr.f32.vlgmr.msra.gmra.mrb[54].mxu0 %v10980_v30 }
 0xf6f   : > { %23960 = vmatpush3.bf16.xpose.msra.mxu0 %v30175_v50  ;;  %21548 = vmatprep.mubr.msk.f32.mxu0 %vm25357_vm2, %v29889_v32 }
 0xf70   : > { %23961 = vmatprep.subr.bf16.mxu0 %v29859_v28 }
 0xf76   : > { %21549 = vmatmul.mubr.f32.vlgmr.msra.gmra.mrb[54].mxu0 %v10978_v58 }
 0xf77   : > { %23963 = vmatpush3.bf16.xpose.msra.mxu0 %v30170_v37  ;;  %21555 = vmatprep.mubr.msk.f32.mxu0 %vm25357_vm2, %v29889_v32 }
 0xf78   : > { %24000 = vmatprep.subr.bf16.mxu0 %v29859_v28 }
 0xf7e   : > { %21556 = vmatmul.mubr.f32.vlgmr.msra.gmra.mrb[54].mxu0 %v10978_v58 }
 0xf7f   : > { %24002 = vmatpush3.bf16.msra.mxu0 %v30176_v57  ;;  %21646 = vmatprep.mubr.msk.f32.mxu0 %vm25357_vm2, %v29889_v32 }
 0xf80   : > { %24003 = vmatprep.subr.bf16.mxu0 %v29859_v28 }
 0xfd4   : > { %v10507_v19 = vpop.f32.mrb[46].mxu1 }
 0xfd5   : > { %v21375_v1 = vpop.f32.mrb[47].mxu1 }
 0xfdc   : > { %v10356_v35 = vpop.f32.mrb[48].mxu0 }
 0xfdd   : > { %v10508_v9 = vadd.f32 %v10507_v19, %v10356_v35  ;;  %v21340_v46 = vpop.f32.mrb[49].mxu0 }
 0xff4   : > { %v10700_v30 = vpop.f32.mrb[48].mxu1 }
 0xff5   : > { %v21445_v37 = vpop.f32.mrb[49].mxu1 }
 0xffc   : > { %v10611_v45 = vpop.f32.mrb[50].mxu0 }
 0xffd   : > { %v10612_v39 = vadd.f32 %v10611_v45, %v10508_v9  ;;  %v21410_v4 = vpop.f32.mrb[51].mxu0 }
 0xfff   : > { %v10701_v62 = vadd.f32 %v10700_v30, %v10612_v39 }
0x1014   : > { %v10906_v33 = vpop.f32.mrb[50].mxu1 }
0x1015   : > { %v21515_v58 = vpop.f32.mrb[51].mxu1 }
0x101c   : > { %v10819_v31 = vpop.f32.mrb[52].mxu0 }
0x101d   : > { %v10820_v50 = vadd.f32 %v10819_v31, %v10701_v62  ;;  %v21480_v52 = vpop.f32.mrb[53].mxu0 }
0x101f   : > { %v10907_v23 = vadd.f32 %v10906_v33, %v10820_v50 }
0x1021   : > { %v28707_v55 = vadd.f32 %v10907_v23, %v28271_v53 }
0x1051   : > { %v11366_v26 = vpop.f32.mrb[54].mxu0 }
0x1052   : > { %v21557_v1 = vpop.f32.mrb[55].mxu0  ;;  %v11370_v19 = vsel %vm5063_vm3, %v11366_v26, -inf }
0x1053   : > { %11371 = vmax.xlane.f32.xlu0 %v11370_v19  ;;  %v30177_v1 = vld [vmem:[#allocation50_spill] sm:$0xff]  ;;  %v30178_v19 = vld [vmem:[#allocation45_spill] sm:$0xff] }
0x10e0   : > { %v11372_v35 = vpop.xlane.xlu0 %11371 }
0x10e1   : > { %v11373_v46 = vsub.f32 %v11366_v26, %v11372_v35  ;;  %v30179_v35 = vld [vmem:[#allocation42_spill] sm:$0xff] }
0x10e3   : > { %v11374_v37 = vmul.f32 1.442695, %v11373_v46  ;;  %v30180_v46 = vpack.c.bf16 %v30178_v19, %v30179_v35  ;;  %v30193_v19 = vld [vmem:[#allocation84_spill] sm:$0xff]  ;;  %v30194_v35 = vld [vmem:[#allocation86_spill] sm:$0xff] }
0x10e5   : > { %25320 = vpow2.f32 %v11374_v37  ;;  %v30181_v37 = vld [vmem:[#allocation48_spill] sm:$0xff] }
0x10ef   : > { %v25321_v9 = vpop.eup %25320 }
0x10f0   : > { %v11376_v30 = vsel %vm5063_vm3, %v25321_v9, 0.0 }
0x10f1   : > { %11377 = vadd.xlane.f32.xlu1 %v11376_v30 }
0x117e   : > { %v11378_v45 = vpop.xlane.xlu1 %11377 }
0x117f   : > { %25322 = vrcp.f32 %v11378_v45 }
0x1189   : > { %v25323_v52 = vpop.eup %25322 }
0x118a   : > { %v11380_v39 = vmul.f32 %v25323_v52, %v11378_v45 }
0x118c   : > { %v11381_v4 = vsub.f32 2.0, %v11380_v39  ;;  %v30183_v39 = vld [vmem:[#allocation16_spill] sm:$0xff] }
0x118e   : > { %v11382_v53 = vmul.f32 %v25323_v52, %v11381_v4 }
0x1190   : > { %v11383_v23 = vmul.f32 %v25321_v9, %v11382_v53  ;;  %v30182_v9 = vld [vmem:[#allocation5_spill] sm:$0xff] }
0x1191   : > { %v11913_v30 = vand.u32 4294901760, %v30182_v9 }
0x1192   : > { %v11385_v62 = vsel %vm5063_vm3, %v11383_v23, 0  ;;  %v30185_v23 = vld [vmem:[#allocation17_spill] sm:$0xff] }
0x1193   : > { %v11454_v33 = vand.u32 4294901760, %v11385_v62  ;;  %v11914_v45 = vsub.f32 %v30182_v9, %v11913_v30 }
0x1195   : > { %v11455_v58 = vsub.f32 %v11385_v62, %v11454_v33  ;;  %v11915_v52 = vand.u32 4294901760, %v11914_v45  ;;  %v30186_v62 = vld [vmem:[#allocation13_spill] sm:$0xff] }
0x1197   : > { %v11456_v31 = vand.u32 4294901760, %v11455_v58  ;;  %v11916_v4 = vsub.f32 %v11914_v45, %v11915_v52 }
0x1199   : > { %v11457_v50 = vsub.f32 %v11455_v58, %v11456_v31  ;;  %v11917_v53 = vand.u32 4294901760, %v11916_v4 }
0x119b   : > { %v11458_v26 = vand.u32 4294901760, %v11457_v50  ;;  %v30190_v50 = vld [vmem:[#allocation81_spill] sm:$0xff] }
0x119d   : > { %21563 = vmatmul.mubr.f32.vlgmr.msra.gmra.mrb[52].mxu1 %v11458_v26  ;;  %v30191_v26 = vld [vmem:[#allocation82_spill] sm:$0xff] }
0x119e   : > { %23969 = vmatpush3.bf16.msra.mxu1 %v30177_v1  ;;  %21569 = vmatprep.mubr.msk.f32.mxu1 %vm25357_vm2, %v29889_v32  ;;  %v30192_v1 = vld [vmem:[#allocation83_spill] sm:$0xff] }
0x119f   : > { %23970 = vmatprep.subr.bf16.mxu1 %v29859_v28 }
0x11a5   : > { %21570 = vmatmul.mubr.f32.vlgmr.msra.gmra.mrb[52].mxu1 %v11454_v33 }
0x11a6   : > { %23972 = vmatpush3.bf16.msra.mxu1 %v30180_v46  ;;  %21576 = vmatprep.mubr.msk.f32.mxu1 %vm25357_vm2, %v29889_v32  ;;  %v30195_v46 = vld [vmem:[#allocation89_spill] sm:$0xff] }
0x11a7   : > { %23973 = vmatprep.subr.bf16.mxu1 %v29859_v28 }
0x11ad   : > { %21577 = vmatmul.mubr.f32.vlgmr.msra.gmra.mrb[52].mxu1 %v11455_v58  ;;  %v30188_v58 = vld [vmem:[#allocation19_spill] sm:$0xff] }
0x11ae   : > { %23975 = vmatpush3.bf16.msra.mxu1 %v30165_v34  ;;  %21583 = vmatprep.mubr.msk.f32.mxu1 %vm25357_vm2, %v29889_v32 }
0x11af   : > { %23976 = vmatprep.subr.bf16.mxu1 %v29859_v28 }
0x11b5   : > { %21584 = vmatmul.mubr.f32.vlgmr.msra.gmra.mrb[52].mxu1 %v11456_v31  ;;  %v30189_v31 = vld [vmem:[#allocation80_spill] sm:$0xff] }
0x11b6   : > { %23978 = vmatpush3.bf16.msra.mxu1 %v30181_v37  ;;  %21590 = vmatprep.mubr.msk.f32.mxu1 %vm25357_vm2, %v29889_v32  ;;  %v30196_v37 = vld [vmem:[#allocation79_spill] sm:$0xff] }
0x11b7   : > { %23979 = vmatprep.subr.bf16.mxu1 %v29859_v28 }
0x11bd   : > { %21591 = vmatmul.mubr.f32.vlgmr.msra.gmra.mrb[52].mxu1 %v11454_v33 }
0x11be   : > { %23981 = vmatpush3.bf16.msra.mxu1 %v30165_v34  ;;  %21597 = vmatprep.mubr.msk.f32.mxu1 %vm25357_vm2, %v29889_v32  ;;  %v30184_v34 = vld [vmem:[#allocation21_spill] sm:$0xff] }
0x11bf   : > { %23982 = vmatprep.subr.bf16.mxu1 %v29859_v28 }
0x11c5   : > { %21598 = vmatmul.mubr.f32.vlgmr.msra.gmra.mrb[52].mxu1 %v11454_v33  ;;  %v30187_v33 = vpack.c.bf16 %v30185_v23, %v30186_v62 }
0x11c6   : > { %21604 = vmatprep.mubr.msk.f32.mxu1 %vm25357_vm2, %v29889_v32 }
0x11c7   : > { %23984 = vmatpush3.bf16.xpose.msra.mxu1 %v30183_v39 }
0x11c8   : > { %23985 = vmatprep.subr.bf16.mxu1 %v29859_v28 }
0x11ce   : > { %21605 = vmatmul.mubr.f32.vlgmr.msra.gmra.mrb[54].mxu1 %v11917_v53 }
0x11cf   : > { %23987 = vmatpush3.bf16.xpose.msra.mxu1 %v30184_v34  ;;  %21611 = vmatprep.mubr.msk.f32.mxu1 %vm25357_vm2, %v29889_v32 }
0x11d0   : > { %23988 = vmatprep.subr.bf16.mxu1 %v29859_v28 }
0x11d6   : > { %21612 = vmatmul.mubr.f32.vlgmr.msra.gmra.mrb[54].mxu1 %v11913_v30 }
0x11d7   : > { %23990 = vmatpush3.bf16.xpose.msra.mxu1 %v30187_v33  ;;  %21618 = vmatprep.mubr.msk.f32.mxu1 %vm25357_vm2, %v29889_v32 }
0x11d8   : > { %23991 = vmatprep.subr.bf16.mxu1 %v29859_v28 }
0x11de   : > { %21619 = vmatmul.mubr.f32.vlgmr.msra.gmra.mrb[54].mxu1 %v11914_v45 }
0x11df   : > { %23993 = vmatpush3.bf16.xpose.msra.mxu1 %v30183_v39  ;;  %21625 = vmatprep.mubr.msk.f32.mxu1 %vm25357_vm2, %v29889_v32 }
0x11e0   : > { %23994 = vmatprep.subr.bf16.mxu1 %v29859_v28 }
0x11e6   : > { %21626 = vmatmul.mubr.f32.vlgmr.msra.gmra.mrb[54].mxu1 %v11915_v52 }
0x11e7   : > { %23996 = vmatpush3.bf16.xpose.msra.mxu1 %v30188_v58  ;;  %21632 = vmatprep.mubr.msk.f32.mxu1 %vm25357_vm2, %v29889_v32 }
0x11e8   : > { %23997 = vmatprep.subr.bf16.mxu1 %v29859_v28 }
0x11ee   : > { %21633 = vmatmul.mubr.f32.vlgmr.msra.gmra.mrb[54].mxu1 %v11913_v30 }
0x11ef   : > { %23999 = vmatpush3.bf16.xpose.msra.mxu1 %v30183_v39  ;;  %21639 = vmatprep.mubr.msk.f32.mxu1 %vm25357_vm2, %v29889_v32 }
0x11f0   : > { %24042 = vmatprep.subr.bf16.mxu1 %v29859_v28 }
0x11f6   : > { %21640 = vmatmul.mubr.f32.vlgmr.msra.gmra.mrb[54].mxu1 %v11913_v30 }
0x11f7   : > { %24044 = vmatpush3.bf16.msra.mxu1 %v30189_v31  ;;  %21751 = vmatprep.mubr.msk.f32.mxu1 %vm25357_vm2, %v29889_v32 }
0x11f8   : > { %24045 = vmatprep.subr.bf16.mxu1 %v29859_v28 }
0x11fb   : > { %24047 = vmatpush3.bf16.msra.mxu1 %v30190_v50 }
0x11fc   : > { %24048 = vmatprep.subr.bf16.mxu1 %v29859_v28 }
0x11ff   : > { %24050 = vmatpush3.bf16.msra.mxu1 %v30191_v26 }
0x1200   : > { %24051 = vmatprep.subr.bf16.mxu1 %v29859_v28 }
0x1203   : > { %24053 = vmatpush3.bf16.msra.mxu1 %v30192_v1 }
0x1204   : > { %24054 = vmatprep.subr.bf16.mxu1 %v29859_v28 }
0x1207   : > { %24056 = vmatpush3.bf16.msra.mxu1 %v30193_v19 }
0x1208   : > { %24057 = vmatprep.subr.bf16.mxu1 %v29859_v28 }
0x120b   : > { %24059 = vmatpush3.bf16.msra.mxu1 %v30194_v35 }
0x120c   : > { %24060 = vmatprep.subr.bf16.mxu1 %v29859_v28 }
0x120f   : > { %24062 = vmatpush3.bf16.msra.mxu1 %v30195_v46 }
0x1210   : > { %24063 = vmatprep.subr.bf16.mxu1 %v29859_v28 }
0x1213   : > { %24065 = vmatpush3.bf16.msra.mxu1 %v30196_v37 }
0x1214   : > { %24090 = vmatprep.subr.bf16.mxu1 %v29859_v28 }
0x1298   : > { %v28780_v9 = vpop.f32.mrb[52].mxu1 }
0x1299   : > { %v21599_v30 = vpop.f32.mrb[53].mxu1 }
0x12c9   : > { %v12301_v45 = vpop.f32.mrb[54].mxu1 }
0x12ca   : > { %v21641_v52 = vpop.f32.mrb[55].mxu1  ;;  %v12305_v39 = vsel %vm5063_vm3, %v12301_v45, -inf }
0x12cb   : > { %12306 = vmax.xlane.f32.xlu0 %v12305_v39  ;;  %v30197_v52 = vld [vmem:[#allocation51_spill] sm:$0xff] }
0x12cc   : > { %v30198_v39 = vld [vmem:[#allocation47_spill] sm:$0xff] }
0x1358   : > { %v12307_v4 = vpop.xlane.xlu0 %12306 }
0x1359   : > { %v12308_v53 = vsub.f32 %v12301_v45, %v12307_v4  ;;  %v30199_v4 = vld [vmem:[#allocation43_spill] sm:$0xff] }
0x135b   : > { %v12309_v34 = vmul.f32 1.442695, %v12308_v53  ;;  %v30200_v53 = vpack.c.bf16 %v30198_v39, %v30199_v4  ;;  %v30211_v39 = vld [vmem:[#allocation97_spill] sm:$0xff]  ;;  %v30224_v4 = vld [vmem:[#allocation108_spill] sm:$0xff] }
0x135d   : > { %25324 = vpow2.f32 %v12309_v34  ;;  %v30201_v34 = vld [vmem:[#allocation49_spill] sm:$0xff] }
0x1367   : > { %v25325_v23 = vpop.eup %25324 }
0x1368   : > { %v12311_v62 = vsel %vm5063_vm3, %v25325_v23, 0.0 }
0x1369   : > { %12312 = vadd.xlane.f32.xlu1 %v12311_v62  ;;  %v30203_v62 = vld [vmem:[#allocation72_spill] sm:$0xff] }
0x13f6   : > { %v12313_v33 = vpop.xlane.xlu1 %12312 }
0x13f7   : > { %25326 = vrcp.f32 %v12313_v33 }
0x1401   : > { %v25327_v58 = vpop.eup %25326 }
0x1402   : > { %v12315_v31 = vmul.f32 %v25327_v58, %v12313_v33  ;;  %v30204_v33 = vld [vmem:[#allocation73_spill] sm:$0xff] }
0x1404   : > { %v12316_v50 = vsub.f32 2.0, %v12315_v31  ;;  %v30207_v31 = vld [vmem:[#allocation76_spill] sm:$0xff] }
0x1406   : > { %v12317_v26 = vmul.f32 %v25327_v58, %v12316_v50  ;;  %v30206_v58 = vld [vmem:[#allocation75_spill] sm:$0xff]  ;;  %v30208_v50 = vld [vmem:[#allocation77_spill] sm:$0xff] }
0x1408   : > { %v12318_v1 = vmul.f32 %v25325_v23, %v12317_v26  ;;  %v30202_v23 = vld [vmem:[#allocation71_spill] sm:$0xff]  ;;  %v30209_v26 = vld [vmem:[#allocation78_spill] sm:$0xff] }
0x140a   : > { %v12320_v19 = vsel %vm5063_vm3, %v12318_v1, 0 }
0x140b   : > { %v12389_v35 = vand.u32 4294901760, %v12320_v19 }
0x140d   : > { %v12390_v46 = vsub.f32 %v12320_v19, %v12389_v35 }
0x140f   : > { %v12391_v37 = vand.u32 4294901760, %v12390_v46 }
0x1411   : > { %v12392_v30 = vsub.f32 %v12390_v46, %v12391_v37 }
0x1413   : > { %v12393_v45 = vand.u32 4294901760, %v12392_v30 }
0x1415   : > { %21647 = vmatmul.mubr.f32.vlgmr.msra.gmra.mrb[56].mxu0 %v12393_v45 }
0x1416   : > { %24005 = vmatpush3.bf16.msra.mxu0 %v30197_v52  ;;  %21653 = vmatprep.mubr.msk.f32.mxu0 %vm25357_vm2, %v29889_v32  ;;  %v30210_v52 = vld [vmem:[#allocation95_spill] sm:$0xff] }
0x1417   : > { %24006 = vmatprep.subr.bf16.mxu0 %v29859_v28 }
0x141d   : > { %21654 = vmatmul.mubr.f32.vlgmr.msra.gmra.mrb[56].mxu0 %v12389_v35 }
0x141e   : > { %24008 = vmatpush3.bf16.msra.mxu0 %v30200_v53  ;;  %21660 = vmatprep.mubr.msk.f32.mxu0 %vm25357_vm2, %v29889_v32  ;;  %v30225_v53 = vld [vmem:[#allocation85_spill] sm:$0xff] }
0x141f   : > { %24009 = vmatprep.subr.bf16.mxu0 %v29859_v28 }
0x1425   : > { %21661 = vmatmul.mubr.f32.vlgmr.msra.gmra.mrb[56].mxu0 %v12390_v46 }
0x1426   : > { %24011 = vmatpush3.bf16.msra.mxu0 %v30176_v57  ;;  %21667 = vmatprep.mubr.msk.f32.mxu0 %vm25357_vm2, %v29889_v32 }
0x1427   : > { %24012 = vmatprep.subr.bf16.mxu0 %v29859_v28 }
0x142d   : > { %21668 = vmatmul.mubr.f32.vlgmr.msra.gmra.mrb[56].mxu0 %v12391_v37 }
0x142e   : > { %24014 = vmatpush3.bf16.msra.mxu0 %v30201_v34  ;;  %21674 = vmatprep.mubr.msk.f32.mxu0 %vm25357_vm2, %v29889_v32  ;;  %v30226_v34 = vld [vmem:[#allocation87_spill] sm:$0xff] }
0x142f   : > { %24015 = vmatprep.subr.bf16.mxu0 %v29859_v28 }
0x1435   : > { %21675 = vmatmul.mubr.f32.vlgmr.msra.gmra.mrb[56].mxu0 %v12389_v35 }
0x1436   : > { %24017 = vmatpush3.bf16.msra.mxu0 %v30176_v57  ;;  %21681 = vmatprep.mubr.msk.f32.mxu0 %vm25357_vm2, %v29889_v32  ;;  %v30205_v57 = vld [vmem:[#allocation74_spill] sm:$0xff] }
0x1437   : > { %24018 = vmatprep.subr.bf16.mxu0 %v29859_v28 }
0x143d   : > { %21682 = vmatmul.mubr.f32.vlgmr.msra.gmra.mrb[56].mxu0 %v12389_v35 }
0x143e   : > { %24020 = vmatpush3.bf16.msra.mxu0 %v30202_v23  ;;  %21716 = vmatprep.mubr.msk.f32.mxu0 %vm25357_vm2, %v29889_v32 }
0x143f   : > { %24021 = vmatprep.subr.bf16.mxu0 %v29859_v28 }
0x1442   : > { %24023 = vmatpush3.bf16.msra.mxu0 %v30203_v62 }
0x1443   : > { %24024 = vmatprep.subr.bf16.mxu0 %v29859_v28 }
0x1446   : > { %24026 = vmatpush3.bf16.msra.mxu0 %v30204_v33 }
0x1447   : > { %24027 = vmatprep.subr.bf16.mxu0 %v29859_v28 }
0x144a   : > { %24029 = vmatpush3.bf16.msra.mxu0 %v30205_v57 }
0x144b   : > { %24030 = vmatprep.subr.bf16.mxu0 %v29859_v28 }
0x144e   : > { %24032 = vmatpush3.bf16.msra.mxu0 %v30206_v58 }
0x144f   : > { %24033 = vmatprep.subr.bf16.mxu0 %v29859_v28 }
0x1452   : > { %24035 = vmatpush3.bf16.msra.mxu0 %v30207_v31 }
0x1453   : > { %24036 = vmatprep.subr.bf16.mxu0 %v29859_v28 }
0x1456   : > { %24038 = vmatpush3.bf16.msra.mxu0 %v30208_v50 }
0x1457   : > { %24039 = vmatprep.subr.bf16.mxu0 %v29859_v28 }
0x145a   : > { %24041 = vmatpush3.bf16.msra.mxu0 %v30209_v26 }
0x145b   : > { %24066 = vmatprep.subr.bf16.mxu0 %v29859_v28 }
0x1510   : > { %v12777_v1 = vpop.f32.mrb[56].mxu0 }
0x1511   : > { %v28825_v19 = vand.u32 4294901760, %v12777_v1  ;;  %v21683_v35 = vpop.f32.mrb[57].mxu0 }
0x1513   : > { %v12863_v46 = vsub.f32 %v12777_v1, %v28825_v19  ;;  %21752 = vmatmul.mubr.f32.vlgmr.msra.gmra.mrb[56].mxu1 %v28825_v19  ;;  %v30238_v1 = vld [vmem:[#allocation61_spill] sm:$0xff] }
0x1514   : > { %24092 = vmatpush3.bf16.msra.mxu1 %v30202_v23  ;;  %21821 = vmatprep.mubr.msk.f32.mxu1 %vm25357_vm2, %v29889_v32 }
0x1515   : > { %v12864_v37 = vand.u32 4294901760, %v12863_v46  ;;  %24093 = vmatprep.subr.bf16.mxu1 %v29859_v28 }
0x1517   : > { %v12865_v30 = vsub.f32 %v12863_v46, %v12864_v37 }
0x1518   : > { %24095 = vmatpush3.bf16.msra.mxu1 %v30203_v62 }
0x1519   : > { %v12866_v45 = vand.u32 4294901760, %v12865_v30  ;;  %24096 = vmatprep.subr.bf16.mxu1 %v29859_v28 }
0x151b   : > { %21717 = vmatmul.mubr.f32.vlgmr.msra.gmra.mrb[58].mxu0 %v12866_v45  ;;  %v30241_v45 = vld [vmem:[#allocation32_spill] sm:$0xff] }
0x151c   : > { %24068 = vmatpush3.bf16.msra.mxu0 %v30210_v52  ;;  %24098 = vmatpush3.bf16.msra.mxu1 %v30204_v33 }
0x151d   : > { %24069 = vmatprep.subr.bf16.mxu0 %v29859_v28  ;;  %24099 = vmatprep.subr.bf16.mxu1 %v29859_v28 }
0x151e   : > { %21786 = vmatprep.mubr.msk.f32.mxu0 %vm25357_vm2, %v29889_v32 }
0x1520   : > { %24071 = vmatpush3.bf16.msra.mxu0 %v30211_v39  ;;  %24101 = vmatpush3.bf16.msra.mxu1 %v30205_v57 }
0x1521   : > { %24072 = vmatprep.subr.bf16.mxu0 %v29859_v28  ;;  %24102 = vmatprep.subr.bf16.mxu1 %v29859_v28 }
0x1524   : > { %24074 = vmatpush3.bf16.msra.mxu0 %v27416_v40  ;;  %24104 = vmatpush3.bf16.msra.mxu1 %v30206_v58  ;;  %v30214_v40 = vld [vmem:[#allocation98_spill] sm:$0xff] }
0x1525   : > { %24075 = vmatprep.subr.bf16.mxu0 %v29859_v28  ;;  %24105 = vmatprep.subr.bf16.mxu1 %v29859_v28 }
0x1528   : > { %24077 = vmatpush3.bf16.msra.mxu0 %v27446_v18  ;;  %24107 = vmatpush3.bf16.msra.mxu1 %v30207_v31  ;;  %v30215_v18 = vld [vmem:[#allocation102_spill] sm:$0xff] }
0x1529   : > { %24078 = vmatprep.subr.bf16.mxu0 %v29859_v28  ;;  %24108 = vmatprep.subr.bf16.mxu1 %v29859_v28 }
0x152c   : > { %24080 = vmatpush3.bf16.msra.mxu0 %v27464_v8  ;;  %24110 = vmatpush3.bf16.msra.mxu1 %v30208_v50  ;;  %v30216_v8 = vld [vmem:[#allocation99_spill] sm:$0xff] }
0x152d   : > { %24081 = vmatprep.subr.bf16.mxu0 %v29859_v28  ;;  %24111 = vmatprep.subr.bf16.mxu1 %v29859_v28 }
0x1530   : > { %24083 = vmatpush3.bf16.msra.mxu0 %v27482_v43  ;;  %24113 = vmatpush3.bf16.msra.mxu1 %v30209_v26  ;;  %v28926_v43 = vand.u32 4294901760, %v28780_v9 }
0x1531   : > { %24084 = vmatprep.subr.bf16.mxu0 %v29859_v28  ;;  %24138 = vmatprep.subr.bf16.mxu1 %v29859_v28 }
0x1533   : > { %21822 = vmatmul.mubr.f32.vlgmr.msra.gmra.mrb[58].mxu1 %v12864_v37 }
0x1534   : > { %24086 = vmatpush3.bf16.msra.mxu0 %v27492_v21  ;;  %24140 = vmatpush3.bf16.msra.mxu1 %v30202_v23  ;;  %v30213_v21 = vld [vmem:[#allocation96_spill] sm:$0xff] }
0x1535   : > { %24087 = vmatprep.subr.bf16.mxu0 %v29859_v28  ;;  %24141 = vmatprep.subr.bf16.mxu1 %v29859_v28  ;;  %v30227_v23 = vld [vmem:[#allocation88_spill] sm:$0xff] }
0x1536   : > { %21891 = vmatprep.mubr.msk.f32.mxu1 %vm25357_vm2, %v29889_v32 }
0x1538   : > { %24089 = vmatpush3.bf16.msra.mxu0 %v27029_v60  ;;  %24143 = vmatpush3.bf16.msra.mxu1 %v30203_v62  ;;  %v30212_v60 = vld [vmem:[#allocation92_spill] sm:$0xff]  ;;  %v30228_v62 = vld [vmem:[#allocation90_spill] sm:$0xff] }
0x1539   : > { %24114 = vmatprep.subr.bf16.mxu0 %v29859_v28  ;;  %24144 = vmatprep.subr.bf16.mxu1 %v29859_v28 }
0x153b   : > { %21787 = vmatmul.mubr.f32.vlgmr.msra.gmra.mrb[60].mxu0 %v12863_v46  ;;  %v30240_v46 = vld [vmem:[#allocation8_spill] sm:$0xff] }
0x153c   : > { %24116 = vmatpush3.bf16.msra.mxu0 %v27518_v48  ;;  %24146 = vmatpush3.bf16.msra.mxu1 %v30204_v33  ;;  %v30218_v48 = vld [vmem:[#allocation100_spill] sm:$0xff]  ;;  %v30229_v33 = vld [vmem:[#allocation91_spill] sm:$0xff] }
0x153d   : > { %24117 = vmatprep.subr.bf16.mxu0 %v29859_v28  ;;  %24147 = vmatprep.subr.bf16.mxu1 %v29859_v28 }
0x153e   : > { %21856 = vmatprep.mubr.msk.f32.mxu0 %vm25357_vm2, %v29889_v32 }
0x1540   : > { %24119 = vmatpush3.bf16.msra.mxu0 %v27537_v54  ;;  %24149 = vmatpush3.bf16.msra.mxu1 %v30205_v57  ;;  %v30219_v54 = vld [vmem:[#allocation104_spill] sm:$0xff]  ;;  %v30230_v57 = vld [vmem:[#allocation93_spill] sm:$0xff] }
0x1541   : > { %24120 = vmatprep.subr.bf16.mxu0 %v29859_v28  ;;  %24150 = vmatprep.subr.bf16.mxu1 %v29859_v28 }
0x1544   : > { %24122 = vmatpush3.bf16.msra.mxu0 %v27555_v3  ;;  %24152 = vmatpush3.bf16.msra.mxu1 %v30206_v58  ;;  %v30220_v3 = vld [vmem:[#allocation101_spill] sm:$0xff]  ;;  %v30231_v58 = vld [vmem:[#allocation94_spill] sm:$0xff] }
0x1545   : > { %24123 = vmatprep.subr.bf16.mxu0 %v29859_v28  ;;  %24153 = vmatprep.subr.bf16.mxu1 %v29859_v28 }
0x1548   : > { %24125 = vmatpush3.bf16.msra.mxu0 %v27571_v25  ;;  %24155 = vmatpush3.bf16.msra.mxu1 %v30207_v31  ;;  %v30235_v31 = vld [vmem:[#allocation112_spill] sm:$0xff] }
0x1549   : > { %24126 = vmatprep.subr.bf16.mxu0 %v29859_v28  ;;  %24156 = vmatprep.subr.bf16.mxu1 %v29859_v28 }
0x154c   : > { %24128 = vmatpush3.bf16.msra.mxu0 %v27587_v20  ;;  %24158 = vmatpush3.bf16.msra.mxu1 %v30208_v50  ;;  %v30221_v20 = vld [vmem:[#allocation105_spill] sm:$0xff] }
0x154d   : > { %24129 = vmatprep.subr.bf16.mxu0 %v29859_v28  ;;  %24159 = vmatprep.subr.bf16.mxu1 %v29859_v28  ;;  %v30236_v50 = vld [vmem:[#allocation113_spill] sm:$0xff] }
0x1550   : > { %24131 = vmatpush3.bf16.msra.mxu0 %v27603_v51  ;;  %24161 = vmatpush3.bf16.msra.mxu1 %v30209_v26  ;;  %v30237_v26 = vld [vmem:[#allocation114_spill] sm:$0xff] }
0x1551   : > { %24132 = vmatprep.subr.bf16.mxu0 %v29859_v28  ;;  %24186 = vmatprep.subr.bf16.mxu1 %v29859_v28 }
0x1553   : > { %21892 = vmatmul.mubr.f32.vlgmr.msra.gmra.mrb[60].mxu1 %v28825_v19 }
0x1554   : > { %24134 = vmatpush3.bf16.msra.mxu0 %v27619_v44  ;;  %24188 = vmatpush3.bf16.msra.mxu1 %v30212_v60  ;;  %v30222_v44 = vld [vmem:[#allocation106_spill] sm:$0xff]  ;;  %v30242_v60 = vld [vmem:[#allocation40_spill] sm:$0xff] }
0x1555   : > { %24135 = vmatprep.subr.bf16.mxu0 %v29859_v28  ;;  %24189 = vmatprep.subr.bf16.mxu1 %v29859_v28 }
0x1556   : > { %21961 = vmatprep.mubr.msk.f32.mxu1 %vm25357_vm2, %v29889_v32 }
0x1558   : > { %24137 = vmatpush3.bf16.msra.mxu0 %v27639_v24  ;;  %24191 = vmatpush3.bf16.msra.mxu1 %v30213_v21  ;;  %v30243_v21 = vld [vmem:[#allocation33_spill] sm:$0xff] }
0x1559   : > { %24162 = vmatprep.subr.bf16.mxu0 %v29859_v28  ;;  %24192 = vmatprep.subr.bf16.mxu1 %v29859_v28 }
0x155b   : > { %21857 = vmatmul.mubr.f32.vlgmr.msra.gmra.mrb[62].mxu0 %v28825_v19  ;;  %v30239_v19 = vld [vmem:[#allocation10_spill] sm:$0xff] }
0x155c   : > { %24164 = vmatpush3.bf16.msra.mxu0 %v27504_v63  ;;  %24194 = vmatpush3.bf16.msra.mxu1 %v30214_v40  ;;  %v14130_v35 = vand.u32 4294901760, %v30239_v19  ;;  %v30244_v40 = vld [vmem:[#allocation29_spill] sm:$0xff] }
0x155d   : > { %24165 = vmatprep.subr.bf16.mxu0 %v29859_v28  ;;  %24195 = vmatprep.subr.bf16.mxu1 %v29859_v28 }
0x155e   : > { %21926 = vmatprep.mubr.msk.f32.mxu0 %vm25357_vm2, %v29889_v32  ;;  %v14131_v37 = vsub.f32 %v30239_v19, %v14130_v35 }
0x1560   : > { %24167 = vmatpush3.bf16.msra.mxu0 %v27524_v17  ;;  %24197 = vmatpush3.bf16.msra.mxu1 %v27418_v27  ;;  %v30217_v27 = vld [vmem:[#allocation103_spill] sm:$0xff]  ;;  %v14132_v30 = vand.u32 4294901760, %v14131_v37 }
0x1561   : > { %24168 = vmatprep.subr.bf16.mxu0 %v29859_v28  ;;  %24198 = vmatprep.subr.bf16.mxu1 %v29859_v28 }
0x1562   : > { %v14133_v52 = vsub.f32 %v14131_v37, %v14132_v30 }
0x1564   : > { %24170 = vmatpush3.bf16.msra.mxu0 %v27543_v16  ;;  %24200 = vmatpush3.bf16.msra.mxu1 %v27448_v12  ;;  %v13504_v12 = vsub.f32 %v28780_v9, %v28926_v43  ;;  %v30223_v9 = vld [vmem:[#allocation107_spill] sm:$0xff]  ;;  %v14134_v39 = vand.u32 4294901760, %v14133_v52 }
0x1565   : > { %24171 = vmatprep.subr.bf16.mxu0 %v29859_v28  ;;  %24201 = vmatprep.subr.bf16.mxu1 %v29859_v28 }
0x1566   : > { %v13505_v25 = vand.u32 4294901760, %v13504_v12 }
0x1568   : > { %24173 = vmatpush3.bf16.msra.mxu0 %v30215_v18  ;;  %24203 = vmatpush3.bf16.msra.mxu1 %v30216_v8  ;;  %v13506_v51 = vsub.f32 %v13504_v12, %v13505_v25  ;;  %v30246_v8 = vld [vmem:[#allocation38_spill] sm:$0xff] }
0x1569   : > { %24174 = vmatprep.subr.bf16.mxu0 %v29859_v28  ;;  %24204 = vmatprep.subr.bf16.mxu1 %v29859_v28 }
0x156a   : > { %v13507_v24 = vand.u32 4294901760, %v13506_v51  ;;  %v30250_v51 = vld [vmem:[#allocation118_spill] sm:$0xff] }
0x156c   : > { %24176 = vmatpush3.bf16.msra.mxu0 %v30217_v27  ;;  %24206 = vmatpush3.bf16.msra.mxu1 %v30218_v48 }
0x156d   : > { %24177 = vmatprep.subr.bf16.mxu0 %v29859_v28  ;;  %24207 = vmatprep.subr.bf16.mxu1 %v29859_v28 }
0x1570   : > { %24179 = vmatpush3.bf16.msra.mxu0 %v30219_v54  ;;  %24209 = vmatpush3.bf16.msra.mxu1 %v30220_v3  ;;  %v30247_v3 = vld [vmem:[#allocation34_spill] sm:$0xff] }
0x1571   : > { %24180 = vmatprep.subr.bf16.mxu0 %v29859_v28  ;;  %24234 = vmatprep.subr.bf16.mxu1 %v29859_v28 }
0x1573   : > { %21962 = vmatmul.mubr.f32.vlgmr.msra.gmra.mrb[62].mxu1 %v28926_v43 }
0x1574   : > { %24182 = vmatpush3.bf16.msra.mxu0 %v30221_v20  ;;  %24236 = vmatpush3.bf16.msra.mxu1 %v27504_v63 }
0x1575   : > { %24183 = vmatprep.subr.bf16.mxu0 %v29859_v28  ;;  %24237 = vmatprep.subr.bf16.mxu1 %v29859_v28 }
0x1576   : > { %22031 = vmatprep.mubr.msk.f32.mxu1 %vm25357_vm2, %v29889_v32 }
0x1578   : > { %24185 = vmatpush3.bf16.msra.mxu0 %v30222_v44  ;;  %24239 = vmatpush3.bf16.msra.mxu1 %v27524_v17 }
0x1579   : > { %24210 = vmatprep.subr.bf16.mxu0 %v29859_v28  ;;  %24240 = vmatprep.subr.bf16.mxu1 %v29859_v28 }
0x157b   : > { %21927 = vmatmul.mubr.f32.vlgmr.msra.gmra.mrb[64].mxu0 %v13507_v24  ;;  %v30252_v24 = vld [vmem:[#allocation120_spill] sm:$0xff] }
0x157c   : > { %24212 = vmatpush3.bf16.msra.mxu0 %v30223_v9  ;;  %24242 = vmatpush3.bf16.msra.mxu1 %v27543_v16 }
0x157d   : > { %24213 = vmatprep.subr.bf16.mxu0 %v29859_v28  ;;  %24243 = vmatprep.subr.bf16.mxu1 %v29859_v28 }
0x157e   : > { %21996 = vmatprep.mubr.msk.f32.mxu0 %vm25357_vm2, %v29889_v32 }
0x1580   : > { %24215 = vmatpush3.bf16.msra.mxu0 %v30224_v4  ;;  %24245 = vmatpush3.bf16.msra.mxu1 %v30215_v18 }
0x1581   : > { %24216 = vmatprep.subr.bf16.mxu0 %v29859_v28  ;;  %24246 = vmatprep.subr.bf16.mxu1 %v29859_v28 }
0x1584   : > { %24218 = vmatpush3.bf16.msra.mxu0 %v30225_v53  ;;  %24248 = vmatpush3.bf16.msra.mxu1 %v30217_v27  ;;  %v30253_v53 = vld [vmem:[#allocation121_spill] sm:$0xff] }
0x1585   : > { %24219 = vmatprep.subr.bf16.mxu0 %v29859_v28  ;;  %24249 = vmatprep.subr.bf16.mxu1 %v29859_v28 }
0x1588   : > { %24221 = vmatpush3.bf16.msra.mxu0 %v30226_v34  ;;  %24251 = vmatpush3.bf16.msra.mxu1 %v30219_v54  ;;  %v30254_v34 = vld [vmem:[#allocation122_spill] sm:$0xff] }
0x1589   : > { %24222 = vmatprep.subr.bf16.mxu0 %v29859_v28  ;;  %24252 = vmatprep.subr.bf16.mxu1 %v29859_v28 }
0x158c   : > { %24224 = vmatpush3.bf16.msra.mxu0 %v30227_v23  ;;  %24254 = vmatpush3.bf16.msra.mxu1 %v30221_v20 }
0x158d   : > { %24225 = vmatprep.subr.bf16.mxu0 %v29859_v28  ;;  %24255 = vmatprep.subr.bf16.mxu1 %v29859_v28 }
0x1590   : > { %24227 = vmatpush3.bf16.msra.mxu0 %v30228_v62  ;;  %24257 = vmatpush3.bf16.msra.mxu1 %v30222_v44 }
0x1591   : > { %24228 = vmatprep.subr.bf16.mxu0 %v29859_v28  ;;  %24282 = vmatprep.subr.bf16.mxu1 %v29859_v28 }
0x1593   : > { %22032 = vmatmul.mubr.f32.vlgmr.msra.gmra.mrb[64].mxu1 %v13505_v25  ;;  %v30248_v25 = vld [vmem:[#allocation22_spill] sm:$0xff] }
0x1594   : > { %24230 = vmatpush3.bf16.msra.mxu0 %v30229_v33  ;;  %24284 = vmatpush3.bf16.msra.mxu1 %v27504_v63  ;;  %v30232_v63 = vld [vmem:[#allocation109_spill] sm:$0xff] }
0x1595   : > { %24231 = vmatprep.subr.bf16.mxu0 %v29859_v28  ;;  %24285 = vmatprep.subr.bf16.mxu1 %v29859_v28 }
0x1596   : > { %22101 = vmatprep.mubr.msk.f32.mxu1 %vm25357_vm2, %v29889_v32 }
0x1598   : > { %24233 = vmatpush3.bf16.msra.mxu0 %v30230_v57  ;;  %24287 = vmatpush3.bf16.msra.mxu1 %v27524_v17  ;;  %v30233_v17 = vld [vmem:[#allocation110_spill] sm:$0xff] }
0x1599   : > { %24258 = vmatprep.subr.bf16.mxu0 %v29859_v28  ;;  %24288 = vmatprep.subr.bf16.mxu1 %v29859_v28 }
0x159b   : > { %21997 = vmatmul.mubr.f32.vlgmr.msra.gmra.mrb[66].mxu0 %v13504_v12 }
0x159c   : > { %24260 = vmatpush3.bf16.msra.mxu0 %v30231_v58  ;;  %24290 = vmatpush3.bf16.msra.mxu1 %v27543_v16  ;;  %v30234_v16 = vld [vmem:[#allocation111_spill] sm:$0xff] }
0x159d   : > { %24261 = vmatprep.subr.bf16.mxu0 %v29859_v28  ;;  %24291 = vmatprep.subr.bf16.mxu1 %v29859_v28 }
0x159e   : > { %22066 = vmatprep.mubr.msk.f32.mxu0 %vm25357_vm2, %v29889_v32 }
0x15a0   : > { %24263 = vmatpush3.bf16.msra.mxu0 %v30232_v63  ;;  %24293 = vmatpush3.bf16.msra.mxu1 %v30215_v18  ;;  %v30245_v18 = vpack.c.bf16 %v30243_v21, %v30244_v40 }
0x15a1   : > { %24264 = vmatprep.subr.bf16.mxu0 %v29859_v28  ;;  %24294 = vmatprep.subr.bf16.mxu1 %v29859_v28 }
0x15a4   : > { %24266 = vmatpush3.bf16.msra.mxu0 %v30233_v17  ;;  %24296 = vmatpush3.bf16.msra.mxu1 %v30217_v27 }
0x15a5   : > { %24267 = vmatprep.subr.bf16.mxu0 %v29859_v28  ;;  %24297 = vmatprep.subr.bf16.mxu1 %v29859_v28 }
0x15a8   : > { %24269 = vmatpush3.bf16.msra.mxu0 %v30234_v16  ;;  %24299 = vmatpush3.bf16.msra.mxu1 %v30219_v54 }
0x15a9   : > { %24270 = vmatprep.subr.bf16.mxu0 %v29859_v28  ;;  %24300 = vmatprep.subr.bf16.mxu1 %v29859_v28 }
0x15ac   : > { %24272 = vmatpush3.bf16.msra.mxu0 %v30235_v31  ;;  %24302 = vmatpush3.bf16.msra.mxu1 %v30221_v20  ;;  %v30249_v20 = vld [vmem:[#allocation116_spill] sm:$0xff] }
0x15ad   : > { %24273 = vmatprep.subr.bf16.mxu0 %v29859_v28  ;;  %24303 = vmatprep.subr.bf16.mxu1 %v29859_v28 }
0x15b0   : > { %24275 = vmatpush3.bf16.msra.mxu0 %v30236_v50  ;;  %24305 = vmatpush3.bf16.msra.mxu1 %v30222_v44  ;;  %v30251_v44 = vld [vmem:[#allocation119_spill] sm:$0xff] }
0x15b1   : > { %24276 = vmatprep.subr.bf16.mxu0 %v29859_v28  ;;  %24324 = vmatprep.subr.bf16.mxu1 %v29859_v28 }
0x15b3   : > { %22102 = vmatmul.mubr.f32.vlgmr.msra.gmra.mrb[66].mxu1 %v28926_v43 }
0x15b4   : > { %24278 = vmatpush3.bf16.msra.mxu0 %v30237_v26  ;;  %24326 = vmatpush3.bf16.msra.mxu1 %v30238_v1 }
0x15b5   : > { %24279 = vmatprep.subr.bf16.mxu0 %v29859_v28  ;;  %22150 = vmatprep.mubr.msk.f32.mxu1 %vm25357_vm2, %v29889_v32 }
0x15b6   : > { %24327 = vmatprep.subr.bf16.mxu1 %v29859_v28 }
0x15b8   : > { %24281 = vmatpush3.bf16.msra.mxu0 %v30240_v46 }
0x15b9   : > { %24306 = vmatprep.subr.bf16.mxu0 %v29859_v28 }
0x15bb   : > { %22067 = vmatmul.mubr.f32.vlgmr.msra.gmra.mrb[68].mxu0 %v28926_v43 }
0x15bc   : > { %22108 = vmatprep.mubr.msk.f32.mxu0 %vm25357_vm2, %v29889_v32 }
0x15c1   : > { %24308 = vmatpush3.bf16.xpose.msra.mxu0 %v30241_v45 }
0x15c2   : > { %24309 = vmatprep.subr.bf16.mxu0 %v29859_v28 }
0x15c8   : > { %22109 = vmatmul.mubr.f32.vlgmr.msra.gmra.mrb[70].mxu0 %v14134_v39 }
0x15c9   : > { %24311 = vmatpush3.bf16.xpose.msra.mxu0 %v30242_v60  ;;  %22115 = vmatprep.mubr.msk.f32.mxu0 %vm25357_vm2, %v29889_v32 }
0x15ca   : > { %24312 = vmatprep.subr.bf16.mxu0 %v29859_v28 }
0x15d0   : > { %22116 = vmatmul.mubr.f32.vlgmr.msra.gmra.mrb[70].mxu0 %v14130_v35 }
0x15d1   : > { %24314 = vmatpush3.bf16.xpose.msra.mxu0 %v30245_v18  ;;  %22122 = vmatprep.mubr.msk.f32.mxu0 %vm25357_vm2, %v29889_v32 }
0x15d2   : > { %24315 = vmatprep.subr.bf16.mxu0 %v29859_v28 }
0x15d8   : > { %22123 = vmatmul.mubr.f32.vlgmr.msra.gmra.mrb[70].mxu0 %v14131_v37 }
0x15d9   : > { %24317 = vmatpush3.bf16.xpose.msra.mxu0 %v30241_v45  ;;  %22129 = vmatprep.mubr.msk.f32.mxu0 %vm25357_vm2, %v29889_v32 }
0x15da   : > { %24318 = vmatprep.subr.bf16.mxu0 %v29859_v28 }
0x15e0   : > { %22130 = vmatmul.mubr.f32.vlgmr.msra.gmra.mrb[70].mxu0 %v14132_v30 }
0x15e1   : > { %24320 = vmatpush3.bf16.xpose.msra.mxu0 %v30246_v8  ;;  %22136 = vmatprep.mubr.msk.f32.mxu0 %vm25357_vm2, %v29889_v32 }
0x15e2   : > { %24321 = vmatprep.subr.bf16.mxu0 %v29859_v28 }
0x15e6   : > { %v13019_v43 = vpop.f32.mrb[56].mxu1 }
0x15e7   : > { %v21753_v27 = vpop.f32.mrb[57].mxu1 }
0x15e8   : > { %22137 = vmatmul.mubr.f32.vlgmr.msra.gmra.mrb[70].mxu0 %v14130_v35 }
0x15e9   : > { %24323 = vmatpush3.bf16.xpose.msra.mxu0 %v30241_v45  ;;  %22143 = vmatprep.mubr.msk.f32.mxu0 %vm25357_vm2, %v29889_v32 }
0x15ea   : > { %24366 = vmatprep.subr.bf16.mxu0 %v29859_v28 }
0x15ee   : > { %v12868_v48 = vpop.f32.mrb[58].mxu0 }
0x15ef   : > { %v13020_v12 = vadd.f32 %v13019_v43, %v12868_v48  ;;  %v21718_v54 = vpop.f32.mrb[59].mxu0 }
0x15f0   : > { %22144 = vmatmul.mubr.f32.vlgmr.msra.gmra.mrb[70].mxu0 %v14130_v35 }
0x15f1   : > { %24368 = vmatpush3.bf16.msra.mxu0 %v30247_v3  ;;  %22255 = vmatprep.mubr.msk.f32.mxu0 %vm25357_vm2, %v29889_v32 }
0x15f2   : > { %24369 = vmatprep.subr.bf16.mxu0 %v29859_v28 }
0x15f5   : > { %24371 = vmatpush3.bf16.msra.mxu0 %v30248_v25 }
0x15f6   : > { %24372 = vmatprep.subr.bf16.mxu0 %v29859_v28 }
0x15f9   : > { %24374 = vmatpush3.bf16.msra.mxu0 %v30249_v20 }
0x15fa   : > { %24375 = vmatprep.subr.bf16.mxu0 %v29859_v28 }
0x15fd   : > { %24377 = vmatpush3.bf16.msra.mxu0 %v30250_v51 }
0x15fe   : > { %24378 = vmatprep.subr.bf16.mxu0 %v29859_v28 }
0x1601   : > { %24380 = vmatpush3.bf16.msra.mxu0 %v30251_v44 }
0x1602   : > { %24381 = vmatprep.subr.bf16.mxu0 %v29859_v28 }
0x1605   : > { %24383 = vmatpush3.bf16.msra.mxu0 %v30252_v24 }
0x1606   : > { %v13212_v9 = vpop.f32.mrb[58].mxu1  ;;  %24384 = vmatprep.subr.bf16.mxu0 %v29859_v28 }
0x1607   : > { %v21823_v4 = vpop.f32.mrb[59].mxu1 }
0x1609   : > { %24386 = vmatpush3.bf16.msra.mxu0 %v30253_v53 }
0x160a   : > { %24387 = vmatprep.subr.bf16.mxu0 %v29859_v28 }
0x160d   : > { %24389 = vmatpush3.bf16.msra.mxu0 %v30254_v34 }
0x160e   : > { %v13123_v23 = vpop.f32.mrb[60].mxu0  ;;  %24414 = vmatprep.subr.bf16.mxu0 %v29859_v28 }
0x160f   : > { %v13124_v62 = vadd.f32 %v13123_v23, %v13020_v12  ;;  %v21788_v33 = vpop.f32.mrb[61].mxu0 }
0x1611   : > { %v13213_v57 = vadd.f32 %v13212_v9, %v13124_v62 }
0x1626   : > { %v13418_v58 = vpop.f32.mrb[60].mxu1 }
0x1627   : > { %v21893_v63 = vpop.f32.mrb[61].mxu1 }
0x162e   : > { %v13331_v17 = vpop.f32.mrb[62].mxu0 }
0x162f   : > { %v13332_v16 = vadd.f32 %v13331_v17, %v13213_v57  ;;  %v21858_v31 = vpop.f32.mrb[63].mxu0 }
0x1631   : > { %v13419_v50 = vadd.f32 %v13418_v58, %v13332_v16 }
0x1646   : > { %v13660_v26 = vpop.f32.mrb[62].mxu1 }
0x1647   : > { %v21963_v19 = vpop.f32.mrb[63].mxu1 }
0x1648   : > { %v30257_v19 = vld [vmem:[#allocation57_spill] sm:$0xff] }
0x164e   : > { %v13509_v35 = vpop.f32.mrb[64].mxu0 }
0x164f   : > { %v13510_v46 = vadd.f32 %v13509_v35, %v13419_v50  ;;  %v21928_v37 = vpop.f32.mrb[65].mxu0  ;;  %v30255_v50 = vld [vmem:[#allocation69_spill] sm:$0xff] }
0x1650   : > { %v30260_v37 = vld [vmem:[#allocation6_spill] sm:$0xff] }
0x1651   : > { %v13661_v30 = vadd.f32 %v13660_v26, %v13510_v46  ;;  %v30256_v26 = vld [vmem:[#allocation62_spill] sm:$0xff]  ;;  %v30259_v46 = vld [vmem:[#allocation67_spill] sm:$0xff] }
0x1652   : > { %v30258_v35 = vpack.c.bf16 %v30256_v26, %v30257_v19  ;;  %v30286_v19 = vld [vmem:[#allocation35_spill] sm:$0xff] }
0x1666   : > { %v13853_v45 = vpop.f32.mrb[64].mxu1 }
0x1667   : > { %v22033_v52 = vpop.f32.mrb[65].mxu1 }
0x1668   : > { %v30264_v52 = vld [vmem:[#allocation115_spill] sm:$0xff] }
0x166e   : > { %v13764_v39 = vpop.f32.mrb[66].mxu0 }
0x166f   : > { %v13765_v60 = vadd.f32 %v13764_v39, %v13661_v30  ;;  %v21998_v21 = vpop.f32.mrb[67].mxu0  ;;  %v30261_v30 = vld [vmem:[#allocation24_spill] sm:$0xff]  ;;  %v30265_v39 = vld [vmem:[#allocation117_spill] sm:$0xff] }
0x1670   : > { %v30267_v21 = vld [vmem:[#allocation54_spill] sm:$0xff] }
0x1671   : > { %v13854_v40 = vadd.f32 %v13853_v45, %v13765_v60  ;;  %v30262_v45 = vld [vmem:[#allocation25_spill] sm:$0xff]  ;;  %v30266_v60 = vld [vmem:[#allocation63_spill] sm:$0xff] }
0x1686   : > { %v14059_v18 = vpop.f32.mrb[66].mxu1 }
0x1687   : > { %v22103_v8 = vpop.f32.mrb[67].mxu1 }
0x168e   : > { %v13972_v43 = vpop.f32.mrb[68].mxu0 }
0x168f   : > { %v13973_v27 = vadd.f32 %v13972_v43, %v13854_v40  ;;  %v22068_v48 = vpop.f32.mrb[69].mxu0 }
0x1691   : > { %v29069_v12 = vadd.f32 %v14059_v18, %v13973_v27 }
0x16c3   : > { %v14518_v54 = vpop.f32.mrb[70].mxu0 }
0x16c4   : > { %v22145_v3 = vpop.f32.mrb[71].mxu0  ;;  %v14522_v25 = vsel %vm5063_vm3, %v14518_v54, -inf }
0x16c5   : > { %14523 = vmax.xlane.f32.xlu0 %v14522_v25  ;;  %v30268_v3 = vld [vmem:[#allocation52_spill] sm:$0xff]  ;;  %v30269_v25 = vld [vmem:[#allocation59_spill] sm:$0xff] }
0x1752   : > { %v14524_v20 = vpop.xlane.xlu0 %14523 }
0x1753   : > { %v14525_v51 = vsub.f32 %v14518_v54, %v14524_v20  ;;  %v30270_v20 = vld [vmem:[#allocation123_spill] sm:$0xff] }
0x1755   : > { %v14526_v44 = vmul.f32 1.442695, %v14525_v51  ;;  %v30271_v51 = vld [vmem:[#allocation124_spill] sm:$0xff] }
0x1757   : > { %25328 = vpow2.f32 %v14526_v44  ;;  %v30272_v44 = vld [vmem:[#allocation125_spill] sm:$0xff] }
0x1761   : > { %v25329_v24 = vpop.eup %25328 }
0x1762   : > { %v14528_v9 = vsel %vm5063_vm3, %v25329_v24, 0.0 }
0x1763   : > { %14529 = vadd.xlane.f32.xlu1 %v14528_v9  ;;  %v30274_v9 = vld [vmem:[#allocation127_spill] sm:$0xff] }
0x17f0   : > { %v14530_v4 = vpop.xlane.xlu1 %14529 }
0x17f1   : > { %25330 = vrcp.f32 %v14530_v4 }
0x17fb   : > { %v25331_v53 = vpop.eup %25330 }
0x17fc   : > { %v14532_v34 = vmul.f32 %v25331_v53, %v14530_v4  ;;  %v30275_v4 = vld [vmem:[#allocation128_spill] sm:$0xff] }
0x17fe   : > { %v14533_v23 = vsub.f32 2.0, %v14532_v34  ;;  %v30277_v34 = vld [vmem:[#allocation130_spill] sm:$0xff] }
0x1800   : > { %v14534_v62 = vmul.f32 %v25331_v53, %v14533_v23  ;;  %v30276_v53 = vld [vmem:[#allocation129_spill] sm:$0xff]  ;;  %v30278_v23 = vld [vmem:[#allocation131_spill] sm:$0xff] }
0x1802   : > { %v14535_v33 = vmul.f32 %v25329_v24, %v14534_v62  ;;  %v30273_v24 = vld [vmem:[#allocation126_spill] sm:$0xff]  ;;  %v30279_v62 = vld [vmem:[#allocation132_spill] sm:$0xff] }
0x1804   : > { %v14537_v57 = vsel %vm5063_vm3, %v14535_v33, 0  ;;  %v30280_v33 = vld [vmem:[#allocation133_spill] sm:$0xff] }
0x1805   : > { %v14606_v58 = vand.u32 4294901760, %v14537_v57 }
0x1807   : > { %v14607_v63 = vsub.f32 %v14537_v57, %v14606_v58  ;;  %v30281_v57 = vld [vmem:[#allocation134_spill] sm:$0xff] }
0x1809   : > { %v14608_v17 = vand.u32 4294901760, %v14607_v63 }
0x180b   : > { %v14609_v16 = vsub.f32 %v14607_v63, %v14608_v17 }
0x180d   : > { %v14610_v31 = vand.u32 4294901760, %v14609_v16 }
0x180f   : > { %22151 = vmatmul.mubr.f32.vlgmr.msra.gmra.mrb[68].mxu1 %v14610_v31  ;;  %v30285_v31 = vld [vmem:[#allocation9_spill] sm:$0xff] }
0x1810   : > { %24329 = vmatpush3.bf16.msra.mxu1 %v30255_v50  ;;  %22157 = vmatprep.mubr.msk.f32.mxu1 %vm25357_vm2, %v29889_v32 }
0x1811   : > { %24330 = vmatprep.subr.bf16.mxu1 %v29859_v28 }
0x1817   : > { %22158 = vmatmul.mubr.f32.vlgmr.msra.gmra.mrb[68].mxu1 %v14606_v58 }
0x1818   : > { %24332 = vmatpush3.bf16.msra.mxu1 %v30258_v35  ;;  %22164 = vmatprep.mubr.msk.f32.mxu1 %vm25357_vm2, %v29889_v32 }
0x1819   : > { %24333 = vmatprep.subr.bf16.mxu1 %v29859_v28 }
0x181f   : > { %22165 = vmatmul.mubr.f32.vlgmr.msra.gmra.mrb[68].mxu1 %v14607_v63  ;;  %v30283_v63 = vld [vmem:[#allocation64_spill] sm:$0xff] }
0x1820   : > { %24335 = vmatpush3.bf16.msra.mxu1 %v30238_v1  ;;  %22171 = vmatprep.mubr.msk.f32.mxu1 %vm25357_vm2, %v29889_v32 }
0x1821   : > { %24336 = vmatprep.subr.bf16.mxu1 %v29859_v28 }
0x1827   : > { %22172 = vmatmul.mubr.f32.vlgmr.msra.gmra.mrb[68].mxu1 %v14608_v17  ;;  %v30284_v17 = vld [vmem:[#allocation11_spill] sm:$0xff] }
0x1828   : > { %24338 = vmatpush3.bf16.msra.mxu1 %v30259_v46  ;;  %22178 = vmatprep.mubr.msk.f32.mxu1 %vm25357_vm2, %v29889_v32  ;;  %v15707_v16 = vand.u32 4294901760, %v30284_v17 }
0x1829   : > { %24339 = vmatprep.subr.bf16.mxu1 %v29859_v28 }
0x182a   : > { %v15708_v50 = vsub.f32 %v30284_v17, %v15707_v16 }
0x182c   : > { %v15709_v26 = vand.u32 4294901760, %v15708_v50 }
0x182e   : > { %v15710_v35 = vsub.f32 %v15708_v50, %v15709_v26 }
0x182f   : > { %22179 = vmatmul.mubr.f32.vlgmr.msra.gmra.mrb[68].mxu1 %v14606_v58 }
0x1830   : > { %24341 = vmatpush3.bf16.msra.mxu1 %v30238_v1  ;;  %22185 = vmatprep.mubr.msk.f32.mxu1 %vm25357_vm2, %v29889_v32  ;;  %v30263_v1 = vld [vmem:[#allocation28_spill] sm:$0xff]  ;;  %v15711_v46 = vand.u32 4294901760, %v15710_v35 }
0x1831   : > { %24342 = vmatprep.subr.bf16.mxu1 %v29859_v28 }
0x1837   : > { %22186 = vmatmul.mubr.f32.vlgmr.msra.gmra.mrb[68].mxu1 %v14606_v58  ;;  %v30282_v58 = vld [vmem:[#allocation135_spill] sm:$0xff] }
0x1838   : > { %24344 = vmatpush3.bf16.msra.mxu1 %v30260_v37  ;;  %22220 = vmatprep.mubr.msk.f32.mxu1 %vm25357_vm2, %v29889_v32 }
0x1839   : > { %24345 = vmatprep.subr.bf16.mxu1 %v29859_v28 }
0x183c   : > { %24347 = vmatpush3.bf16.msra.mxu1 %v30261_v30 }
0x183d   : > { %24348 = vmatprep.subr.bf16.mxu1 %v29859_v28 }
0x1840   : > { %24350 = vmatpush3.bf16.msra.mxu1 %v30262_v45 }
0x1841   : > { %24351 = vmatprep.subr.bf16.mxu1 %v29859_v28 }
0x1844   : > { %24353 = vmatpush3.bf16.msra.mxu1 %v30263_v1 }
0x1845   : > { %24354 = vmatprep.subr.bf16.mxu1 %v29859_v28 }
0x1848   : > { %24356 = vmatpush3.bf16.msra.mxu1 %v30264_v52 }
0x1849   : > { %24357 = vmatprep.subr.bf16.mxu1 %v29859_v28 }
0x184c   : > { %24359 = vmatpush3.bf16.msra.mxu1 %v30265_v39 }
0x184d   : > { %24360 = vmatprep.subr.bf16.mxu1 %v29859_v28 }
0x1850   : > { %24362 = vmatpush3.bf16.msra.mxu1 %v30266_v60 }
0x1851   : > { %24363 = vmatprep.subr.bf16.mxu1 %v29859_v28 }
0x1854   : > { %24365 = vmatpush3.bf16.msra.mxu1 %v30267_v21 }
0x1855   : > { %24390 = vmatprep.subr.bf16.mxu1 %v29859_v28 }
0x190a   : > { %v14994_v40 = vpop.f32.mrb[68].mxu1 }
0x190b   : > { %v29114_v18 = vand.u32 4294901760, %v14994_v40  ;;  %v22187_v8 = vpop.f32.mrb[69].mxu1 }
0x190c   : > { %v30297_v8 = vld [vmem:[#allocation23_spill] sm:$0xff] }
0x190d   : > { %v15080_v43 = vsub.f32 %v14994_v40, %v29114_v18  ;;  %22256 = vmatmul.mubr.f32.vlgmr.msra.gmra.mrb[72].mxu0 %v29114_v18  ;;  %v30295_v40 = vld [vmem:[#allocation37_spill] sm:$0xff] }
0x190e   : > { %24416 = vmatpush3.bf16.msra.mxu0 %v30260_v37  ;;  %22325 = vmatprep.mubr.msk.f32.mxu0 %vm25357_vm2, %v29889_v32 }
0x190f   : > { %v15081_v27 = vand.u32 4294901760, %v15080_v43  ;;  %24417 = vmatprep.subr.bf16.mxu0 %v29859_v28 }
0x1911   : > { %v15082_v48 = vsub.f32 %v15080_v43, %v15081_v27 }
0x1912   : > { %24419 = vmatpush3.bf16.msra.mxu0 %v30261_v30 }
0x1913   : > { %v15083_v54 = vand.u32 4294901760, %v15082_v48  ;;  %24420 = vmatprep.subr.bf16.mxu0 %v29859_v28 }
0x1915   : > { %22221 = vmatmul.mubr.f32.vlgmr.msra.gmra.mrb[70].mxu1 %v15083_v54 }
0x1916   : > { %24392 = vmatpush3.bf16.msra.mxu1 %v30268_v3  ;;  %24422 = vmatpush3.bf16.msra.mxu0 %v30262_v45 }
0x1917   : > { %24393 = vmatprep.subr.bf16.mxu1 %v29859_v28  ;;  %24423 = vmatprep.subr.bf16.mxu0 %v29859_v28 }
0x1918   : > { %22290 = vmatprep.mubr.msk.f32.mxu1 %vm25357_vm2, %v29889_v32 }
0x191a   : > { %24395 = vmatpush3.bf16.msra.mxu1 %v30269_v25  ;;  %24425 = vmatpush3.bf16.msra.mxu0 %v30263_v1 }
0x191b   : > { %24396 = vmatprep.subr.bf16.mxu1 %v29859_v28  ;;  %24426 = vmatprep.subr.bf16.mxu0 %v29859_v28 }
0x191e   : > { %24398 = vmatpush3.bf16.msra.mxu1 %v30270_v20  ;;  %24428 = vmatpush3.bf16.msra.mxu0 %v30264_v52 }
0x191f   : > { %24399 = vmatprep.subr.bf16.mxu1 %v29859_v28  ;;  %24429 = vmatprep.subr.bf16.mxu0 %v29859_v28 }
0x1922   : > { %24401 = vmatpush3.bf16.msra.mxu1 %v30271_v51  ;;  %24431 = vmatpush3.bf16.msra.mxu0 %v30265_v39 }
0x1923   : > { %24402 = vmatprep.subr.bf16.mxu1 %v29859_v28  ;;  %24432 = vmatprep.subr.bf16.mxu0 %v29859_v28 }
0x1926   : > { %24404 = vmatpush3.bf16.msra.mxu1 %v30272_v44  ;;  %24434 = vmatpush3.bf16.msra.mxu0 %v30266_v60 }
0x1927   : > { %24405 = vmatprep.subr.bf16.mxu1 %v29859_v28  ;;  %24435 = vmatprep.subr.bf16.mxu0 %v29859_v28 }
0x192a   : > { %24407 = vmatpush3.bf16.msra.mxu1 %v30273_v24  ;;  %24437 = vmatpush3.bf16.msra.mxu0 %v30267_v21 }
0x192b   : > { %24408 = vmatprep.subr.bf16.mxu1 %v29859_v28  ;;  %24462 = vmatprep.subr.bf16.mxu0 %v29859_v28 }
0x192d   : > { %22326 = vmatmul.mubr.f32.vlgmr.msra.gmra.mrb[74].mxu0 %v15081_v27 }
0x192e   : > { %24410 = vmatpush3.bf16.msra.mxu1 %v30274_v9  ;;  %24464 = vmatpush3.bf16.msra.mxu0 %v30260_v37  ;;  %v30287_v37 = vld [vmem:[#allocation41_spill] sm:$0xff] }
0x192f   : > { %24411 = vmatprep.subr.bf16.mxu1 %v29859_v28  ;;  %24465 = vmatprep.subr.bf16.mxu0 %v29859_v28 }
0x1930   : > { %22395 = vmatprep.mubr.msk.f32.mxu0 %vm25357_vm2, %v29889_v32 }
0x1932   : > { %24413 = vmatpush3.bf16.msra.mxu1 %v30275_v4  ;;  %24467 = vmatpush3.bf16.msra.mxu0 %v30261_v30  ;;  %v30288_v30 = vld [vmem:[#allocation36_spill] sm:$0xff] }
0x1933   : > { %24438 = vmatprep.subr.bf16.mxu1 %v29859_v28  ;;  %24468 = vmatprep.subr.bf16.mxu0 %v29859_v28 }
0x1935   : > { %22291 = vmatmul.mubr.f32.vlgmr.msra.gmra.mrb[72].mxu1 %v15080_v43  ;;  %v30298_v43 = vld [vmem:[#allocation30_spill] sm:$0xff] }
0x1936   : > { %24440 = vmatpush3.bf16.msra.mxu1 %v30276_v53  ;;  %24470 = vmatpush3.bf16.msra.mxu0 %v30262_v45  ;;  %v30289_v45 = vld [vmem:[#allocation31_spill] sm:$0xff] }
0x1937   : > { %24441 = vmatprep.subr.bf16.mxu1 %v29859_v28  ;;  %24471 = vmatprep.subr.bf16.mxu0 %v29859_v28 }
0x1938   : > { %22360 = vmatprep.mubr.msk.f32.mxu1 %vm25357_vm2, %v29889_v32 }
0x193a   : > { %24443 = vmatpush3.bf16.msra.mxu1 %v30277_v34  ;;  %24473 = vmatpush3.bf16.msra.mxu0 %v30263_v1  ;;  %v30290_v1 = vpack.c.bf16 %v30288_v30, %v30289_v45 }
0x193b   : > { %24444 = vmatprep.subr.bf16.mxu1 %v29859_v28  ;;  %24474 = vmatprep.subr.bf16.mxu0 %v29859_v28 }
0x193e   : > { %24446 = vmatpush3.bf16.msra.mxu1 %v30278_v23  ;;  %24476 = vmatpush3.bf16.msra.mxu0 %v30264_v52  ;;  %v30291_v52 = vld [vmem:[#allocation39_spill] sm:$0xff] }
0x193f   : > { %24447 = vmatprep.subr.bf16.mxu1 %v29859_v28  ;;  %24477 = vmatprep.subr.bf16.mxu0 %v29859_v28 }
0x1942   : > { %24449 = vmatpush3.bf16.msra.mxu1 %v30279_v62  ;;  %24479 = vmatpush3.bf16.msra.mxu0 %v30265_v39  ;;  %v30292_v39 = vld [vmem:[#allocation7_spill] sm:$0xff] }
0x1943   : > { %24450 = vmatprep.subr.bf16.mxu1 %v29859_v28  ;;  %24480 = vmatprep.subr.bf16.mxu0 %v29859_v28 }
0x1946   : > { %24452 = vmatpush3.bf16.msra.mxu1 %v30280_v33  ;;  %24482 = vmatpush3.bf16.msra.mxu0 %v30266_v60  ;;  %v30293_v60 = vld [vmem:[#allocation55_spill] sm:$0xff] }
0x1947   : > { %24453 = vmatprep.subr.bf16.mxu1 %v29859_v28  ;;  %24483 = vmatprep.subr.bf16.mxu0 %v29859_v28 }
0x194a   : > { %24455 = vmatpush3.bf16.msra.mxu1 %v30281_v57  ;;  %24485 = vmatpush3.bf16.msra.mxu0 %v30267_v21  ;;  %v30294_v21 = vld [vmem:[#allocation26_spill] sm:$0xff] }
0x194b   : > { %24456 = vmatprep.subr.bf16.mxu1 %v29859_v28  ;;  %24504 = vmatprep.subr.bf16.mxu0 %v29859_v28 }
0x194d   : > { %22396 = vmatmul.mubr.f32.vlgmr.msra.gmra.mrb[76].mxu0 %v29114_v18 }
0x194e   : > { %24458 = vmatpush3.bf16.msra.mxu1 %v30282_v58  ;;  %24506 = vmatpush3.bf16.msra.mxu0 %v30283_v63  ;;  %v30299_v58 = vld [vmem:[#allocation3_spill] sm:$0xff] }
0x194f   : > { %24459 = vmatprep.subr.bf16.mxu1 %v29859_v28  ;;  %22444 = vmatprep.mubr.msk.f32.mxu0 %vm25357_vm2, %v29889_v32  ;;  %v17219_v17 = vsub.s32 2, %v30299_v58 }
0x1950   : > { %24507 = vmatprep.subr.bf16.mxu0 %v29859_v28 }
0x1952   : > { %24461 = vmatpush3.bf16.msra.mxu1 %v30285_v31 }
0x1953   : > { %24486 = vmatprep.subr.bf16.mxu1 %v29859_v28 }
0x1955   : > { %22361 = vmatmul.mubr.f32.vlgmr.msra.gmra.mrb[74].mxu1 %v29114_v18  ;;  %v30296_v18 = vld [vmem:[#allocation27_spill] sm:$0xff] }
0x1956   : > { %22402 = vmatprep.mubr.msk.f32.mxu1 %vm25357_vm2, %v29889_v32 }
0x195b   : > { %24488 = vmatpush3.bf16.xpose.msra.mxu1 %v30286_v19 }
0x195c   : > { %24489 = vmatprep.subr.bf16.mxu1 %v29859_v28 }
0x1962   : > { %22403 = vmatmul.mubr.f32.vlgmr.msra.gmra.mrb[76].mxu1 %v15711_v46  ;;  %v25345_v46 = vld [vmem:[#allocation2] sm:$0xff] }
0x1963   : > { %24491 = vmatpush3.bf16.xpose.msra.mxu1 %v30287_v37  ;;  %22409 = vmatprep.mubr.msk.f32.mxu1 %vm25357_vm2, %v29889_v32 }
0x1964   : > { %24492 = vmatprep.subr.bf16.mxu1 %v29859_v28 }
0x196a   : > { %22410 = vmatmul.mubr.f32.vlgmr.msra.gmra.mrb[76].mxu1 %v15707_v16 }
0x196b   : > { %24494 = vmatpush3.bf16.xpose.msra.mxu1 %v30290_v1  ;;  %22416 = vmatprep.mubr.msk.f32.mxu1 %vm25357_vm2, %v29889_v32 }
0x196c   : > { %24495 = vmatprep.subr.bf16.mxu1 %v29859_v28 }
0x1972   : > { %22417 = vmatmul.mubr.f32.vlgmr.msra.gmra.mrb[76].mxu1 %v15708_v50 }
0x1973   : > { %24497 = vmatpush3.bf16.xpose.msra.mxu1 %v30286_v19  ;;  %22423 = vmatprep.mubr.msk.f32.mxu1 %vm25357_vm2, %v29889_v32 }
0x1974   : > { %24498 = vmatprep.subr.bf16.mxu1 %v29859_v28 }
0x197a   : > { %22424 = vmatmul.mubr.f32.vlgmr.msra.gmra.mrb[76].mxu1 %v15709_v26 }
0x197b   : > { %24500 = vmatpush3.bf16.xpose.msra.mxu1 %v30291_v52  ;;  %22430 = vmatprep.mubr.msk.f32.mxu1 %vm25357_vm2, %v29889_v32 }
0x197c   : > { %24501 = vmatprep.subr.bf16.mxu1 %v29859_v28 }
0x1982   : > { %22431 = vmatmul.mubr.f32.vlgmr.msra.gmra.mrb[76].mxu1 %v15707_v16 }
0x1983   : > { %24503 = vmatpush3.bf16.xpose.msra.mxu1 %v30286_v19  ;;  %22437 = vmatprep.mubr.msk.f32.mxu1 %vm25357_vm2, %v29889_v32 }
0x1984   : > { %24546 = vmatprep.subr.bf16.mxu1 %v29859_v28 }
0x198a   : > { %22438 = vmatmul.mubr.f32.vlgmr.msra.gmra.mrb[76].mxu1 %v15707_v16  ;;  %v29247_v16 = vld [vmem:[%s25448_s2] sm:$0xff] }
0x198b   : > { %24548 = vmatpush3.bf16.msra.mxu1 %v30292_v39  ;;  %22549 = vmatprep.mubr.msk.f32.mxu1 %vm25357_vm2, %v29889_v32  ;;  %v29250_v31 = vrot.slane %v29247_v16, %v17219_v17 }
0x198c   : > { %24549 = vmatprep.subr.bf16.mxu1 %v29859_v28 }
0x198d   : > { %v17221_v50 = vadd.f32 %v29250_v31, %v28707_v55 }
0x198f   : > { %24551 = vmatpush3.bf16.msra.mxu1 %v30293_v60  ;;  %v17223_v37 = vadd.f32 %v25345_v46, %v17221_v50 }
0x1990   : > { %24552 = vmatprep.subr.bf16.mxu1 %v29859_v28 }
0x1993   : > { %24554 = vmatpush3.bf16.msra.mxu1 %v30294_v21 }
0x1994   : > { %24555 = vmatprep.subr.bf16.mxu1 %v29859_v28 }
0x1997   : > { %24557 = vmatpush3.bf16.msra.mxu1 %v30295_v40 }
0x1998   : > { %24558 = vmatprep.subr.bf16.mxu1 %v29859_v28 }
0x199b   : > { %24560 = vmatpush3.bf16.msra.mxu1 %v30296_v18 }
0x199c   : > { %24561 = vmatprep.subr.bf16.mxu1 %v29859_v28 }
0x199f   : > { %24563 = vmatpush3.bf16.msra.mxu1 %v30297_v8 }
0x19a0   : > { %24564 = vmatprep.subr.bf16.mxu1 %v29859_v28 }
0x19a3   : > { %24566 = vmatpush3.bf16.msra.mxu1 %v30298_v43 }
0x19a4   : > { %24567 = vmatprep.subr.bf16.mxu1 %v29859_v28 }
0x19a7   : > { %24569 = vmatpush3.bf16.msra.mxu1 %v28453_v14 }
0x19a8   : > { %24594 = vmatprep.subr.bf16.mxu1 %v29859_v28 }
0x19e0   : > { %v15236_v27 = vpop.f32.mrb[72].mxu0 }
0x19e1   : > { %v22257_v48 = vpop.f32.mrb[73].mxu0 }
0x19e8   : > { %v15085_v54 = vpop.f32.mrb[70].mxu1 }
0x19e9   : > { %v15237_v3 = vadd.f32 %v15236_v27, %v15085_v54  ;;  %v22222_v25 = vpop.f32.mrb[71].mxu1 }
0x1a00   : > { %v15429_v20 = vpop.f32.mrb[74].mxu0 }
0x1a01   : > { %v22327_v51 = vpop.f32.mrb[75].mxu0 }
0x1a08   : > { %v15340_v44 = vpop.f32.mrb[72].mxu1 }
0x1a09   : > { %v15341_v24 = vadd.f32 %v15340_v44, %v15237_v3  ;;  %v22292_v9 = vpop.f32.mrb[73].mxu1 }
0x1a0b   : > { %v15430_v4 = vadd.f32 %v15429_v20, %v15341_v24 }
0x1a20   : > { %v15635_v53 = vpop.f32.mrb[76].mxu0 }
0x1a21   : > { %v22397_v34 = vpop.f32.mrb[77].mxu0 }
0x1a22   : > { %v30302_v34 = vld [vmem:[#allocation58_spill] sm:$0xff] }
0x1a28   : > { %v15548_v23 = vpop.f32.mrb[74].mxu1 }
0x1a29   : > { %v15549_v62 = vadd.f32 %v15548_v23, %v15430_v4  ;;  %v22362_v33 = vpop.f32.mrb[75].mxu1  ;;  %v30300_v4 = vld [vmem:[#allocation70_spill] sm:$0xff] }
0x1a2b   : > { %v15636_v14 = vadd.f32 %v15635_v53, %v15549_v62  ;;  %v30301_v53 = vld [vmem:[#allocation65_spill] sm:$0xff]  ;;  %v30304_v62 = vld [vmem:[#allocation68_spill] sm:$0xff] }
0x1a2c   : > { %v30303_v23 = vpack.c.bf16 %v30301_v53, %v30302_v34  ;;  %v573_v53 = vld [vmem:[%s25443_s11 + $0x8] sm:$0xff]  ;;  %v574_v34 = vld [vmem:[%s25443_s11 + $0x10] sm:$0xff] }
0x1a2d   : > { %v29243_v57 = vadd.f32 %v15636_v14, %v29069_v12  ;;  %v17225_v12 = vsel %vm609_vm1, %v17223_v37, 0.0 }
0x1a5d   : > { %v16095_v26 = vpop.f32.mrb[76].mxu1 }
0x1a5e   : > { %v22439_v19 = vpop.f32.mrb[77].mxu1  ;;  %v16099_v35 = vsel %vm5063_vm3, %v16095_v26, -inf }
0x1a5f   : > { %16100 = vmax.xlane.f32.xlu0 %v16099_v35 }
0x1a63   : > { %17226 = vadd.xlane.f32.xlu0 %v17225_v12 }
0x1aec   : > { %v16101_v30 = vpop.xlane.xlu0 %16100 }
0x1aed   : > { %v16102_v45 = vsub.f32 %v16095_v26, %v16101_v30 }
0x1aef   : > { %v16103_v1 = vmul.f32 1.442695, %v16102_v45 }
0x1af0   : > { %v17227_v52 = vpop.xlane.xlu0 %17226 }
0x1af1   : > { %25332 = vpow2.f32 %v16103_v1  ;;  %v17232_v39 = vmul.f32 0.03125, %v17227_v52 }
0x1af3   : > { %v29256_v60 = vsub.f32 %v17223_v37, %v17232_v39 }
0x1af5   : > { %v17236_v55 = vmul.f32 %v29256_v60, %v29256_v60 }
0x1af7   : > { %v17238_v21 = vsel %vm609_vm1, %v17236_v55, 0.0 }
0x1af8   : > { %17239 = vadd.xlane.f32.xlu0 %v17238_v21 }
0x1afb   : > { %v25333_v40 = vpop.eup %25332 }
0x1afc   : > { %v16105_v18 = vsel %vm5063_vm3, %v25333_v40, 0.0 }
0x1afd   : > { %16106 = vadd.xlane.f32.xlu1 %v16105_v18 }
0x1b85   : > { %v17240_v35 = vpop.xlane.xlu0 %17239 }
0x1b8a   : > { %v16107_v8 = vpop.xlane.xlu1 %16106 }
0x1b8b   : > { %25334 = vrcp.f32 %v16107_v8 }
0x1b95   : > { %v25335_v43 = vpop.eup %25334 }
0x1b96   : > { %v16109_v27 = vmul.f32 %v25335_v43, %v16107_v8 }
0x1b98   : > { %v16110_v48 = vsub.f32 2.0, %v16109_v27 }
0x1b9a   : > { %v16111_v54 = vmul.f32 %v25335_v43, %v16110_v48 }
0x1b9c   : > { %v16112_v3 = vmul.f32 %v25333_v40, %v16111_v54  ;;  %v25346_v54 = vld [vmem:[#allocation2 + $0x8] sm:$0xff] }
0x1b9e   : > { %v16114_v25 = vsel %vm5063_vm3, %v16112_v3, 0 }
0x1b9f   : > { %v16183_v20 = vand.u32 4294901760, %v16114_v25 }
0x1ba1   : > { %v16184_v51 = vsub.f32 %v16114_v25, %v16183_v20 }
0x1ba3   : > { %v16185_v44 = vand.u32 4294901760, %v16184_v51 }
0x1ba5   : > { %v16186_v24 = vsub.f32 %v16184_v51, %v16185_v44 }
0x1ba7   : > { %v16187_v9 = vand.u32 4294901760, %v16186_v24 }
0x1ba9   : > { %22445 = vmatmul.mubr.f32.vlgmr.msra.gmra.mrb[78].mxu0 %v16187_v9 }
0x1baa   : > { %24509 = vmatpush3.bf16.msra.mxu0 %v30300_v4  ;;  %22451 = vmatprep.mubr.msk.f32.mxu0 %vm25357_vm2, %v29889_v32  ;;  %v572_v4 = vld [vmem:[%s25443_s11] sm:$0xff] }
0x1bab   : > { %24510 = vmatprep.subr.bf16.mxu0 %v29859_v28 }
0x1bb1   : > { %22452 = vmatmul.mubr.f32.vlgmr.msra.gmra.mrb[78].mxu0 %v16183_v20 }
0x1bb2   : > { %24512 = vmatpush3.bf16.msra.mxu0 %v30303_v23  ;;  %22458 = vmatprep.mubr.msk.f32.mxu0 %vm25357_vm2, %v29889_v32  ;;  %v17275_v23 = vand.u32 4294901760, %v572_v4 }
0x1bb3   : > { %24513 = vmatprep.subr.bf16.mxu0 %v29859_v28 }
0x1bb9   : > { %22459 = vmatmul.mubr.f32.vlgmr.msra.gmra.mrb[78].mxu0 %v16184_v51 }
0x1bba   : > { %24515 = vmatpush3.bf16.msra.mxu0 %v30283_v63  ;;  %22465 = vmatprep.mubr.msk.f32.mxu0 %vm25357_vm2, %v29889_v32 }
0x1bbb   : > { %24516 = vmatprep.subr.bf16.mxu0 %v29859_v28 }
0x1bc1   : > { %22466 = vmatmul.mubr.f32.vlgmr.msra.gmra.mrb[78].mxu0 %v16185_v44 }
0x1bc2   : > { %24518 = vmatpush3.bf16.msra.mxu0 %v30304_v62  ;;  %22472 = vmatprep.mubr.msk.f32.mxu0 %vm25357_vm2, %v29889_v32  ;;  %v575_v62 = vld [vmem:[%s25443_s11 + $0x18] sm:$0xff] }
0x1bc3   : > { %24519 = vmatprep.subr.bf16.mxu0 %v29859_v28 }
0x1bc9   : > { %22473 = vmatmul.mubr.f32.vlgmr.msra.gmra.mrb[78].mxu0 %v16183_v20 }
0x1bca   : > { %24521 = vmatpush3.bf16.msra.mxu0 %v30283_v63  ;;  %22479 = vmatprep.mubr.msk.f32.mxu0 %vm25357_vm2, %v29889_v32 }
0x1bcb   : > { %24522 = vmatprep.subr.bf16.mxu0 %v29859_v28 }
0x1bd1   : > { %22480 = vmatmul.mubr.f32.vlgmr.msra.gmra.mrb[78].mxu0 %v16183_v20 }
0x1bd2   : > { %24524 = vmatpush3.bf16.msra.mxu0 %v28290_v56  ;;  %22514 = vmatprep.mubr.msk.f32.mxu0 %vm25357_vm2, %v29889_v32 }
0x1bd3   : > { %24525 = vmatprep.subr.bf16.mxu0 %v29859_v28 }
0x1bd6   : > { %24527 = vmatpush3.bf16.msra.mxu0 %v28298_v49 }
0x1bd7   : > { %24528 = vmatprep.subr.bf16.mxu0 %v29859_v28 }
0x1bda   : > { %24530 = vmatpush3.bf16.msra.mxu0 %v28336_v47 }
0x1bdb   : > { %24531 = vmatprep.subr.bf16.mxu0 %v29859_v28 }
0x1bde   : > { %24533 = vmatpush3.bf16.msra.mxu0 %v28349_v15 }
0x1bdf   : > { %24534 = vmatprep.subr.bf16.mxu0 %v29859_v28 }
0x1be2   : > { %24536 = vmatpush3.bf16.msra.mxu0 %v28357_v29 }
0x1be3   : > { %24537 = vmatprep.subr.bf16.mxu0 %v29859_v28 }
0x1be6   : > { %24539 = vmatpush3.bf16.msra.mxu0 %v28384_v59 }
0x1be7   : > { %24540 = vmatprep.subr.bf16.mxu0 %v29859_v28 }
0x1bea   : > { %24542 = vmatpush3.bf16.msra.mxu0 %v28500_v11 }
0x1beb   : > { %24543 = vmatprep.subr.bf16.mxu0 %v29859_v28 }
0x1bee   : > { %24545 = vmatpush3.bf16.msra.mxu0 %v28508_v5 }
0x1bef   : > { %24570 = vmatprep.subr.bf16.mxu0 %v29859_v28 }
0x1ca4   : > { %v16571_v63 = vpop.f32.mrb[78].mxu0 }
0x1ca5   : > { %v29303_v33 = vand.u32 4294901760, %v16571_v63  ;;  %v22481_v14 = vpop.f32.mrb[79].mxu0 }
0x1ca7   : > { %v16657_v17 = vsub.f32 %v16571_v63, %v29303_v33  ;;  %22550 = vmatmul.mubr.f32.vlgmr.msra.gmra.mrb[78].mxu1 %v29303_v33  ;;  %v17284_v63 = vand.u32 4294901760, %v575_v62 }
0x1ca8   : > { %24596 = vmatpush3.bf16.msra.mxu1 %v28290_v56  ;;  %22619 = vmatprep.mubr.msk.f32.mxu1 %vm25357_vm2, %v29889_v32 }
0x1ca9   : > { %v16658_v50 = vand.u32 4294901760, %v16657_v17  ;;  %24597 = vmatprep.subr.bf16.mxu1 %v29859_v28 }
0x1cab   : > { %v16659_v26 = vsub.f32 %v16657_v17, %v16658_v50 }
0x1cac   : > { %24599 = vmatpush3.bf16.msra.mxu1 %v28298_v49 }
0x1cad   : > { %v16660_v19 = vand.u32 4294901760, %v16659_v26  ;;  %24600 = vmatprep.subr.bf16.mxu1 %v29859_v28 }
0x1caf   : > { %22515 = vmatmul.mubr.f32.vlgmr.msra.gmra.mrb[80].mxu0 %v16660_v19 }
0x1cb0   : > { %24572 = vmatpush3.bf16.msra.mxu0 %v28523_v7  ;;  %24602 = vmatpush3.bf16.msra.mxu1 %v28336_v47  ;;  %v17244_v7 = vmul.f32 0.03125, %v17240_v35 }
0x1cb1   : > { %24573 = vmatprep.subr.bf16.mxu0 %v29859_v28  ;;  %24603 = vmatprep.subr.bf16.mxu1 %v29859_v28 }
0x1cb2   : > { %22584 = vmatprep.mubr.msk.f32.mxu0 %vm25357_vm2, %v29889_v32 }
0x1cb4   : > { %24575 = vmatpush3.bf16.msra.mxu0 %v28530_v36  ;;  %24605 = vmatpush3.bf16.msra.mxu1 %v28349_v15  ;;  %v17246_v36 = vadd.f32 1e-05, %v17244_v7 }
0x1cb5   : > { %24576 = vmatprep.subr.bf16.mxu0 %v29859_v28  ;;  %24606 = vmatprep.subr.bf16.mxu1 %v29859_v28 }
0x1cb6   : > { %25336 = vrsqrt.f32 %v17246_v36 }
0x1cb8   : > { %24578 = vmatpush3.bf16.msra.mxu0 %v28540_v6  ;;  %24608 = vmatpush3.bf16.msra.mxu1 %v28357_v29  ;;  %v17254_v6 = vsub.s32 3, %v30299_v58 }
0x1cb9   : > { %24579 = vmatprep.subr.bf16.mxu0 %v29859_v28  ;;  %24609 = vmatprep.subr.bf16.mxu1 %v29859_v28 }
0x1cbc   : > { %24581 = vmatpush3.bf16.msra.mxu0 %v28548_v61  ;;  %24611 = vmatpush3.bf16.msra.mxu1 %v28384_v59 }
0x1cbd   : > { %24582 = vmatprep.subr.bf16.mxu0 %v29859_v28  ;;  %24612 = vmatprep.subr.bf16.mxu1 %v29859_v28 }
0x1cc0   : > { %24584 = vmatpush3.bf16.msra.mxu0 %v28556_v38  ;;  %24614 = vmatpush3.bf16.msra.mxu1 %v28500_v11  ;;  %v25337_v61 = vpop.eup %25336  ;;  %v29352_v38 = vrot.slane %v29247_v16, %v17254_v6  ;;  %v17386_v6 = vsub.f32 %v575_v62, %v17284_v63 }
0x1cc1   : > { %24585 = vmatprep.subr.bf16.mxu0 %v29859_v28  ;;  %24615 = vmatprep.subr.bf16.mxu1 %v29859_v28 }
0x1cc4   : > { %24587 = vmatpush3.bf16.msra.mxu0 %v28564_v41  ;;  %24617 = vmatpush3.bf16.msra.mxu1 %v28508_v5  ;;  %v17260_v41 = vsub.s32 4, %v30299_v58 }
0x1cc5   : > { %24588 = vmatprep.subr.bf16.mxu0 %v29859_v28  ;;  %24642 = vmatprep.subr.bf16.mxu1 %v29859_v28 }
0x1cc7   : > { %22620 = vmatmul.mubr.f32.vlgmr.msra.gmra.mrb[80].mxu1 %v16658_v50 }
0x1cc8   : > { %24590 = vmatpush3.bf16.msra.mxu0 %v28572_v10  ;;  %24644 = vmatpush3.bf16.msra.mxu1 %v28290_v56  ;;  %v17250_v56 = vmul.f32 %v25337_v61, %v29256_v60  ;;  %v29363_v10 = vrot.slane %v29247_v16, %v17260_v41 }
0x1cc9   : > { %24591 = vmatprep.subr.bf16.mxu0 %v29859_v28  ;;  %24645 = vmatprep.subr.bf16.mxu1 %v29859_v28 }
0x1cca   : > { %22689 = vmatprep.mubr.msk.f32.mxu1 %vm25357_vm2, %v29889_v32 }
0x1ccc   : > { %24593 = vmatpush3.bf16.msra.mxu0 %v28580_v0  ;;  %24647 = vmatpush3.bf16.msra.mxu1 %v28298_v49  ;;  %v17256_v49 = vmul.f32 %v29352_v38, %v17250_v56  ;;  %v30305_v0 = vld [vmem:[#allocation66_spill] sm:$0xff] }
0x1ccd   : > { %24618 = vmatprep.subr.bf16.mxu0 %v29859_v28  ;;  %24648 = vmatprep.subr.bf16.mxu1 %v29859_v28 }
0x1ccf   : > { %22585 = vmatmul.mubr.f32.vlgmr.msra.gmra.mrb[82].mxu0 %v16657_v17  ;;  %v17365_v17 = vsub.f32 %v572_v4, %v17275_v23 }
0x1cd0   : > { %24620 = vmatpush3.bf16.msra.mxu0 %v28592_v2  ;;  %24650 = vmatpush3.bf16.msra.mxu1 %v28336_v47  ;;  %v29370_v47 = vadd.f32 %v29363_v10, %v17256_v49  ;;  %v30306_v2 = vld [vmem:[#allocation56_spill] sm:$0xff]  ;;  %v17387_v49 = vand.u32 4294901760, %v17386_v6 }
0x1cd1   : > { %24621 = vmatprep.subr.bf16.mxu0 %v29859_v28  ;;  %24651 = vmatprep.subr.bf16.mxu1 %v29859_v28  ;;  %v17366_v26 = vand.u32 4294901760, %v17365_v17 }
0x1cd2   : > { %22654 = vmatprep.mubr.msk.f32.mxu0 %vm25357_vm2, %v29889_v32  ;;  %v17269_v32 = vsel %vm609_vm1, %v29370_v47, 0 }
0x1cd3   : > { %v17367_v35 = vsub.f32 %v17365_v17, %v17366_v26 }
0x1cd4   : > { %24623 = vmatpush3.bf16.msra.mxu0 %v28602_v42  ;;  %24653 = vmatpush3.bf16.msra.mxu1 %v28349_v15  ;;  %v29382_v15 = vand.u32 4294901760, %v17269_v32  ;;  %v30307_v42 = vld [vmem:[#allocation53_spill] sm:$0xff] }
0x1cd5   : > { %24624 = vmatprep.subr.bf16.mxu0 %v29859_v28  ;;  %24654 = vmatprep.subr.bf16.mxu1 %v29859_v28  ;;  %v17368_v61 = vand.u32 4294901760, %v17367_v35 }
0x1cd8   : > { %24626 = vmatpush3.bf16.msra.mxu0 %v28614_v13  ;;  %24656 = vmatpush3.bf16.msra.mxu1 %v28357_v29  ;;  %v29389_v29 = vsub.f32 %v17269_v32, %v29382_v15  ;;  %v30308_v13 = vld [vmem:[#allocation60_spill] sm:$0xff] }
0x1cd9   : > { %24627 = vmatprep.subr.bf16.mxu0 %v29859_v28  ;;  %24657 = vmatprep.subr.bf16.mxu1 %v29859_v28 }
0x1cdc   : > { %24629 = vmatpush3.bf16.msra.mxu0 %v28624_v22  ;;  %24659 = vmatpush3.bf16.msra.mxu1 %v28384_v59  ;;  %v17345_v59 = vand.u32 4294901760, %v29389_v29 }
0x1cdd   : > { %24630 = vmatprep.subr.bf16.mxu0 %v29859_v28  ;;  %24660 = vmatprep.subr.bf16.mxu1 %v29859_v28 }
0x1ce0   : > { %24632 = vmatpush3.bf16.msra.mxu0 %v30305_v0  ;;  %24662 = vmatpush3.bf16.msra.mxu1 %v28500_v11  ;;  %v17346_v11 = vsub.f32 %v29389_v29, %v17345_v59 }
0x1ce1   : > { %24633 = vmatprep.subr.bf16.mxu0 %v29859_v28  ;;  %24663 = vmatprep.subr.bf16.mxu1 %v29859_v28 }
0x1ce2   : > { %v17347_v22 = vand.u32 4294901760, %v17346_v11 }
0x1ce4   : > { %24635 = vmatpush3.bf16.msra.mxu0 %v30306_v2  ;;  %24665 = vmatpush3.bf16.msra.mxu1 %v28508_v5  ;;  %v17388_v2 = vsub.f32 %v17386_v6, %v17387_v49 }
0x1ce5   : > { %24636 = vmatprep.subr.bf16.mxu0 %v29859_v28 }
0x1ce6   : > { %v17389_v11 = vand.u32 4294901760, %v17388_v2 }
0x1ce7   : > { %22690 = vmatmul.mubr.f32.vlgmr.msra.gmra.mrb[82].mxu1 %v29303_v33 }
0x1ce8   : > { %24638 = vmatpush3.bf16.msra.mxu0 %v30307_v42 }
0x1ce9   : > { %24639 = vmatprep.subr.bf16.mxu0 %v29859_v28 }
0x1cec   : > { %24641 = vmatpush3.bf16.msra.mxu0 %v30308_v13 }
0x1cef   : > { %22655 = vmatmul.mubr.f32.vlgmr.msra.gmra.mrb[84].mxu0 %v29303_v33 }
0x1cf0   : > { %22700 = vmatprep.mubr.f32.mxu0 %v17347_v22 }
0x1d7a   : > { %v16813_v5 = vpop.f32.mrb[78].mxu1 }
0x1d7b   : > { %v22551_v46 = vpop.f32.mrb[79].mxu1 }
0x1d82   : > { %v16662_v37 = vpop.f32.mrb[80].mxu0 }
0x1d83   : > { %v16814_v12 = vadd.f32 %v16813_v5, %v16662_v37  ;;  %v22516_v30 = vpop.f32.mrb[81].mxu0 }
0x1d9a   : > { %v17006_v45 = vpop.f32.mrb[80].mxu1 }
0x1d9b   : > { %v22621_v1 = vpop.f32.mrb[81].mxu1 }
0x1da2   : > { %v16917_v52 = vpop.f32.mrb[82].mxu0 }
0x1da3   : > { %v16918_v39 = vadd.f32 %v16917_v52, %v16814_v12  ;;  %v22586_v28 = vpop.f32.mrb[83].mxu0 }
0x1da5   : > { %v17007_v60 = vadd.f32 %v17006_v45, %v16918_v39 }
0x1dba   : > { %v17212_v55 = vpop.f32.mrb[82].mxu1 }
0x1dbb   : > { %v22691_v21 = vpop.f32.mrb[83].mxu1 }
0x1dc2   : > { %v17125_v40 = vpop.f32.mrb[84].mxu0 }
0x1dc3   : > { %v17126_v18 = vadd.f32 %v17125_v40, %v17007_v60  ;;  %v22656_v8 = vpop.f32.mrb[85].mxu0 }
0x1dc5   : > { %v17213_v43 = vadd.f32 %v17212_v55, %v17126_v18 }
0x1dc7   : > { %v17216_v27 = vadd.f32 %v17213_v43, %v29243_v57  ;;  %v17278_v57 = vand.u32 4294901760, %v573_v53 }
0x1dc9   : > { %v17222_v48 = vadd.f32 %v29250_v31, %v17216_v27  ;;  %v17281_v31 = vand.u32 4294901760, %v574_v34  ;;  %v29411_v33 = vpack.c.bf16 %v17278_v57, %v17275_v23  ;;  %v17372_v50 = vsub.f32 %v573_v53, %v17278_v57  ;;  %v578_v27 = vld [vmem:[%s25453_s22 + $0x10] sm:$0xff] }
0x1dca   : > { %v582_v53 = vld [vmem:[%s25453_s22 + $0x30] sm:$0xff] }
0x1dcb   : > { %v17224_v3 = vadd.f32 %v25346_v54, %v17222_v48  ;;  %v29413_v14 = vpack.c.bf16 %v17284_v63, %v17281_v31  ;;  %24667 = vmatprep.subr.bf16.mxu0 %v29411_v33  ;;  %v17373_v19 = vand.u32 4294901760, %v17372_v50  ;;  %v17379_v36 = vsub.f32 %v574_v34, %v17281_v31  ;;  %v579_v48 = vld [vmem:[%s25453_s22 + $0x18] sm:$0xff] }
0x1dcc   : > { %24669 = vmatpush3.bf16.msra.mxu0 %v29411_v33  ;;  %v24682_v22 = vpack.c.bf16 %v17372_v50, %v17365_v17  ;;  %v17825_v54 = vand.u32 4294901760, %v579_v48  ;;  %v583_v34 = vld [vmem:[%s25453_s22 + $0x38] sm:$0xff]  ;;  %v17834_v23 = vand.u32 4294901760, %v582_v53 }
0x1dcd   : > { %v17228_v25 = vsel %vm609_vm1, %v17224_v3, 0.0  ;;  %24671 = vmatprep.subr.bf16.mxu0 %v29413_v14  ;;  %v17374_v7 = vsub.f32 %v17372_v50, %v17373_v19  ;;  %v17380_v41 = vand.u32 4294901760, %v17379_v36  ;;  %v24686_v5 = vpack.c.bf16 %v17386_v6, %v17379_v36 }
0x1dce   : > { %17229 = vadd.xlane.f32.xlu1 %v17228_v25  ;;  %v24698_v46 = vpack.c.bf16 %v17373_v19, %v17366_v26  ;;  %v580_v25 = vld [vmem:[%s25453_s22 + $0x20] sm:$0xff]  ;;  %v17837_v57 = vand.u32 4294901760, %v583_v34  ;;  %v17931_v50 = vsub.f32 %v579_v48, %v17825_v54 }
0x1dcf   : > { %v17375_v56 = vand.u32 4294901760, %v17374_v7  ;;  %v17381_v0 = vsub.f32 %v17379_v36, %v17380_v41  ;;  %v24702_v37 = vpack.c.bf16 %v17387_v49, %v17380_v41 }
0x1dd0   : > { %24673 = vmatpush3.bf16.msra.mxu0 %v29413_v14  ;;  %v29459_v63 = vpack.c.bf16 %v17837_v57, %v17834_v23  ;;  %v17932_v7 = vand.u32 4294901760, %v17931_v50 }
0x1dd1   : > { %v24674_v32 = vpack.c.bf16 %v17375_v56, %v17368_v61  ;;  %v17382_v42 = vand.u32 4294901760, %v17381_v0 }
0x1dd2   : > { %v17933_v61 = vsub.f32 %v17931_v50, %v17932_v7 }
0x1dd3   : > { %24675 = vmatprep.subr.bf16.mxu0 %v24674_v32  ;;  %v24678_v13 = vpack.c.bf16 %v17389_v11, %v17382_v42 }
0x1e5b   : > { %v17230_v20 = vpop.xlane.xlu1 %17229 }
0x1e5c   : > { %v17233_v51 = vmul.f32 0.03125, %v17230_v20  ;;  %v581_v20 = vld [vmem:[%s25453_s22 + $0x28] sm:$0xff] }
0x1e5e   : > { %v17235_v44 = vsub.f32 %v17224_v3, %v17233_v51  ;;  %v17828_v51 = vand.u32 4294901760, %v580_v25 }
0x1e60   : > { %v17237_v24 = vmul.f32 %v17235_v44, %v17235_v44  ;;  %v17938_v56 = vsub.f32 %v580_v25, %v17828_v51 }
0x1e62   : > { %v17241_v9 = vsel %vm609_vm1, %v17237_v24, 0.0  ;;  %v17939_v0 = vand.u32 4294901760, %v17938_v56 }
0x1e63   : > { %17242 = vadd.xlane.f32.xlu1 %v17241_v9 }
0x1e64   : > { %v17940_v11 = vsub.f32 %v17938_v56, %v17939_v0 }
0x1ef0   : > { %v17243_v12 = vpop.xlane.xlu1 %17242 }
0x1ef1   : > { %v17245_v30 = vmul.f32 0.03125, %v17243_v12 }
0x1ef3   : > { %v17247_v45 = vadd.f32 1e-05, %v17245_v30 }
0x1ef5   : > { %25338 = vrsqrt.f32 %v17247_v45 }
0x1eff   : > { %v25339_v1 = vpop.eup %25338 }
0x1f00   : > { %v17251_v52 = vmul.f32 %v25339_v1, %v17235_v44  ;;  %v17831_v44 = vand.u32 4294901760, %v581_v20 }
0x1f02   : > { %v17257_v39 = vmul.f32 %v29352_v38, %v17251_v52  ;;  %v576_v38 = vld [vmem:[%s25453_s22] sm:$0xff]  ;;  %v29453_v24 = vpack.c.bf16 %v17831_v44, %v17828_v51  ;;  %v17945_v41 = vsub.f32 %v581_v20, %v17831_v44 }
0x1f04   : > { %v29421_v28 = vadd.f32 %v29363_v10, %v17257_v39  ;;  %v577_v10 = vld [vmem:[%s25453_s22 + $0x8] sm:$0xff]  ;;  %v17946_v2 = vand.u32 4294901760, %v17945_v41 }
0x1f06   : > { %v17272_v60 = vsel %vm609_vm1, %v29421_v28, 0 }
0x1f07   : > { %v17353_v55 = vand.u32 4294901760, %v17272_v60 }
0x1f09   : > { %v17354_v21 = vsub.f32 %v17272_v60, %v17353_v55 }
0x1f0b   : > { %v17355_v40 = vand.u32 4294901760, %v17354_v21 }
0x1f0d   : > { %v17356_v18 = vsub.f32 %v17354_v21, %v17355_v40 }
0x1f0f   : > { %v17357_v8 = vand.u32 4294901760, %v17356_v18  ;;  %v24754_v18 = vpack.c.bf16 %v17945_v41, %v17938_v56 }
0x1f11   : > { %22701 = vmatmul.mubr.f32.vlgmr.msra.gmra.mrb[86].mxu0 %v17357_v8 }
0x1f12   : > { %24677 = vmatpush3.bf16.msra.mxu0 %v24674_v32  ;;  %22711 = vmatprep.mubr.f32.mxu0 %v29382_v15  ;;  %v17934_v32 = vand.u32 4294901760, %v17933_v61 }
0x1f13   : > { %24679 = vmatprep.subr.bf16.mxu0 %v24678_v13 }
0x1f16   : > { %24681 = vmatpush3.bf16.msra.mxu0 %v24678_v13  ;;  %v17947_v13 = vsub.f32 %v17945_v41, %v17946_v2 }
0x1f17   : > { %24683 = vmatprep.subr.bf16.mxu0 %v24682_v22 }
0x1f19   : > { %22712 = vmatmul.mubr.f32.vlgmr.msra.gmra.mrb[86].mxu0 %v17353_v55 }
0x1f1a   : > { %24685 = vmatpush3.bf16.msra.mxu0 %v24682_v22  ;;  %22722 = vmatprep.mubr.f32.mxu0 %v29389_v29  ;;  %v17816_v29 = vand.u32 4294901760, %v576_v38  ;;  %v17952_v22 = vsub.f32 %v582_v53, %v17834_v23 }
0x1f1b   : > { %24687 = vmatprep.subr.bf16.mxu0 %v24686_v5 }
0x1f1c   : > { %v17910_v9 = vsub.f32 %v576_v38, %v17816_v29  ;;  %v17953_v12 = vand.u32 4294901760, %v17952_v22 }
0x1f1e   : > { %24689 = vmatpush3.bf16.msra.mxu0 %v24686_v5  ;;  %v17911_v62 = vand.u32 4294901760, %v17910_v9  ;;  %v17959_v5 = vsub.f32 %v583_v34, %v17837_v57  ;;  %v17954_v1 = vsub.f32 %v17952_v22, %v17953_v12 }
0x1f1f   : > { %24691 = vmatprep.subr.bf16.mxu0 %v29411_v33 }
0x1f20   : > { %v17960_v30 = vand.u32 4294901760, %v17959_v5  ;;  %v17955_v39 = vand.u32 4294901760, %v17954_v1  ;;  %v24758_v8 = vpack.c.bf16 %v17959_v5, %v17952_v22 }
0x1f21   : > { %22723 = vmatmul.mubr.f32.vlgmr.msra.gmra.mrb[86].mxu0 %v17354_v21 }
0x1f22   : > { %24693 = vmatpush3.bf16.msra.mxu0 %v29411_v33  ;;  %22733 = vmatprep.mubr.f32.mxu0 %v17345_v59  ;;  %v17819_v59 = vand.u32 4294901760, %v577_v10  ;;  %v17961_v52 = vsub.f32 %v17959_v5, %v17960_v30 }
0x1f23   : > { %24695 = vmatprep.subr.bf16.mxu0 %v29413_v14 }
0x1f24   : > { %v29441_v43 = vpack.c.bf16 %v17819_v59, %v17816_v29  ;;  %v17917_v4 = vsub.f32 %v577_v10, %v17819_v59  ;;  %v17962_v60 = vand.u32 4294901760, %v17961_v52  ;;  %v24786_v29 = vpack.c.bf16 %v17946_v2, %v17939_v0 }
0x1f25   : > { %v24790_v59 = vpack.c.bf16 %v17960_v30, %v17953_v12  ;;  %v18425_v12 = vsub.s32 7, %v30299_v58 }
0x1f26   : > { %24697 = vmatpush3.bf16.msra.mxu0 %v29413_v14  ;;  %24715 = vmatprep.subr.bf16.mxu1 %v29441_v43  ;;  %v17918_v31 = vand.u32 4294901760, %v17917_v4  ;;  %v24746_v21 = vpack.c.bf16 %v17917_v4, %v17910_v9 }
0x1f27   : > { %24699 = vmatprep.subr.bf16.mxu0 %v24698_v46  ;;  %24717 = vmatpush3.bf16.msra.mxu1 %v29441_v43  ;;  %v18426_v30 = vrot.slane %v29247_v16, %v18425_v12 }
0x1f28   : > { %v24778_v38 = vpack.c.bf16 %v17918_v31, %v17911_v62 }
0x1f29   : > { %22734 = vmatmul.mubr.f32.vlgmr.msra.gmra.mrb[86].mxu0 %v17355_v40 }
0x1f2a   : > { %24701 = vmatpush3.bf16.msra.mxu0 %v24698_v46  ;;  %22744 = vmatprep.mubr.f32.mxu0 %v29382_v15  ;;  %v17941_v46 = vand.u32 4294901760, %v17940_v11 }
0x1f2b   : > { %24703 = vmatprep.subr.bf16.mxu0 %v24702_v37 }
0x1f2e   : > { %24705 = vmatpush3.bf16.msra.mxu0 %v24702_v37  ;;  %v17948_v37 = vand.u32 4294901760, %v17947_v13 }
0x1f2f   : > { %24707 = vmatprep.subr.bf16.mxu0 %v29411_v33 }
0x1f30   : > { %v24738_v45 = vpack.c.bf16 %v17948_v37, %v17941_v46 }
0x1f31   : > { %22745 = vmatmul.mubr.f32.vlgmr.msra.gmra.mrb[86].mxu0 %v17353_v55 }
0x1f32   : > { %24709 = vmatpush3.bf16.msra.mxu0 %v29411_v33  ;;  %22755 = vmatprep.mubr.f32.mxu0 %v29382_v15  ;;  %v17822_v15 = vand.u32 4294901760, %v578_v27  ;;  %v17912_v33 = vsub.f32 %v17910_v9, %v17911_v62 }
0x1f33   : > { %24711 = vmatprep.subr.bf16.mxu0 %v29413_v14 }
0x1f34   : > { %v29447_v3 = vpack.c.bf16 %v17825_v54, %v17822_v15  ;;  %v17924_v17 = vsub.f32 %v578_v27, %v17822_v15  ;;  %v17913_v26 = vand.u32 4294901760, %v17912_v33  ;;  %v17266_v27 = vsub.s32 5, %v30299_v58 }
0x1f36   : > { %24713 = vmatpush3.bf16.msra.mxu0 %v29413_v14  ;;  %24719 = vmatprep.subr.bf16.mxu1 %v29447_v3  ;;  %v17919_v14 = vsub.f32 %v17917_v4, %v17918_v31  ;;  %v17925_v35 = vand.u32 4294901760, %v17924_v17  ;;  %v24750_v40 = vpack.c.bf16 %v17931_v50, %v17924_v17  ;;  %v17267_v48 = vrot.slane %v29247_v16, %v17266_v27  ;;  %v18444_v27 = vld [vmem:[%s29541_s8 + $0x18] sm:$0xff] (!%p19094_p5) }
0x1f37   : > { %24721 = vmatpush3.bf16.msra.mxu1 %v29447_v3 }
0x1f38   : > { %24723 = vmatprep.subr.bf16.mxu1 %v29453_v24  ;;  %v17920_v19 = vand.u32 4294901760, %v17919_v14  ;;  %v17926_v6 = vsub.f32 %v17924_v17, %v17925_v35  ;;  %v24782_v10 = vpack.c.bf16 %v17932_v7, %v17925_v35 }
0x1f39   : > { %22756 = vmatmul.mubr.f32.vlgmr.msra.gmra.mrb[86].mxu0 %v17353_v55  ;;  %v24742_v55 = vpack.c.bf16 %v17962_v60, %v17955_v39  ;;  %v19093_v39 = vld [vmem:[%s25448_s2 + $0x40] ss:$0 sm:$0xff] }
0x1f3a   : > { %v24730_v36 = vpack.c.bf16 %v17920_v19, %v17913_v26  ;;  %v17927_v49 = vand.u32 4294901760, %v17926_v6  ;;  %v17806_v26 = vsub.s32 6, %v30299_v58  ;;  %v18441_v58 = vld [vmem:[%s29541_s8] sm:$0xff] (!%p19094_p5) }
0x1f3b   : > { %24725 = vmatpush3.bf16.msra.mxu1 %v29453_v24 }
0x1f3c   : > { %24727 = vmatprep.subr.bf16.mxu1 %v29459_v63  ;;  %v24734_v42 = vpack.c.bf16 %v17934_v32, %v17927_v49  ;;  %v17807_v19 = vrot.slane %v29247_v16, %v17806_v26  ;;  %v18442_v16 = vld [vmem:[%s29541_s8 + $0x8] sm:$0xff] (!%p19094_p5) }
0x1f3f   : > { %24729 = vmatpush3.bf16.msra.mxu1 %v29459_v63 }
0x1f40   : > { %24731 = vmatprep.subr.bf16.mxu1 %v24730_v36 }
0x200c   : > { %v22757_v15 = vpop.f32.mrb[86].mxu0 }
0x200d   : > { %v24899_v54 = vadd.f32 %v22757_v15, %v17267_v48  ;;  %v17792_v25 = vpop.f32.mrb[87].mxu0 }
0x200e   : > { %v24900_v20 = vadd.f32 %v17792_v25, %v17267_v48 }
0x200f   : > { %v17803_v51 = vmax.f32 %v24899_v54, 0.0  ;;  %v18468_v54 = vand.u32 (!%p19094_p5), 4294901760, %v18444_v27 }
0x2010   : > { %v17802_v44 = vmax.f32 %v24900_v20, 0.0 }
0x2011   : > { %v17813_v53 = vsel %vm17808_vm4, %v17803_v51, 0 }
0x2012   : > { %v17898_v9 = vand.u32 4294901760, %v17813_v53  ;;  %v17810_v4 = vsel %vm17808_vm4, %v17802_v44, 0 }
0x2013   : > { %v17888_v34 = vand.u32 4294901760, %v17810_v4 }
0x2014   : > { %v17899_v23 = vsub.f32 %v17813_v53, %v17898_v9 }
0x2015   : > { %v17889_v57 = vsub.f32 %v17810_v4, %v17888_v34 }
0x2016   : > { %v17900_v62 = vand.u32 4294901760, %v17899_v23 }
0x2017   : > { %v17890_v31 = vand.u32 4294901760, %v17889_v57 }
0x2018   : > { %v17901_v33 = vsub.f32 %v17899_v23, %v17900_v62 }
0x2019   : > { %v17891_v14 = vsub.f32 %v17889_v57, %v17890_v31 }
0x201a   : > { %v17902_v50 = vand.u32 4294901760, %v17901_v33 }
0x201b   : > { %v17892_v17 = vand.u32 4294901760, %v17891_v14 }
0x201d   : > { %22774 = vmatprep.mubr.f32.mxu1 %v17892_v17 }
0x201e   : > { %22775 = vmatmul.mubr.f32.vlgmr.msra.gmra.mrb[84].mxu1 %v17902_v50 }
0x201f   : > { %24733 = vmatpush3.bf16.msra.mxu1 %v24730_v36  ;;  %22793 = vmatprep.mubr.f32.mxu1 %v17888_v34 }
0x2020   : > { %24735 = vmatprep.subr.bf16.mxu1 %v24734_v42 }
0x2023   : > { %24737 = vmatpush3.bf16.msra.mxu1 %v24734_v42 }
0x2024   : > { %24739 = vmatprep.subr.bf16.mxu1 %v24738_v45 }
0x2027   : > { %24741 = vmatpush3.bf16.msra.mxu1 %v24738_v45 }
0x2028   : > { %24743 = vmatprep.subr.bf16.mxu1 %v24742_v55 }
0x202b   : > { %24745 = vmatpush3.bf16.msra.mxu1 %v24742_v55 }
0x202c   : > { %24747 = vmatprep.subr.bf16.mxu1 %v24746_v21 }
0x202e   : > { %22794 = vmatmul.mubr.f32.vlgmr.msra.gmra.mrb[84].mxu1 %v17898_v9 }
0x202f   : > { %24749 = vmatpush3.bf16.msra.mxu1 %v24746_v21  ;;  %22812 = vmatprep.mubr.f32.mxu1 %v17889_v57 }
0x2030   : > { %24751 = vmatprep.subr.bf16.mxu1 %v24750_v40 }
0x2033   : > { %24753 = vmatpush3.bf16.msra.mxu1 %v24750_v40 }
0x2034   : > { %24755 = vmatprep.subr.bf16.mxu1 %v24754_v18 }
0x2037   : > { %24757 = vmatpush3.bf16.msra.mxu1 %v24754_v18 }
0x2038   : > { %24759 = vmatprep.subr.bf16.mxu1 %v24758_v8 }
0x203b   : > { %24761 = vmatpush3.bf16.msra.mxu1 %v24758_v8  ;;  %v18443_v8 = vld [vmem:[%s29541_s8 + $0x10] sm:$0xff] (!%p19094_p5) }
0x203c   : > { %24763 = vmatprep.subr.bf16.mxu1 %v29441_v43  ;;  %v18465_v48 = vand.u32 (!%p19094_p5), 4294901760, %v18443_v8 }
0x203e   : > { %22813 = vmatmul.mubr.f32.vlgmr.msra.gmra.mrb[84].mxu1 %v17899_v23  ;;  %v18570_v23 = vsub.f32 (!%p19094_p5), %v18444_v27, %v18468_v54 }
0x203f   : > { %24765 = vmatpush3.bf16.msra.mxu1 %v29441_v43  ;;  %22831 = vmatprep.mubr.f32.mxu1 %v17890_v31 }
0x2040   : > { %24767 = vmatprep.subr.bf16.mxu1 %v29447_v3  ;;  %v18571_v17 = vand.u32 (!%p19094_p5), 4294901760, %v18570_v23 }
0x2043   : > { %24769 = vmatpush3.bf16.msra.mxu1 %v29447_v3 }
0x2044   : > { %24771 = vmatprep.subr.bf16.mxu1 %v29453_v24 }
0x2047   : > { %24773 = vmatpush3.bf16.msra.mxu1 %v29453_v24 }
0x2048   : > { %24775 = vmatprep.subr.bf16.mxu1 %v29459_v63 }
0x204b   : > { %24777 = vmatpush3.bf16.msra.mxu1 %v29459_v63 }
0x204c   : > { %24779 = vmatprep.subr.bf16.mxu1 %v24778_v38 }
0x204e   : > { %22832 = vmatmul.mubr.f32.vlgmr.msra.gmra.mrb[84].mxu1 %v17900_v62 }
0x204f   : > { %24781 = vmatpush3.bf16.msra.mxu1 %v24778_v38  ;;  %22850 = vmatprep.mubr.f32.mxu1 %v17888_v34 }
0x2050   : > { %24783 = vmatprep.subr.bf16.mxu1 %v24782_v10 }
0x2053   : > { %24785 = vmatpush3.bf16.msra.mxu1 %v24782_v10 }
0x2054   : > { %24787 = vmatprep.subr.bf16.mxu1 %v24786_v29 }
0x2057   : > { %24789 = vmatpush3.bf16.msra.mxu1 %v24786_v29  ;;  %v18459_v29 = vand.u32 (!%p19094_p5), 4294901760, %v18441_v58 }
0x2058   : > { %24791 = vmatprep.subr.bf16.mxu1 %v24790_v59 }
0x2059   : > { %v18549_v44 = vsub.f32 (!%p19094_p5), %v18441_v58, %v18459_v29 }
0x205b   : > { %24793 = vmatpush3.bf16.msra.mxu1 %v24790_v59  ;;  %v18462_v59 = vand.u32 (!%p19094_p5), 4294901760, %v18442_v16  ;;  %v18550_v62 = vand.u32 (!%p19094_p5), 4294901760, %v18549_v44 }
0x205c   : > { %24795 = vmatprep.subr.bf16.mxu1 %v29441_v43 }
0x205d   : > { %v24810_v20 = vpack.c.bf16 (!%p19094_p5), %v18462_v59, %v18459_v29  ;;  %v18556_v53 = vsub.f32 (!%p19094_p5), %v18442_v16, %v18462_v59  ;;  %v18551_v26 = vsub.f32 (!%p19094_p5), %v18549_v44, %v18550_v62 }
0x205e   : > { %22851 = vmatmul.mubr.f32.vlgmr.msra.gmra.mrb[84].mxu1 %v17898_v9 }
0x205f   : > { %24797 = vmatpush3.bf16.msra.mxu1 %v29441_v43  ;;  %22869 = vmatprep.mubr.f32.mxu1 %v17888_v34  ;;  %v18563_v34 = vsub.f32 (!%p19094_p5), %v18443_v8, %v18465_v48  ;;  %v18557_v31 = vand.u32 (!%p19094_p5), 4294901760, %v18556_v53 }
0x2060   : > { %24799 = vmatprep.subr.bf16.mxu1 %v29447_v3  ;;  %24835 = vmatprep.subr.bf16.mxu0 (!%p19094_p5), %v24810_v20 }
0x2061   : > { %24837 = vmatpush3.bf16.msra.mxu0 (!%p19094_p5), %v24810_v20  ;;  %v18564_v14 = vand.u32 (!%p19094_p5), 4294901760, %v18563_v34 }
0x2063   : > { %24801 = vmatpush3.bf16.msra.mxu1 %v29447_v3 }
0x2064   : > { %24803 = vmatprep.subr.bf16.mxu1 %v29453_v24 }
0x2067   : > { %24805 = vmatpush3.bf16.msra.mxu1 %v29453_v24 }
0x2068   : > { %24807 = vmatprep.subr.bf16.mxu1 %v29459_v63 }
0x206b   : > { %24809 = vmatpush3.bf16.msra.mxu1 %v29459_v63 }
0x206c   : > { %24811 = vmatprep.subr.bf16.mxu1 (!%p19094_p5), %v24810_v20 }
0x206e   : > { %22870 = vmatmul.mubr.f32.vlgmr.msra.gmra.mrb[84].mxu1 %v17898_v9  ;;  %v24814_v9 = vpack.c.bf16 (!%p19094_p5), %v18468_v54, %v18465_v48 }
0x206f   : > { %24813 = vmatpush3.bf16.msra.mxu1 (!%p19094_p5), %v24810_v20 }
0x2070   : > { %24815 = vmatprep.subr.bf16.mxu1 (!%p19094_p5), %v24814_v9  ;;  %24839 = vmatprep.subr.bf16.mxu0 (!%p19094_p5), %v24814_v9 }
0x2071   : > { %24841 = vmatpush3.bf16.msra.mxu0 (!%p19094_p5), %v24814_v9 }
0x2073   : > { %24817 = vmatpush3.bf16.msra.mxu1 (!%p19094_p5), %v24814_v9 }
0x2141   : > { %v22871_v35 = vpop.f32.mrb[84].mxu1 }
0x2142   : > { %v24901_v43 = vadd.f32 %v22871_v35, %v17807_v19  ;;  %v18385_v7 = vpop.f32.mrb[85].mxu1 }
0x2143   : > { %v24902_v36 = vadd.f32 %v18385_v7, %v17807_v19  ;;  %v18558_v19 = vsub.f32 (!%p19094_p5), %v18556_v53, %v18557_v31  ;;  %v18565_v7 = vsub.f32 (!%p19094_p5), %v18563_v34, %v18564_v14 }
0x2144   : > { %v18396_v6 = vadd.f32 %v24901_v43, %v29421_v28  ;;  %v24842_v43 = vpack.c.bf16 (!%p19094_p5), %v18557_v31, %v18550_v62 }
0x2145   : > { %v18395_v3 = vadd.f32 %v24902_v36, %v29370_v47  ;;  %v18572_v36 = vsub.f32 (!%p19094_p5), %v18570_v23, %v18571_v17 }
0x2146   : > { %v18400_v61 = vsel %vm609_vm1, %v18396_v6, 0.0  ;;  %24843 = vmatprep.subr.bf16.mxu0 (!%p19094_p5), %v24842_v43 }
0x2147   : > { %18401 = vadd.xlane.f32.xlu1 %v18400_v61  ;;  %v18397_v24 = vsel %vm609_vm1, %v18395_v3, 0.0  ;;  %v18559_v61 = vand.u32 (!%p19094_p5), 4294901760, %v18558_v19 }
0x2148   : > { %18398 = vadd.xlane.f32.xlu0 %v18397_v24 }
0x21d4   : > { %v18402_v63 = vpop.xlane.xlu1 %18401 }
0x21d5   : > { %v18404_v56 = vmul.f32 0.03125, %v18402_v63  ;;  %v18399_v41 = vpop.xlane.xlu0 %18398  ;;  %v18566_v63 = vand.u32 (!%p19094_p5), 4294901760, %v18565_v7 }
0x21d6   : > { %v18403_v49 = vmul.f32 0.03125, %v18399_v41 }
0x21d7   : > { %v18406_v32 = vsub.f32 %v18396_v6, %v18404_v56  ;;  %v18573_v56 = vand.u32 (!%p19094_p5), 4294901760, %v18572_v36 }
0x21d8   : > { %v18405_v0 = vsub.f32 %v18395_v3, %v18403_v49  ;;  %v18552_v3 = vand.u32 (!%p19094_p5), 4294901760, %v18551_v26 }
0x21d9   : > { %v18408_v2 = vmul.f32 %v18406_v32, %v18406_v32  ;;  %v24822_v49 = vpack.c.bf16 (!%p19094_p5), %v18573_v56, %v18566_v63 }
0x21da   : > { %v18407_v42 = vmul.f32 %v18405_v0, %v18405_v0  ;;  %v24818_v41 = vpack.c.bf16 (!%p19094_p5), %v18559_v61, %v18552_v3 }
0x21db   : > { %v18412_v11 = vsel %vm609_vm1, %v18408_v2, 0.0  ;;  %v24830_v2 = vpack.c.bf16 (!%p19094_p5), %v18570_v23, %v18563_v34 }
0x21dc   : > { %18413 = vadd.xlane.f32.xlu1 %v18412_v11  ;;  %v18409_v47 = vsel %vm609_vm1, %v18407_v42, 0.0  ;;  %24819 = vmatprep.subr.bf16.mxu1 (!%p19094_p5), %v24818_v41  ;;  %v19095_v42 = vld [vmem:[%s29542_s9] ss:$0 sm:$0xff] (!%p19094_p5) }
0x21dd   : > { %18410 = vadd.xlane.f32.xlu0 %v18409_v47 }
0x2269   : > { %v18414_v28 = vpop.xlane.xlu1 %18413 }
0x226a   : > { %v18416_v13 = vmul.f32 0.03125, %v18414_v28  ;;  %v18411_v22 = vpop.xlane.xlu0 %18410 }
0x226b   : > { %v18415_v5 = vmul.f32 0.03125, %v18411_v22 }
0x226c   : > { %v18418_v46 = vadd.f32 1e-05, %v18416_v13 }
0x226d   : > { %v18417_v37 = vadd.f32 1e-05, %v18415_v5 }
0x226e   : > { %25340 = vrsqrt.f32 %v18418_v46 }
0x226f   : > { %25342 = vrsqrt.f32 %v18417_v37 }
0x2278   : > { %v25341_v45 = vpop.eup %25340 }
0x2279   : > { %v25343_v1 = vpop.eup %25342  ;;  %v18422_v52 = vmul.f32 %v25341_v45, %v18406_v32  ;;  %v24846_v32 = vpack.c.bf16 (!%p19094_p5), %v18571_v17, %v18564_v14 }
0x227a   : > { %v18421_v60 = vmul.f32 %v25343_v1, %v18405_v0  ;;  %18440 = sbr.rel (%p19094_p5) target bundleno = 9078 (0x2376), region = 68  ;;  %v24826_v0 = vpack.c.bf16 (!%p19094_p5), %v18556_v53, %v18549_v44 }
0x227b   : > { %v18428_v55 = vmul.f32 %v18426_v30, %v18422_v52 }
0x227c   : > { %v18427_v21 = vmul.f32 %v18426_v30, %v18421_v60 }
0x227d   : > { %v18434_v40 = vadd.f32 %v19093_v39, %v18428_v55 }
0x227e   : > { %v18433_v18 = vadd.f32 %v19093_v39, %v18427_v21 }
0x227f   : > { %18436 = vst.msk [vmem:[#allocation2 + $0x8] sm:$0xff] %vm609_vm1, %v18434_v40  ;;  %v18456_v10 = vsel (!%p19094_p5), %vm609_vm1, %v18434_v40, 0 }
0x2280   : > { %18435 = vst.msk [vmem:[#allocation2] sm:$0xff] %vm609_vm1, %v18433_v18  ;;  %v18453_v38 = vsel (!%p19094_p5), %vm609_vm1, %v18433_v18, 0  ;;  %v29511_v25 = vand.u32 (!%p19094_p5), 4294901760, %v18456_v10 }
0x2281   : > { %v29509_v15 = vand.u32 4294901760, %v18453_v38 }
0x2282   : > { %v18538_v4 = vsub.f32 %v18456_v10, %v29511_v25 }
0x2283   : > { %v18528_v51 = vsub.f32 %v18453_v38, %v29509_v15 }
0x2284   : > { %v18539_v33 = vand.u32 4294901760, %v18538_v4 }
0x2285   : > { %v18529_v57 = vand.u32 4294901760, %v18528_v51 }
0x2286   : > { %v18540_v35 = vsub.f32 %v18538_v4, %v18539_v33 }
0x2287   : > { %v18530_v50 = vsub.f32 %v18528_v51, %v18529_v57  ;;  %22913 = vmatprep.mubr.f32.mxu0 %v18529_v57 }
0x2288   : > { %v18541_v24 = vand.u32 4294901760, %v18540_v35  ;;  %22914 = vmatmul.mubr.f32.vlgmr.msra.gmra.mrb[0].mxu0 %v18539_v33 }
0x2289   : > { %v18531_v6 = vand.u32 4294901760, %v18530_v50  ;;  %24845 = vmatpush3.bf16.msra.mxu0 %v24842_v43  ;;  %22924 = vmatprep.mubr.f32.mxu0 %v29509_v15 }
0x228a   : > { %24847 = vmatprep.subr.bf16.mxu0 %v24846_v32 }
0x228b   : > { %22880 = vmatprep.mubr.f32.mxu1 %v18531_v6 }
0x228c   : > { %22881 = vmatmul.mubr.f32.vlgmr.msra.gmra.mrb[0].mxu1 %v18541_v24 }
0x228d   : > { %24821 = vmatpush3.bf16.msra.mxu1 %v24818_v41  ;;  %22891 = vmatprep.mubr.f32.mxu1 %v29509_v15 }
0x228e   : > { %24823 = vmatprep.subr.bf16.mxu1 %v24822_v49  ;;  %24849 = vmatpush3.bf16.msra.mxu0 %v24846_v32 }
0x228f   : > { %24851 = vmatprep.subr.bf16.mxu0 %v24810_v20 }
0x2291   : > { %24825 = vmatpush3.bf16.msra.mxu1 %v24822_v49  ;;  %22925 = vmatmul.mubr.f32.vlgmr.msra.gmra.mrb[0].mxu0 %v29511_v25 }
0x2292   : > { %24827 = vmatprep.subr.bf16.mxu1 %v24826_v0  ;;  %24853 = vmatpush3.bf16.msra.mxu0 %v24810_v20 }
0x2293   : > { %24855 = vmatprep.subr.bf16.mxu0 %v24814_v9  ;;  %22935 = vmatprep.mubr.f32.mxu0 %v29509_v15 }
0x2294   : > { %22892 = vmatmul.mubr.f32.vlgmr.msra.gmra.mrb[0].mxu1 %v29511_v25 }
0x2295   : > { %24829 = vmatpush3.bf16.msra.mxu1 %v24826_v0  ;;  %22902 = vmatprep.mubr.f32.mxu1 %v18528_v51 }
0x2296   : > { %24831 = vmatprep.subr.bf16.mxu1 %v24830_v2  ;;  %24857 = vmatpush3.bf16.msra.mxu0 %v24814_v9 }
0x2299   : > { %24833 = vmatpush3.bf16.msra.mxu1 %v24830_v2  ;;  %22936 = vmatmul.mubr.f32.vlgmr.msra.gmra.mrb[0].mxu0 %v29511_v25 }
0x229c   : > { %22903 = vmatmul.mubr.f32.vlgmr.msra.gmra.mrb[0].mxu1 %v18538_v4 }
0x236c   : > { %v22937_v28 = vpop.f32.mrb[0].mxu0 }
0x236d   : > { %v18976_v5 = vpop.f32.mrb[1].mxu0 }
0x236f   : > { %v22904_v11 = vpop.f32.mrb[0].mxu1 }
0x2370   : > { %v25281_v47 = vadd.f32 %v22904_v11, %v19095_v42  ;;  %v18720_v13 = vpop.f32.mrb[1].mxu1 }
0x2371   : > { %v25283_v22 = vadd.f32 %v19095_v42, %v18720_v13 }
0x2372   : > { %v25282_v46 = vadd.f32 %v25281_v47, %v22937_v28 }
0x2373   : > { %v25284_v37 = vadd.f32 %v25283_v22, %v18976_v5 }
0x2374   : > { %18987 = vst [vmem:[%s29543_s10 + $0x8] sm:$0xff] %v25282_v46 }
0x2375   : > { %18986 = vst [vmem:[%s29543_s10] sm:$0xff] %v25284_v37 }
0x2376 PF: > { %s20_s13 = sadd.s32 1, %s25353_s13  }
0x2377   : > { %p17_p6 = scmp.ge.s32.totalorder %s20_s13, 4  }
0x2379   :  { %19 = sbr.rel (!%p17_p6) target bundleno = 2 (0x2), region = 109 }

</bundles_post_ra>
